<compile_context>
chip_gen: v5e
topology: v5e:2x2
jax: 0.10.0
libtpu: 0.0.40
codegen_flags: <defaults>
</compile_context>

<pallas_src>
import functools

import jax
import jax.numpy as jnp
from jax.experimental import pallas as pl
from jax.experimental.pallas import tpu as pltpu

LN_EPS = 1e-5


def feature_extractor_kernel(
    x_ref,          # (TILE_B, Din_p)  f32
    ln_in_ref,      # (3, Din_p)       f32   [gamma; beta; lane-mask]
    w_in_ref,       # (Din_p, Dh_p)    bf16
    hid_par_ref,    # (5, Dh_p)        f32   [ln_h gamma; ln_h beta; lane-mask; b_in; b_fcn]
    w_fcn_ref,      # (Dh_p, Dh_p)     bf16
    w_out_ref,      # (Dh_p, Dout_p)   bf16
    b_out_ref,      # (1, Dout_p)      f32
    o_ref,          # (TILE_B, Dout_p) f32
    *,
    n_layers: int,
    d_in: int,      # true (unpadded) input width
    d_hid: int,     # true (unpadded) hidden width
):
    x = x_ref[...]                       # f32
    ln_in = ln_in_ref[...]
    hp = hid_par_ref[...]

    # ---- input_norm: centered LayerNorm over the TRUE width -----------------
    # Padded x columns are zero, so the plain sum already equals the true-width
    # sum for the mean; the packed 0/1 lane mask keeps padded columns out of
    # the variance sum (where (0 - mu)^2 would otherwise leak in).
    inv_in = 1.0 / d_in
    mu = jnp.sum(x, axis=-1, keepdims=True) * inv_in
    xc = x - mu
    xcm = xc * ln_in[2:3, :]                                  # masked for variance only
    var = jnp.sum(xcm * xcm, axis=-1, keepdims=True) * inv_in
    xn = xc * jax.lax.rsqrt(var + LN_EPS) * ln_in[0:1, :] + ln_in[1:2, :]
    # padded gamma/beta are 0 -> padded columns of xn are exactly 0.

    # ---- input_layer (bf16 MXU inputs, f32 accumulation) --------------------
    h = jnp.dot(xn.astype(jnp.bfloat16), w_in_ref[...],
                preferred_element_type=jnp.float32) + hp[3:4, :]

    # ---- hidden_norm + ReLU --------------------------------------------------
    inv_h = 1.0 / d_hid
    mu = jnp.sum(h, axis=-1, keepdims=True) * inv_h
    hc = h - mu
    hcm = hc * hp[2:3, :]
    var = jnp.sum(hcm * hcm, axis=-1, keepdims=True) * inv_h
    hn = hc * jax.lax.rsqrt(var + LN_EPS) * hp[0:1, :] + hp[1:2, :]
    h = jnp.maximum(hn, 0.0)

    # ---- n_layers of shared-weight fcn + ReLU --------------------------------
    # Bias stays a (1, Dh_p) row: the add is an implicit sublane broadcast, so
    # no (tile_b, Dh_p) broadcast value is kept live across the loop.
    w_fcn = w_fcn_ref[...]
    b_fcn_row = hp[4:5, :]

    def fcn_body(_, hh):
        hh = jnp.dot(hh.astype(jnp.bfloat16), w_fcn,
                     preferred_element_type=jnp.float32)
        return jnp.maximum(hh + b_fcn_row, 0.0)

    h = jax.lax.fori_loop(0, n_layers, fcn_body, h, unroll=True)

    # ---- output_layer + ReLU --------------------------------------------------
    out = jnp.dot(h.astype(jnp.bfloat16), w_out_ref[...],
                  preferred_element_type=jnp.float32) + b_out_ref[...]
    o_ref[...] = jnp.maximum(out, 0.0).astype(o_ref.dtype)


def _round_up(n, m):
    return ((n + m - 1) // m) * m


def _pad2d(a, rows, cols):
    return jnp.pad(a, ((0, rows - a.shape[0]), (0, cols - a.shape[1])))


def _pad_cols(a, cols):
    return jnp.pad(a, ((0, 0), (0, cols - a.shape[1])))


def _choose_tile_b(B):
    # Aim for >= 4 grid steps so each v7x TensorCore gets >= 2 pipelined steps,
    # while minimizing batch padding waste; cap tile size at 512 rows.
    target_steps = 4
    tile_b = _round_up(-(-B // target_steps), 8)
    return max(8, min(tile_b, 512))


def _vmem_limit_bytes(tile_b, d_in_p, d_hid_p, d_out_p, single_buffer):
    wbuf = 1 if single_buffer else 2
    weight_bytes = wbuf * 2 * (d_in_p * d_hid_p + d_hid_p * d_hid_p + d_hid_p * d_out_p)
    param_bytes = wbuf * 4 * 8 * (d_in_p + d_hid_p + d_out_p)       # sublane-padded rows
    io_bytes = 2 * 4 * tile_b * (d_in_p + d_out_p)                   # double-buffered x / out
    act_bytes = 6 * 4 * tile_b * d_hid_p                             # h temporaries / spill headroom
    total = weight_bytes + param_bytes + io_bytes + act_bytes + (8 << 20)
    return int(min(max(total, 32 << 20), 64 << 20))


@functools.partial(jax.jit, static_argnames=("n_layers", "tile_b", "single_buffer_weights"))
def feature_extractor(x, params, *, n_layers, tile_b=None, single_buffer_weights=True):
    """x: (B, dim_input) f32.  params: dict from init_params (weights are (in, out))."""
    B, d_in = x.shape
    d_hid = params["w_in"].shape[1]
    d_out = params["w_out"].shape[1]

    # Lane-dense padding targets (outputs stored with unmasked full-lane vst).
    d_in_p = _round_up(d_in, 128)
    d_hid_p = _round_up(d_hid, 128)
    d_out_p = _round_up(d_out, 128)
    tb = _choose_tile_b(B) if tile_b is None else max(8, _round_up(min(tile_b, B), 8))
    b_pad = _round_up(B, tb)

    # Pad + pack operands (zero padding keeps LN / matmul math exact; the lane
    # masks keep padded columns out of the centered-variance sums).
    x_p = _pad2d(x, b_pad, d_in_p)
    mask_in = (jnp.arange(d_in_p) < d_in).astype(jnp.float32)[None, :]
    mask_h = (jnp.arange(d_hid_p) < d_hid).astype(jnp.float32)[None, :]
    ln_in = jnp.concatenate(
        [_pad_cols(params["ln_in_w"], d_in_p),
         _pad_cols(params["ln_in_b"], d_in_p),
         mask_in], axis=0)                                           # (3, Din_p)
    hid_par = jnp.concatenate(
        [_pad_cols(params["ln_h_w"], d_hid_p),
         _pad_cols(params["ln_h_b"], d_hid_p),
         mask_h,
         _pad_cols(params["b_in"], d_hid_p),
         _pad_cols(params["b_fcn"], d_hid_p)], axis=0)               # (5, Dh_p)
    b_out = _pad_cols(params["b_out"], d_out_p)                      # (1, Dout_p)
    w_in = _pad2d(params["w_in"], d_in_p, d_hid_p).astype(jnp.bfloat16)
    w_fcn = _pad2d(params["w_fcn"], d_hid_p, d_hid_p).astype(jnp.bfloat16)
    w_out = _pad2d(params["w_out"], d_hid_p, d_out_p).astype(jnp.bfloat16)

    resident = lambda i: (0, 0)   # weights/params: same block every grid step

    def resident_spec(shape):
        if single_buffer_weights:
            return pl.BlockSpec(shape, resident, pipeline_mode=pl.Buffered(1))
        return pl.BlockSpec(shape, resident)

    flops = 2 * b_pad * (d_in_p * d_hid_p + n_layers * d_hid_p * d_hid_p + d_hid_p * d_out_p)
    bytes_accessed = (4 * b_pad * (d_in_p + d_out_p)
                      + 2 * (d_in_p * d_hid_p + d_hid_p * d_hid_p + d_hid_p * d_out_p)
                      + 4 * (3 * d_in_p + 5 * d_hid_p + d_out_p))
    cost = pl.CostEstimate(flops=int(flops), transcendentals=int(2 * b_pad),
                           bytes_accessed=int(bytes_accessed))

    out_p = pl.pallas_call(
        functools.partial(feature_extractor_kernel,
                          n_layers=n_layers, d_in=d_in, d_hid=d_hid),
        out_shape=jax.ShapeDtypeStruct((b_pad, d_out_p), jnp.float32),
        grid=(b_pad // tb,),
        in_specs=[
            pl.BlockSpec((tb, d_in_p), lambda i: (i, 0)),   # x (double-buffered pipeline)
            resident_spec((3, d_in_p)),                     # input-norm gamma/beta/mask
            resident_spec((d_in_p, d_hid_p)),               # w_in (bf16)
            resident_spec((5, d_hid_p)),                    # hidden-norm g/b/mask, b_in, b_fcn
            resident_spec((d_hid_p, d_hid_p)),              # w_fcn (bf16)
            resident_spec((d_hid_p, d_out_p)),              # w_out (bf16)
            resident_spec((1, d_out_p)),                    # b_out
        ],
        out_specs=pl.BlockSpec((tb, d_out_p), lambda i: (i, 0)),
        compiler_params=pltpu.CompilerParams(
            dimension_semantics=("parallel",),              # v7x: shard batch over 2 TCs
            vmem_limit_bytes=_vmem_limit_bytes(tb, d_in_p, d_hid_p, d_out_p,
                                               single_buffer_weights),
        ),
        cost_estimate=cost,
    )(x_p, ln_in, w_in, hid_par, w_fcn, w_out, b_out)

    return out_p[:B, :d_out]


def init_params(key, dim_input, dim_hidden, dim_output):
    """Deterministic synthetic init. Linear weights stored as (in, out)."""
    ks = jax.random.split(key, 3)

    def lin(k, fan_in, fan_out):
        # torch.nn.Linear default: U(-1/sqrt(fan_in), 1/sqrt(fan_in))
        bound = 1.0 / jnp.sqrt(fan_in)
        kw, kb = jax.random.split(k)
        w = jax.random.uniform(kw, (fan_in, fan_out), jnp.float32, -bound, bound)
        b = jax.random.uniform(kb, (1, fan_out), jnp.float32, -bound, bound)
        return w, b

    w_in, b_in = lin(ks[0], dim_input, dim_hidden)
    w_fcn, b_fcn = lin(ks[1], dim_hidden, dim_hidden)
    w_out, b_out = lin(ks[2], dim_hidden, dim_output)

    return {
        # LayerNorm affine params (PyTorch default init: ones / zeros)
        "ln_in_w": jnp.ones((1, dim_input), jnp.float32),
        "ln_in_b": jnp.zeros((1, dim_input), jnp.float32),
        "ln_h_w": jnp.ones((1, dim_hidden), jnp.float32),
        "ln_h_b": jnp.zeros((1, dim_hidden), jnp.float32),
        "w_in": w_in, "b_in": b_in,
        "w_fcn": w_fcn, "b_fcn": b_fcn,
        "w_out": w_out, "b_out": b_out,
    }


def reference(x, p, n_layers):
    """Pure-JAX reference replicating the PyTorch forward (centered-variance
    LayerNorm like torch.nn.LayerNorm, with the same bf16-at-the-dot casting
    the kernel uses; everything else f32)."""
    def ln(v, g, b):
        mu = jnp.mean(v, -1, keepdims=True)
        vc = v - mu
        var = jnp.mean(vc * vc, -1, keepdims=True)
        return vc * jax.lax.rsqrt(var + LN_EPS) * g + b

    def dot_bf16(a, w):
        return jnp.dot(a.astype(jnp.bfloat16), w.astype(jnp.bfloat16),
                       preferred_element_type=jnp.float32)

    h = ln(x, p["ln_in_w"], p["ln_in_b"])
    h = dot_bf16(h, p["w_in"]) + p["b_in"]
    h = jnp.maximum(ln(h, p["ln_h_w"], p["ln_h_b"]), 0.0)
    for _ in range(n_layers):
        h = jnp.maximum(dot_bf16(h, p["w_fcn"]) + p["b_fcn"], 0.0)
    return jnp.maximum(dot_bf16(h, p["w_out"]) + p["b_out"], 0.0)


if __name__ == "__main__":
    n_layers = 3
    # Non-128-aligned dims + non-tile-aligned batch exercise the lane-dense
    # padding path (kernel arrays are padded to 128/256/128; batch -> 4 tiles).
    B, dim_input, dim_hidden, dim_output = 500, 96, 192, 48

    key = jax.random.PRNGKey(0)
    kx, kp = jax.random.split(key)
    x = jax.random.normal(kx, (B, dim_input), jnp.float32)
    params = init_params(kp, dim_input, dim_hidden, dim_output)

    try:
        out = feature_extractor(x, params, n_layers=n_layers)
        out = jax.block_until_ready(out)
    except Exception:
        # Fallback if pipeline_mode=pl.Buffered(1) is rejected by this jax version.
        out = feature_extractor(x, params, n_layers=n_layers,
                                single_buffer_weights=False)
        out = jax.block_until_ready(out)

    ref = reference(x, params, n_layers)
    assert out.shape == (B, dim_output)
    assert jnp.allclose(out, ref, atol=2e-3, rtol=2e-3), (
        f"mismatch vs reference: max|diff|={float(jnp.max(jnp.abs(out - ref)))}")

    print("KERNEL_OK")
</pallas_src>

<mosaic_0001>
module attributes {stable_mosaic.version = 11 : i64} {
  func.func @feature_extractor_kernel(%arg0: i32, %arg1: memref<128x128xf32, #tpu.memory_space<vmem>>, %arg2: memref<3x128xf32, #tpu.memory_space<vmem>>, %arg3: memref<128x256xbf16, #tpu.memory_space<vmem>>, %arg4: memref<5x256xf32, #tpu.memory_space<vmem>>, %arg5: memref<256x256xbf16, #tpu.memory_space<vmem>>, %arg6: memref<256x128xbf16, #tpu.memory_space<vmem>>, %arg7: memref<1x128xf32, #tpu.memory_space<vmem>>, %arg8: memref<128x128xf32, #tpu.memory_space<vmem>>) attributes {dimension_semantics = [#tpu.dimension_semantics<parallel>], iteration_bounds = array<i64: 4>, scalar_prefetch = 0 : i64, scratch_operands = 0 : i64, tpu.core_type = #tpu.core_type<tc>, window_params = [{transform_indices = @transform_0, window_bounds = array<i64: 128, 128>}, {pipeline_mode = #tpu.pipeline_mode<synchronous>, transform_indices = @transform_1, window_bounds = array<i64: 3, 128>}, {pipeline_mode = #tpu.pipeline_mode<synchronous>, transform_indices = @transform_2, window_bounds = array<i64: 128, 256>}, {pipeline_mode = #tpu.pipeline_mode<synchronous>, transform_indices = @transform_3, window_bounds = array<i64: 5, 256>}, {pipeline_mode = #tpu.pipeline_mode<synchronous>, transform_indices = @transform_4, window_bounds = array<i64: 256, 256>}, {pipeline_mode = #tpu.pipeline_mode<synchronous>, transform_indices = @transform_5, window_bounds = array<i64: 256, 128>}, {pipeline_mode = #tpu.pipeline_mode<synchronous>, transform_indices = @transform_6, window_bounds = array<i64: 1, 128>}, {transform_indices = @transform_7, window_bounds = array<i64: 128, 128>}]} {
    %c0 = arith.constant 0 : index
    %c0_0 = arith.constant 0 : index
    %0 = vector.load %arg1[%c0, %c0_0] : memref<128x128xf32, #tpu.memory_space<vmem>>, vector<128x128xf32>
    %c0_1 = arith.constant 0 : index
    %c0_2 = arith.constant 0 : index
    %1 = vector.load %arg2[%c0_1, %c0_2] : memref<3x128xf32, #tpu.memory_space<vmem>>, vector<3x128xf32>
    %c0_3 = arith.constant 0 : index
    %c0_4 = arith.constant 0 : index
    %2 = vector.load %arg4[%c0_3, %c0_4] : memref<5x256xf32, #tpu.memory_space<vmem>>, vector<5x256xf32>
    %cst = arith.constant dense<0.000000e+00> : vector<128xf32>
    %3 = vector.multi_reduction <add>, %0, %cst [1] : vector<128x128xf32> to vector<128xf32>
    %4 = vector.shape_cast %3 : vector<128xf32> to vector<128x1xf32>
    %cst_5 = arith.constant 0.010416667 : f32
    %5 = vector.broadcast %cst_5 : f32 to vector<128x1xf32>
    %6 = arith.mulf %4, %5 : vector<128x1xf32>
    %7 = vector.broadcast %6 : vector<128x1xf32> to vector<128x128xf32>
    %8 = arith.subf %0, %7 : vector<128x128xf32>
    %9 = vector.extract_strided_slice %1 {offsets = [2, 0], sizes = [1, 128], strides = [1, 1]} : vector<3x128xf32> to vector<1x128xf32>
    %10 = vector.broadcast %9 : vector<1x128xf32> to vector<128x128xf32>
    %11 = arith.mulf %8, %10 : vector<128x128xf32>
    %12 = arith.mulf %11, %11 : vector<128x128xf32>
    %cst_6 = arith.constant dense<0.000000e+00> : vector<128xf32>
    %13 = vector.multi_reduction <add>, %12, %cst_6 [1] : vector<128x128xf32> to vector<128xf32>
    %14 = vector.shape_cast %13 : vector<128xf32> to vector<128x1xf32>
    %cst_7 = arith.constant 0.010416667 : f32
    %15 = vector.broadcast %cst_7 : f32 to vector<128x1xf32>
    %16 = arith.mulf %14, %15 : vector<128x1xf32>
    %cst_8 = arith.constant 9.99999974E-6 : f32
    %17 = vector.broadcast %cst_8 : f32 to vector<128x1xf32>
    %18 = arith.addf %16, %17 : vector<128x1xf32>
    %19 = math.rsqrt %18 : vector<128x1xf32>
    %20 = vector.broadcast %19 : vector<128x1xf32> to vector<128x128xf32>
    %21 = arith.mulf %8, %20 : vector<128x128xf32>
    %22 = vector.extract_strided_slice %1 {offsets = [0, 0], sizes = [1, 128], strides = [1, 1]} : vector<3x128xf32> to vector<1x128xf32>
    %23 = vector.broadcast %22 : vector<1x128xf32> to vector<128x128xf32>
    %24 = arith.mulf %21, %23 : vector<128x128xf32>
    %25 = vector.extract_strided_slice %1 {offsets = [1, 0], sizes = [1, 128], strides = [1, 1]} : vector<3x128xf32> to vector<1x128xf32>
    %26 = vector.broadcast %25 : vector<1x128xf32> to vector<128x128xf32>
    %27 = arith.addf %24, %26 : vector<128x128xf32>
    %28 = arith.truncf %27 : vector<128x128xf32> to vector<128x128xbf16>
    %c0_9 = arith.constant 0 : index
    %c0_10 = arith.constant 0 : index
    %29 = vector.load %arg3[%c0_9, %c0_10] : memref<128x256xbf16, #tpu.memory_space<vmem>>, vector<128x256xbf16>
    %cst_11 = arith.constant dense<0.000000e+00> : vector<128x256xf32>
    %30 = tpu.matmul %28, %29, %cst_11 {dimension_numbers = #tpu.dot_dimension_numbers<[1], [0], [0], [1], [0, 0, 1, 1], [], []>} : vector<128x128xbf16>, vector<128x256xbf16>, vector<128x256xf32> -> vector<128x256xf32>
    %31 = vector.extract_strided_slice %2 {offsets = [3, 0], sizes = [1, 256], strides = [1, 1]} : vector<5x256xf32> to vector<1x256xf32>
    %32 = vector.broadcast %31 : vector<1x256xf32> to vector<128x256xf32>
    %33 = arith.addf %30, %32 : vector<128x256xf32>
    %cst_12 = arith.constant dense<0.000000e+00> : vector<128xf32>
    %34 = vector.multi_reduction <add>, %33, %cst_12 [1] : vector<128x256xf32> to vector<128xf32>
    %35 = vector.shape_cast %34 : vector<128xf32> to vector<128x1xf32>
    %cst_13 = arith.constant 0.00520833349 : f32
    %36 = vector.broadcast %cst_13 : f32 to vector<128x1xf32>
    %37 = arith.mulf %35, %36 : vector<128x1xf32>
    %38 = vector.broadcast %37 : vector<128x1xf32> to vector<128x256xf32>
    %39 = arith.subf %33, %38 : vector<128x256xf32>
    %40 = vector.extract_strided_slice %2 {offsets = [2, 0], sizes = [1, 256], strides = [1, 1]} : vector<5x256xf32> to vector<1x256xf32>
    %41 = vector.broadcast %40 : vector<1x256xf32> to vector<128x256xf32>
    %42 = arith.mulf %39, %41 : vector<128x256xf32>
    %43 = arith.mulf %42, %42 : vector<128x256xf32>
    %cst_14 = arith.constant dense<0.000000e+00> : vector<128xf32>
    %44 = vector.multi_reduction <add>, %43, %cst_14 [1] : vector<128x256xf32> to vector<128xf32>
    %45 = vector.shape_cast %44 : vector<128xf32> to vector<128x1xf32>
    %cst_15 = arith.constant 0.00520833349 : f32
    %46 = vector.broadcast %cst_15 : f32 to vector<128x1xf32>
    %47 = arith.mulf %45, %46 : vector<128x1xf32>
    %cst_16 = arith.constant 9.99999974E-6 : f32
    %48 = vector.broadcast %cst_16 : f32 to vector<128x1xf32>
    %49 = arith.addf %47, %48 : vector<128x1xf32>
    %50 = math.rsqrt %49 : vector<128x1xf32>
    %51 = vector.broadcast %50 : vector<128x1xf32> to vector<128x256xf32>
    %52 = arith.mulf %39, %51 : vector<128x256xf32>
    %53 = vector.extract_strided_slice %2 {offsets = [0, 0], sizes = [1, 256], strides = [1, 1]} : vector<5x256xf32> to vector<1x256xf32>
    %54 = vector.broadcast %53 : vector<1x256xf32> to vector<128x256xf32>
    %55 = arith.mulf %52, %54 : vector<128x256xf32>
    %56 = vector.extract_strided_slice %2 {offsets = [1, 0], sizes = [1, 256], strides = [1, 1]} : vector<5x256xf32> to vector<1x256xf32>
    %57 = vector.broadcast %56 : vector<1x256xf32> to vector<128x256xf32>
    %58 = arith.addf %55, %57 : vector<128x256xf32>
    %cst_17 = arith.constant 0.000000e+00 : f32
    %59 = vector.broadcast %cst_17 : f32 to vector<128x256xf32>
    %60 = arith.maximumf %58, %59 : vector<128x256xf32>
    %c0_18 = arith.constant 0 : index
    %c0_19 = arith.constant 0 : index
    %61 = vector.load %arg5[%c0_18, %c0_19] : memref<256x256xbf16, #tpu.memory_space<vmem>>, vector<256x256xbf16>
    %62 = vector.extract_strided_slice %2 {offsets = [4, 0], sizes = [1, 256], strides = [1, 1]} : vector<5x256xf32> to vector<1x256xf32>
    %c0_i32 = arith.constant 0 : i32
    %63 = arith.truncf %60 : vector<128x256xf32> to vector<128x256xbf16>
    %cst_20 = arith.constant dense<0.000000e+00> : vector<128x256xf32>
    %64 = tpu.matmul %63, %61, %cst_20 {dimension_numbers = #tpu.dot_dimension_numbers<[1], [0], [0], [1], [0, 0, 1, 1], [], []>} : vector<128x256xbf16>, vector<256x256xbf16>, vector<128x256xf32> -> vector<128x256xf32>
    %65 = vector.broadcast %62 : vector<1x256xf32> to vector<128x256xf32>
    %66 = arith.addf %64, %65 : vector<128x256xf32>
    %cst_21 = arith.constant 0.000000e+00 : f32
    %67 = vector.broadcast %cst_21 : f32 to vector<128x256xf32>
    %68 = arith.maximumf %66, %67 : vector<128x256xf32>
    %c1_i32 = arith.constant 1 : i32
    %69 = arith.truncf %68 : vector<128x256xf32> to vector<128x256xbf16>
    %cst_22 = arith.constant dense<0.000000e+00> : vector<128x256xf32>
    %70 = tpu.matmul %69, %61, %cst_22 {dimension_numbers = #tpu.dot_dimension_numbers<[1], [0], [0], [1], [0, 0, 1, 1], [], []>} : vector<128x256xbf16>, vector<256x256xbf16>, vector<128x256xf32> -> vector<128x256xf32>
    %71 = vector.broadcast %62 : vector<1x256xf32> to vector<128x256xf32>
    %72 = arith.addf %70, %71 : vector<128x256xf32>
    %cst_23 = arith.constant 0.000000e+00 : f32
    %73 = vector.broadcast %cst_23 : f32 to vector<128x256xf32>
    %74 = arith.maximumf %72, %73 : vector<128x256xf32>
    %c2_i32 = arith.constant 2 : i32
    %75 = arith.truncf %74 : vector<128x256xf32> to vector<128x256xbf16>
    %cst_24 = arith.constant dense<0.000000e+00> : vector<128x256xf32>
    %76 = tpu.matmul %75, %61, %cst_24 {dimension_numbers = #tpu.dot_dimension_numbers<[1], [0], [0], [1], [0, 0, 1, 1], [], []>} : vector<128x256xbf16>, vector<256x256xbf16>, vector<128x256xf32> -> vector<128x256xf32>
    %77 = vector.broadcast %62 : vector<1x256xf32> to vector<128x256xf32>
    %78 = arith.addf %76, %77 : vector<128x256xf32>
    %cst_25 = arith.constant 0.000000e+00 : f32
    %79 = vector.broadcast %cst_25 : f32 to vector<128x256xf32>
    %80 = arith.maximumf %78, %79 : vector<128x256xf32>
    %81 = arith.truncf %80 : vector<128x256xf32> to vector<128x256xbf16>
    %c0_26 = arith.constant 0 : index
    %c0_27 = arith.constant 0 : index
    %82 = vector.load %arg6[%c0_26, %c0_27] : memref<256x128xbf16, #tpu.memory_space<vmem>>, vector<256x128xbf16>
    %cst_28 = arith.constant dense<0.000000e+00> : vector<128x128xf32>
    %83 = tpu.matmul %81, %82, %cst_28 {dimension_numbers = #tpu.dot_dimension_numbers<[1], [0], [0], [1], [0, 0, 1, 1], [], []>} : vector<128x256xbf16>, vector<256x128xbf16>, vector<128x128xf32> -> vector<128x128xf32>
    %c0_29 = arith.constant 0 : index
    %c0_30 = arith.constant 0 : index
    %84 = vector.load %arg7[%c0_29, %c0_30] : memref<1x128xf32, #tpu.memory_space<vmem>>, vector<1x128xf32>
    %85 = vector.broadcast %84 : vector<1x128xf32> to vector<128x128xf32>
    %86 = arith.addf %83, %85 : vector<128x128xf32>
    %cst_31 = arith.constant 0.000000e+00 : f32
    %87 = vector.broadcast %cst_31 : f32 to vector<128x128xf32>
    %88 = arith.maximumf %86, %87 : vector<128x128xf32>
    %c0_32 = arith.constant 0 : index
    %c0_33 = arith.constant 0 : index
    %89 = vector.load %arg8[%c0_32, %c0_33] : memref<128x128xf32, #tpu.memory_space<vmem>>, vector<128x128xf32>
    tpu.vector_store %arg8[%c0_32, %c0_33], %88 {strides = array<i32>} : memref<128x128xf32, #tpu.memory_space<vmem>>, vector<128x128xf32>,
    return
  }
  func.func @transform_0(%arg0: i32) -> (i32, i32) {
    %c0_i32 = arith.constant 0 : i32
    %c0_i32_0 = arith.constant 0 : i32
    return %arg0, %c0_i32 : i32, i32
  }
  func.func @transform_1(%arg0: i32) -> (i32, i32) {
    %c0_i32 = arith.constant 0 : i32
    %c0_i32_0 = arith.constant 0 : i32
    %c0_i32_1 = arith.constant 0 : i32
    return %c0_i32, %c0_i32_0 : i32, i32
  }
  func.func @transform_2(%arg0: i32) -> (i32, i32) {
    %c0_i32 = arith.constant 0 : i32
    %c0_i32_0 = arith.constant 0 : i32
    %c0_i32_1 = arith.constant 0 : i32
    return %c0_i32, %c0_i32_0 : i32, i32
  }
  func.func @transform_3(%arg0: i32) -> (i32, i32) {
    %c0_i32 = arith.constant 0 : i32
    %c0_i32_0 = arith.constant 0 : i32
    %c0_i32_1 = arith.constant 0 : i32
    return %c0_i32, %c0_i32_0 : i32, i32
  }
  func.func @transform_4(%arg0: i32) -> (i32, i32) {
    %c0_i32 = arith.constant 0 : i32
    %c0_i32_0 = arith.constant 0 : i32
    %c0_i32_1 = arith.constant 0 : i32
    return %c0_i32, %c0_i32_0 : i32, i32
  }
  func.func @transform_5(%arg0: i32) -> (i32, i32) {
    %c0_i32 = arith.constant 0 : i32
    %c0_i32_0 = arith.constant 0 : i32
    %c0_i32_1 = arith.constant 0 : i32
    return %c0_i32, %c0_i32_0 : i32, i32
  }
  func.func @transform_6(%arg0: i32) -> (i32, i32) {
    %c0_i32 = arith.constant 0 : i32
    %c0_i32_0 = arith.constant 0 : i32
    %c0_i32_1 = arith.constant 0 : i32
    return %c0_i32, %c0_i32_0 : i32, i32
  }
  func.func @transform_7(%arg0: i32) -> (i32, i32) {
    %c0_i32 = arith.constant 0 : i32
    %c0_i32_0 = arith.constant 0 : i32
    return %arg0, %c0_i32 : i32, i32
  }
}

module attributes {stable_mosaic.version = 11 : i64} {
  func.func @feature_extractor_kernel(%arg0: i32, %arg1: memref<128x128xf32, #tpu.memory_space<vmem>>, %arg2: memref<3x128xf32, #tpu.memory_space<vmem>>, %arg3: memref<128x256xbf16, #tpu.memory_space<vmem>>, %arg4: memref<5x256xf32, #tpu.memory_space<vmem>>, %arg5: memref<256x256xbf16, #tpu.memory_space<vmem>>, %arg6: memref<256x128xbf16, #tpu.memory_space<vmem>>, %arg7: memref<1x128xf32, #tpu.memory_space<vmem>>, %arg8: memref<128x128xf32, #tpu.memory_space<vmem>>) attributes {dimension_semantics = [#tpu.dimension_semantics<parallel>], iteration_bounds = array<i64: 4>, scalar_prefetch = 0 : i64, scratch_operands = 0 : i64, tpu.core_type = #tpu.core_type<tc>, window_params = [{transform_indices = @transform_0, window_bounds = array<i64: 128, 128>}, {pipeline_mode = #tpu.pipeline_mode<synchronous>, transform_indices = @transform_1, window_bounds = array<i64: 3, 128>}, {pipeline_mode = #tpu.pipeline_mode<synchronous>, transform_indices = @transform_2, window_bounds = array<i64: 128, 256>}, {pipeline_mode = #tpu.pipeline_mode<synchronous>, transform_indices = @transform_3, window_bounds = array<i64: 5, 256>}, {pipeline_mode = #tpu.pipeline_mode<synchronous>, transform_indices = @transform_4, window_bounds = array<i64: 256, 256>}, {pipeline_mode = #tpu.pipeline_mode<synchronous>, transform_indices = @transform_5, window_bounds = array<i64: 256, 128>}, {pipeline_mode = #tpu.pipeline_mode<synchronous>, transform_indices = @transform_6, window_bounds = array<i64: 1, 128>}, {transform_indices = @transform_7, window_bounds = array<i64: 128, 128>}]} {
    %c0 = arith.constant 0 : index
    %c0_0 = arith.constant 0 : index
    %0 = vector.load %arg1[%c0, %c0_0] : memref<128x128xf32, #tpu.memory_space<vmem>>, vector<128x128xf32>
    %c0_1 = arith.constant 0 : index
    %c0_2 = arith.constant 0 : index
    %1 = vector.load %arg2[%c0_1, %c0_2] : memref<3x128xf32, #tpu.memory_space<vmem>>, vector<3x128xf32>
    %c0_3 = arith.constant 0 : index
    %c0_4 = arith.constant 0 : index
    %2 = vector.load %arg4[%c0_3, %c0_4] : memref<5x256xf32, #tpu.memory_space<vmem>>, vector<5x256xf32>
    %cst = arith.constant dense<0.000000e+00> : vector<128xf32>
    %3 = vector.multi_reduction <add>, %0, %cst [1] : vector<128x128xf32> to vector<128xf32>
    %4 = vector.shape_cast %3 : vector<128xf32> to vector<128x1xf32>
    %cst_5 = arith.constant 0.010416667 : f32
    %5 = vector.broadcast %cst_5 : f32 to vector<128x1xf32>
    %6 = arith.mulf %4, %5 : vector<128x1xf32>
    %7 = vector.broadcast %6 : vector<128x1xf32> to vector<128x128xf32>
    %8 = arith.subf %0, %7 : vector<128x128xf32>
    %9 = vector.extract_strided_slice %1 {offsets = [2, 0], sizes = [1, 128], strides = [1, 1]} : vector<3x128xf32> to vector<1x128xf32>
    %10 = vector.broadcast %9 : vector<1x128xf32> to vector<128x128xf32>
    %11 = arith.mulf %8, %10 : vector<128x128xf32>
    %12 = arith.mulf %11, %11 : vector<128x128xf32>
    %cst_6 = arith.constant dense<0.000000e+00> : vector<128xf32>
    %13 = vector.multi_reduction <add>, %12, %cst_6 [1] : vector<128x128xf32> to vector<128xf32>
    %14 = vector.shape_cast %13 : vector<128xf32> to vector<128x1xf32>
    %cst_7 = arith.constant 0.010416667 : f32
    %15 = vector.broadcast %cst_7 : f32 to vector<128x1xf32>
    %16 = arith.mulf %14, %15 : vector<128x1xf32>
    %cst_8 = arith.constant 9.99999974E-6 : f32
    %17 = vector.broadcast %cst_8 : f32 to vector<128x1xf32>
    %18 = arith.addf %16, %17 : vector<128x1xf32>
    %19 = math.rsqrt %18 : vector<128x1xf32>
    %20 = vector.broadcast %19 : vector<128x1xf32> to vector<128x128xf32>
    %21 = arith.mulf %8, %20 : vector<128x128xf32>
    %22 = vector.extract_strided_slice %1 {offsets = [0, 0], sizes = [1, 128], strides = [1, 1]} : vector<3x128xf32> to vector<1x128xf32>
    %23 = vector.broadcast %22 : vector<1x128xf32> to vector<128x128xf32>
    %24 = arith.mulf %21, %23 : vector<128x128xf32>
    %25 = vector.extract_strided_slice %1 {offsets = [1, 0], sizes = [1, 128], strides = [1, 1]} : vector<3x128xf32> to vector<1x128xf32>
    %26 = vector.broadcast %25 : vector<1x128xf32> to vector<128x128xf32>
    %27 = arith.addf %24, %26 : vector<128x128xf32>
    %28 = arith.truncf %27 : vector<128x128xf32> to vector<128x128xbf16>
    %c0_9 = arith.constant 0 : index
    %c0_10 = arith.constant 0 : index
    %29 = vector.load %arg3[%c0_9, %c0_10] : memref<128x256xbf16, #tpu.memory_space<vmem>>, vector<128x256xbf16>
    %cst_11 = arith.constant dense<0.000000e+00> : vector<128x256xf32>
    %30 = tpu.matmul %28, %29, %cst_11 {dimension_numbers = #tpu.dot_dimension_numbers<[1], [0], [0], [1], [0, 0, 1, 1], [], []>} : vector<128x128xbf16>, vector<128x256xbf16>, vector<128x256xf32> -> vector<128x256xf32>
    %31 = vector.extract_strided_slice %2 {offsets = [3, 0], sizes = [1, 256], strides = [1, 1]} : vector<5x256xf32> to vector<1x256xf32>
    %32 = vector.broadcast %31 : vector<1x256xf32> to vector<128x256xf32>
    %33 = arith.addf %30, %32 : vector<128x256xf32>
    %cst_12 = arith.constant dense<0.000000e+00> : vector<128xf32>
    %34 = vector.multi_reduction <add>, %33, %cst_12 [1] : vector<128x256xf32> to vector<128xf32>
    %35 = vector.shape_cast %34 : vector<128xf32> to vector<128x1xf32>
    %cst_13 = arith.constant 0.00520833349 : f32
    %36 = vector.broadcast %cst_13 : f32 to vector<128x1xf32>
    %37 = arith.mulf %35, %36 : vector<128x1xf32>
    %38 = vector.broadcast %37 : vector<128x1xf32> to vector<128x256xf32>
    %39 = arith.subf %33, %38 : vector<128x256xf32>
    %40 = vector.extract_strided_slice %2 {offsets = [2, 0], sizes = [1, 256], strides = [1, 1]} : vector<5x256xf32> to vector<1x256xf32>
    %41 = vector.broadcast %40 : vector<1x256xf32> to vector<128x256xf32>
    %42 = arith.mulf %39, %41 : vector<128x256xf32>
    %43 = arith.mulf %42, %42 : vector<128x256xf32>
    %cst_14 = arith.constant dense<0.000000e+00> : vector<128xf32>
    %44 = vector.multi_reduction <add>, %43, %cst_14 [1] : vector<128x256xf32> to vector<128xf32>
    %45 = vector.shape_cast %44 : vector<128xf32> to vector<128x1xf32>
    %cst_15 = arith.constant 0.00520833349 : f32
    %46 = vector.broadcast %cst_15 : f32 to vector<128x1xf32>
    %47 = arith.mulf %45, %46 : vector<128x1xf32>
    %cst_16 = arith.constant 9.99999974E-6 : f32
    %48 = vector.broadcast %cst_16 : f32 to vector<128x1xf32>
    %49 = arith.addf %47, %48 : vector<128x1xf32>
    %50 = math.rsqrt %49 : vector<128x1xf32>
    %51 = vector.broadcast %50 : vector<128x1xf32> to vector<128x256xf32>
    %52 = arith.mulf %39, %51 : vector<128x256xf32>
    %53 = vector.extract_strided_slice %2 {offsets = [0, 0], sizes = [1, 256], strides = [1, 1]} : vector<5x256xf32> to vector<1x256xf32>
    %54 = vector.broadcast %53 : vector<1x256xf32> to vector<128x256xf32>
    %55 = arith.mulf %52, %54 : vector<128x256xf32>
    %56 = vector.extract_strided_slice %2 {offsets = [1, 0], sizes = [1, 256], strides = [1, 1]} : vector<5x256xf32> to vector<1x256xf32>
    %57 = vector.broadcast %56 : vector<1x256xf32> to vector<128x256xf32>
    %58 = arith.addf %55, %57 : vector<128x256xf32>
    %cst_17 = arith.constant 0.000000e+00 : f32
    %59 = vector.broadcast %cst_17 : f32 to vector<128x256xf32>
    %60 = arith.maximumf %58, %59 : vector<128x256xf32>
    %c0_18 = arith.constant 0 : index
    %c0_19 = arith.constant 0 : index
    %61 = vector.load %arg5[%c0_18, %c0_19] : memref<256x256xbf16, #tpu.memory_space<vmem>>, vector<256x256xbf16>
    %62 = vector.extract_strided_slice %2 {offsets = [4, 0], sizes = [1, 256], strides = [1, 1]} : vector<5x256xf32> to vector<1x256xf32>
    %c0_i32 = arith.constant 0 : i32
    %63 = arith.truncf %60 : vector<128x256xf32> to vector<128x256xbf16>
    %cst_20 = arith.constant dense<0.000000e+00> : vector<128x256xf32>
    %64 = tpu.matmul %63, %61, %cst_20 {dimension_numbers = #tpu.dot_dimension_numbers<[1], [0], [0], [1], [0, 0, 1, 1], [], []>} : vector<128x256xbf16>, vector<256x256xbf16>, vector<128x256xf32> -> vector<128x256xf32>
    %65 = vector.broadcast %62 : vector<1x256xf32> to vector<128x256xf32>
    %66 = arith.addf %64, %65 : vector<128x256xf32>
    %cst_21 = arith.constant 0.000000e+00 : f32
    %67 = vector.broadcast %cst_21 : f32 to vector<128x256xf32>
    %68 = arith.maximumf %66, %67 : vector<128x256xf32>
    %c1_i32 = arith.constant 1 : i32
    %69 = arith.truncf %68 : vector<128x256xf32> to vector<128x256xbf16>
    %cst_22 = arith.constant dense<0.000000e+00> : vector<128x256xf32>
    %70 = tpu.matmul %69, %61, %cst_22 {dimension_numbers = #tpu.dot_dimension_numbers<[1], [0], [0], [1], [0, 0, 1, 1], [], []>} : vector<128x256xbf16>, vector<256x256xbf16>, vector<128x256xf32> -> vector<128x256xf32>
    %71 = vector.broadcast %62 : vector<1x256xf32> to vector<128x256xf32>
    %72 = arith.addf %70, %71 : vector<128x256xf32>
    %cst_23 = arith.constant 0.000000e+00 : f32
    %73 = vector.broadcast %cst_23 : f32 to vector<128x256xf32>
    %74 = arith.maximumf %72, %73 : vector<128x256xf32>
    %c2_i32 = arith.constant 2 : i32
    %75 = arith.truncf %74 : vector<128x256xf32> to vector<128x256xbf16>
    %cst_24 = arith.constant dense<0.000000e+00> : vector<128x256xf32>
    %76 = tpu.matmul %75, %61, %cst_24 {dimension_numbers = #tpu.dot_dimension_numbers<[1], [0], [0], [1], [0, 0, 1, 1], [], []>} : vector<128x256xbf16>, vector<256x256xbf16>, vector<128x256xf32> -> vector<128x256xf32>
    %77 = vector.broadcast %62 : vector<1x256xf32> to vector<128x256xf32>
    %78 = arith.addf %76, %77 : vector<128x256xf32>
    %cst_25 = arith.constant 0.000000e+00 : f32
    %79 = vector.broadcast %cst_25 : f32 to vector<128x256xf32>
    %80 = arith.maximumf %78, %79 : vector<128x256xf32>
    %81 = arith.truncf %80 : vector<128x256xf32> to vector<128x256xbf16>
    %c0_26 = arith.constant 0 : index
    %c0_27 = arith.constant 0 : index
    %82 = vector.load %arg6[%c0_26, %c0_27] : memref<256x128xbf16, #tpu.memory_space<vmem>>, vector<256x128xbf16>
    %cst_28 = arith.constant dense<0.000000e+00> : vector<128x128xf32>
    %83 = tpu.matmul %81, %82, %cst_28 {dimension_numbers = #tpu.dot_dimension_numbers<[1], [0], [0], [1], [0, 0, 1, 1], [], []>} : vector<128x256xbf16>, vector<256x128xbf16>, vector<128x128xf32> -> vector<128x128xf32>
    %c0_29 = arith.constant 0 : index
    %c0_30 = arith.constant 0 : index
    %84 = vector.load %arg7[%c0_29, %c0_30] : memref<1x128xf32, #tpu.memory_space<vmem>>, vector<1x128xf32>
    %85 = vector.broadcast %84 : vector<1x128xf32> to vector<128x128xf32>
    %86 = arith.addf %83, %85 : vector<128x128xf32>
    %cst_31 = arith.constant 0.000000e+00 : f32
    %87 = vector.broadcast %cst_31 : f32 to vector<128x128xf32>
    %88 = arith.maximumf %86, %87 : vector<128x128xf32>
    %c0_32 = arith.constant 0 : index
    %c0_33 = arith.constant 0 : index
    %89 = vector.load %arg8[%c0_32, %c0_33] : memref<128x128xf32, #tpu.memory_space<vmem>>, vector<128x128xf32>
    tpu.vector_store %arg8[%c0_32, %c0_33], %88 {strides = array<i32>} : memref<128x128xf32, #tpu.memory_space<vmem>>, vector<128x128xf32>,
    return
  }
  func.func @transform_0(%arg0: i32) -> (i32, i32) {
    %c0_i32 = arith.constant 0 : i32
    %c0_i32_0 = arith.constant 0 : i32
    return %arg0, %c0_i32 : i32, i32
  }
  func.func @transform_1(%arg0: i32) -> (i32, i32) {
    %c0_i32 = arith.constant 0 : i32
    %c0_i32_0 = arith.constant 0 : i32
    %c0_i32_1 = arith.constant 0 : i32
    return %c0_i32, %c0_i32_0 : i32, i32
  }
  func.func @transform_2(%arg0: i32) -> (i32, i32) {
    %c0_i32 = arith.constant 0 : i32
    %c0_i32_0 = arith.constant 0 : i32
    %c0_i32_1 = arith.constant 0 : i32
    return %c0_i32, %c0_i32_0 : i32, i32
  }
  func.func @transform_3(%arg0: i32) -> (i32, i32) {
    %c0_i32 = arith.constant 0 : i32
    %c0_i32_0 = arith.constant 0 : i32
    %c0_i32_1 = arith.constant 0 : i32
    return %c0_i32, %c0_i32_0 : i32, i32
  }
  func.func @transform_4(%arg0: i32) -> (i32, i32) {
    %c0_i32 = arith.constant 0 : i32
    %c0_i32_0 = arith.constant 0 : i32
    %c0_i32_1 = arith.constant 0 : i32
    return %c0_i32, %c0_i32_0 : i32, i32
  }
  func.func @transform_5(%arg0: i32) -> (i32, i32) {
    %c0_i32 = arith.constant 0 : i32
    %c0_i32_0 = arith.constant 0 : i32
    %c0_i32_1 = arith.constant 0 : i32
    return %c0_i32, %c0_i32_0 : i32, i32
  }
  func.func @transform_6(%arg0: i32) -> (i32, i32) {
    %c0_i32 = arith.constant 0 : i32
    %c0_i32_0 = arith.constant 0 : i32
    %c0_i32_1 = arith.constant 0 : i32
    return %c0_i32, %c0_i32_0 : i32, i32
  }
  func.func @transform_7(%arg0: i32) -> (i32, i32) {
    %c0_i32 = arith.constant 0 : i32
    %c0_i32_0 = arith.constant 0 : i32
    return %arg0, %c0_i32 : i32, i32
  }
}

</mosaic_0001>

<bundles_post_ra>
// kernel: feature_extractor.1
= control target key start
LH: loop header
LB: loop body
LE: loop exit
PB: predicated region body
PF: predicated region fallthrough
CT: control target
= control target key end

     0   :  { %s3124_s24 = smov 0   ;;  %s4562_s0 = inlined_call_operand.vmem [shape: f32[512,128], index: 0, kind: input, shape index: {}]   ;;  %s4563_s1 = inlined_call_operand.vmem [shape: f32[3,128], index: 1, kind: input, shape index: {}]   ;;  %s4564_s2 = inlined_call_operand.vmem [shape: bf16[128,256], index: 2, kind: input, shape index: {}]   ;;  %s4565_s3 = inlined_call_operand.vmem [shape: f32[5,256], index: 3, kind: input, shape index: {}]   ;;  %s4566_s4 = inlined_call_operand.vmem [shape: bf16[256,256], index: 4, kind: input, shape index: {}]   ;;  %s4567_s5 = inlined_call_operand.vmem [shape: bf16[256,128], index: 5, kind: input, shape index: {}]   ;;  %s4568_s6 = inlined_call_operand.vmem [shape: f32[1,128], index: 6, kind: input, shape index: {}]   ;;  %s4569_s7 = inlined_call_operand.vmem [shape: f32[512,128], index: 7, kind: output, shape index: {}]  }
   0x1 LB: > { %s2670_s25 = sadd.s32 4294967295, %s3082_s24   ;;  %p2674_p0 = scmp.ge.s32.totalorder %s3082_s24, 1  ;;  %s3082_s24 = sphi %s3124_s24, %s17_s24  }
   0x2   : > { %p238_p1 = scmp.lt.s32.totalorder %s3082_s24, 5 }
   0x4   : > { %p239_p2 = pnand %p2674_p0, %p238_p1 }
   0x6   : > { %242 = sbr.rel (%p239_p2) target bundleno = 1475 (0x5c3), region = 48 }
   0xb   : > { %s2675_s26 = sshll.u32 %s2670_s25, 4  ;;  %v3157_v9 = vld [vmem:[%s4563_s1] sm:$0x7]  ;;  %v2737_v63 = vld [vmem:[%s4564_s2 + $0x70] sm:$0xf] }
   0xc   : > { %p271_p3 = scmp.lt.s32.totalorder %s2675_s26, 63  ;;  %v3160_v13 = vperm.slane %v3157_v9, 2 }
   0xe   : > { %s4659_s26 = smov (!%p271_p3, %s2675_s26), 63 }
   0xf   : > { %s2676_s27 = sshll.u32 %s4659_s26, 3 }
  0x10   : > { %s3140_s30 = scalar_lea.vmem %s4562_s0, %s2676_s27  ;;  %s4526_s29 = scalar_lea.vmem %s4569_s7, %s2676_s27 }
  0x11   : > { %v284_v0 = vld [vmem:[%s3140_s30 + $0x10] sm:$0xff]  ;;  %v282_v1 = vld [vmem:[%s3140_s30] sm:$0xff]  ;;  %v285_v3 = vld [vmem:[%s3140_s30 + $0x18] sm:$0xff] }
  0x12   : > { %305 = vadd.xlane.f32.xlu1 %v284_v0  ;;  %301 = vadd.xlane.f32.xlu0 %v282_v1  ;;  %v286_v2 = vld [vmem:[%s3140_s30 + $0x20] sm:$0xff]  ;;  %v283_v4 = vld [vmem:[%s3140_s30 + $0x8] sm:$0xff]  ;;  %v288_v6 = vld [vmem:[%s3140_s30 + $0x30] sm:$0xff] }
  0x13   : > { %309 = vadd.xlane.f32.xlu2 %v286_v2  ;;  %v287_v5 = vld [vmem:[%s3140_s30 + $0x28] sm:$0xff]  ;;  %v289_v7 = vld [vmem:[%s3140_s30 + $0x38] sm:$0xff]  ;;  %v3151_v8 = vld [vmem:[%s3140_s30 + $0x40] sm:$0xff] }
  0x14   : > { %v3179_v30 = vld [vmem:[%s3140_s30 + $0x48] sm:$0xff]  ;;  %v3189_v39 = vld [vmem:[%s3140_s30 + $0x50] sm:$0xff]  ;;  %v3200_v48 = vld [vmem:[%s3140_s30 + $0x58] sm:$0xff] }
  0x15   : > { %v3197_v47 = vld [vmem:[%s3140_s30 + $0x68] sm:$0xff]  ;;  %v3209_v53 = vld [vmem:[%s3140_s30 + $0x70] sm:$0xff]  ;;  %v3212_v54 = vld [vmem:[%s3140_s30 + $0x60] sm:$0xff] }
  0x16   : > { %v3222_v60 = vld [vmem:[%s3140_s30 + $0x78] sm:$0xff] }
  0x1a   : > { %307 = vadd.xlane.f32.xlu1 %v285_v3  ;;  %303 = vadd.xlane.f32.xlu0 %v283_v4 }
  0x1b   : > { %311 = vadd.xlane.f32.xlu2 %v287_v5 }
  0x22   : > { %313 = vadd.xlane.f32.xlu0 %v288_v6  ;;  %315 = vadd.xlane.f32.xlu1 %v289_v7 }
  0x2a   : > { %317 = vadd.xlane.f32.xlu1 %v3151_v8 }
  0x85   : > { %v306_v10 = vpop.xlane.xlu1 %305  ;;  %v302_v11 = vpop.xlane.xlu0 %301 }
  0x86   : > { %v333_v12 = vmul.f32 0.010416667, %v302_v11  ;;  %v310_v15 = vpop.xlane.xlu2 %309  ;;  %v335_v23 = vmul.f32 0.010416667, %v306_v10  ;;  %v2731_v10 = vld [vmem:[%s4564_s2 + $0x68] sm:$0xf0] }
  0x87   : > { %v337_v22 = vmul.f32 0.010416667, %v310_v15  ;;  %v2948_v15 = vld [vmem:[%s4564_s2 + $0x54] sm:$0xf0] }
  0x88   : > { %v3162_v14 = vsub.f32 %v282_v1, %v333_v12  ;;  %v3176_v29 = vsub.f32 %v284_v0, %v335_v23  ;;  %v2952_v0 = vld [vmem:[%s4564_s2 + $0x74] sm:$0xf0]  ;;  %v2951_v1 = vld [vmem:[%s4564_s2 + $0x74] sm:$0xf]  ;;  %v2721_v12 = vld [vmem:[%s4564_s2 + $0x50] sm:$0xf] }
  0x89   : > { %v3170_v26 = vsub.f32 %v286_v2, %v337_v22  ;;  %v2738_v2 = vor.u32 %v2952_v0, %v2737_v63  ;;  %v2945_v22 = vld [vmem:[%s4564_s2 + $0x44] sm:$0xf] }
  0x8a   : > { %v366_v16 = vmul.f32 %v3160_v13, %v3162_v14  ;;  %v368_v36 = vmul.f32 %v3160_v13, %v3176_v29  ;;  %v2937_v63 = vld [vmem:[%s4564_s2 + $0x4] sm:$0xf] }
  0x8b   : > { %v370_v35 = vmul.f32 %v3160_v13, %v3170_v26  ;;  %778 = vmatpush.bf16.msra.mxu0 %v2738_v2  ;;  %v2683_v2 = vld [vmem:[%s4564_s2 + $0x8] sm:$0xf0] }
  0x8c   : > { %v382_v17 = vmul.f32 %v366_v16, %v366_v16  ;;  %v384_v40 = vmul.f32 %v368_v36, %v368_v36  ;;  %v2947_v16 = vld [vmem:[%s4564_s2 + $0x54] sm:$0xf] }
  0x8d   : > { %v308_v18 = vpop.xlane.xlu1 %307  ;;  %v304_v19 = vpop.xlane.xlu0 %303  ;;  %v386_v38 = vmul.f32 %v370_v35, %v370_v35  ;;  %v2707_v35 = vld [vmem:[%s4564_s2 + $0x38] sm:$0xf0] }
  0x8e   : > { %v336_v20 = vmul.f32 0.010416667, %v308_v18  ;;  %v334_v21 = vmul.f32 0.010416667, %v304_v19  ;;  %398 = vadd.xlane.f32.xlu2 %v382_v17  ;;  %v312_v31 = vpop.xlane.xlu2 %311  ;;  %v2722_v17 = vor.u32 %v2948_v15, %v2721_v12  ;;  %v2723_v18 = vld [vmem:[%s4564_s2 + $0x58] sm:$0xf0] }
  0x8f   : > { %v338_v34 = vmul.f32 0.010416667, %v312_v31  ;;  %v2726_v19 = vor.u32 %v2947_v16, %v2723_v18  ;;  %v2705_v31 = vld [vmem:[%s4564_s2 + $0x30] sm:$0xf] }
  0x90   : > { %v3166_v24 = vsub.f32 %v285_v3, %v336_v20  ;;  %v3168_v25 = vsub.f32 %v283_v4, %v334_v21  ;;  %v2739_v3 = vld [vmem:[%s4564_s2 + $0x78] sm:$0xf0]  ;;  %v2713_v20 = vld [vmem:[%s4564_s2 + $0x40] sm:$0xf]  ;;  %v2946_v21 = vld [vmem:[%s4564_s2 + $0x44] sm:$0xf0] }
  0x91   : > { %v3186_v37 = vsub.f32 %v287_v5, %v338_v34  ;;  %v2742_v4 = vor.u32 %v2951_v1, %v2739_v3  ;;  %v2729_v5 = vld [vmem:[%s4564_s2 + $0x60] sm:$0xf]  ;;  %v2714_v23 = vor.u32 %v2946_v21, %v2713_v20  ;;  %v2686_v3 = vor.u32 %v2937_v63, %v2683_v2 }
  0x92   : > { %v369_v27 = vmul.f32 %v3160_v13, %v3166_v24  ;;  %v367_v28 = vmul.f32 %v3160_v13, %v3168_v25 }
  0x93   : > { %v371_v43 = vmul.f32 %v3160_v13, %v3186_v37  ;;  %827 = vmatpush.bf16.msra.mxu1 %v2742_v4 }
  0x94   : > { %v385_v32 = vmul.f32 %v369_v27, %v369_v27  ;;  %v383_v33 = vmul.f32 %v367_v28, %v367_v28  ;;  %v2715_v27 = vld [vmem:[%s4564_s2 + $0x48] sm:$0xf0] }
  0x95   : > { %v314_v41 = vpop.xlane.xlu0 %313  ;;  %v387_v45 = vmul.f32 %v371_v43, %v371_v43  ;;  %v316_v46 = vpop.xlane.xlu1 %315  ;;  %v2718_v28 = vor.u32 %v2945_v22, %v2715_v27  ;;  %v2699_v43 = vld [vmem:[%s4564_s2 + $0x28] sm:$0xf0] }
  0x96   : > { %404 = vadd.xlane.f32.xlu1 %v385_v32  ;;  %319 = vadd.xlane.f32.xlu2 %v3179_v30  ;;  %v339_v42 = vmul.f32 0.010416667, %v314_v41  ;;  %v340_v50 = vmul.f32 0.010416667, %v316_v46  ;;  %v2944_v32 = vld [vmem:[%s4564_s2 + $0x34] sm:$0xf0] }
  0x97   : > { %400 = vadd.xlane.f32.xlu0 %v383_v33  ;;  %v2943_v33 = vld [vmem:[%s4564_s2 + $0x34] sm:$0xf]  ;;  %v2706_v34 = vor.u32 %v2944_v32, %v2705_v31  ;;  %v2941_v41 = vld [vmem:[%s4564_s2 + $0x24] sm:$0xf]  ;;  %v2689_v46 = vld [vmem:[%s4564_s2 + $0x10] sm:$0xf] }
  0x98   : > { %v3194_v44 = vsub.f32 %v288_v6, %v339_v42  ;;  %v3206_v52 = vsub.f32 %v289_v7, %v340_v50  ;;  %v2950_v6 = vld [vmem:[%s4564_s2 + $0x64] sm:$0xf0]  ;;  %v2949_v7 = vld [vmem:[%s4564_s2 + $0x64] sm:$0xf]  ;;  %v2710_v36 = vor.u32 %v2943_v33, %v2707_v35  ;;  %v2939_v50 = vld [vmem:[%s4564_s2 + $0x14] sm:$0xf] }
  0x99   : > { %v2734_v11 = vor.u32 %v2949_v7, %v2731_v10 }
  0x9a   : > { %v372_v49 = vmul.f32 %v3160_v13, %v3194_v44  ;;  %v373_v57 = vmul.f32 %v3160_v13, %v3206_v52 }
  0x9b   : > { %828 = vmatpush.bf16.msra.mxu1 %v2734_v11 }
  0x9c   : > { %v388_v51 = vmul.f32 %v372_v49, %v372_v49  ;;  %v389_v59 = vmul.f32 %v373_v57, %v373_v57  ;;  %v2940_v49 = vld [vmem:[%s4564_s2 + $0x14] sm:$0xf0] }
  0x9d   : > { %v318_v55 = vpop.xlane.xlu1 %317 }
  0x9e   : > { %406 = vadd.xlane.f32.xlu1 %v386_v38  ;;  %321 = vadd.xlane.f32.xlu2 %v3189_v39  ;;  %v341_v56 = vmul.f32 0.010416667, %v318_v55  ;;  %v2697_v38 = vld [vmem:[%s4564_s2 + $0x20] sm:$0xf]  ;;  %v2691_v55 = vld [vmem:[%s4564_s2 + $0x18] sm:$0xf0] }
  0x9f   : > { %402 = vadd.xlane.f32.xlu0 %v384_v40  ;;  %829 = vmatpush.bf16.msra.mxu1 %v2726_v19  ;;  %v2942_v40 = vld [vmem:[%s4564_s2 + $0x24] sm:$0xf0]  ;;  %v2694_v57 = vor.u32 %v2939_v50, %v2691_v55 }
  0xa0   : > { %v3219_v58 = vsub.f32 %v3151_v8, %v341_v56  ;;  %v2730_v8 = vor.u32 %v2950_v6, %v2729_v5  ;;  %v2698_v42 = vor.u32 %v2942_v40, %v2697_v38 }
  0xa2   : > { %v374_v61 = vmul.f32 %v3160_v13, %v3219_v58  ;;  %779 = vmatpush.bf16.msra.mxu0 %v2730_v8 }
  0xa3   : > { %830 = vmatpush.bf16.msra.mxu1 %v2718_v28 }
  0xa4   : > { %v390_v62 = vmul.f32 %v374_v61, %v374_v61  ;;  %v2681_v61 = vld [vmem:[%s4564_s2] sm:$0xf] }
  0xa6   : > { %327 = vadd.xlane.f32.xlu1 %v3197_v47  ;;  %408 = vadd.xlane.f32.xlu2 %v387_v45  ;;  %v2702_v45 = vor.u32 %v2941_v41, %v2699_v43 }
  0xa7   : > { %323 = vadd.xlane.f32.xlu0 %v3200_v48  ;;  %780 = vmatpush.bf16.msra.mxu0 %v2722_v17 }
  0xa8   : > { %831 = vmatpush.bf16.msra.mxu1 %v2710_v36 }
  0xab   : > { %781 = vmatpush.bf16.msra.mxu0 %v2714_v23 }
  0xac   : > { %832 = vmatpush.bf16.msra.mxu1 %v2702_v45 }
  0xae   : > { %329 = vadd.xlane.f32.xlu1 %v3209_v53  ;;  %410 = vadd.xlane.f32.xlu2 %v388_v51  ;;  %v2690_v51 = vor.u32 %v2940_v49, %v2689_v46 }
  0xaf   : > { %325 = vadd.xlane.f32.xlu0 %v3212_v54  ;;  %782 = vmatpush.bf16.msra.mxu0 %v2706_v34 }
  0xb0   : > { %833 = vmatpush.bf16.msra.mxu1 %v2694_v57 }
  0xb3   : > { %783 = vmatpush.bf16.msra.mxu0 %v2698_v42 }
  0xb4   : > { %834 = vmatpush.bf16.msra.mxu1 %v2686_v3 }
  0xb6   : > { %331 = vadd.xlane.f32.xlu2 %v3222_v60 }
  0xb7   : > { %412 = vadd.xlane.f32.xlu0 %v389_v59  ;;  %784 = vmatpush.bf16.msra.mxu0 %v2690_v51 }
  0xbf   : > { %414 = vadd.xlane.f32.xlu0 %v390_v62  ;;  %v2938_v62 = vld [vmem:[%s4564_s2 + $0x4] sm:$0xf0] }
  0xc0   : > { %v2682_v1 = vor.u32 %v2938_v62, %v2681_v61 }
  0xc2   : > { %785 = vmatpush.bf16.msra.mxu0 %v2682_v1 }
 0x101   : > { %v399_v56 = vpop.xlane.xlu2 %398 }
 0x102   : > { %v430_v59 = vmul.f32 0.010416667, %v399_v56 }
 0x104   : > { %v446_v0 = vadd.f32 1e-05, %v430_v59 }
 0x106   : > { %3010 = vrsqrt.f32 %v446_v0  ;;  %vm468_vm1 = vweird.f32 %v446_v0 }
 0x109   : > { %v405_v4 = vpop.xlane.xlu1 %404  ;;  %v320_v5 = vpop.xlane.xlu2 %319 }
 0x10a   : > { %v433_v6 = vmul.f32 0.010416667, %v405_v4  ;;  %v342_v7 = vmul.f32 0.010416667, %v320_v5  ;;  %v401_v8 = vpop.xlane.xlu0 %400  ;;  %v3364_v4 = vperm.slane %v3157_v9, 0 }
 0x10b   : > { %v431_v10 = vmul.f32 0.010416667, %v401_v8 }
 0x10c   : > { %v3011_v11 = vpop.eup %3010  ;;  %v3323_v12 = vadd.f32 1e-05, %v433_v6  ;;  %v3326_v15 = vsub.f32 %v3179_v30, %v342_v7 }
 0x10d   : > { %v463_v16 = vmul.f32 %v3011_v11, %v446_v0  ;;  %v447_v17 = vadd.f32 1e-05, %v431_v10  ;;  %vm469_vm0 = vweird.f32 %v3011_v11 }
 0x10e   : > { %3012 = vrsqrt.f32 %v3323_v12  ;;  %v375_v18 = vmul.f32 %v3160_v13, %v3326_v15  ;;  %vm3345_vm2 = vmor %vm468_vm1, %vm469_vm0  ;;  %vm498_vm6 = vweird.f32 %v3323_v12 }
 0x10f   : > { %v464_v19 = vmul.f32 %v3011_v11, %v463_v16  ;;  %3014 = vrsqrt.f32 %v447_v17  ;;  %vm478_vm4 = vweird.f32 %v447_v17 }
 0x110   : > { %v391_v20 = vmul.f32 %v375_v18, %v375_v18 }
 0x111   : > { %v465_v21 = vmul.f32 0.5, %v464_v19  ;;  %v407_v22 = vpop.xlane.xlu1 %406  ;;  %v322_v23 = vpop.xlane.xlu2 %321 }
 0x112   : > { %v343_v27 = vmul.f32 0.010416667, %v322_v23  ;;  %v403_v28 = vpop.xlane.xlu0 %402  ;;  %416 = vadd.xlane.f32.xlu1 %v391_v20  ;;  %v434_v35 = vmul.f32 0.010416667, %v407_v22 }
 0x113   : > { %v466_v31 = vsub.f32 1.5, %v465_v21  ;;  %v432_v32 = vmul.f32 0.010416667, %v403_v28 }
 0x114   : > { %v3331_v30 = vpop.eup %3012  ;;  %v3334_v33 = vsub.f32 %v3189_v39, %v343_v27  ;;  %v3343_v45 = vadd.f32 1e-05, %v434_v35  ;;  %v3378_v27 = vperm.slane %v3157_v9, 1 }
 0x115   : > { %v3015_v34 = vpop.eup %3014  ;;  %v3336_v36 = vadd.f32 1e-05, %v432_v32  ;;  %v467_v40 = vmul.f32 %v3011_v11, %v466_v31  ;;  %v493_v41 = vmul.f32 %v3331_v30, %v3323_v12  ;;  %vm499_vm7 = vweird.f32 %v3331_v30 }
 0x116   : > { %v473_v38 = vmul.f32 %v3015_v34, %v447_v17  ;;  %v376_v42 = vmul.f32 %v3160_v13, %v3334_v33  ;;  %vm479_vm3 = vweird.f32 %v3015_v34  ;;  %vm3401_vm10 = vmor %vm498_vm6, %vm499_vm7  ;;  %vm508_vm14 = vweird.f32 %v3343_v45 }
 0x117   : > { %3016 = vrsqrt.f32 %v3336_v36  ;;  %v494_v59 = vmul.f32 %v3331_v30, %v493_v41  ;;  %v471_v62 = vsel %vm3345_vm2, %v3011_v11, %v467_v40  ;;  %vm480_vm5 = vmor %vm478_vm4, %vm479_vm3  ;;  %vm488_vm8 = vweird.f32 %v3336_v36 }
 0x118   : > { %v474_v43 = vmul.f32 %v3015_v34, %v473_v38  ;;  %v392_v49 = vmul.f32 %v376_v42, %v376_v42  ;;  %3018 = vrsqrt.f32 %v3343_v45 }
 0x119   : > { %v328_v39 = vpop.xlane.xlu1 %327  ;;  %v409_v46 = vpop.xlane.xlu2 %408  ;;  %v495_v7 = vmul.f32 0.5, %v494_v59 }
 0x11a   : > { %v475_v51 = vmul.f32 0.5, %v474_v43  ;;  %v346_v55 = vmul.f32 0.010416667, %v328_v39  ;;  %v435_v56 = vmul.f32 0.010416667, %v409_v46  ;;  %v324_v57 = vpop.xlane.xlu0 %323  ;;  %418 = vadd.xlane.f32.xlu2 %v392_v49 }
 0x11b   : > { %v344_v61 = vmul.f32 0.010416667, %v324_v57  ;;  %v496_v31 = vsub.f32 1.5, %v495_v7 }
 0x11c   : > { %v476_v63 = vsub.f32 1.5, %v475_v51  ;;  %v3353_v0 = vsub.f32 %v3197_v47, %v346_v55  ;;  %v3355_v1 = vadd.f32 1e-05, %v435_v56  ;;  %v622_v47 = vmul.f32 %v471_v62, %v3162_v14 }
 0x11d   : > { %v3357_v2 = vpop.eup %3016  ;;  %v3361_v3 = vsub.f32 %v3200_v48, %v344_v61 }
 0x11e   : > { %v477_v5 = vmul.f32 %v3015_v34, %v476_v63  ;;  %v483_v6 = vmul.f32 %v3357_v2, %v3336_v36  ;;  %3020 = vrsqrt.f32 %v3355_v1  ;;  %v379_v8 = vmul.f32 %v3160_v13, %v3353_v0  ;;  %v3380_v28 = vpop.eup %3018 }
 0x11f   : > { %v377_v48 = vmul.f32 %v3160_v13, %v3361_v3  ;;  %v639_v23 = vmul.f32 %v3364_v4, %v622_v47  ;;  %vm489_vm9 = vweird.f32 %v3357_v2  ;;  %v503_v36 = vmul.f32 %v3380_v28, %v3343_v45 }
 0x120   : > { %v484_v10 = vmul.f32 %v3357_v2, %v483_v6  ;;  %v481_v11 = vsel %vm480_vm5, %v3015_v34, %v477_v5  ;;  %v395_v18 = vmul.f32 %v379_v8, %v379_v8  ;;  %vm3411_vm11 = vmor %vm488_vm8, %vm489_vm9  ;;  %vm518_vm12 = vweird.f32 %v3355_v1 }
 0x121   : > { %v330_v16 = vpop.xlane.xlu1 %329  ;;  %v411_v17 = vpop.xlane.xlu2 %410  ;;  %v393_v19 = vmul.f32 %v377_v48, %v377_v48  ;;  %v623_v20 = vmul.f32 %v481_v11, %v3168_v25  ;;  %v656_v12 = vadd.f32 %v3378_v27, %v639_v23  ;;  %v504_v5 = vmul.f32 %v3380_v28, %v503_v36 }
 0x122   : > { %v485_v21 = vmul.f32 0.5, %v484_v10  ;;  %v347_v22 = vmul.f32 0.010416667, %v330_v16  ;;  %v326_v14 = vpop.xlane.xlu0 %325  ;;  %424 = vadd.xlane.f32.xlu2 %v395_v18  ;;  %v436_v42 = vmul.f32 0.010416667, %v411_v17  ;;  %vm509_vm15 = vweird.f32 %v3380_v28 }
 0x123   : > { %v345_v32 = vmul.f32 0.010416667, %v326_v14  ;;  %420 = vadd.xlane.f32.xlu0 %v393_v19  ;;  %v640_v34 = vmul.f32 %v3364_v4, %v623_v20  ;;  %v505_v16 = vmul.f32 0.5, %v504_v5  ;;  %vm510_vm1 = vmor %vm508_vm14, %vm509_vm15 }
 0x124   : > { %v3383_v35 = vpop.eup %3020  ;;  %v486_v25 = vsub.f32 1.5, %v485_v21  ;;  %v3388_v38 = vsub.f32 %v3209_v53, %v347_v22  ;;  %v497_v53 = vmul.f32 %v3331_v30, %v496_v31  ;;  %v3419_v61 = vadd.f32 1e-05, %v436_v42 }
 0x125   : > { %v513_v9 = vmul.f32 %v3383_v35, %v3355_v1  ;;  %v3395_v40 = vsub.f32 %v3212_v54, %v345_v32  ;;  %v657_v43 = vadd.f32 %v3378_v27, %v640_v34  ;;  %v506_v19 = vsub.f32 1.5, %v505_v16 }
 0x126   : > { %v487_v41 = vmul.f32 %v3357_v2, %v486_v25  ;;  %v380_v54 = vmul.f32 %v3160_v13, %v3388_v38  ;;  %v501_v47 = vsel %vm3401_vm10, %v3331_v30, %v497_v53  ;;  %3022 = vrsqrt.f32 %v3419_v61 }
 0x127   : > { %v378_v46 = vmul.f32 %v3160_v13, %v3395_v40  ;;  %v672_v50 = vpack.c.bf16 %v657_v43, %v656_v12  ;;  %v514_v51 = vmul.f32 %v3383_v35, %v513_v9  ;;  %v625_v11 = vmul.f32 %v501_v47, %v3166_v24 }
 0x128   : > { %v396_v56 = vmul.f32 %v380_v54, %v380_v54  ;;  %v491_v59 = vsel %vm3411_vm11, %v3357_v2, %v487_v41  ;;  %vm519_vm13 = vweird.f32 %v3383_v35  ;;  %v507_v14 = vmul.f32 %v3380_v28, %v506_v19 }
 0x129   : > { %v332_v55 = vpop.xlane.xlu2 %331  ;;  %v394_v57 = vmul.f32 %v378_v46, %v378_v46  ;;  %786 = vmatmul.bf16.vlgmr.msra.gmra.mxu0 %v672_v50  ;;  %835 = vmatmul.bf16.vlgmr.msra.gmra.mxu1 %v672_v50  ;;  %v624_v2 = vmul.f32 %v491_v59, %v3176_v29  ;;  %v515_v8 = vmul.f32 0.5, %v514_v51  ;;  %vm520_vm0 = vmor %vm518_vm12, %vm519_vm13  ;;  %vm528_vm4 = vweird.f32 %v3419_v61 }
 0x12a   : > { %v348_v62 = vmul.f32 0.010416667, %v332_v55  ;;  %v413_v63 = vpop.xlane.xlu0 %412  ;;  %v511_v34 = vsel %vm510_vm1, %v3380_v28, %v507_v14 }
 0x12b   : > { %v437_v6 = vmul.f32 0.010416667, %v413_v63  ;;  %426 = vadd.xlane.f32.xlu0 %v396_v56  ;;  %422 = vadd.xlane.f32.xlu1 %v394_v57  ;;  %v641_v18 = vmul.f32 %v3364_v4, %v624_v2  ;;  %v516_v30 = vsub.f32 1.5, %v515_v8  ;;  %v626_v41 = vmul.f32 %v511_v34, %v3170_v26 }
 0x12c   : > { %v3426_v7 = vsub.f32 %v3222_v60, %v348_v62  ;;  %v642_v60 = vmul.f32 %v3364_v4, %v625_v11  ;;  %v3023_v29 = vpop.eup %3022 }
 0x12d   : > { %v453_v48 = vadd.f32 1e-05, %v437_v6  ;;  %v658_v20 = vadd.f32 %v3378_v27, %v641_v18  ;;  %v517_v24 = vmul.f32 %v3383_v35, %v516_v30  ;;  %v523_v1 = vmul.f32 %v3023_v29, %v3419_v61 }
 0x12e   : > { %v381_v10 = vmul.f32 %v3160_v13, %v3426_v7  ;;  %v659_v22 = vadd.f32 %v3378_v27, %v642_v60  ;;  %v643_v53 = vmul.f32 %v3364_v4, %v626_v41  ;;  %vm529_vm5 = vweird.f32 %v3023_v29 }
 0x12f   : > { %3024 = vrsqrt.f32 %v453_v48  ;;  %v521_v32 = vsel %vm520_vm0, %v3383_v35, %v517_v24  ;;  %v524_v45 = vmul.f32 %v3023_v29, %v523_v1  ;;  %vm538_vm2 = vweird.f32 %v453_v48  ;;  %vm530_vm7 = vmor %vm528_vm4, %vm529_vm5 }
 0x130   : > { %v397_v17 = vmul.f32 %v381_v10, %v381_v10  ;;  %v673_v23 = vpack.c.bf16 %v659_v22, %v658_v20  ;;  %v627_v25 = vmul.f32 %v521_v32, %v3186_v37  ;;  %v660_v37 = vadd.f32 %v3378_v27, %v643_v53 }
 0x131   : > { %v525_v42 = vmul.f32 0.5, %v524_v45 }
 0x132   : > { %v644_v12 = vmul.f32 %v3364_v4, %v627_v25  ;;  %v415_v61 = vpop.xlane.xlu0 %414 }
 0x133   : > { %428 = vadd.xlane.f32.xlu1 %v397_v17  ;;  %v526_v39 = vsub.f32 1.5, %v525_v42  ;;  %v438_v62 = vmul.f32 0.010416667, %v415_v61 }
 0x134   : > { %v661_v35 = vadd.f32 %v3378_v27, %v644_v12 }
 0x135   : > { %v3025_v13 = vpop.eup %3024  ;;  %v527_v36 = vmul.f32 %v3023_v29, %v526_v39  ;;  %v454_v63 = vadd.f32 1e-05, %v438_v62 }
 0x136   : > { %v533_v21 = vmul.f32 %v3025_v13, %v453_v48  ;;  %vm539_vm3 = vweird.f32 %v3025_v13  ;;  %v674_v26 = vpack.c.bf16 %v661_v35, %v660_v37  ;;  %v3471_v37 = vld [vmem:[%s4565_s3] sm:$0x1f] }
 0x137   : > { %vm540_vm6 = vmor %vm538_vm2, %vm539_vm3  ;;  %v531_v46 = vsel %vm530_vm7, %v3023_v29, %v527_v36  ;;  %3026 = vrsqrt.f32 %v454_v63  ;;  %vm548_vm8 = vweird.f32 %v454_v63 }
 0x138   : > { %v534_v31 = vmul.f32 %v3025_v13, %v533_v21  ;;  %v628_v50 = vmul.f32 %v531_v46, %v3194_v44 }
 0x139   : > { %791 = vmatmul.bf16.gmra.mxu0 %v673_v23  ;;  %840 = vmatmul.bf16.gmra.mxu1 %v673_v23 }
 0x13a   : > { %v535_v9 = vmul.f32 0.5, %v534_v31  ;;  %v645_v55 = vmul.f32 %v3364_v4, %v628_v50 }
 0x13c   : > { %v536_v43 = vsub.f32 1.5, %v535_v9  ;;  %v662_v57 = vadd.f32 %v3378_v27, %v645_v55  ;;  %v3486_v55 = vperm.slane %v3471_v37, 3 }
 0x13d   : > { %v3027_v5 = vpop.eup %3026 }
 0x13e   : > { %v537_v28 = vmul.f32 %v3025_v13, %v536_v43  ;;  %v543_v6 = vmul.f32 %v3027_v5, %v454_v63  ;;  %vm549_vm9 = vweird.f32 %v3027_v5 }
 0x13f   : > { %vm550_vm10 = vmor %vm548_vm8, %vm549_vm9 }
 0x140   : > { %v541_v54 = vsel %vm540_vm6, %v3025_v13, %v537_v28 }
 0x141   : > { %v629_v49 = vmul.f32 %v541_v54, %v3206_v52  ;;  %v544_v52 = vmul.f32 %v3027_v5, %v543_v6 }
 0x143   : > { %v646_v51 = vmul.f32 %v3364_v4, %v629_v49  ;;  %v545_v8 = vmul.f32 0.5, %v544_v52 }
 0x145   : > { %v663_v56 = vadd.f32 %v3378_v27, %v646_v51  ;;  %v546_v48 = vsub.f32 1.5, %v545_v8 }
 0x147   : > { %v675_v59 = vpack.c.bf16 %v663_v56, %v662_v57  ;;  %v547_v17 = vmul.f32 %v3027_v5, %v546_v48 }
 0x149   : > { %796 = vmatmul.bf16.gmra.mxu0 %v674_v26  ;;  %845 = vmatmul.bf16.gmra.mxu1 %v674_v26  ;;  %v551_v29 = vsel %vm550_vm10, %v3027_v5, %v547_v17  ;;  %v3480_v26 = vld [vmem:[%s4565_s3 + $0x8] sm:$0x1f] }
 0x14a   : > { %v630_v14 = vmul.f32 %v551_v29, %v3219_v58  ;;  %v3489_v57 = vperm.slane %v3480_v26, 3 }
 0x14c   : > { %v647_v41 = vmul.f32 %v3364_v4, %v630_v14 }
 0x14e   : > { %v664_v35 = vadd.f32 %v3378_v27, %v647_v41 }
 0x159   : > { %801 = vmatmul.bf16.gmra.mxu0 %v675_v59  ;;  %850 = vmatmul.bf16.gmra.mxu1 %v675_v59 }
 0x185   : > { %v417_v47 = vpop.xlane.xlu1 %416 }
 0x186   : > { %v439_v44 = vmul.f32 0.010416667, %v417_v47 }
 0x188   : > { %v455_v2 = vadd.f32 1e-05, %v439_v44 }
 0x18a   : > { %3028 = vrsqrt.f32 %v455_v2  ;;  %vm558_vm12 = vweird.f32 %v455_v2 }
 0x18d   : > { %v419_v10 = vpop.xlane.xlu2 %418 }
 0x18e   : > { %v440_v11 = vmul.f32 0.010416667, %v419_v10 }
 0x190   : > { %v3029_v16 = vpop.eup %3028  ;;  %v456_v30 = vadd.f32 1e-05, %v440_v11 }
 0x191   : > { %v553_v18 = vmul.f32 %v3029_v16, %v455_v2  ;;  %vm559_vm11 = vweird.f32 %v3029_v16 }
 0x192   : > { %3030 = vrsqrt.f32 %v456_v30  ;;  %vm560_vm13 = vmor %vm558_vm12, %vm559_vm11  ;;  %vm568_vm14 = vweird.f32 %v456_v30 }
 0x193   : > { %v554_v60 = vmul.f32 %v3029_v16, %v553_v18 }
 0x195   : > { %v555_v19 = vmul.f32 0.5, %v554_v60  ;;  %v425_v20 = vpop.xlane.xlu2 %424 }
 0x196   : > { %v421_v13 = vpop.xlane.xlu0 %420  ;;  %v443_v21 = vmul.f32 0.010416667, %v425_v20 }
 0x197   : > { %v556_v24 = vsub.f32 1.5, %v555_v19  ;;  %v441_v22 = vmul.f32 0.010416667, %v421_v13 }
 0x198   : > { %v3031_v1 = vpop.eup %3030  ;;  %v3460_v31 = vadd.f32 1e-05, %v443_v21 }
 0x199   : > { %v557_v23 = vmul.f32 %v3029_v16, %v556_v24  ;;  %v457_v32 = vadd.f32 1e-05, %v441_v22  ;;  %v563_v45 = vmul.f32 %v3031_v1, %v456_v30  ;;  %vm569_vm15 = vweird.f32 %v3031_v1 }
 0x19a   : > { %3032 = vrsqrt.f32 %v3460_v31  ;;  %vm3493_vm0 = vmor %vm568_vm14, %vm569_vm15  ;;  %vm598_vm4 = vweird.f32 %v3460_v31 }
 0x19b   : > { %v561_v34 = vsel %vm560_vm13, %v3029_v16, %v557_v23  ;;  %v564_v25 = vmul.f32 %v3031_v1, %v563_v45  ;;  %3034 = vrsqrt.f32 %v457_v32  ;;  %vm578_vm2 = vweird.f32 %v457_v32 }
 0x19c   : > { %v631_v9 = vmul.f32 %v561_v34, %v3326_v15 }
 0x19d   : > { %v565_v42 = vmul.f32 0.5, %v564_v25 }
 0x19e   : > { %v423_v12 = vpop.xlane.xlu1 %422  ;;  %v648_v58 = vmul.f32 %v3364_v4, %v631_v9  ;;  %v427_v53 = vpop.xlane.xlu0 %426 }
 0x19f   : > { %v442_v43 = vmul.f32 0.010416667, %v423_v12  ;;  %v566_v39 = vsub.f32 1.5, %v565_v42  ;;  %v444_v46 = vmul.f32 0.010416667, %v427_v53 }
 0x1a0   : > { %v665_v28 = vadd.f32 %v3378_v27, %v648_v58  ;;  %v3473_v36 = vpop.eup %3032 }
 0x1a1   : > { %v3475_v15 = vadd.f32 1e-05, %v442_v43  ;;  %v3035_v54 = vpop.eup %3034  ;;  %v593_v50 = vmul.f32 %v3473_v36, %v3460_v31  ;;  %v567_v56 = vmul.f32 %v3031_v1, %v566_v39  ;;  %v3491_v61 = vadd.f32 1e-05, %v444_v46 }
 0x1a2   : > { %v676_v49 = vpack.c.bf16 %v665_v28, %v664_v35  ;;  %v573_v51 = vmul.f32 %v3035_v54, %v457_v32  ;;  %vm579_vm1 = vweird.f32 %v3035_v54  ;;  %vm599_vm5 = vweird.f32 %v3473_v36 }
 0x1a3   : > { %3036 = vrsqrt.f32 %v3475_v15  ;;  %v594_v5 = vmul.f32 %v3473_v36, %v593_v50  ;;  %v571_v48 = vsel %vm3493_vm0, %v3031_v1, %v567_v56  ;;  %vm580_vm3 = vmor %vm578_vm2, %vm579_vm1  ;;  %vm588_vm6 = vweird.f32 %v3475_v15 }
 0x1a4   : > { %806 = vmatmul.bf16.gmra.mxu0 %v676_v49  ;;  %855 = vmatmul.bf16.gmra.mxu1 %v676_v49  ;;  %v574_v59 = vmul.f32 %v3035_v54, %v573_v51  ;;  %3038 = vrsqrt.f32 %v3491_v61  ;;  %v632_v19 = vmul.f32 %v571_v48, %v3334_v33  ;;  %vm3534_vm8 = vmor %vm598_vm4, %vm599_vm5  ;;  %vm608_vm12 = vweird.f32 %v3491_v61 }
 0x1a5   : > { %v595_v30 = vmul.f32 0.5, %v594_v5 }
 0x1a6   : > { %v429_v62 = vpop.xlane.xlu1 %428  ;;  %v575_v6 = vmul.f32 0.5, %v574_v59  ;;  %v787_v52 = vpop.f32.mrf.mxu0  ;;  %v649_v1 = vmul.f32 %v3364_v4, %v632_v19 }
 0x1a7   : > { %v836_v47 = vpop.f32.mrf.mxu1  ;;  %v445_v44 = vmul.f32 0.010416667, %v429_v62  ;;  %v3499_v2 = vadd.f32 %v787_v52, %v3486_v55  ;;  %v596_v21 = vsub.f32 1.5, %v595_v30 }
 0x1a8   : > { %v3502_v8 = vadd.f32 %v836_v47, %v3489_v57  ;;  %v576_v11 = vsub.f32 1.5, %v575_v6  ;;  %v666_v42 = vadd.f32 %v3378_v27, %v649_v1 }
 0x1a9   : > { %v3037_v10 = vpop.eup %3036  ;;  %v3506_v16 = vadd.f32 1e-05, %v445_v44  ;;  %v597_v58 = vmul.f32 %v3473_v36, %v596_v21 }
 0x1aa   : > { %v583_v17 = vmul.f32 %v3037_v10, %v3475_v15  ;;  %v876_v18 = vadd.f32 %v3502_v8, %v3499_v2  ;;  %v577_v60 = vmul.f32 %v3035_v54, %v576_v11  ;;  %v3516_v23 = vpop.eup %3038  ;;  %vm589_vm7 = vweird.f32 %v3037_v10 }
 0x1ab   : > { %3040 = vrsqrt.f32 %v3506_v16  ;;  %v603_v31 = vmul.f32 %v3516_v23, %v3491_v61  ;;  %vm590_vm9 = vmor %vm588_vm6, %vm589_vm7  ;;  %v601_v50 = vsel %vm3534_vm8, %v3473_v36, %v597_v58  ;;  %vm618_vm10 = vweird.f32 %v3506_v16 }
 0x1ac   : > { %v584_v29 = vmul.f32 %v3037_v10, %v583_v17  ;;  %877 = vadd.xlane.f32.xlu2 %v876_v18  ;;  %v581_v20 = vsel %vm580_vm3, %v3035_v54, %v577_v60  ;;  %v635_v62 = vmul.f32 %v601_v50, %v3353_v0  ;;  %vm609_vm13 = vweird.f32 %v3516_v23 }
 0x1ad   : > { %v633_v24 = vmul.f32 %v581_v20, %v3361_v3  ;;  %v604_v54 = vmul.f32 %v3516_v23, %v603_v31  ;;  %vm610_vm15 = vmor %vm608_vm12, %vm609_vm13 }
 0x1ae   : > { %v585_v13 = vmul.f32 0.5, %v584_v29  ;;  %v789_v22 = vpop.f32.mrf.mxu0  ;;  %v652_v44 = vmul.f32 %v3364_v4, %v635_v62 }
 0x1af   : > { %v838_v14 = vpop.f32.mrf.mxu1  ;;  %v3519_v45 = vadd.f32 %v789_v22, %v3486_v55  ;;  %v650_v34 = vmul.f32 %v3364_v4, %v633_v24  ;;  %v605_v63 = vmul.f32 0.5, %v604_v54 }
 0x1b0   : > { %v586_v32 = vsub.f32 1.5, %v585_v13  ;;  %v3522_v33 = vadd.f32 %v838_v14, %v3489_v57 }
 0x1b1   : > { %v3041_v25 = vpop.eup %3040  ;;  %v667_v12 = vadd.f32 %v3378_v27, %v650_v34  ;;  %v606_v36 = vsub.f32 1.5, %v605_v63 }
 0x1b2   : > { %v587_v3 = vmul.f32 %v3037_v10, %v586_v32  ;;  %v613_v9 = vmul.f32 %v3041_v25, %v3506_v16  ;;  %v879_v41 = vadd.f32 %v3522_v33, %v3519_v45  ;;  %vm619_vm11 = vweird.f32 %v3041_v25 }
 0x1b3   : > { %v677_v53 = vpack.c.bf16 %v667_v12, %v666_v42  ;;  %vm620_vm14 = vmor %vm618_vm10, %vm619_vm11  ;;  %v669_v16 = vadd.f32 %v3378_v27, %v652_v44  ;;  %v607_v17 = vmul.f32 %v3516_v23, %v606_v36 }
 0x1b4   : > { %880 = vadd.xlane.f32.xlu0 %v879_v41  ;;  %v614_v39 = vmul.f32 %v3041_v25, %v613_v9  ;;  %v591_v35 = vsel %vm590_vm9, %v3037_v10, %v587_v3 }
 0x1b5   : > { %811 = vmatmul.bf16.gmra.mxu0 %v677_v53  ;;  %860 = vmatmul.bf16.gmra.mxu1 %v677_v53  ;;  %v634_v51 = vmul.f32 %v591_v35, %v3395_v40  ;;  %v611_v20 = vsel %vm610_vm15, %v3516_v23, %v607_v17 }
 0x1b6   : > { %v792_v28 = vpop.f32.mrf.mxu0  ;;  %v615_v56 = vmul.f32 0.5, %v614_v39  ;;  %v636_v21 = vmul.f32 %v611_v20, %v3388_v38 }
 0x1b7   : > { %v841_v15 = vpop.f32.mrf.mxu1  ;;  %v3542_v46 = vadd.f32 %v792_v28, %v3486_v55  ;;  %v651_v5 = vmul.f32 %v3364_v4, %v634_v51  ;;  %v3610_v28 = vperm.slane %v3471_v37, 2 }
 0x1b8   : > { %v3545_v49 = vadd.f32 %v841_v15, %v3489_v57  ;;  %v616_v6 = vsub.f32 1.5, %v615_v56  ;;  %v653_v32 = vmul.f32 %v3364_v4, %v636_v21  ;;  %v3613_v15 = vperm.slane %v3480_v26, 2 }
 0x1b9   : > { %v668_v0 = vadd.f32 %v3378_v27, %v651_v5 }
 0x1ba   : > { %v882_v59 = vadd.f32 %v3545_v49, %v3542_v46  ;;  %v617_v10 = vmul.f32 %v3041_v25, %v616_v6  ;;  %v670_v38 = vadd.f32 %v3378_v27, %v653_v32 }
 0x1bb   : > { %v678_v18 = vpack.c.bf16 %v669_v16, %v668_v0 }
 0x1bc   : > { %883 = vadd.xlane.f32.xlu1 %v882_v59  ;;  %v621_v30 = vsel %vm620_vm14, %v3041_v25, %v617_v10 }
 0x1bd   : > { %v637_v13 = vmul.f32 %v621_v30, %v3426_v7 }
 0x1be   : > { %v794_v52 = vpop.f32.mrf.mxu0 }
 0x1bf   : > { %v843_v47 = vpop.f32.mrf.mxu1  ;;  %v3558_v40 = vadd.f32 %v794_v52, %v3486_v55  ;;  %v654_v22 = vmul.f32 %v3364_v4, %v637_v13 }
 0x1c0   : > { %v3561_v48 = vadd.f32 %v843_v47, %v3489_v57 }
 0x1c1   : > { %v671_v7 = vadd.f32 %v3378_v27, %v654_v22 }
 0x1c2   : > { %v885_v11 = vadd.f32 %v3561_v48, %v3558_v40 }
 0x1c3   : > { %v679_v3 = vpack.c.bf16 %v671_v7, %v670_v38 }
 0x1c4   : > { %886 = vadd.xlane.f32.xlu2 %v885_v11 }
 0x1c5   : > { %816 = vmatmul.bf16.gmra.mxu0 %v678_v18  ;;  %865 = vmatmul.bf16.gmra.mxu1 %v678_v18 }
 0x1c6   : > { %v797_v60 = vpop.f32.mrf.mxu0 }
 0x1c7   : > { %v846_v19 = vpop.f32.mrf.mxu1  ;;  %v3571_v61 = vadd.f32 %v797_v60, %v3486_v55 }
 0x1c8   : > { %v3574_v29 = vadd.f32 %v846_v19, %v3489_v57 }
 0x1ca   : > { %v888_v24 = vadd.f32 %v3574_v29, %v3571_v61 }
 0x1cc   : > { %889 = vadd.xlane.f32.xlu0 %v888_v24 }
 0x1ce   : > { %v799_v14 = vpop.f32.mrf.mxu0 }
 0x1cf   : > { %v848_v1 = vpop.f32.mrf.mxu1  ;;  %v3584_v34 = vadd.f32 %v799_v14, %v3486_v55 }
 0x1d0   : > { %v3587_v25 = vadd.f32 %v848_v1, %v3489_v57 }
 0x1d2   : > { %v891_v23 = vadd.f32 %v3587_v25, %v3584_v34 }
 0x1d4   : > { %892 = vadd.xlane.f32.xlu1 %v891_v23 }
 0x1d5   : > { %821 = vmatmul.bf16.gmra.mxu0 %v679_v3  ;;  %870 = vmatmul.bf16.gmra.mxu1 %v679_v3 }
 0x1d6   : > { %v802_v9 = vpop.f32.mrf.mxu0 }
 0x1d7   : > { %v851_v41 = vpop.f32.mrf.mxu1  ;;  %v3594_v4 = vadd.f32 %v802_v9, %v3486_v55 }
 0x1d8   : > { %v3597_v42 = vadd.f32 %v851_v41, %v3489_v57 }
 0x1da   : > { %v894_v12 = vadd.f32 %v3597_v42, %v3594_v4 }
 0x1dc   : > { %895 = vadd.xlane.f32.xlu2 %v894_v12 }
 0x1de   : > { %v804_v58 = vpop.f32.mrf.mxu0 }
 0x1df   : > { %v853_v43 = vpop.f32.mrf.mxu1  ;;  %v3602_v27 = vadd.f32 %v804_v58, %v3486_v55 }
 0x1e0   : > { %v3605_v31 = vadd.f32 %v853_v43, %v3489_v57 }
 0x1e2   : > { %v897_v53 = vadd.f32 %v3605_v31, %v3602_v27 }
 0x1e4   : > { %898 = vadd.xlane.f32.xlu0 %v897_v53 }
 0x21f   : > { %v878_v39 = vpop.xlane.xlu2 %877 }
 0x220   : > { %v924_v35 = vmul.f32 0.0052083335, %v878_v39 }
 0x221   : > { %v807_v54 = vpop.f32.mrf.mxu0  ;;  %v856_v50 = vpop.f32.mrf.mxu1 }
 0x222   : > { %v3616_v51 = vsub.f32 %v3499_v2, %v924_v35  ;;  %v3619_v56 = vsub.f32 %v3502_v8, %v924_v35  ;;  %v3622_v59 = vadd.f32 %v807_v54, %v3486_v55  ;;  %v3625_v62 = vadd.f32 %v856_v50, %v3489_v57 }
 0x224   : > { %v900_v63 = vadd.f32 %v3625_v62, %v3622_v59  ;;  %v974_v5 = vmul.f32 %v3610_v28, %v3616_v51  ;;  %v975_v6 = vmul.f32 %v3613_v15, %v3619_v56 }
 0x226   : > { %901 = vadd.xlane.f32.xlu0 %v900_v63  ;;  %v1006_v2 = vmul.f32 %v974_v5, %v974_v5  ;;  %v1007_v52 = vmul.f32 %v975_v6, %v975_v6 }
 0x227   : > { %v881_v8 = vpop.xlane.xlu0 %880 }
 0x228   : > { %v925_v47 = vmul.f32 0.0052083335, %v881_v8  ;;  %v1038_v44 = vadd.f32 %v1007_v52, %v1006_v2 }
 0x229   : > { %v809_v36 = vpop.f32.mrf.mxu0  ;;  %v858_v0 = vpop.f32.mrf.mxu1 }
 0x22a   : > { %v3634_v10 = vsub.f32 %v3519_v45, %v925_v47  ;;  %v3637_v11 = vsub.f32 %v3522_v33, %v925_v47  ;;  %1039 = vadd.xlane.f32.xlu1 %v1038_v44  ;;  %v3640_v16 = vadd.f32 %v809_v36, %v3486_v55  ;;  %v3643_v17 = vadd.f32 %v858_v0, %v3489_v57  ;;  %v2967_v47 = vld [vmem:[%s4566_s4 + $0x74] sm:$0xf]  ;;  %v2803_v44 = vld [vmem:[%s4566_s4 + $0x78] sm:$0xf0] }
 0x22b   : > { %v2983_v36 = vld [vmem:[%s4566_s4 + $0xf4] sm:$0xf]  ;;  %v3702_v0 = vor.u32 %v2967_v47, %v2803_v44 }
 0x22c   : > { %v976_v18 = vmul.f32 %v3610_v28, %v3634_v10  ;;  %v977_v30 = vmul.f32 %v3613_v15, %v3637_v11  ;;  %v903_v33 = vadd.f32 %v3643_v17, %v3640_v16 }
 0x22d   : > { %4610 = vst [vmem:[#allocation6_spill] sm:$0xff] %v3702_v0  ;;  %1718 = vmatpush.bf16.msrb.mxu0 %v3702_v0 }
 0x22e   : > { %v1008_v60 = vmul.f32 %v976_v18, %v976_v18  ;;  %v1009_v19 = vmul.f32 %v977_v30, %v977_v30 }
 0x22f   : > { %v884_v45 = vpop.xlane.xlu1 %883 }
 0x230   : > { %v926_v20 = vmul.f32 0.0052083335, %v884_v45  ;;  %v1041_v13 = vadd.f32 %v1009_v19, %v1008_v60 }
 0x232   : > { %v3652_v24 = vsub.f32 %v3542_v46, %v926_v20  ;;  %v3655_v21 = vsub.f32 %v3545_v49, %v926_v20  ;;  %904 = vadd.xlane.f32.xlu1 %v903_v33  ;;  %1042 = vadd.xlane.f32.xlu2 %v1041_v13  ;;  %v812_v22 = vpop.f32.mrf.mxu0  ;;  %v861_v14 = vpop.f32.mrf.mxu1 }
 0x233   : > { %v3662_v7 = vadd.f32 %v812_v22, %v3486_v55  ;;  %v3665_v23 = vadd.f32 %v861_v14, %v3489_v57 }
 0x234   : > { %v978_v1 = vmul.f32 %v3610_v28, %v3652_v24  ;;  %v979_v32 = vmul.f32 %v3613_v15, %v3655_v21 }
 0x235   : > { %v906_v9 = vadd.f32 %v3665_v23, %v3662_v7 }
 0x236   : > { %v1010_v46 = vmul.f32 %v978_v1, %v978_v1  ;;  %v1011_v38 = vmul.f32 %v979_v32, %v979_v32 }
 0x237   : > { %v887_v49 = vpop.xlane.xlu2 %886 }
 0x238   : > { %v927_v3 = vmul.f32 0.0052083335, %v887_v49  ;;  %v1044_v41 = vadd.f32 %v1011_v38, %v1010_v46 }
 0x23a   : > { %v3670_v12 = vsub.f32 %v3558_v40, %v927_v3  ;;  %v3673_v58 = vsub.f32 %v3561_v48, %v927_v3  ;;  %907 = vadd.xlane.f32.xlu1 %v906_v9  ;;  %1045 = vadd.xlane.f32.xlu2 %v1044_v41  ;;  %v814_v43 = vpop.f32.mrf.mxu0  ;;  %v863_v53 = vpop.f32.mrf.mxu1 }
 0x23b   : > { %v3680_v54 = vadd.f32 %v814_v43, %v3486_v55  ;;  %v3683_v50 = vadd.f32 %v863_v53, %v3489_v57 }
 0x23c   : > { %4606 = vst [vmem:[#allocation2_spill] sm:$0xff] %v3670_v12  ;;  %v980_v39 = vmul.f32 %v3610_v28, %v3670_v12  ;;  %v981_v35 = vmul.f32 %v3613_v15, %v3673_v58 }
 0x23d   : > { %4607 = vst [vmem:[#allocation3_spill] sm:$0xff] %v3673_v58  ;;  %v909_v2 = vadd.f32 %v3683_v50, %v3680_v54 }
 0x23e   : > { %v1012_v40 = vmul.f32 %v980_v39, %v980_v39  ;;  %v1013_v63 = vmul.f32 %v981_v35, %v981_v35 }
 0x23f   : > { %v890_v48 = vpop.xlane.xlu0 %889 }
 0x240   : > { %v928_v5 = vmul.f32 0.0052083335, %v890_v48  ;;  %v1047_v6 = vadd.f32 %v1013_v63, %v1012_v40 }
 0x242   : > { %v3688_v52 = vsub.f32 %v3571_v61, %v928_v5  ;;  %v3691_v8 = vsub.f32 %v3574_v29, %v928_v5  ;;  %1048 = vadd.xlane.f32.xlu0 %v1047_v6  ;;  %910 = vadd.xlane.f32.xlu2 %v909_v2  ;;  %v2867_v61 = vld [vmem:[%s4566_s4 + $0xf8] sm:$0xf0]  ;;  %v817_v29 = vpop.f32.mrf.mxu0  ;;  %v866_v18 = vpop.f32.mrf.mxu1 }
 0x243   : > { %v3711_v19 = vor.u32 %v2983_v36, %v2867_v61  ;;  %v3714_v45 = vadd.f32 %v817_v29, %v3486_v55  ;;  %v3717_v20 = vadd.f32 %v866_v18, %v3489_v57 }
 0x244   : > { %4608 = vst [vmem:[#allocation4_spill] sm:$0xff] %v3688_v52  ;;  %v982_v30 = vmul.f32 %v3610_v28, %v3688_v52  ;;  %v983_v60 = vmul.f32 %v3613_v15, %v3691_v8 }
 0x245   : > { %4609 = vst [vmem:[#allocation5_spill] sm:$0xff] %v3691_v8  ;;  %1767 = vmatpush.bf16.msrb.mxu1 %v3711_v19  ;;  %v912_v1 = vadd.f32 %v3717_v20, %v3714_v45 }
 0x246   : > { %4611 = vst [vmem:[#allocation7_spill] sm:$0xff] %v3711_v19  ;;  %v1014_v33 = vmul.f32 %v982_v30, %v982_v30  ;;  %v1015_v13 = vmul.f32 %v983_v60, %v983_v60 }
 0x247   : > { %v893_v22 = vpop.xlane.xlu1 %892 }
 0x248   : > { %v929_v14 = vmul.f32 0.0052083335, %v893_v22  ;;  %v1050_v32 = vadd.f32 %v1015_v13, %v1014_v33 }
 0x24a   : > { %v3724_v46 = vsub.f32 %v3584_v34, %v929_v14  ;;  %v3727_v38 = vsub.f32 %v3587_v25, %v929_v14  ;;  %913 = vadd.xlane.f32.xlu2 %v912_v1  ;;  %1051 = vadd.xlane.f32.xlu0 %v1050_v32  ;;  %v819_v49 = vpop.f32.mrf.mxu0  ;;  %v868_v3 = vpop.f32.mrf.mxu1 }
 0x24b   : > { %v3734_v43 = vadd.f32 %v819_v49, %v3486_v55  ;;  %v3737_v53 = vadd.f32 %v868_v3, %v3489_v57 }
 0x24c   : > { %4612 = vst [vmem:[#allocation8_spill] sm:$0xff] %v3724_v46  ;;  %v984_v9 = vmul.f32 %v3610_v28, %v3724_v46  ;;  %v985_v41 = vmul.f32 %v3613_v15, %v3727_v38 }
 0x24d   : > { %4613 = vst [vmem:[#allocation9_spill] sm:$0xff] %v3727_v38  ;;  %v915_v63 = vadd.f32 %v3737_v53, %v3734_v43 }
 0x24e   : > { %v1016_v34 = vmul.f32 %v984_v9, %v984_v9  ;;  %v1017_v39 = vmul.f32 %v985_v41, %v985_v41 }
 0x24f   : > { %v896_v25 = vpop.xlane.xlu2 %895 }
 0x250   : > { %v930_v35 = vmul.f32 0.0052083335, %v896_v25  ;;  %v1053_v40 = vadd.f32 %v1017_v39, %v1016_v34  ;;  %v2965_v34 = vld [vmem:[%s4566_s4 + $0x64] sm:$0xf]  ;;  %v2968_v25 = vld [vmem:[%s4566_s4 + $0x74] sm:$0xf0] }
 0x252   : > { %v3742_v48 = vsub.f32 %v3594_v4, %v930_v35  ;;  %v3745_v5 = vsub.f32 %v3597_v42, %v930_v35  ;;  %1054 = vadd.xlane.f32.xlu1 %v1053_v40  ;;  %916 = vadd.xlane.f32.xlu0 %v915_v63  ;;  %v822_v6 = vpop.f32.mrf.mxu0  ;;  %v871_v2 = vpop.f32.mrf.mxu1  ;;  %v2865_v35 = vld [vmem:[%s4566_s4 + $0xf0] sm:$0xf]  ;;  %v2984_v63 = vld [vmem:[%s4566_s4 + $0xf4] sm:$0xf0] }
 0x253   : > { %v3752_v36 = vadd.f32 %v822_v6, %v3486_v55  ;;  %v3755_v61 = vadd.f32 %v871_v2, %v3489_v57  ;;  %v3800_v6 = vor.u32 %v2984_v63, %v2865_v35  ;;  %v2981_v2 = vld [vmem:[%s4566_s4 + $0xe4] sm:$0xf]  ;;  %v2777_v35 = vld [vmem:[%s4566_s4 + $0x40] sm:$0xf]  ;;  %v2962_v63 = vld [vmem:[%s4566_s4 + $0x44] sm:$0xf0] }
 0x254   : > { %4614 = vst [vmem:[#allocation10_spill] sm:$0xff] %v3742_v48  ;;  %v986_v47 = vmul.f32 %v3610_v28, %v3742_v48  ;;  %v987_v44 = vmul.f32 %v3613_v15, %v3745_v5 }
 0x255   : > { %4615 = vst [vmem:[#allocation11_spill] sm:$0xff] %v3745_v5  ;;  %v918_v60 = vadd.f32 %v3755_v61, %v3752_v36  ;;  %1669 = vmatpush.bf16.msra.mxu3 %v3800_v6  ;;  %v2827_v5 = vld [vmem:[%s4566_s4 + $0xa8] sm:$0xf0] }
 0x256   : > { %4616 = vst [vmem:[#allocation12_spill] sm:$0xff] %v3752_v36  ;;  %v1018_v4 = vmul.f32 %v986_v47, %v986_v47  ;;  %v1019_v29 = vmul.f32 %v987_v44, %v987_v44  ;;  %v2859_v47 = vld [vmem:[%s4566_s4 + $0xe8] sm:$0xf0]  ;;  %v2793_v44 = vld [vmem:[%s4566_s4 + $0x60] sm:$0xf] }
 0x257   : > { %4617 = vst [vmem:[#allocation13_spill] sm:$0xff] %v3755_v61  ;;  %v899_v42 = vpop.xlane.xlu0 %898 }
 0x258   : > { %v931_v18 = vmul.f32 0.0052083335, %v899_v42  ;;  %v1056_v30 = vadd.f32 %v1019_v29, %v1018_v4  ;;  %4622 = vst [vmem:[#allocation18_spill] sm:$0xff] %v3800_v6  ;;  %v3813_v4 = vor.u32 %v2981_v2, %v2859_v47  ;;  %v2966_v29 = vld [vmem:[%s4566_s4 + $0x64] sm:$0xf0]  ;;  %v3876_v47 = vor.u32 %v2962_v63, %v2777_v35 }
 0x259   : > { %v2857_v42 = vld [vmem:[%s4566_s4 + $0xe0] sm:$0xf]  ;;  %v2976_v35 = vld [vmem:[%s4566_s4 + $0xb4] sm:$0xf0]  ;;  %v2959_v63 = vld [vmem:[%s4566_s4 + $0x34] sm:$0xf] }
 0x25a   : > { %v3760_v33 = vsub.f32 %v3602_v27, %v931_v18  ;;  %v3763_v13 = vsub.f32 %v3605_v31, %v931_v18  ;;  %1057 = vadd.xlane.f32.xlu1 %v1056_v30  ;;  %919 = vadd.xlane.f32.xlu0 %v918_v60  ;;  %v824_v22 = vpop.f32.mrf.mxu0  ;;  %v873_v14 = vpop.f32.mrf.mxu1  ;;  %v2982_v18 = vld [vmem:[%s4566_s4 + $0xe4] sm:$0xf0]  ;;  %v3824_v30 = vor.u32 %v2966_v29, %v2793_v44  ;;  %v2841_v2 = vld [vmem:[%s4566_s4 + $0xc0] sm:$0xf]  ;;  %v2961_v29 = vld [vmem:[%s4566_s4 + $0x44] sm:$0xf] }
 0x25b   : > { %v3770_v49 = vadd.f32 %v824_v22, %v3486_v55  ;;  %v3773_v3 = vadd.f32 %v873_v14, %v3489_v57  ;;  %v2795_v55 = vld [vmem:[%s4566_s4 + $0x68] sm:$0xf0]  ;;  %v2801_v57 = vld [vmem:[%s4566_s4 + $0x70] sm:$0xf]  ;;  %v3826_v60 = vor.u32 %v2982_v18, %v2857_v42  ;;  %1768 = vmatpush.bf16.msrb.mxu1 %v3813_v4  ;;  %v2963_v22 = vld [vmem:[%s4566_s4 + $0x54] sm:$0xf] }
 0x25c   : > { %4618 = vst [vmem:[#allocation14_spill] sm:$0xff] %v3760_v33  ;;  %v988_v1 = vmul.f32 %v3610_v28, %v3760_v33  ;;  %v989_v32 = vmul.f32 %v3613_v15, %v3763_v13  ;;  %v3783_v39 = vor.u32 %v2965_v34, %v2795_v55  ;;  %v3795_v40 = vor.u32 %v2968_v25, %v2801_v57  ;;  %v2787_v14 = vld [vmem:[%s4566_s4 + $0x58] sm:$0xf0]  ;;  %v2849_v55 = vld [vmem:[%s4566_s4 + $0xd0] sm:$0xf] }
 0x25d   : > { %4619 = vst [vmem:[#allocation15_spill] sm:$0xff] %v3763_v13  ;;  %v921_v31 = vadd.f32 %v3773_v3, %v3770_v49  ;;  %1670 = vmatpush.bf16.msra.mxu3 %v3826_v60  ;;  %v2980_v57 = vld [vmem:[%s4566_s4 + $0xd4] sm:$0xf0]  ;;  %v2978_v44 = vld [vmem:[%s4566_s4 + $0xc4] sm:$0xf0] }
 0x25e   : > { %4620 = vst [vmem:[#allocation16_spill] sm:$0xff] %v3770_v49  ;;  %v1020_v27 = vmul.f32 %v988_v1, %v988_v1  ;;  %v1021_v9 = vmul.f32 %v989_v32, %v989_v32  ;;  %1719 = vmatpush.bf16.msrb.mxu0 %v3783_v39  ;;  %1620 = vmatpush.bf16.msra.mxu2 %v3795_v40  ;;  %v2979_v1 = vld [vmem:[%s4566_s4 + $0xd4] sm:$0xf]  ;;  %v2779_v42 = vld [vmem:[%s4566_s4 + $0x48] sm:$0xf0] }
 0x25f   : > { %4621 = vst [vmem:[#allocation17_spill] sm:$0xff] %v3773_v3  ;;  %v3840_v32 = vor.u32 %v2963_v22, %v2787_v14  ;;  %v3862_v25 = vor.u32 %v2980_v57, %v2849_v55  ;;  %v3887_v18 = vor.u32 %v2978_v44, %v2841_v2  ;;  %v3889_v22 = vor.u32 %v2961_v29, %v2779_v42  ;;  %v2977_v14 = vld [vmem:[%s4566_s4 + $0xc4] sm:$0xf]  ;;  %v2833_v55 = vld [vmem:[%s4566_s4 + $0xb0] sm:$0xf] }
 0x260   : > { %v1059_v41 = vadd.f32 %v1021_v9, %v1020_v27  ;;  %v2851_v27 = vld [vmem:[%s4566_s4 + $0xd8] sm:$0xf0]  ;;  %v2785_v9 = vld [vmem:[%s4566_s4 + $0x50] sm:$0xf]  ;;  %v3923_v44 = vor.u32 %v2976_v35, %v2833_v55  ;;  %v2975_v42 = vld [vmem:[%s4566_s4 + $0xb4] sm:$0xf] }
 0x261   : > { %1671 = vmatpush.bf16.msra.mxu3 %v3862_v25  ;;  %v2771_v2 = vld [vmem:[%s4566_s4 + $0x38] sm:$0xf0]  ;;  %v2761_v55 = vld [vmem:[%s4566_s4 + $0x20] sm:$0xf]  ;;  %v2958_v35 = vld [vmem:[%s4566_s4 + $0x24] sm:$0xf0] }
 0x262   : > { %922 = vadd.xlane.f32.xlu1 %v921_v31  ;;  %1060 = vadd.xlane.f32.xlu2 %v1059_v41  ;;  %v2964_v31 = vld [vmem:[%s4566_s4 + $0x54] sm:$0xf0]  ;;  %v3851_v41 = vor.u32 %v2979_v1, %v2851_v27  ;;  %v2843_v1 = vld [vmem:[%s4566_s4 + $0xc8] sm:$0xf0]  ;;  %v3925_v29 = vor.u32 %v2959_v63, %v2771_v2  ;;  %v3945_v63 = vor.u32 %v2958_v35, %v2761_v55  ;;  %v2825_v2 = vld [vmem:[%s4566_s4 + $0xa0] sm:$0xf] }
 0x263   : > { %1621 = vmatpush.bf16.msra.mxu2 %v3824_v30  ;;  %v3853_v34 = vor.u32 %v2964_v31, %v2785_v9  ;;  %1720 = vmatpush.bf16.msrb.mxu0 %v3840_v32  ;;  %v3897_v27 = vor.u32 %v2977_v14, %v2843_v1  ;;  %v2769_v9 = vld [vmem:[%s4566_s4 + $0x30] sm:$0xf]  ;;  %v2960_v31 = vld [vmem:[%s4566_s4 + $0x34] sm:$0xf0]  ;;  %v2835_v14 = vld [vmem:[%s4566_s4 + $0xb8] sm:$0xf0] }
 0x264   : > { %1769 = vmatpush.bf16.msrb.mxu1 %v3851_v41  ;;  %v3912_v57 = vor.u32 %v2960_v31, %v2769_v9  ;;  %4623 = vst [vmem:[#allocation19_spill] sm:$0xff] %v3925_v29  ;;  %v3933_v9 = vor.u32 %v2975_v42, %v2835_v14  ;;  %v2974_v42 = vld [vmem:[%s4566_s4 + $0xa4] sm:$0xf0]  ;;  %v2957_v14 = vld [vmem:[%s4566_s4 + $0x24] sm:$0xf] }
 0x265   : > { %1672 = vmatpush.bf16.msra.mxu3 %v3887_v18  ;;  %v3962_v55 = vor.u32 %v2974_v42, %v2825_v2  ;;  %v2763_v35 = vld [vmem:[%s4566_s4 + $0x28] sm:$0xf0]  ;;  %v2973_v33 = vld [vmem:[%s4566_s4 + $0xa4] sm:$0xf]  ;;  %v2753_v42 = vld [vmem:[%s4566_s4 + $0x10] sm:$0xf] }
 0x266   : > { %v3975_v38 = vor.u32 %v2973_v33, %v2827_v5  ;;  %v2817_v5 = vld [vmem:[%s4566_s4 + $0x90] sm:$0xf]  ;;  %v2972_v33 = vld [vmem:[%s4566_s4 + $0x94] sm:$0xf0]  ;;  %v2971_v3 = vld [vmem:[%s4566_s4 + $0x94] sm:$0xf] }
 0x267   : > { %1622 = vmatpush.bf16.msra.mxu2 %v3853_v34  ;;  %1721 = vmatpush.bf16.msrb.mxu0 %v3889_v22 }
 0x268   : > { %1770 = vmatpush.bf16.msrb.mxu1 %v3897_v27 }
 0x269   : > { %1673 = vmatpush.bf16.msra.mxu3 %v3923_v44 }
 0x26b   : > { %1623 = vmatpush.bf16.msra.mxu2 %v3876_v47  ;;  %1722 = vmatpush.bf16.msrb.mxu0 %v3925_v29 }
 0x26c   : > { %1771 = vmatpush.bf16.msrb.mxu1 %v3933_v9 }
 0x26d   : > { %1674 = vmatpush.bf16.msra.mxu3 %v3962_v55 }
 0x26f   : > { %1624 = vmatpush.bf16.msra.mxu2 %v3912_v57 }
 0x270   : > { %1772 = vmatpush.bf16.msrb.mxu1 %v3975_v38 }
 0x273   : > { %1625 = vmatpush.bf16.msra.mxu2 %v3945_v63 }
 0x299   : > { %v902_v1 = vpop.xlane.xlu0 %901 }
 0x29a   : > { %v932_v31 = vmul.f32 0.0052083335, %v902_v1 }
 0x29c   : > { %v3957_v1 = vsub.f32 %v3622_v59, %v932_v31  ;;  %v3960_v13 = vsub.f32 %v3625_v62, %v932_v31  ;;  %v3973_v59 = vor.u32 %v2957_v14, %v2763_v35  ;;  %v2956_v14 = vld [vmem:[%s4566_s4 + $0x14] sm:$0xf0]  ;;  %v2955_v35 = vld [vmem:[%s4566_s4 + $0x14] sm:$0xf] }
 0x29d   : > { %v1040_v48 = vpop.xlane.xlu1 %1039 }
 0x29e   : > { %4624 = vst [vmem:[#allocation20_spill] sm:$0xff] %v3957_v1  ;;  %v1086_v62 = vmul.f32 0.0052083335, %v1040_v48  ;;  %v990_v31 = vmul.f32 %v3610_v28, %v3957_v1  ;;  %v991_v2 = vmul.f32 %v3613_v15, %v3960_v13  ;;  %1723 = vmatpush.bf16.msrb.mxu0 %v3973_v59  ;;  %v3990_v48 = vor.u32 %v2956_v14, %v2753_v42  ;;  %v2755_v14 = vld [vmem:[%s4566_s4 + $0x18] sm:$0xf0] }
 0x29f   : > { %4625 = vst [vmem:[#allocation21_spill] sm:$0xff] %v3960_v13  ;;  %v4004_v42 = vor.u32 %v2972_v33, %v2817_v5  ;;  %v4012_v49 = vor.u32 %v2955_v35, %v2755_v14  ;;  %v2745_v5 = vld [vmem:[%s4566_s4] sm:$0xf]  ;;  %v2954_v33 = vld [vmem:[%s4566_s4 + $0x4] sm:$0xf0] }
 0x2a0   : > { %v4001_v13 = vadd.f32 1e-05, %v1086_v62  ;;  %v1022_v1 = vmul.f32 %v990_v31, %v990_v31  ;;  %v1023_v46 = vmul.f32 %v991_v2, %v991_v2  ;;  %v2819_v62 = vld [vmem:[%s4566_s4 + $0x98] sm:$0xf0]  ;;  %1626 = vmatpush.bf16.msra.mxu2 %v3990_v48  ;;  %v2809_v35 = vld [vmem:[%s4566_s4 + $0x80] sm:$0xf] }
 0x2a1   : > { %v4019_v2 = vor.u32 %v2971_v3, %v2819_v62  ;;  %1675 = vmatpush.bf16.msra.mxu3 %v4004_v42  ;;  %v2970_v3 = vld [vmem:[%s4566_s4 + $0x84] sm:$0xf0]  ;;  %v2747_v14 = vld [vmem:[%s4566_s4 + $0x8] sm:$0xf0] }
 0x2a2   : > { %3042 = vrsqrt.f32 %v4001_v13  ;;  %v1062_v31 = vadd.f32 %v1023_v46, %v1022_v1  ;;  %1724 = vmatpush.bf16.msrb.mxu0 %v4012_v49  ;;  %v4032_v46 = vor.u32 %v2954_v33, %v2745_v5  ;;  %v2953_v1 = vld [vmem:[%s4566_s4 + $0x4] sm:$0xf]  ;;  %v4044_v62 = vor.u32 %v2970_v3, %v2809_v35  ;;  %v2811_v33 = vld [vmem:[%s4566_s4 + $0x88] sm:$0xf0] }
 0x2a3   : > { %1773 = vmatpush.bf16.msrb.mxu1 %v4019_v2  ;;  %v4046_v8 = vor.u32 %v2953_v1, %v2747_v14  ;;  %v2969_v5 = vld [vmem:[%s4566_s4 + $0x84] sm:$0xf]  ;;  %vm1124_vm1 = vweird.f32 %v4001_v13 }
 0x2a4   : > { %1063 = vadd.xlane.f32.xlu2 %v1062_v31  ;;  %v4054_v36 = vor.u32 %v2969_v5, %v2811_v33  ;;  %1627 = vmatpush.bf16.msra.mxu2 %v4032_v46 }
 0x2a5   : > { %v905_v52 = vpop.xlane.xlu1 %904  ;;  %v1043_v61 = vpop.xlane.xlu2 %1042  ;;  %1676 = vmatpush.bf16.msra.mxu3 %v4044_v62 }
 0x2a6   : > { %v933_v58 = vmul.f32 0.0052083335, %v905_v52  ;;  %v1087_v31 = vmul.f32 0.0052083335, %v1043_v61  ;;  %1725 = vmatpush.bf16.msrb.mxu0 %v4046_v8 }
 0x2a7   : > { %1774 = vmatpush.bf16.msrb.mxu1 %v4054_v36 }
 0x2a8   : > { %v3043_v35 = vpop.eup %3042  ;;  %v4060_v3 = vsub.f32 %v3640_v16, %v933_v58  ;;  %v4063_v1 = vsub.f32 %v3643_v17, %v933_v58  ;;  %v4065_v14 = vadd.f32 1e-05, %v1087_v31  ;;  %1864 = vmatpush.bf16.msrb.mxu2 %v3795_v40 }
 0x2a9   : > { %v1119_v52 = vmul.f32 %v3043_v35, %v4001_v13  ;;  %1913 = vmatpush.bf16.msrb.mxu3 %v3800_v6  ;;  %vm1125_vm0 = vweird.f32 %v3043_v35 }
 0x2aa   : > { %4626 = vst [vmem:[#allocation22_spill] sm:$0xff] %v4060_v3  ;;  %1962 = vmatpush.bf16.msra.mxu0 %v3702_v0  ;;  %3044 = vrsqrt.f32 %v4065_v14  ;;  %v992_v16 = vmul.f32 %v3610_v28, %v4060_v3  ;;  %v993_v17 = vmul.f32 %v3613_v15, %v4063_v1  ;;  %vm1126_vm2 = vmor %vm1124_vm1, %vm1125_vm0  ;;  %vm1134_vm4 = vweird.f32 %v4065_v14 }
 0x2ab   : > { %4627 = vst [vmem:[#allocation23_spill] sm:$0xff] %v4063_v1  ;;  %2011 = vmatpush.bf16.msra.mxu1 %v3711_v19  ;;  %v1120_v58 = vmul.f32 %v3043_v35, %v1119_v52 }
 0x2ac   : > { %v1024_v61 = vmul.f32 %v992_v16, %v992_v16  ;;  %v1025_v5 = vmul.f32 %v993_v17, %v993_v17  ;;  %1865 = vmatpush.bf16.msrb.mxu2 %v3824_v30 }
 0x2ad   : > { %v1121_v33 = vmul.f32 0.5, %v1120_v58  ;;  %v908_v31 = vpop.xlane.xlu1 %907  ;;  %v1046_v12 = vpop.xlane.xlu2 %1045  ;;  %1914 = vmatpush.bf16.msrb.mxu3 %v3826_v60 }
 0x2ae   : > { %1963 = vmatpush.bf16.msra.mxu0 %v3783_v39  ;;  %v934_v0 = vmul.f32 0.0052083335, %v908_v31  ;;  %v1088_v6 = vmul.f32 0.0052083335, %v1046_v12  ;;  %v1065_v3 = vadd.f32 %v1025_v5, %v1024_v61  ;;  %v4103_v61 = vperm.slane %v3471_v37, 0 }
 0x2af   : > { %2012 = vmatpush.bf16.msra.mxu1 %v3813_v4  ;;  %v1122_v1 = vsub.f32 1.5, %v1121_v33 }
 0x2b0   : > { %v3045_v19 = vpop.eup %3044  ;;  %v4083_v52 = vsub.f32 %v3662_v7, %v934_v0  ;;  %v4086_v16 = vsub.f32 %v3665_v23, %v934_v0  ;;  %v4088_v17 = vadd.f32 1e-05, %v1088_v6  ;;  %1066 = vadd.xlane.f32.xlu0 %v1065_v3  ;;  %1866 = vmatpush.bf16.msrb.mxu2 %v3853_v34 }
 0x2b1   : > { %v1123_v58 = vmul.f32 %v3043_v35, %v1122_v1  ;;  %v1129_v12 = vmul.f32 %v3045_v19, %v4065_v14  ;;  %1915 = vmatpush.bf16.msrb.mxu3 %v3862_v25  ;;  %vm1135_vm3 = vweird.f32 %v3045_v19 }
 0x2b2   : > { %4628 = vst [vmem:[#allocation24_spill] sm:$0xff] %v4083_v52  ;;  %1964 = vmatpush.bf16.msra.mxu0 %v3840_v32  ;;  %3046 = vrsqrt.f32 %v4088_v17  ;;  %v994_v7 = vmul.f32 %v3610_v28, %v4083_v52  ;;  %v995_v23 = vmul.f32 %v3613_v15, %v4086_v16  ;;  %vm1136_vm5 = vmor %vm1134_vm4, %vm1135_vm3  ;;  %vm1144_vm6 = vweird.f32 %v4088_v17 }
 0x2b3   : > { %4629 = vst [vmem:[#allocation25_spill] sm:$0xff] %v4086_v16  ;;  %2013 = vmatpush.bf16.msra.mxu1 %v3851_v41  ;;  %v1127_v0 = vsel %vm1126_vm2, %v3043_v35, %v1123_v58  ;;  %v1130_v6 = vmul.f32 %v3045_v19, %v1129_v12  ;;  %v4108_v16 = vperm.slane %v3480_v26, 0 }
 0x2b4   : > { %v1026_v13 = vmul.f32 %v994_v7, %v994_v7  ;;  %v1027_v3 = vmul.f32 %v995_v23, %v995_v23  ;;  %v1278_v1 = vmul.f32 %v1127_v0, %v3616_v51  ;;  %1867 = vmatpush.bf16.msrb.mxu2 %v3876_v47  ;;  %v1279_v52 = vmul.f32 %v1127_v0, %v3619_v56 }
 0x2b5   : > { %v1131_v5 = vmul.f32 0.5, %v1130_v6  ;;  %v911_v33 = vpop.xlane.xlu2 %910  ;;  %v1049_v31 = vpop.xlane.xlu0 %1048  ;;  %1916 = vmatpush.bf16.msrb.mxu3 %v3887_v18  ;;  %v4114_v7 = vperm.slane %v3471_v37, 1  ;;  %v4117_v23 = vperm.slane %v3480_v26, 1 }
 0x2b6   : > { %1965 = vmatpush.bf16.msra.mxu0 %v3889_v22  ;;  %v935_v35 = vmul.f32 0.0052083335, %v911_v33  ;;  %v1089_v58 = vmul.f32 0.0052083335, %v1049_v31  ;;  %v1068_v51 = vadd.f32 %v1027_v3, %v1026_v13  ;;  %v1312_v13 = vmul.f32 %v4103_v61, %v1278_v1 }
 0x2b7   : > { %2014 = vmatpush.bf16.msra.mxu1 %v3897_v27  ;;  %v1132_v12 = vsub.f32 1.5, %v1131_v5  ;;  %v1313_v26 = vmul.f32 %v4108_v16, %v1279_v52 }
 0x2b8   : > { %v3047_v56 = vpop.eup %3046  ;;  %v4120_v0 = vsub.f32 %v3680_v54, %v935_v35  ;;  %v4123_v6 = vsub.f32 %v3683_v50, %v935_v35  ;;  %v4125_v33 = vadd.f32 1e-05, %v1089_v58  ;;  %1069 = vadd.xlane.f32.xlu1 %v1068_v51  ;;  %1868 = vmatpush.bf16.msrb.mxu2 %v3912_v57 }
 0x2b9   : > { %v1133_v3 = vmul.f32 %v3045_v19, %v1132_v12  ;;  %v1139_v37 = vmul.f32 %v3047_v56, %v4088_v17  ;;  %1917 = vmatpush.bf16.msrb.mxu3 %v3923_v44  ;;  %vm1145_vm7 = vweird.f32 %v3047_v56 }
 0x2ba   : > { %4630 = vst [vmem:[#allocation26_spill] sm:$0xff] %v4120_v0  ;;  %1966 = vmatpush.bf16.msra.mxu0 %v3925_v29  ;;  %3048 = vrsqrt.f32 %v4125_v33  ;;  %v996_v54 = vmul.f32 %v3610_v28, %v4120_v0  ;;  %v997_v50 = vmul.f32 %v3613_v15, %v4123_v6  ;;  %v1346_v0 = vadd.f32 %v4114_v7, %v1312_v13  ;;  %vm1146_vm8 = vmor %vm1144_vm6, %vm1145_vm7 }
 0x2bb   : > { %2015 = vmatpush.bf16.msra.mxu1 %v3933_v9  ;;  %v1137_v14 = vsel %vm1136_vm5, %v3045_v19, %v1133_v3  ;;  %v1140_v1 = vmul.f32 %v3047_v56, %v1139_v37  ;;  %v1347_v29 = vadd.f32 %v4117_v23, %v1313_v26  ;;  %vm1154_vm10 = vweird.f32 %v4125_v33 }
 0x2bc   : > { %v1028_v5 = vmul.f32 %v996_v54, %v996_v54  ;;  %v1029_v52 = vmul.f32 %v997_v50, %v997_v50  ;;  %v1280_v31 = vmul.f32 %v1137_v14, %v3634_v10  ;;  %v1281_v35 = vmul.f32 %v1137_v14, %v3637_v11  ;;  %1869 = vmatpush.bf16.msrb.mxu2 %v3945_v63 }
 0x2bd   : > { %v1141_v58 = vmul.f32 0.5, %v1140_v1  ;;  %v914_v51 = vpop.xlane.xlu2 %913  ;;  %v1052_v12 = vpop.xlane.xlu0 %1051  ;;  %1918 = vmatpush.bf16.msrb.mxu3 %v3962_v55 }
 0x2be   : > { %1967 = vmatpush.bf16.msra.mxu0 %v3973_v59  ;;  %v936_v19 = vmul.f32 0.0052083335, %v914_v51  ;;  %v1090_v3 = vmul.f32 0.0052083335, %v1052_v12  ;;  %v1071_v37 = vadd.f32 %v1029_v52, %v1028_v5  ;;  %v1314_v10 = vmul.f32 %v4103_v61, %v1280_v31 }
 0x2bf   : > { %2016 = vmatpush.bf16.msra.mxu1 %v3975_v38  ;;  %v1142_v11 = vsub.f32 1.5, %v1141_v58  ;;  %v1315_v54 = vmul.f32 %v4108_v16, %v1281_v35  ;;  %v1378_v31 = vmax.f32 %v1346_v0, 0.0 }
 0x2c0   : > { %v4152_v13 = vpop.eup %3048  ;;  %v4155_v26 = vsub.f32 %v3714_v45, %v936_v19  ;;  %v4158_v50 = vsub.f32 %v3717_v20, %v936_v19  ;;  %v4160_v14 = vadd.f32 1e-05, %v1090_v3  ;;  %1072 = vadd.xlane.f32.xlu2 %v1071_v37  ;;  %v1348_v1 = vadd.f32 %v4114_v7, %v1314_v10  ;;  %1870 = vmatpush.bf16.msrb.mxu2 %v3990_v48 }
 0x2c1   : > { %v1143_v5 = vmul.f32 %v3047_v56, %v1142_v11  ;;  %v1149_v52 = vmul.f32 %v4152_v13, %v4125_v33  ;;  %v1349_v35 = vadd.f32 %v4117_v23, %v1315_v54  ;;  %1919 = vmatpush.bf16.msrb.mxu3 %v4004_v42  ;;  %v1379_v20 = vmax.f32 %v1347_v29, 0.0  ;;  %v4634_v33 = vld [vmem:[#allocation7_spill] sm:$0xff] }
 0x2c2   : > { %4631 = vst [vmem:[#allocation27_spill] sm:$0xff] %v4155_v26  ;;  %1968 = vmatpush.bf16.msra.mxu0 %v4012_v49  ;;  %3050 = vrsqrt.f32 %v4160_v14  ;;  %v1380_v45 = vmax.f32 %v1348_v1, 0.0  ;;  %v998_v58 = vmul.f32 %v3610_v28, %v4155_v26  ;;  %v999_v19 = vmul.f32 %v3613_v15, %v4158_v50 }
 0x2c3   : > { %2017 = vmatpush.bf16.msra.mxu1 %v4019_v2  ;;  %v1147_v0 = vsel %vm1146_vm8, %v3047_v56, %v1143_v5  ;;  %v1150_v51 = vmul.f32 %v4152_v13, %v1149_v52  ;;  %v1381_v12 = vmax.f32 %v1349_v35, 0.0  ;;  %vm1155_vm9 = vweird.f32 %v4152_v13 }
 0x2c4   : > { %v1442_v3 = vpack.c.bf16 %v1380_v45, %v1378_v31  ;;  %v1030_v37 = vmul.f32 %v998_v58, %v998_v58  ;;  %v1282_v17 = vmul.f32 %v1147_v0, %v3652_v24  ;;  %1871 = vmatpush.bf16.msrb.mxu2 %v4032_v46  ;;  %v1031_v1 = vmul.f32 %v999_v19, %v999_v19  ;;  %vm1156_vm11 = vmor %vm1154_vm10, %vm1155_vm9 }
 0x2c5   : > { %v1151_v10 = vmul.f32 0.5, %v1150_v51  ;;  %v1055_v29 = vpop.xlane.xlu1 %1054  ;;  %v917_v11 = vpop.xlane.xlu0 %916  ;;  %v1443_v54 = vpack.c.bf16 %v1381_v12, %v1379_v20  ;;  %v1283_v26 = vmul.f32 %v1147_v0, %v3655_v21  ;;  %1920 = vmatpush.bf16.msrb.mxu3 %v4044_v62  ;;  %v4633_v12 = vld [vmem:[#allocation6_spill] sm:$0xff]  ;;  %vm1164_vm12 = vweird.f32 %v4160_v14 }
 0x2c6   : > { %1969 = vmatpush.bf16.msra.mxu0 %v4046_v8  ;;  %v1091_v56 = vmul.f32 0.0052083335, %v1055_v29  ;;  %v937_v5 = vmul.f32 0.0052083335, %v917_v11  ;;  %1628 = vmatmul.bf16.vlgmr.msra.gmra.mxu2 %v1442_v3  ;;  %v1074_v24 = vadd.f32 %v1031_v1, %v1030_v37  ;;  %v1316_v20 = vmul.f32 %v4103_v61, %v1282_v17  ;;  %v4635_v17 = vld [vmem:[#allocation2_spill] sm:$0xff]  ;;  %v4636_v29 = vld [vmem:[#allocation3_spill] sm:$0xff] }
 0x2c7   : > { %1726 = vmatmul.bf16.vlgmr.msrb.gmra.mxu0 %v1442_v3  ;;  %v1152_v52 = vsub.f32 1.5, %v1151_v10  ;;  %1677 = vmatmul.bf16.vlgmr.msra.gmra.mxu3 %v1443_v54  ;;  %v1317_v51 = vmul.f32 %v4108_v16, %v1283_v26 }
 0x2c8   : > { %1775 = vmatmul.bf16.vlgmr.msrb.gmra.mxu1 %v1443_v54  ;;  %v3051_v31 = vpop.eup %3050  ;;  %v4185_v35 = vadd.f32 1e-05, %v1091_v56  ;;  %v4188_v45 = vsub.f32 %v3734_v43, %v937_v5  ;;  %v4191_v21 = vsub.f32 %v3737_v53, %v937_v5  ;;  %2108 = vmatpush.bf16.msra.mxu2 %v3795_v40  ;;  %v4632_v43 = vld [vmem:[#allocation18_spill] sm:$0xff]  ;;  %v1350_v5 = vadd.f32 %v4114_v7, %v1316_v20 }
 0x2c9   : > { %2018 = vmatpush.bf16.msra.mxu1 %v4054_v36  ;;  %v1153_v58 = vmul.f32 %v4152_v13, %v1152_v52  ;;  %v1159_v0 = vmul.f32 %v3051_v31, %v4160_v14  ;;  %1075 = vadd.xlane.f32.xlu0 %v1074_v24  ;;  %v1351_v52 = vadd.f32 %v4117_v23, %v1317_v51  ;;  %vm1165_vm13 = vweird.f32 %v3051_v31  ;;  %v4637_v51 = vld [vmem:[#allocation12_spill] sm:$0xff] }
 0x2ca   : > { %2157 = vmatpush.bf16.msra.mxu3 %v4632_v43  ;;  %3052 = vrsqrt.f32 %v4185_v35  ;;  %v1000_v53 = vmul.f32 %v3610_v28, %v4188_v45  ;;  %v1001_v40 = vmul.f32 %v3613_v15, %v4191_v21  ;;  %2206 = vmatpush.bf16.msrb.mxu0 %v4633_v12  ;;  %vm1166_vm14 = vmor %vm1164_vm12, %vm1165_vm13  ;;  %vm1174_vm0 = vweird.f32 %v4185_v35 }
 0x2cb   : > { %v1157_v19 = vsel %vm1156_vm11, %v4152_v13, %v1153_v58  ;;  %v1160_v26 = vmul.f32 %v3051_v31, %v1159_v0 }
 0x2cc   : > { %v1032_v3 = vmul.f32 %v1000_v53, %v1000_v53  ;;  %v1033_v37 = vmul.f32 %v1001_v40, %v1001_v40  ;;  %v1284_v10 = vmul.f32 %v1157_v19, %v4635_v17  ;;  %v1285_v11 = vmul.f32 %v1157_v19, %v4636_v29  ;;  %2109 = vmatpush.bf16.msra.mxu2 %v3824_v30  ;;  %v4638_v40 = vld [vmem:[#allocation13_spill] sm:$0xff] }
 0x2cd   : > { %2255 = vmatpush.bf16.msrb.mxu1 %v4634_v33  ;;  %v1161_v54 = vmul.f32 0.5, %v1160_v26  ;;  %v1058_v1 = vpop.xlane.xlu1 %1057  ;;  %v920_v56 = vpop.xlane.xlu0 %919  ;;  %v1382_v19 = vmax.f32 %v1350_v5, 0.0 }
 0x2ce   : > { %2158 = vmatpush.bf16.msra.mxu3 %v3826_v60  ;;  %v1092_v24 = vmul.f32 0.0052083335, %v1058_v1  ;;  %v938_v13 = vmul.f32 0.0052083335, %v920_v56  ;;  %v1077_v58 = vadd.f32 %v1033_v37, %v1032_v3  ;;  %v1318_v0 = vmul.f32 %v4103_v61, %v1284_v10  ;;  %2207 = vmatpush.bf16.msrb.mxu0 %v3783_v39 }
 0x2cf   : > { %v1162_v43 = vsub.f32 1.5, %v1161_v54  ;;  %v1319_v30 = vmul.f32 %v4108_v16, %v1285_v11  ;;  %v1383_v37 = vmax.f32 %v1351_v52, 0.0 }
 0x2d0   : > { %v3053_v20 = vpop.eup %3052  ;;  %v4222_v53 = vadd.f32 1e-05, %v1092_v24  ;;  %v4225_v60 = vsub.f32 %v4637_v51, %v938_v13  ;;  %v4228_v12 = vsub.f32 %v4638_v40, %v938_v13  ;;  %1078 = vadd.xlane.f32.xlu1 %v1077_v58  ;;  %v1352_v39 = vadd.f32 %v4114_v7, %v1318_v0  ;;  %2110 = vmatpush.bf16.msra.mxu2 %v3853_v34  ;;  %v4639_v24 = vld [vmem:[#allocation4_spill] sm:$0xff]  ;;  %v4642_v40 = vld [vmem:[#allocation17_spill] sm:$0xff] }
 0x2d1   : > { %2256 = vmatpush.bf16.msrb.mxu1 %v3813_v4  ;;  %v1163_v4 = vmul.f32 %v3051_v31, %v1162_v43  ;;  %v1169_v33 = vmul.f32 %v3053_v20, %v4185_v35  ;;  %v1353_v26 = vadd.f32 %v4117_v23, %v1319_v30  ;;  %vm1175_vm15 = vweird.f32 %v3053_v20  ;;  %v4641_v30 = vld [vmem:[#allocation16_spill] sm:$0xff] }
 0x2d2   : > { %2159 = vmatpush.bf16.msra.mxu3 %v3862_v25  ;;  %3054 = vrsqrt.f32 %v4222_v53  ;;  %v1384_v3 = vmax.f32 %v1352_v39, 0.0  ;;  %v1002_v17 = vmul.f32 %v3610_v28, %v4225_v60  ;;  %2208 = vmatpush.bf16.msrb.mxu0 %v3840_v32  ;;  %v1003_v25 = vmul.f32 %v3613_v15, %v4228_v12  ;;  %vm1176_vm1 = vmor %vm1174_vm0, %vm1175_vm15 }
 0x2d3   : > { %v1167_v34 = vsel %vm1166_vm14, %v3051_v31, %v1163_v4  ;;  %v1170_v10 = vmul.f32 %v3053_v20, %v1169_v33  ;;  %v1385_v29 = vmax.f32 %v1353_v26, 0.0  ;;  %v4640_v31 = vld [vmem:[#allocation5_spill] sm:$0xff]  ;;  %vm1184_vm3 = vweird.f32 %v4222_v53 }
 0x2d4   : > { %v1444_v11 = vpack.c.bf16 %v1384_v3, %v1382_v19  ;;  %v1034_v14 = vmul.f32 %v1002_v17, %v1002_v17  ;;  %2111 = vmatpush.bf16.msra.mxu2 %v3876_v47  ;;  %v1035_v52 = vmul.f32 %v1003_v25, %v1003_v25  ;;  %v1286_v13 = vmul.f32 %v1167_v34, %v4639_v24  ;;  %v4645_v25 = vld [vmem:[#allocation19_spill] sm:$0xff] }
 0x2d5   : > { %2257 = vmatpush.bf16.msrb.mxu1 %v3851_v41  ;;  %v1171_v54 = vmul.f32 0.5, %v1170_v10  ;;  %v923_v1 = vpop.xlane.xlu1 %922  ;;  %v1061_v56 = vpop.xlane.xlu2 %1060  ;;  %v1445_v5 = vpack.c.bf16 %v1385_v29, %v1383_v37  ;;  %v1287_v58 = vmul.f32 %v1167_v34, %v4640_v31  ;;  %v4643_v34 = vld [vmem:[#allocation8_spill] sm:$0xff]  ;;  %v4644_v10 = vld [vmem:[#allocation9_spill] sm:$0xff] }
 0x2d6   : > { %2160 = vmatpush.bf16.msra.mxu3 %v3887_v18  ;;  %v939_v32 = vmul.f32 0.0052083335, %v923_v1  ;;  %v1093_v41 = vmul.f32 0.0052083335, %v1061_v56  ;;  %1633 = vmatmul.bf16.gmra.mxu2 %v1444_v11  ;;  %v1080_v47 = vadd.f32 %v1035_v52, %v1034_v14  ;;  %v1320_v19 = vmul.f32 %v4103_v61, %v1286_v13 }
 0x2d7   : > { %1731 = vmatmul.bf16.gmra.mxu0 %v1444_v11  ;;  %v1172_v0 = vsub.f32 1.5, %v1171_v54  ;;  %1682 = vmatmul.bf16.gmra.mxu3 %v1445_v5 }
 0x2d8   : > { %1780 = vmatmul.bf16.gmra.mxu1 %v1445_v5  ;;  %v3055_v43 = vpop.eup %3054  ;;  %v4249_v51 = vsub.f32 %v4641_v30, %v939_v32  ;;  %v4252_v39 = vsub.f32 %v4642_v40, %v939_v32  ;;  %v4254_v4 = vadd.f32 1e-05, %v1093_v41  ;;  %2209 = vmatpush.bf16.msrb.mxu0 %v3889_v22  ;;  %v4649_v40 = vld [vmem:[#allocation15_spill] sm:$0xff] }
 0x2d9   : > { %2258 = vmatpush.bf16.msrb.mxu1 %v3897_v27  ;;  %v1173_v18 = vmul.f32 %v3053_v20, %v1172_v0  ;;  %v1179_v33 = vmul.f32 %v3055_v43, %v4222_v53  ;;  %1081 = vadd.xlane.f32.xlu2 %v1080_v47  ;;  %v1321_v27 = vmul.f32 %v4108_v16, %v1287_v58  ;;  %vm1185_vm2 = vweird.f32 %v3055_v43  ;;  %v4647_v58 = vld [vmem:[#allocation11_spill] sm:$0xff] }
 0x2da   : > { %2112 = vmatpush.bf16.msra.mxu2 %v3912_v57  ;;  %3056 = vrsqrt.f32 %v4254_v4  ;;  %v1004_v26 = vmul.f32 %v3610_v28, %v4249_v51  ;;  %v1005_v22 = vmul.f32 %v3613_v15, %v4252_v39  ;;  %2161 = vmatpush.bf16.msra.mxu3 %v3923_v44  ;;  %v1354_v28 = vadd.f32 %v4114_v7, %v1320_v19  ;;  %vm1186_vm4 = vmor %vm1184_vm3, %vm1185_vm2 }
 0x2db   : > { %v1177_v35 = vsel %vm1176_vm1, %v3053_v20, %v1173_v18  ;;  %v1180_v3 = vmul.f32 %v3055_v43, %v1179_v33  ;;  %v1355_v14 = vadd.f32 %v4117_v23, %v1321_v27  ;;  %vm1194_vm6 = vweird.f32 %v4254_v4 }
 0x2dc   : > { %v1036_v37 = vmul.f32 %v1004_v26, %v1004_v26  ;;  %v1037_v17 = vmul.f32 %v1005_v22, %v1005_v22  ;;  %v1288_v57 = vmul.f32 %v1177_v35, %v4643_v34  ;;  %v1289_v29 = vmul.f32 %v1177_v35, %v4644_v10  ;;  %2210 = vmatpush.bf16.msrb.mxu0 %v4645_v25 }
 0x2dd   : > { %v1181_v11 = vmul.f32 0.5, %v1180_v3  ;;  %2259 = vmatpush.bf16.msrb.mxu1 %v3933_v9  ;;  %v1387_v24 = vmax.f32 %v1355_v14, 0.0 }
 0x2de   : > { %2113 = vmatpush.bf16.msra.mxu2 %v3945_v63  ;;  %v1083_v15 = vadd.f32 %v1037_v17, %v1036_v37  ;;  %v1322_v44 = vmul.f32 %v4103_v61, %v1288_v57  ;;  %v1323_v20 = vmul.f32 %v4108_v16, %v1289_v29  ;;  %2162 = vmatpush.bf16.msra.mxu3 %v3962_v55  ;;  %v1386_v55 = vmax.f32 %v1354_v28, 0.0 }
 0x2df   : > { %v1182_v54 = vsub.f32 1.5, %v1181_v11 }
 0x2e0   : > { %v3057_v1 = vpop.eup %3056  ;;  %1084 = vadd.xlane.f32.xlu0 %v1083_v15  ;;  %v1356_v56 = vadd.f32 %v4114_v7, %v1322_v44  ;;  %v1357_v5 = vadd.f32 %v4117_v23, %v1323_v20  ;;  %2211 = vmatpush.bf16.msrb.mxu0 %v3973_v59 }
 0x2e1   : > { %v1183_v9 = vmul.f32 %v3055_v43, %v1182_v54  ;;  %v1189_v63 = vmul.f32 %v3057_v1, %v4254_v4  ;;  %2260 = vmatpush.bf16.msrb.mxu1 %v3975_v38  ;;  %v4646_v38 = vld [vmem:[#allocation10_spill] sm:$0xff]  ;;  %vm1195_vm5 = vweird.f32 %v3057_v1 }
 0x2e2   : > { %2114 = vmatpush.bf16.msra.mxu2 %v3990_v48  ;;  %v1388_v52 = vmax.f32 %v1356_v56, 0.0  ;;  %v1389_v13 = vmax.f32 %v1357_v5, 0.0  ;;  %2163 = vmatpush.bf16.msra.mxu3 %v4004_v42  ;;  %vm1196_vm7 = vmor %vm1194_vm6, %vm1195_vm5 }
 0x2e3   : > { %v1187_v32 = vsel %vm1186_vm4, %v3055_v43, %v1183_v9  ;;  %v1190_v41 = vmul.f32 %v3057_v1, %v1189_v63  ;;  %v4648_v43 = vld [vmem:[#allocation14_spill] sm:$0xff] }
 0x2e4   : > { %v1446_v31 = vpack.c.bf16 %v1388_v52, %v1386_v55  ;;  %v1447_v59 = vpack.c.bf16 %v1389_v13, %v1387_v24  ;;  %2212 = vmatpush.bf16.msrb.mxu0 %v4012_v49  ;;  %v1290_v48 = vmul.f32 %v1187_v32, %v4646_v38  ;;  %v1291_v0 = vmul.f32 %v1187_v32, %v4647_v58  ;;  %v4650_v32 = vld [vmem:[#allocation20_spill] sm:$0xff] }
 0x2e5   : > { %v1191_v53 = vmul.f32 0.5, %v1190_v41  ;;  %2261 = vmatpush.bf16.msrb.mxu1 %v4019_v2 }
 0x2e6   : > { %2115 = vmatpush.bf16.msra.mxu2 %v4032_v46  ;;  %2164 = vmatpush.bf16.msra.mxu3 %v4044_v62  ;;  %v1324_v42 = vmul.f32 %v4103_v61, %v1290_v48  ;;  %v1325_v2 = vmul.f32 %v4108_v16, %v1291_v0 }
 0x2e7   : > { %1638 = vmatmul.bf16.gmra.mxu2 %v1446_v31  ;;  %1736 = vmatmul.bf16.gmra.mxu0 %v1446_v31  ;;  %v1192_v47 = vsub.f32 1.5, %v1191_v53  ;;  %v4651_v31 = vld [vmem:[#allocation21_spill] sm:$0xff] }
 0x2e8   : > { %1687 = vmatmul.bf16.gmra.mxu3 %v1447_v59  ;;  %1785 = vmatmul.bf16.gmra.mxu1 %v1447_v59  ;;  %v1358_v62 = vadd.f32 %v4114_v7, %v1324_v42  ;;  %v1359_v4 = vadd.f32 %v4117_v23, %v1325_v2 }
 0x2e9   : > { %2213 = vmatpush.bf16.msrb.mxu0 %v4046_v8  ;;  %v1193_v49 = vmul.f32 %v3057_v1, %v1192_v47  ;;  %2262 = vmatpush.bf16.msrb.mxu1 %v4054_v36 }
 0x2ea   : > { %v1390_v26 = vmax.f32 %v1358_v62, 0.0  ;;  %v1391_v27 = vmax.f32 %v1359_v4, 0.0 }
 0x2eb   : > { %v1197_v46 = vsel %vm1196_vm7, %v3057_v1, %v1193_v49 }
 0x2ec   : > { %v1292_v30 = vmul.f32 %v1197_v46, %v4648_v43  ;;  %v1293_v18 = vmul.f32 %v1197_v46, %v4649_v40  ;;  %v4652_v46 = vld [vmem:[#allocation22_spill] sm:$0xff] }
 0x2ee   : > { %v1326_v33 = vmul.f32 %v4103_v61, %v1292_v30  ;;  %v1327_v8 = vmul.f32 %v4108_v16, %v1293_v18  ;;  %v4653_v30 = vld [vmem:[#allocation23_spill] sm:$0xff] }
 0x2f0   : > { %v1360_v36 = vadd.f32 %v4114_v7, %v1326_v33  ;;  %v1361_v19 = vadd.f32 %v4117_v23, %v1327_v8 }
 0x2f2   : > { %v1392_v22 = vmax.f32 %v1360_v36, 0.0  ;;  %v1393_v35 = vmax.f32 %v1361_v19, 0.0 }
 0x2f4   : > { %v1448_v3 = vpack.c.bf16 %v1392_v22, %v1390_v26  ;;  %v1449_v37 = vpack.c.bf16 %v1393_v35, %v1391_v27 }
 0x2f7   : > { %1643 = vmatmul.bf16.gmra.mxu2 %v1448_v3  ;;  %1741 = vmatmul.bf16.gmra.mxu0 %v1448_v3 }
 0x2f8   : > { %1692 = vmatmul.bf16.gmra.mxu3 %v1449_v37  ;;  %1790 = vmatmul.bf16.gmra.mxu1 %v1449_v37 }
 0x317   : > { %v1064_v17 = vpop.xlane.xlu2 %1063 }
 0x318   : > { %v1094_v34 = vmul.f32 0.0052083335, %v1064_v17 }
 0x31a   : > { %v1110_v57 = vadd.f32 1e-05, %v1094_v34 }
 0x31c   : > { %3058 = vrsqrt.f32 %v1110_v57  ;;  %vm1204_vm9 = vweird.f32 %v1110_v57 }
 0x322   : > { %v3059_v10 = vpop.eup %3058 }
 0x323   : > { %v1199_v29 = vmul.f32 %v3059_v10, %v1110_v57  ;;  %v1067_v25 = vpop.xlane.xlu0 %1066  ;;  %vm1205_vm8 = vweird.f32 %v3059_v10 }
 0x324   : > { %v1095_v11 = vmul.f32 0.0052083335, %v1067_v25  ;;  %vm1206_vm10 = vmor %vm1204_vm9, %vm1205_vm8 }
 0x325   : > { %v1200_v28 = vmul.f32 %v3059_v10, %v1199_v29 }
 0x326   : > { %v1111_v15 = vadd.f32 1e-05, %v1095_v11 }
 0x327   : > { %v1201_v44 = vmul.f32 0.5, %v1200_v28 }
 0x328   : > { %3060 = vrsqrt.f32 %v1111_v15  ;;  %vm1214_vm12 = vweird.f32 %v1111_v15 }
 0x329   : > { %v1202_v20 = vsub.f32 1.5, %v1201_v44 }
 0x32b   : > { %v1070_v14 = vpop.xlane.xlu1 %1069  ;;  %v1203_v1 = vmul.f32 %v3059_v10, %v1202_v20 }
 0x32c   : > { %v1096_v54 = vmul.f32 0.0052083335, %v1070_v14 }
 0x32d   : > { %v1207_v63 = vsel %vm1206_vm10, %v3059_v10, %v1203_v1 }
 0x32e   : > { %v3061_v56 = vpop.eup %3060  ;;  %v1112_v5 = vadd.f32 1e-05, %v1096_v54  ;;  %v1294_v41 = vmul.f32 %v1207_v63, %v4650_v32  ;;  %v1295_v59 = vmul.f32 %v1207_v63, %v4651_v31  ;;  %v4654_v54 = vld [vmem:[#allocation24_spill] sm:$0xff] }
 0x32f   : > { %v1209_v9 = vmul.f32 %v3061_v56, %v1111_v15  ;;  %vm1215_vm11 = vweird.f32 %v3061_v56 }
 0x330   : > { %3062 = vrsqrt.f32 %v1112_v5  ;;  %vm1216_vm13 = vmor %vm1214_vm12, %vm1215_vm11  ;;  %v1328_v47 = vmul.f32 %v4103_v61, %v1294_v41  ;;  %v1329_v49 = vmul.f32 %v4108_v16, %v1295_v59  ;;  %vm1224_vm15 = vweird.f32 %v1112_v5  ;;  %v4656_v59 = vld [vmem:[#allocation26_spill] sm:$0xff] }
 0x331   : > { %v1210_v55 = vmul.f32 %v3061_v56, %v1209_v9 }
 0x332   : > { %v1362_v8 = vadd.f32 %v4114_v7, %v1328_v47  ;;  %v1363_v36 = vadd.f32 %v4117_v23, %v1329_v49 }
 0x333   : > { %v1211_v52 = vmul.f32 0.5, %v1210_v55  ;;  %v1073_v24 = vpop.xlane.xlu2 %1072 }
 0x334   : > { %v1097_v13 = vmul.f32 0.0052083335, %v1073_v24  ;;  %v1394_v34 = vmax.f32 %v1362_v8, 0.0  ;;  %v1395_v10 = vmax.f32 %v1363_v36, 0.0 }
 0x335   : > { %v1212_v53 = vsub.f32 1.5, %v1211_v52 }
 0x336   : > { %v3063_v38 = vpop.eup %3062  ;;  %v1113_v48 = vadd.f32 1e-05, %v1097_v13 }
 0x337   : > { %v1213_v58 = vmul.f32 %v3061_v56, %v1212_v53  ;;  %v1219_v0 = vmul.f32 %v3063_v38, %v1112_v5  ;;  %vm1225_vm14 = vweird.f32 %v3063_v38  ;;  %v4655_v5 = vld [vmem:[#allocation25_spill] sm:$0xff] }
 0x338   : > { %3064 = vrsqrt.f32 %v1113_v48  ;;  %vm1226_vm0 = vmor %vm1224_vm15, %vm1225_vm14  ;;  %vm1234_vm2 = vweird.f32 %v1113_v48 }
 0x339   : > { %v1217_v42 = vsel %vm1216_vm13, %v3061_v56, %v1213_v58  ;;  %v1220_v2 = vmul.f32 %v3063_v38, %v1219_v0 }
 0x33a   : > { %v1296_v43 = vmul.f32 %v1217_v42, %v4652_v46  ;;  %v1297_v40 = vmul.f32 %v1217_v42, %v4653_v30 }
 0x33b   : > { %v1221_v18 = vmul.f32 0.5, %v1220_v2 }
 0x33c   : > { %v1076_v33 = vpop.xlane.xlu0 %1075  ;;  %v1330_v62 = vmul.f32 %v4103_v61, %v1296_v43  ;;  %v1331_v4 = vmul.f32 %v4108_v16, %v1297_v40 }
 0x33d   : > { %v1222_v19 = vsub.f32 1.5, %v1221_v18  ;;  %v1098_v26 = vmul.f32 0.0052083335, %v1076_v33 }
 0x33e   : > { %v3065_v22 = vpop.eup %3064  ;;  %v1364_v27 = vadd.f32 %v4114_v7, %v1330_v62  ;;  %v1365_v35 = vadd.f32 %v4117_v23, %v1331_v4 }
 0x33f   : > { %v1223_v3 = vmul.f32 %v3063_v38, %v1222_v19  ;;  %v1229_v37 = vmul.f32 %v3065_v22, %v1113_v48  ;;  %v1114_v17 = vadd.f32 1e-05, %v1098_v26  ;;  %vm1235_vm1 = vweird.f32 %v3065_v22 }
 0x340   : > { %v1396_v57 = vmax.f32 %v1364_v27, 0.0  ;;  %v1397_v29 = vmax.f32 %v1365_v35, 0.0  ;;  %vm1236_vm3 = vmor %vm1234_vm2, %vm1235_vm1 }
 0x341   : > { %v1227_v25 = vsel %vm1226_vm0, %v3063_v38, %v1223_v3  ;;  %v1230_v11 = vmul.f32 %v3065_v22, %v1229_v37  ;;  %3066 = vrsqrt.f32 %v1114_v17  ;;  %vm1244_vm5 = vweird.f32 %v1114_v17 }
 0x342   : > { %v1450_v28 = vpack.c.bf16 %v1396_v57, %v1394_v34  ;;  %v1451_v15 = vpack.c.bf16 %v1397_v29, %v1395_v10  ;;  %v1298_v1 = vmul.f32 %v1227_v25, %v4654_v54  ;;  %v1299_v9 = vmul.f32 %v1227_v25, %v4655_v5  ;;  %v4657_v34 = vld [vmem:[#allocation27_spill] sm:$0xff] }
 0x343   : > { %v1231_v44 = vmul.f32 0.5, %v1230_v11  ;;  %v1079_v20 = vpop.xlane.xlu1 %1078 }
 0x344   : > { %v1099_v14 = vmul.f32 0.0052083335, %v1079_v20  ;;  %1648 = vmatmul.bf16.gmra.mxu2 %v1450_v28  ;;  %1697 = vmatmul.bf16.gmra.mxu3 %v1451_v15  ;;  %v1332_v13 = vmul.f32 %v4103_v61, %v1298_v1  ;;  %v1333_v41 = vmul.f32 %v4108_v16, %v1299_v9 }
 0x345   : > { %v1232_v56 = vsub.f32 1.5, %v1231_v44  ;;  %1746 = vmatmul.bf16.gmra.mxu0 %v1450_v28  ;;  %1795 = vmatmul.bf16.gmra.mxu1 %v1451_v15 }
 0x346   : > { %v1115_v63 = vadd.f32 1e-05, %v1099_v14  ;;  %v1366_v49 = vadd.f32 %v4114_v7, %v1332_v13  ;;  %v1367_v2 = vadd.f32 %v4117_v23, %v1333_v41 }
 0x347   : > { %v3067_v55 = vpop.eup %3066  ;;  %v1233_v52 = vmul.f32 %v3065_v22, %v1232_v56 }
 0x348   : > { %v1239_v24 = vmul.f32 %v3067_v55, %v1114_v17  ;;  %3068 = vrsqrt.f32 %v1115_v63  ;;  %vm1245_vm4 = vweird.f32 %v3067_v55  ;;  %v1398_v62 = vmax.f32 %v1366_v49, 0.0 }
 0x349   : > { %v1237_v32 = vsel %vm1236_vm3, %v3065_v22, %v1233_v52  ;;  %vm1246_vm6 = vmor %vm1244_vm5, %vm1245_vm4  ;;  %v1399_v36 = vmax.f32 %v1367_v2, 0.0  ;;  %vm1254_vm8 = vweird.f32 %v1115_v63  ;;  %v4339_v9 = vpop.f32.mrf.mxu2  ;;  %v1776_v2 = vpop.f32.mrf.mxu1 }
 0x34a   : > { %v1240_v31 = vmul.f32 %v3067_v55, %v1239_v24  ;;  %v1300_v53 = vmul.f32 %v1237_v32, %v4656_v59  ;;  %v1301_v38 = vmul.f32 %v1237_v32, %v4123_v6  ;;  %v4343_v24 = vpop.f32.mrf.mxu0  ;;  %v1678_v49 = vpop.f32.mrf.mxu3 }
 0x34c   : > { %v1241_v58 = vmul.f32 0.5, %v1240_v31  ;;  %v1082_v0 = vpop.xlane.xlu2 %1081  ;;  %v1334_v47 = vmul.f32 %v4103_v61, %v1300_v53  ;;  %v1335_v42 = vmul.f32 %v4108_v16, %v1301_v38 }
 0x34d   : > { %v1100_v48 = vmul.f32 0.0052083335, %v1082_v0 }
 0x34e   : > { %v3069_v46 = vpop.eup %3068  ;;  %v1242_v43 = vsub.f32 1.5, %v1241_v58  ;;  %v1368_v30 = vadd.f32 %v4114_v7, %v1334_v47  ;;  %v1369_v6 = vadd.f32 %v4117_v23, %v1335_v42 }
 0x34f   : > { %v1249_v40 = vmul.f32 %v3069_v46, %v1115_v63  ;;  %v1116_v18 = vadd.f32 1e-05, %v1100_v48  ;;  %vm1255_vm7 = vweird.f32 %v3069_v46 }
 0x350   : > { %v1243_v33 = vmul.f32 %v3067_v55, %v1242_v43  ;;  %v1400_v8 = vmax.f32 %v1368_v30, 0.0  ;;  %v1401_v19 = vmax.f32 %v1369_v6, 0.0  ;;  %vm1256_vm9 = vmor %vm1254_vm8, %vm1255_vm7 }
 0x351   : > { %v1250_v4 = vmul.f32 %v3069_v46, %v1249_v40  ;;  %3070 = vrsqrt.f32 %v1116_v18  ;;  %vm1264_vm11 = vweird.f32 %v1116_v18  ;;  %v1631_v40 = vpop.f32.mrf.mxu2 }
 0x352   : > { %v1247_v26 = vsel %vm1246_vm6, %v3067_v55, %v1243_v33  ;;  %v1452_v22 = vpack.c.bf16 %v1400_v8, %v1398_v62  ;;  %v1453_v3 = vpack.c.bf16 %v1401_v19, %v1399_v36  ;;  %v1729_v6 = vpop.f32.mrf.mxu0 }
 0x353   : > { %v1251_v27 = vmul.f32 0.5, %v1250_v4  ;;  %v1085_v35 = vpop.xlane.xlu0 %1084  ;;  %v1302_v57 = vmul.f32 %v1247_v26, %v4657_v34  ;;  %v1303_v17 = vmul.f32 %v1247_v26, %v4158_v50 }
 0x354   : > { %v1101_v37 = vmul.f32 0.0052083335, %v1085_v35  ;;  %1653 = vmatmul.bf16.gmra.mxu2 %v1452_v22  ;;  %1702 = vmatmul.bf16.gmra.mxu3 %v1453_v3 }
 0x355   : > { %v1252_v10 = vsub.f32 1.5, %v1251_v27  ;;  %1751 = vmatmul.bf16.gmra.mxu0 %v1452_v22  ;;  %1800 = vmatmul.bf16.gmra.mxu1 %v1453_v3  ;;  %v1336_v15 = vmul.f32 %v4103_v61, %v1302_v57  ;;  %v1337_v20 = vmul.f32 %v4108_v16, %v1303_v17  ;;  %v1680_v22 = vpop.f32.mrf.mxu3  ;;  %v1778_v27 = vpop.f32.mrf.mxu1 }
 0x356   : > { %v1117_v29 = vadd.f32 1e-05, %v1101_v37 }
 0x357   : > { %v3071_v25 = vpop.eup %3070  ;;  %v1253_v11 = vmul.f32 %v3069_v46, %v1252_v10  ;;  %v1370_v5 = vadd.f32 %v4114_v7, %v1336_v15  ;;  %v1371_v55 = vadd.f32 %v4117_v23, %v1337_v20 }
 0x358   : > { %v1259_v28 = vmul.f32 %v3071_v25, %v1116_v18  ;;  %3072 = vrsqrt.f32 %v1117_v29  ;;  %vm1265_vm10 = vweird.f32 %v3071_v25  ;;  %vm1274_vm14 = vweird.f32 %v1117_v29 }
 0x359   : > { %v1257_v44 = vsel %vm1256_vm9, %v3069_v46, %v1253_v11  ;;  %v1402_v31 = vmax.f32 %v1370_v5, 0.0  ;;  %vm1266_vm12 = vmor %vm1264_vm11, %vm1265_vm10  ;;  %v1403_v38 = vmax.f32 %v1371_v55, 0.0  ;;  %v1634_v10 = vpop.f32.mrf.mxu2 }
 0x35a   : > { %v1260_v14 = vmul.f32 %v3071_v25, %v1259_v28  ;;  %v1304_v54 = vmul.f32 %v1257_v44, %v4188_v45  ;;  %v1305_v1 = vmul.f32 %v1257_v44, %v4191_v21 }
 0x35c   : > { %v1261_v56 = vmul.f32 0.5, %v1260_v14  ;;  %v1338_v50 = vmul.f32 %v4103_v61, %v1304_v54  ;;  %v1339_v63 = vmul.f32 %v4108_v16, %v1305_v1 }
 0x35d   : > { %v1683_v28 = vpop.f32.mrf.mxu3  ;;  %v1781_v44 = vpop.f32.mrf.mxu1 }
 0x35e   : > { %v3073_v52 = vpop.eup %3072  ;;  %v1262_v13 = vsub.f32 1.5, %v1261_v56  ;;  %v1372_v45 = vadd.f32 %v4114_v7, %v1338_v50  ;;  %v1373_v21 = vadd.f32 %v4117_v23, %v1339_v63 }
 0x35f   : > { %v1269_v32 = vmul.f32 %v3073_v52, %v1117_v29  ;;  %vm1275_vm13 = vweird.f32 %v3073_v52 }
 0x360   : > { %v1263_v41 = vmul.f32 %v3071_v25, %v1262_v13  ;;  %v1404_v59 = vmax.f32 %v1372_v45, 0.0  ;;  %v1405_v58 = vmax.f32 %v1373_v21, 0.0  ;;  %vm1276_vm15 = vmor %vm1274_vm14, %vm1275_vm13 }
 0x361   : > { %v1270_v53 = vmul.f32 %v3073_v52, %v1269_v32  ;;  %v1636_v1 = vpop.f32.mrf.mxu2 }
 0x362   : > { %v1267_v0 = vsel %vm1266_vm12, %v3071_v25, %v1263_v41  ;;  %v1454_v47 = vpack.c.bf16 %v1404_v59, %v1402_v31  ;;  %v1455_v42 = vpack.c.bf16 %v1405_v58, %v1403_v38 }
 0x363   : > { %v1271_v48 = vmul.f32 0.5, %v1270_v53  ;;  %v1306_v46 = vmul.f32 %v1267_v0, %v4225_v60  ;;  %v1307_v43 = vmul.f32 %v1267_v0, %v4228_v12 }
 0x364   : > { %1658 = vmatmul.bf16.gmra.mxu2 %v1454_v47  ;;  %1707 = vmatmul.bf16.gmra.mxu3 %v1455_v42 }
 0x365   : > { %v1272_v30 = vsub.f32 1.5, %v1271_v48  ;;  %1756 = vmatmul.bf16.gmra.mxu0 %v1454_v47  ;;  %1805 = vmatmul.bf16.gmra.mxu1 %v1455_v42  ;;  %v1340_v33 = vmul.f32 %v4103_v61, %v1306_v46  ;;  %v1341_v62 = vmul.f32 %v4108_v16, %v1307_v43  ;;  %v1685_v45 = vpop.f32.mrf.mxu3  ;;  %v1783_v32 = vpop.f32.mrf.mxu1 }
 0x367   : > { %v1273_v18 = vmul.f32 %v3073_v52, %v1272_v30  ;;  %v1374_v36 = vadd.f32 %v4114_v7, %v1340_v33  ;;  %v1375_v26 = vadd.f32 %v4117_v23, %v1341_v62 }
 0x369   : > { %v1277_v8 = vsel %vm1276_vm15, %v3073_v52, %v1273_v18  ;;  %v1406_v37 = vmax.f32 %v1374_v36, 0.0  ;;  %v1407_v57 = vmax.f32 %v1375_v26, 0.0 }
 0x36a   : > { %v1308_v4 = vmul.f32 %v1277_v8, %v4249_v51  ;;  %v1309_v60 = vmul.f32 %v1277_v8, %v4252_v39  ;;  %v1732_v39 = vpop.f32.mrf.mxu0 }
 0x36c   : > { %v1342_v12 = vmul.f32 %v4103_v61, %v1308_v4  ;;  %v1343_v19 = vmul.f32 %v4108_v16, %v1309_v60  ;;  %v3074_v16 = vld [vmem:[%s4565_s3] sm:$0x1f] }
 0x36d   : > { %v4362_v29 = vperm.slane %v3074_v16, 4  ;;  %v1688_v47 = vpop.f32.mrf.mxu3  ;;  %v1786_v48 = vpop.f32.mrf.mxu1 }
 0x36e   : > { %v1376_v35 = vadd.f32 %v4114_v7, %v1342_v12  ;;  %v1377_v3 = vadd.f32 %v4117_v23, %v1343_v19  ;;  %v3075_v7 = vld [vmem:[%s4565_s3 + $0x8] sm:$0x1f] }
 0x36f   : > { %v4367_v23 = vperm.slane %v3075_v7, 4  ;;  %v1632_v25 = vadd.f32 %v1631_v40, %v4362_v29  ;;  %v1630_v15 = vadd.f32 %v4339_v9, %v4362_v29  ;;  %v1639_v9 = vpop.f32.mrf.mxu2  ;;  %v1635_v53 = vadd.f32 %v1634_v10, %v4362_v29 }
 0x370   : > { %v1408_v34 = vmax.f32 %v1376_v35, 0.0  ;;  %v1409_v51 = vmax.f32 %v1377_v3, 0.0  ;;  %v1640_v12 = vadd.f32 %v1639_v9, %v4362_v29 }
 0x371   : > { %v1730_v11 = vadd.f32 %v1729_v6, %v4367_v23  ;;  %v1728_v20 = vadd.f32 %v4343_v24, %v4367_v23  ;;  %v1681_v14 = vadd.f32 %v1680_v22, %v1632_v25  ;;  %v1679_v56 = vadd.f32 %v1678_v49, %v1630_v15 }
 0x372   : > { %v1456_v17 = vpack.c.bf16 %v1408_v34, %v1406_v37  ;;  %v1457_v61 = vpack.c.bf16 %v1409_v51, %v1407_v57  ;;  %v1734_v50 = vpop.f32.mrf.mxu0  ;;  %v1637_v24 = vadd.f32 %v1636_v1, %v4362_v29  ;;  %v1733_v38 = vadd.f32 %v1732_v39, %v4367_v23 }
 0x373   : > { %v1779_v54 = vadd.f32 %v1778_v27, %v1730_v11  ;;  %v1777_v5 = vadd.f32 %v1776_v2, %v1728_v20  ;;  %v1818_v63 = vmax.f32 %v1681_v14, 0.0  ;;  %v1816_v52 = vmax.f32 %v1679_v56, 0.0 }
 0x374   : > { %1663 = vmatmul.bf16.gmra.mxu2 %v1456_v17  ;;  %1712 = vmatmul.bf16.gmra.mxu3 %v1457_v61  ;;  %v1735_v59 = vadd.f32 %v1734_v50, %v4367_v23  ;;  %v1686_v58 = vadd.f32 %v1685_v45, %v1637_v24  ;;  %v1684_v49 = vadd.f32 %v1683_v28, %v1635_v53 }
 0x375   : > { %1761 = vmatmul.bf16.gmra.mxu0 %v1456_v17  ;;  %1810 = vmatmul.bf16.gmra.mxu1 %v1457_v61  ;;  %v1819_v55 = vmax.f32 %v1779_v54, 0.0  ;;  %v1817_v13 = vmax.f32 %v1777_v5, 0.0  ;;  %v1848_v21 = vpack.c.bf16 %v1818_v63, %v1816_v52  ;;  %v1782_v42 = vadd.f32 %v1781_v44, %v1733_v38  ;;  %v1690_v62 = vpop.f32.mrf.mxu3  ;;  %v1788_v8 = vpop.f32.mrf.mxu1 }
 0x376   : > { %v1784_v0 = vadd.f32 %v1783_v32, %v1735_v59  ;;  %v1822_v2 = vmax.f32 %v1686_v58, 0.0  ;;  %v1820_v30 = vmax.f32 %v1684_v49, 0.0  ;;  %v1689_v35 = vadd.f32 %v1688_v47, %v1640_v12 }
 0x377   : > { %v1849_v41 = vpack.c.bf16 %v1819_v55, %v1817_v13  ;;  %v1641_v43 = vpop.f32.mrf.mxu2  ;;  %v1821_v18 = vmax.f32 %v1782_v42, 0.0 }
 0x378   : > { %v1823_v46 = vmax.f32 %v1784_v0, 0.0  ;;  %v1850_v6 = vpack.c.bf16 %v1822_v2, %v1820_v30  ;;  %v1642_v4 = vadd.f32 %v1641_v43, %v4362_v29  ;;  %v1824_v51 = vmax.f32 %v1689_v35, 0.0 }
 0x37a   : > { %v1737_v31 = vpop.f32.mrf.mxu0  ;;  %v1851_v33 = vpack.c.bf16 %v1823_v46, %v1821_v18  ;;  %v1691_v26 = vadd.f32 %v1690_v62, %v1642_v4 }
 0x37b   : > { %v1738_v36 = vadd.f32 %v1737_v31, %v4367_v23 }
 0x37c   : > { %v1826_v37 = vmax.f32 %v1691_v26, 0.0 }
 0x37d   : > { %v1787_v3 = vadd.f32 %v1786_v48, %v1738_v36  ;;  %v1693_v57 = vpop.f32.mrf.mxu3  ;;  %v1791_v10 = vpop.f32.mrf.mxu1 }
 0x37e   : > { %v1852_v17 = vpack.c.bf16 %v1826_v37, %v1824_v51 }
 0x37f   : > { %v1644_v19 = vpop.f32.mrf.mxu2  ;;  %v1825_v39 = vmax.f32 %v1787_v3, 0.0 }
 0x380   : > { %v1645_v28 = vadd.f32 %v1644_v19, %v4362_v29 }
 0x382   : > { %v1739_v40 = vpop.f32.mrf.mxu0  ;;  %v1694_v1 = vadd.f32 %v1693_v57, %v1645_v28 }
 0x383   : > { %v1740_v60 = vadd.f32 %v1739_v40, %v4367_v23 }
 0x384   : > { %1872 = vmatmul.bf16.vlgmr.msrb.gmra.mxu2 %v1848_v21  ;;  %1921 = vmatmul.bf16.vlgmr.msrb.gmra.mxu3 %v1849_v41  ;;  %v1828_v63 = vmax.f32 %v1694_v1, 0.0 }
 0x385   : > { %1970 = vmatmul.bf16.vlgmr.msra.gmra.mxu0 %v1848_v21  ;;  %2019 = vmatmul.bf16.vlgmr.msra.gmra.mxu1 %v1849_v41  ;;  %v1789_v27 = vadd.f32 %v1788_v8, %v1740_v60  ;;  %v1695_v44 = vpop.f32.mrf.mxu3  ;;  %v1793_v20 = vpop.f32.mrf.mxu1 }
 0x387   : > { %v1827_v34 = vmax.f32 %v1789_v27, 0.0  ;;  %v1646_v61 = vpop.f32.mrf.mxu2 }
 0x388   : > { %v1647_v25 = vadd.f32 %v1646_v61, %v4362_v29 }
 0x389   : > { %v1853_v16 = vpack.c.bf16 %v1827_v34, %v1825_v39 }
 0x38a   : > { %v1742_v22 = vpop.f32.mrf.mxu0  ;;  %v1696_v14 = vadd.f32 %v1695_v44, %v1647_v25 }
 0x38b   : > { %v1743_v15 = vadd.f32 %v1742_v22, %v4367_v23 }
 0x38c   : > { %v1830_v50 = vmax.f32 %v1696_v14, 0.0 }
 0x38d   : > { %v1792_v56 = vadd.f32 %v1791_v10, %v1743_v15 }
 0x38e   : > { %v1854_v52 = vpack.c.bf16 %v1830_v50, %v1828_v63 }
 0x38f   : > { %v1829_v55 = vmax.f32 %v1792_v56, 0.0 }
 0x392   : > { %v1744_v7 = vpop.f32.mrf.mxu0 }
 0x393   : > { %v1745_v11 = vadd.f32 %v1744_v7, %v4367_v23 }
 0x394   : > { %1877 = vmatmul.bf16.gmra.mxu2 %v1850_v6  ;;  %1926 = vmatmul.bf16.gmra.mxu3 %v1851_v33 }
 0x395   : > { %1975 = vmatmul.bf16.gmra.mxu0 %v1850_v6  ;;  %2024 = vmatmul.bf16.gmra.mxu1 %v1851_v33  ;;  %v1794_v54 = vadd.f32 %v1793_v20, %v1745_v11 }
 0x397   : > { %v1831_v5 = vmax.f32 %v1794_v54, 0.0 }
 0x399   : > { %v1855_v13 = vpack.c.bf16 %v1831_v5, %v1829_v55 }
 0x3a4   : > { %1882 = vmatmul.bf16.gmra.mxu2 %v1852_v17  ;;  %1931 = vmatmul.bf16.gmra.mxu3 %v1853_v16 }
 0x3a5   : > { %1980 = vmatmul.bf16.gmra.mxu0 %v1852_v17  ;;  %2029 = vmatmul.bf16.gmra.mxu1 %v1853_v16 }
 0x3b4   : > { %1887 = vmatmul.bf16.gmra.mxu2 %v1854_v52  ;;  %1936 = vmatmul.bf16.gmra.mxu3 %v1855_v13 }
 0x3b5   : > { %1985 = vmatmul.bf16.gmra.mxu0 %v1854_v52  ;;  %2034 = vmatmul.bf16.gmra.mxu1 %v1855_v13 }
 0x3c2   : > { %v1747_v45 = vpop.f32.mrf.mxu0  ;;  %v1796_v32 = vpop.f32.mrf.mxu1 }
 0x3c3   : > { %v1748_v21 = vadd.f32 %v1747_v45, %v4367_v23 }
 0x3c5   : > { %v1797_v59 = vadd.f32 %v1796_v32, %v1748_v21 }
 0x3c7   : > { %v1649_v41 = vpop.f32.mrf.mxu2  ;;  %v1698_v9 = vpop.f32.mrf.mxu3  ;;  %v1833_v0 = vmax.f32 %v1797_v59, 0.0 }
 0x3c8   : > { %v1650_v38 = vadd.f32 %v1649_v41, %v4362_v29 }
 0x3ca   : > { %v1749_v24 = vpop.f32.mrf.mxu0  ;;  %v1798_v31 = vpop.f32.mrf.mxu1  ;;  %v1699_v42 = vadd.f32 %v1698_v9, %v1650_v38 }
 0x3cb   : > { %v1750_v53 = vadd.f32 %v1749_v24, %v4367_v23 }
 0x3cc   : > { %v1832_v18 = vmax.f32 %v1699_v42, 0.0 }
 0x3cd   : > { %v1799_v58 = vadd.f32 %v1798_v31, %v1750_v53 }
 0x3cf   : > { %v1835_v47 = vmax.f32 %v1799_v58, 0.0  ;;  %v1651_v49 = vpop.f32.mrf.mxu2  ;;  %v1700_v48 = vpop.f32.mrf.mxu3 }
 0x3d0   : > { %v1652_v2 = vadd.f32 %v1651_v49, %v4362_v29 }
 0x3d1   : > { %v1857_v46 = vpack.c.bf16 %v1835_v47, %v1833_v0 }
 0x3d2   : > { %v1701_v43 = vadd.f32 %v1700_v48, %v1652_v2  ;;  %v1752_v30 = vpop.f32.mrf.mxu0  ;;  %v1801_v40 = vpop.f32.mrf.mxu1 }
 0x3d3   : > { %1941 = vmatmul.bf16.gmra.mxu3 %v1857_v46  ;;  %2039 = vmatmul.bf16.gmra.mxu1 %v1857_v46  ;;  %v1753_v62 = vadd.f32 %v1752_v30, %v4367_v23 }
 0x3d4   : > { %v1834_v6 = vmax.f32 %v1701_v43, 0.0 }
 0x3d5   : > { %v1802_v12 = vadd.f32 %v1801_v40, %v1753_v62 }
 0x3d6   : > { %v1856_v33 = vpack.c.bf16 %v1834_v6, %v1832_v18 }
 0x3d7   : > { %v1654_v8 = vpop.f32.mrf.mxu2  ;;  %v1703_v4 = vpop.f32.mrf.mxu3  ;;  %v1837_v27 = vmax.f32 %v1802_v12, 0.0 }
 0x3d8   : > { %1892 = vmatmul.bf16.gmra.mxu2 %v1856_v33  ;;  %1990 = vmatmul.bf16.gmra.mxu0 %v1856_v33  ;;  %v1655_v26 = vadd.f32 %v1654_v8, %v4362_v29 }
 0x3da   : > { %v1754_v60 = vpop.f32.mrf.mxu0  ;;  %v1803_v19 = vpop.f32.mrf.mxu1  ;;  %v1704_v37 = vadd.f32 %v1703_v4, %v1655_v26 }
 0x3db   : > { %v1755_v36 = vadd.f32 %v1754_v60, %v4367_v23 }
 0x3dc   : > { %v1836_v61 = vmax.f32 %v1704_v37, 0.0 }
 0x3dd   : > { %v1804_v22 = vadd.f32 %v1803_v19, %v1755_v36 }
 0x3df   : > { %v1839_v35 = vmax.f32 %v1804_v22, 0.0  ;;  %v1656_v3 = vpop.f32.mrf.mxu2  ;;  %v1705_v57 = vpop.f32.mrf.mxu3 }
 0x3e0   : > { %v1657_v34 = vadd.f32 %v1656_v3, %v4362_v29 }
 0x3e1   : > { %v1859_v51 = vpack.c.bf16 %v1839_v35, %v1837_v27 }
 0x3e2   : > { %v1706_v10 = vadd.f32 %v1705_v57, %v1657_v34  ;;  %v1757_v39 = vpop.f32.mrf.mxu0  ;;  %v1806_v17 = vpop.f32.mrf.mxu1 }
 0x3e3   : > { %1946 = vmatmul.bf16.gmra.mxu3 %v1859_v51  ;;  %2044 = vmatmul.bf16.gmra.mxu1 %v1859_v51  ;;  %v1758_v25 = vadd.f32 %v1757_v39, %v4367_v23 }
 0x3e4   : > { %v1838_v16 = vmax.f32 %v1706_v10, 0.0 }
 0x3e5   : > { %v1807_v44 = vadd.f32 %v1806_v17, %v1758_v25 }
 0x3e6   : > { %v1858_v7 = vpack.c.bf16 %v1838_v16, %v1836_v61 }
 0x3e7   : > { %v1659_v11 = vpop.f32.mrf.mxu2  ;;  %v1708_v28 = vpop.f32.mrf.mxu3  ;;  %v1841_v56 = vmax.f32 %v1807_v44, 0.0 }
 0x3e8   : > { %1897 = vmatmul.bf16.gmra.mxu2 %v1858_v7  ;;  %1995 = vmatmul.bf16.gmra.mxu0 %v1858_v7  ;;  %v1660_v54 = vadd.f32 %v1659_v11, %v4362_v29 }
 0x3ea   : > { %v1759_v15 = vpop.f32.mrf.mxu0  ;;  %v1808_v14 = vpop.f32.mrf.mxu1  ;;  %v1709_v63 = vadd.f32 %v1708_v28, %v1660_v54 }
 0x3eb   : > { %v1760_v20 = vadd.f32 %v1759_v15, %v4367_v23 }
 0x3ec   : > { %v1840_v41 = vmax.f32 %v1709_v63, 0.0 }
 0x3ed   : > { %v1809_v1 = vadd.f32 %v1808_v14, %v1760_v20 }
 0x3ef   : > { %v1843_v50 = vmax.f32 %v1809_v1, 0.0  ;;  %v1661_v5 = vpop.f32.mrf.mxu2  ;;  %v1710_v52 = vpop.f32.mrf.mxu3 }
 0x3f0   : > { %v1662_v55 = vadd.f32 %v1661_v5, %v4362_v29 }
 0x3f1   : > { %v1861_v13 = vpack.c.bf16 %v1843_v50, %v1841_v56 }
 0x3f2   : > { %v1711_v45 = vadd.f32 %v1710_v52, %v1662_v55  ;;  %v1762_v32 = vpop.f32.mrf.mxu0  ;;  %v1811_v21 = vpop.f32.mrf.mxu1 }
 0x3f3   : > { %1951 = vmatmul.bf16.gmra.mxu3 %v1861_v13  ;;  %2049 = vmatmul.bf16.gmra.mxu1 %v1861_v13  ;;  %v1763_v31 = vadd.f32 %v1762_v32, %v4367_v23 }
 0x3f4   : > { %v1842_v9 = vmax.f32 %v1711_v45, 0.0 }
 0x3f5   : > { %v1812_v58 = vadd.f32 %v1811_v21, %v1763_v31 }
 0x3f6   : > { %v1860_v24 = vpack.c.bf16 %v1842_v9, %v1840_v41 }
 0x3f7   : > { %v1664_v59 = vpop.f32.mrf.mxu2  ;;  %v1713_v53 = vpop.f32.mrf.mxu3  ;;  %v1845_v42 = vmax.f32 %v1812_v58, 0.0  ;;  %v3000_v58 = vld [vmem:[%s4567_s5 + $0x78] sm:$0xff] }
 0x3f8   : > { %1902 = vmatmul.bf16.gmra.mxu2 %v1860_v24  ;;  %2000 = vmatmul.bf16.gmra.mxu0 %v1860_v24  ;;  %v1665_v49 = vadd.f32 %v1664_v59, %v4362_v29 }
 0x3f9   : > { %2533 = vmatpush.bf16.msrb.mxu3 %v3000_v58 }
 0x3fa   : > { %v1764_v38 = vpop.f32.mrf.mxu0  ;;  %v1813_v47 = vpop.f32.mrf.mxu1  ;;  %v1714_v43 = vadd.f32 %v1713_v53, %v1665_v49 }
 0x3fb   : > { %v1765_v0 = vadd.f32 %v1764_v38, %v4367_v23  ;;  %v2992_v38 = vld [vmem:[%s4567_s5 + $0x38] sm:$0xff] }
 0x3fc   : > { %v1844_v8 = vmax.f32 %v1714_v43, 0.0  ;;  %2484 = vmatpush.bf16.msrb.mxu2 %v2992_v38 }
 0x3fd   : > { %v1814_v48 = vadd.f32 %v1813_v47, %v1765_v0 }
 0x3ff   : > { %v1847_v2 = vmax.f32 %v1814_v48, 0.0  ;;  %v1666_v46 = vpop.f32.mrf.mxu2  ;;  %v1715_v40 = vpop.f32.mrf.mxu3 }
 0x400   : > { %v1667_v30 = vadd.f32 %v1666_v46, %v4362_v29 }
 0x401   : > { %v1863_v18 = vpack.c.bf16 %v1847_v2, %v1845_v42 }
 0x402   : > { %v1716_v6 = vadd.f32 %v1715_v40, %v1667_v30  ;;  %v1971_v33 = vpop.f32.mrf.mxu0  ;;  %v2020_v62 = vpop.f32.mrf.mxu1 }
 0x403   : > { %1956 = vmatmul.bf16.gmra.mxu3 %v1863_v18  ;;  %2054 = vmatmul.bf16.gmra.mxu1 %v1863_v18  ;;  %v1972_v12 = vadd.f32 %v1971_v33, %v4367_v23 }
 0x404   : > { %v1846_v4 = vmax.f32 %v1716_v6, 0.0 }
 0x405   : > { %v2021_v22 = vadd.f32 %v2020_v62, %v1972_v12  ;;  %v2999_v12 = vld [vmem:[%s4567_s5 + $0x70] sm:$0xff] }
 0x406   : > { %v1862_v60 = vpack.c.bf16 %v1846_v4, %v1844_v8  ;;  %2534 = vmatpush.bf16.msrb.mxu3 %v2999_v12 }
 0x407   : > { %v1873_v36 = vpop.f32.mrf.mxu2  ;;  %v1922_v19 = vpop.f32.mrf.mxu3  ;;  %v2061_v34 = vmax.f32 %v2021_v22, 0.0 }
 0x408   : > { %1907 = vmatmul.bf16.gmra.mxu2 %v1862_v60  ;;  %2005 = vmatmul.bf16.gmra.mxu0 %v1862_v60  ;;  %v1874_v3 = vadd.f32 %v1873_v36, %v4362_v29  ;;  %v2991_v60 = vld [vmem:[%s4567_s5 + $0x30] sm:$0xff] }
 0x409   : > { %2485 = vmatpush.bf16.msrb.mxu2 %v2991_v60 }
 0x40a   : > { %v1973_v26 = vpop.f32.mrf.mxu0  ;;  %v2022_v35 = vpop.f32.mrf.mxu1  ;;  %v1923_v10 = vadd.f32 %v1922_v19, %v1874_v3 }
 0x40b   : > { %v1974_v27 = vadd.f32 %v1973_v26, %v4367_v23 }
 0x40c   : > { %v2060_v11 = vmax.f32 %v1923_v10, 0.0 }
 0x40d   : > { %v2023_v37 = vadd.f32 %v2022_v35, %v1974_v27 }
 0x40f   : > { %v2063_v57 = vmax.f32 %v2023_v37, 0.0  ;;  %v1875_v51 = vpop.f32.mrf.mxu2  ;;  %v1924_v17 = vpop.f32.mrf.mxu3 }
 0x410   : > { %v1876_v39 = vadd.f32 %v1875_v51, %v4362_v29 }
 0x411   : > { %v2093_v61 = vpack.c.bf16 %v2063_v57, %v2061_v34 }
 0x412   : > { %v1925_v16 = vadd.f32 %v1924_v17, %v1876_v39  ;;  %v1976_v7 = vpop.f32.mrf.mxu0  ;;  %v2025_v25 = vpop.f32.mrf.mxu1 }
 0x413   : > { %2165 = vmatmul.bf16.vlgmr.msra.gmra.mxu3 %v2093_v61  ;;  %2263 = vmatmul.bf16.vlgmr.msrb.gmra.mxu1 %v2093_v61  ;;  %v1977_v44 = vadd.f32 %v1976_v7, %v4367_v23 }
 0x414   : > { %v2062_v28 = vmax.f32 %v1925_v16, 0.0 }
 0x415   : > { %v2026_v1 = vadd.f32 %v2025_v25, %v1977_v44 }
 0x416   : > { %v2092_v15 = vpack.c.bf16 %v2062_v28, %v2060_v11 }
 0x417   : > { %v1878_v20 = vpop.f32.mrf.mxu2  ;;  %v1927_v14 = vpop.f32.mrf.mxu3  ;;  %v2065_v55 = vmax.f32 %v2026_v1, 0.0  ;;  %v2998_v1 = vld [vmem:[%s4567_s5 + $0x68] sm:$0xff] }
 0x418   : > { %2116 = vmatmul.bf16.vlgmr.msra.gmra.mxu2 %v2092_v15  ;;  %2214 = vmatmul.bf16.vlgmr.msrb.gmra.mxu0 %v2092_v15  ;;  %v1879_v5 = vadd.f32 %v1878_v20, %v4362_v29 }
 0x419   : > { %2535 = vmatpush.bf16.msrb.mxu3 %v2998_v1 }
 0x41a   : > { %v1978_v54 = vpop.f32.mrf.mxu0  ;;  %v2027_v50 = vpop.f32.mrf.mxu1  ;;  %v1928_v45 = vadd.f32 %v1927_v14, %v1879_v5 }
 0x41b   : > { %v1979_v56 = vadd.f32 %v1978_v54, %v4367_v23  ;;  %v2990_v54 = vld [vmem:[%s4567_s5 + $0x28] sm:$0xff] }
 0x41c   : > { %v2064_v59 = vmax.f32 %v1928_v45, 0.0  ;;  %2486 = vmatpush.bf16.msrb.mxu2 %v2990_v54 }
 0x41d   : > { %v2028_v63 = vadd.f32 %v2027_v50, %v1979_v56 }
 0x41f   : > { %v2067_v52 = vmax.f32 %v2028_v63, 0.0  ;;  %v1880_v13 = vpop.f32.mrf.mxu2  ;;  %v1929_v21 = vpop.f32.mrf.mxu3 }
 0x420   : > { %v1881_v32 = vadd.f32 %v1880_v13, %v4362_v29 }
 0x421   : > { %v2095_v41 = vpack.c.bf16 %v2067_v52, %v2065_v55  ;;  %v2989_v55 = vld [vmem:[%s4567_s5 + $0x20] sm:$0xff] }
 0x422   : > { %v1930_v9 = vadd.f32 %v1929_v21, %v1881_v32  ;;  %v1981_v24 = vpop.f32.mrf.mxu0  ;;  %v2030_v31 = vpop.f32.mrf.mxu1  ;;  %v2997_v52 = vld [vmem:[%s4567_s5 + $0x60] sm:$0xff]  ;;  %2487 = vmatpush.bf16.msrb.mxu2 %v2989_v55  ;;  %v2994_v55 = vld [vmem:[%s4567_s5 + $0x48] sm:$0xff] }
 0x423   : > { %2170 = vmatmul.bf16.gmra.mxu3 %v2095_v41  ;;  %2268 = vmatmul.bf16.gmra.mxu1 %v2095_v41  ;;  %v1982_v47 = vadd.f32 %v1981_v24, %v4367_v23 }
 0x424   : > { %v2066_v53 = vmax.f32 %v1930_v9, 0.0  ;;  %2536 = vmatpush.bf16.msrb.mxu3 %v2997_v52 }
 0x425   : > { %v2031_v2 = vadd.f32 %v2030_v31, %v1982_v47 }
 0x426   : > { %v2094_v0 = vpack.c.bf16 %v2066_v53, %v2064_v59 }
 0x427   : > { %v1883_v49 = vpop.f32.mrf.mxu2  ;;  %v1932_v48 = vpop.f32.mrf.mxu3  ;;  %v2069_v18 = vmax.f32 %v2031_v2, 0.0 }
 0x428   : > { %2121 = vmatmul.bf16.gmra.mxu2 %v2094_v0  ;;  %2219 = vmatmul.bf16.gmra.mxu0 %v2094_v0  ;;  %v1884_v30 = vadd.f32 %v1883_v49, %v4362_v29  ;;  %v2988_v49 = vld [vmem:[%s4567_s5 + $0x18] sm:$0xff] }
 0x429   : > { %2488 = vmatpush.bf16.msrb.mxu2 %v2988_v49 }
 0x42a   : > { %v1983_v42 = vpop.f32.mrf.mxu0  ;;  %v2032_v43 = vpop.f32.mrf.mxu1  ;;  %v1933_v62 = vadd.f32 %v1932_v48, %v1884_v30  ;;  %v2996_v48 = vld [vmem:[%s4567_s5 + $0x58] sm:$0xff] }
 0x42b   : > { %v1984_v46 = vadd.f32 %v1983_v42, %v4367_v23  ;;  %2537 = vmatpush.bf16.msrb.mxu3 %v2996_v48  ;;  %v2985_v48 = vld [vmem:[%s4567_s5] sm:$0xff] }
 0x42c   : > { %v2068_v27 = vmax.f32 %v1933_v62, 0.0 }
 0x42d   : > { %v2033_v40 = vadd.f32 %v2032_v43, %v1984_v46 }
 0x42f   : > { %v2071_v6 = vmax.f32 %v2033_v40, 0.0  ;;  %v1885_v33 = vpop.f32.mrf.mxu2  ;;  %v1934_v4 = vpop.f32.mrf.mxu3 }
 0x430   : > { %v1886_v8 = vadd.f32 %v1885_v33, %v4362_v29 }
 0x431   : > { %v2097_v36 = vpack.c.bf16 %v2071_v6, %v2069_v18 }
 0x432   : > { %v1935_v19 = vadd.f32 %v1934_v4, %v1886_v8  ;;  %v1986_v26 = vpop.f32.mrf.mxu0  ;;  %v2035_v22 = vpop.f32.mrf.mxu1 }
 0x433   : > { %2175 = vmatmul.bf16.gmra.mxu3 %v2097_v36  ;;  %2273 = vmatmul.bf16.gmra.mxu1 %v2097_v36  ;;  %v1987_v37 = vadd.f32 %v1986_v26, %v4367_v23 }
 0x434   : > { %v2070_v35 = vmax.f32 %v1935_v19, 0.0 }
 0x435   : > { %v2036_v10 = vadd.f32 %v2035_v22, %v1987_v37 }
 0x436   : > { %v2096_v3 = vpack.c.bf16 %v2070_v35, %v2068_v27 }
 0x437   : > { %v1888_v34 = vpop.f32.mrf.mxu2  ;;  %v1937_v57 = vpop.f32.mrf.mxu3  ;;  %v2073_v7 = vmax.f32 %v2036_v10, 0.0 }
 0x438   : > { %2126 = vmatmul.bf16.gmra.mxu2 %v2096_v3  ;;  %2224 = vmatmul.bf16.gmra.mxu0 %v2096_v3  ;;  %v1889_v17 = vadd.f32 %v1888_v34, %v4362_v29  ;;  %v2987_v34 = vld [vmem:[%s4567_s5 + $0x10] sm:$0xff] }
 0x439   : > { %2489 = vmatpush.bf16.msrb.mxu2 %v2987_v34 }
 0x43a   : > { %v1988_v51 = vpop.f32.mrf.mxu0  ;;  %v2037_v61 = vpop.f32.mrf.mxu1  ;;  %v1938_v28 = vadd.f32 %v1937_v57, %v1889_v17  ;;  %v2995_v57 = vld [vmem:[%s4567_s5 + $0x50] sm:$0xff] }
 0x43b   : > { %v1989_v39 = vadd.f32 %v1988_v51, %v4367_v23  ;;  %2538 = vmatpush.bf16.msrb.mxu3 %v2995_v57 }
 0x43c   : > { %v2072_v56 = vmax.f32 %v1938_v28, 0.0 }
 0x43d   : > { %v2038_v16 = vadd.f32 %v2037_v61, %v1989_v39 }
 0x43f   : > { %v2075_v25 = vmax.f32 %v2038_v16, 0.0  ;;  %v1890_v11 = vpop.f32.mrf.mxu2  ;;  %v1939_v44 = vpop.f32.mrf.mxu3  ;;  %2539 = vmatpush.bf16.msrb.mxu3 %v2994_v55 }
 0x440   : > { %v1891_v15 = vadd.f32 %v1890_v11, %v4362_v29 }
 0x441   : > { %v2099_v20 = vpack.c.bf16 %v2075_v25, %v2073_v7 }
 0x442   : > { %v1940_v14 = vadd.f32 %v1939_v44, %v1891_v15 }
 0x443   : > { %2180 = vmatmul.bf16.gmra.mxu3 %v2099_v20  ;;  %2278 = vmatmul.bf16.gmra.mxu1 %v2099_v20 }
 0x444   : > { %v2074_v50 = vmax.f32 %v1940_v14, 0.0 }
 0x446   : > { %v2098_v5 = vpack.c.bf16 %v2074_v50, %v2072_v56 }
 0x448   : > { %2131 = vmatmul.bf16.gmra.mxu2 %v2098_v5  ;;  %2229 = vmatmul.bf16.gmra.mxu0 %v2098_v5 }
 0x450   : > { %v2040_v63 = vpop.f32.mrf.mxu1 }
 0x455   : > { %v1991_v13 = vpop.f32.mrf.mxu0 }
 0x456   : > { %v1942_v45 = vpop.f32.mrf.mxu3  ;;  %v1992_v21 = vadd.f32 %v1991_v13, %v4367_v23 }
 0x458   : > { %v2042_v32 = vpop.f32.mrf.mxu1  ;;  %v2041_v24 = vadd.f32 %v2040_v63, %v1992_v21 }
 0x45a   : > { %v2077_v0 = vmax.f32 %v2041_v24, 0.0  ;;  %v2993_v24 = vld [vmem:[%s4567_s5 + $0x40] sm:$0xff] }
 0x45b   : > { %v1893_v41 = vpop.f32.mrf.mxu2  ;;  %2540 = vmatpush.bf16.msrb.mxu3 %v2993_v24 }
 0x45c   : > { %v1894_v53 = vadd.f32 %v1893_v41, %v4362_v29 }
 0x45d   : > { %v1993_v9 = vpop.f32.mrf.mxu0 }
 0x45e   : > { %v1944_v31 = vpop.f32.mrf.mxu3  ;;  %v1994_v59 = vadd.f32 %v1993_v9, %v4367_v23  ;;  %v1943_v2 = vadd.f32 %v1942_v45, %v1894_v53  ;;  %v2986_v9 = vld [vmem:[%s4567_s5 + $0x8] sm:$0xff] }
 0x45f   : > { %2490 = vmatpush.bf16.msrb.mxu2 %v2986_v9 }
 0x460   : > { %v2043_v38 = vadd.f32 %v2042_v32, %v1994_v59  ;;  %v2045_v58 = vpop.f32.mrf.mxu1  ;;  %v2076_v6 = vmax.f32 %v1943_v2, 0.0 }
 0x462   : > { %v2079_v47 = vmax.f32 %v2043_v38, 0.0 }
 0x463   : > { %v1895_v42 = vpop.f32.mrf.mxu2  ;;  %2491 = vmatpush.bf16.msrb.mxu2 %v2985_v48 }
 0x464   : > { %v1896_v46 = vadd.f32 %v1895_v42, %v4362_v29  ;;  %v2101_v43 = vpack.c.bf16 %v2079_v47, %v2077_v0 }
 0x465   : > { %v1996_v30 = vpop.f32.mrf.mxu0 }
 0x466   : > { %v1945_v40 = vadd.f32 %v1944_v31, %v1896_v46  ;;  %v1947_v18 = vpop.f32.mrf.mxu3  ;;  %2185 = vmatmul.bf16.gmra.mxu3 %v2101_v43  ;;  %2283 = vmatmul.bf16.gmra.mxu1 %v2101_v43  ;;  %v1997_v8 = vadd.f32 %v1996_v30, %v4367_v23 }
 0x468   : > { %v2078_v33 = vmax.f32 %v1945_v40, 0.0  ;;  %v2047_v62 = vpop.f32.mrf.mxu1  ;;  %v2046_v36 = vadd.f32 %v2045_v58, %v1997_v8 }
 0x46a   : > { %v2100_v4 = vpack.c.bf16 %v2078_v33, %v2076_v6  ;;  %v2081_v3 = vmax.f32 %v2046_v36, 0.0 }
 0x46b   : > { %v1898_v60 = vpop.f32.mrf.mxu2 }
 0x46c   : > { %2136 = vmatmul.bf16.gmra.mxu2 %v2100_v4  ;;  %2234 = vmatmul.bf16.gmra.mxu0 %v2100_v4  ;;  %v1899_v22 = vadd.f32 %v1898_v60, %v4362_v29 }
 0x46d   : > { %v1998_v12 = vpop.f32.mrf.mxu0 }
 0x46e   : > { %v1949_v19 = vpop.f32.mrf.mxu3  ;;  %v1999_v26 = vadd.f32 %v1998_v12, %v4367_v23  ;;  %v1948_v10 = vadd.f32 %v1947_v18, %v1899_v22 }
 0x470   : > { %v2048_v27 = vadd.f32 %v2047_v62, %v1999_v26  ;;  %v2050_v35 = vpop.f32.mrf.mxu1  ;;  %v2080_v25 = vmax.f32 %v1948_v10, 0.0 }
 0x472   : > { %v2083_v37 = vmax.f32 %v2048_v27, 0.0 }
 0x473   : > { %v1900_v51 = vpop.f32.mrf.mxu2 }
 0x474   : > { %v1901_v39 = vadd.f32 %v1900_v51, %v4362_v29  ;;  %v2103_v17 = vpack.c.bf16 %v2083_v37, %v2081_v3 }
 0x475   : > { %v2001_v61 = vpop.f32.mrf.mxu0 }
 0x476   : > { %v1950_v16 = vadd.f32 %v1949_v19, %v1901_v39  ;;  %v1952_v7 = vpop.f32.mrf.mxu3  ;;  %2190 = vmatmul.bf16.gmra.mxu3 %v2103_v17  ;;  %2288 = vmatmul.bf16.gmra.mxu1 %v2103_v17  ;;  %v2002_v15 = vadd.f32 %v2001_v61, %v4367_v23 }
 0x478   : > { %v2082_v11 = vmax.f32 %v1950_v16, 0.0  ;;  %v2052_v28 = vpop.f32.mrf.mxu1  ;;  %v2051_v54 = vadd.f32 %v2050_v35, %v2002_v15 }
 0x47a   : > { %v2102_v44 = vpack.c.bf16 %v2082_v11, %v2080_v25  ;;  %v2085_v52 = vmax.f32 %v2051_v54, 0.0 }
 0x47b   : > { %v1903_v20 = vpop.f32.mrf.mxu2 }
 0x47c   : > { %2141 = vmatmul.bf16.gmra.mxu2 %v2102_v44  ;;  %2239 = vmatmul.bf16.gmra.mxu0 %v2102_v44  ;;  %v1904_v50 = vadd.f32 %v1903_v20, %v4362_v29 }
 0x47d   : > { %v2003_v14 = vpop.f32.mrf.mxu0 }
 0x47e   : > { %v1954_v1 = vpop.f32.mrf.mxu3  ;;  %v2004_v56 = vadd.f32 %v2003_v14, %v4367_v23  ;;  %v1953_v32 = vadd.f32 %v1952_v7, %v1904_v50 }
 0x480   : > { %v2053_v5 = vadd.f32 %v2052_v28, %v2004_v56  ;;  %v2055_v63 = vpop.f32.mrf.mxu1  ;;  %v2084_v38 = vmax.f32 %v1953_v32, 0.0 }
 0x482   : > { %v2087_v13 = vmax.f32 %v2053_v5, 0.0 }
 0x483   : > { %v1905_v45 = vpop.f32.mrf.mxu2 }
 0x484   : > { %v1906_v21 = vadd.f32 %v1905_v45, %v4362_v29  ;;  %v2105_v41 = vpack.c.bf16 %v2087_v13, %v2085_v52 }
 0x485   : > { %v2006_v31 = vpop.f32.mrf.mxu0 }
 0x486   : > { %v1955_v59 = vadd.f32 %v1954_v1, %v1906_v21  ;;  %v1957_v53 = vpop.f32.mrf.mxu3  ;;  %2195 = vmatmul.bf16.gmra.mxu3 %v2105_v41  ;;  %2293 = vmatmul.bf16.gmra.mxu1 %v2105_v41  ;;  %v2007_v47 = vadd.f32 %v2006_v31, %v4367_v23 }
 0x488   : > { %v2086_v58 = vmax.f32 %v1955_v59, 0.0  ;;  %v2057_v0 = vpop.f32.mrf.mxu1  ;;  %v2056_v46 = vadd.f32 %v2055_v63, %v2007_v47 }
 0x48a   : > { %v2104_v49 = vpack.c.bf16 %v2086_v58, %v2084_v38  ;;  %v2089_v33 = vmax.f32 %v2056_v46, 0.0 }
 0x48b   : > { %v1908_v42 = vpop.f32.mrf.mxu2 }
 0x48c   : > { %2146 = vmatmul.bf16.gmra.mxu2 %v2104_v49  ;;  %2244 = vmatmul.bf16.gmra.mxu0 %v2104_v49  ;;  %v1909_v40 = vadd.f32 %v1908_v42, %v4362_v29 }
 0x48d   : > { %v2008_v2 = vpop.f32.mrf.mxu0 }
 0x48e   : > { %v1959_v43 = vpop.f32.mrf.mxu3  ;;  %v2009_v30 = vadd.f32 %v2008_v2, %v4367_v23  ;;  %v1958_v4 = vadd.f32 %v1957_v53, %v1909_v40 }
 0x490   : > { %v2058_v18 = vadd.f32 %v2057_v0, %v2009_v30  ;;  %v2264_v6 = vpop.f32.mrf.mxu1  ;;  %v2088_v22 = vmax.f32 %v1958_v4, 0.0 }
 0x492   : > { %v2091_v62 = vmax.f32 %v2058_v18, 0.0 }
 0x493   : > { %v1910_v8 = vpop.f32.mrf.mxu2 }
 0x494   : > { %v1911_v60 = vadd.f32 %v1910_v8, %v4362_v29  ;;  %v2107_v12 = vpack.c.bf16 %v2091_v62, %v2089_v33 }
 0x495   : > { %v2215_v36 = vpop.f32.mrf.mxu0 }
 0x496   : > { %v1960_v19 = vadd.f32 %v1959_v43, %v1911_v60  ;;  %v2166_v26 = vpop.f32.mrf.mxu3  ;;  %2200 = vmatmul.bf16.gmra.mxu3 %v2107_v12  ;;  %2298 = vmatmul.bf16.gmra.mxu1 %v2107_v12  ;;  %v2216_v3 = vadd.f32 %v2215_v36, %v4367_v23 }
 0x498   : > { %v2090_v27 = vmax.f32 %v1960_v19, 0.0  ;;  %v2266_v35 = vpop.f32.mrf.mxu1  ;;  %v2265_v51 = vadd.f32 %v2264_v6, %v2216_v3 }
 0x49a   : > { %v2106_v37 = vpack.c.bf16 %v2090_v27, %v2088_v22  ;;  %v2305_v7 = vmax.f32 %v2265_v51, 0.0 }
 0x49b   : > { %v2117_v34 = vpop.f32.mrf.mxu2 }
 0x49c   : > { %2151 = vmatmul.bf16.gmra.mxu2 %v2106_v37  ;;  %2249 = vmatmul.bf16.gmra.mxu0 %v2106_v37  ;;  %v2118_v17 = vadd.f32 %v2117_v34, %v4362_v29 }
 0x49d   : > { %v2217_v57 = vpop.f32.mrf.mxu0 }
 0x49e   : > { %v2168_v10 = vpop.f32.mrf.mxu3  ;;  %v2218_v39 = vadd.f32 %v2217_v57, %v4367_v23  ;;  %v2167_v28 = vadd.f32 %v2166_v26, %v2118_v17 }
 0x4a0   : > { %v2267_v61 = vadd.f32 %v2266_v35, %v2218_v39  ;;  %v2269_v16 = vpop.f32.mrf.mxu1  ;;  %v2304_v1 = vmax.f32 %v2167_v28, 0.0 }
 0x4a2   : > { %v2307_v25 = vmax.f32 %v2267_v61, 0.0 }
 0x4a3   : > { %v2119_v11 = vpop.f32.mrf.mxu2 }
 0x4a4   : > { %v2337_v15 = vpack.c.bf16 %v2307_v25, %v2305_v7  ;;  %v2120_v44 = vadd.f32 %v2119_v11, %v4362_v29 }
 0x4a5   : > { %v2220_v20 = vpop.f32.mrf.mxu0 }
 0x4a6   : > { %v2169_v14 = vadd.f32 %v2168_v10, %v2120_v44  ;;  %v2171_v54 = vpop.f32.mrf.mxu3  ;;  %2541 = vmatmul.bf16.vlgmr.msrb.gmra.mxu3 %v2337_v15  ;;  %v2221_v63 = vadd.f32 %v2220_v20, %v4367_v23 }
 0x4a8   : > { %v2306_v56 = vmax.f32 %v2169_v14, 0.0  ;;  %v2271_v50 = vpop.f32.mrf.mxu1  ;;  %v2270_v13 = vadd.f32 %v2269_v16, %v2221_v63 }
 0x4aa   : > { %v2336_v5 = vpack.c.bf16 %v2306_v56, %v2304_v1  ;;  %v2309_v24 = vmax.f32 %v2270_v13, 0.0 }
 0x4ab   : > { %v2122_v55 = vpop.f32.mrf.mxu2 }
 0x4ac   : > { %2492 = vmatmul.bf16.vlgmr.msrb.gmra.mxu2 %v2336_v5  ;;  %v2123_v21 = vadd.f32 %v2122_v55, %v4362_v29 }
 0x4ad   : > { %v2222_v52 = vpop.f32.mrf.mxu0 }
 0x4ae   : > { %v2173_v45 = vpop.f32.mrf.mxu3  ;;  %v2223_v32 = vadd.f32 %v2222_v52, %v4367_v23  ;;  %v2172_v53 = vadd.f32 %v2171_v54, %v2123_v21 }
 0x4b0   : > { %v2272_v41 = vadd.f32 %v2271_v50, %v2223_v32  ;;  %v2274_v9 = vpop.f32.mrf.mxu1  ;;  %v2308_v48 = vmax.f32 %v2172_v53, 0.0 }
 0x4b2   : > { %v2311_v31 = vmax.f32 %v2272_v41, 0.0 }
 0x4b3   : > { %v2124_v59 = vpop.f32.mrf.mxu2 }
 0x4b4   : > { %v2125_v38 = vadd.f32 %v2124_v59, %v4362_v29  ;;  %v2339_v58 = vpack.c.bf16 %v2311_v31, %v2309_v24 }
 0x4b5   : > { %v2225_v0 = vpop.f32.mrf.mxu0 }
 0x4b6   : > { %v2174_v47 = vadd.f32 %v2173_v45, %v2125_v38  ;;  %2546 = vmatmul.bf16.gmra.mxu3 %v2339_v58  ;;  %v2176_v49 = vpop.f32.mrf.mxu3  ;;  %v2226_v2 = vadd.f32 %v2225_v0, %v4367_v23 }
 0x4b8   : > { %v2310_v42 = vmax.f32 %v2174_v47, 0.0  ;;  %v2276_v43 = vpop.f32.mrf.mxu1  ;;  %v2275_v18 = vadd.f32 %v2274_v9, %v2226_v2 }
 0x4ba   : > { %v2338_v46 = vpack.c.bf16 %v2310_v42, %v2308_v48  ;;  %v2313_v4 = vmax.f32 %v2275_v18, 0.0 }
 0x4bb   : > { %v2127_v30 = vpop.f32.mrf.mxu2 }
 0x4bc   : > { %2497 = vmatmul.bf16.gmra.mxu2 %v2338_v46  ;;  %v2128_v33 = vadd.f32 %v2127_v30, %v4362_v29 }
 0x4bd   : > { %v2227_v40 = vpop.f32.mrf.mxu0 }
 0x4be   : > { %v2228_v6 = vadd.f32 %v2227_v40, %v4367_v23  ;;  %v2178_v8 = vpop.f32.mrf.mxu3  ;;  %v2177_v36 = vadd.f32 %v2176_v49, %v2128_v33 }
 0x4c0   : > { %v2277_v62 = vadd.f32 %v2276_v43, %v2228_v6  ;;  %v2279_v22 = vpop.f32.mrf.mxu1  ;;  %v2312_v3 = vmax.f32 %v2177_v36, 0.0 }
 0x4c2   : > { %v2315_v60 = vmax.f32 %v2277_v62, 0.0 }
 0x4c3   : > { %v2129_v12 = vpop.f32.mrf.mxu2 }
 0x4c4   : > { %v2130_v19 = vadd.f32 %v2129_v12, %v4362_v29  ;;  %v2341_v26 = vpack.c.bf16 %v2315_v60, %v2313_v4 }
 0x4c5   : > { %v2230_v27 = vpop.f32.mrf.mxu0 }
 0x4c6   : > { %v2179_v35 = vadd.f32 %v2178_v8, %v2130_v19  ;;  %2551 = vmatmul.bf16.gmra.mxu3 %v2341_v26  ;;  %v2231_v34 = vadd.f32 %v2230_v27, %v4367_v23  ;;  %v2181_v51 = vpop.f32.mrf.mxu3 }
 0x4c8   : > { %v2314_v37 = vmax.f32 %v2179_v35, 0.0  ;;  %v2280_v17 = vadd.f32 %v2279_v22, %v2231_v34  ;;  %v2281_v16 = vpop.f32.mrf.mxu1 }
 0x4ca   : > { %v2340_v57 = vpack.c.bf16 %v2314_v37, %v2312_v3  ;;  %v2317_v11 = vmax.f32 %v2280_v17, 0.0 }
 0x4cb   : > { %v2132_v10 = vpop.f32.mrf.mxu2 }
 0x4cc   : > { %2502 = vmatmul.bf16.gmra.mxu2 %v2340_v57  ;;  %v2133_v7 = vadd.f32 %v2132_v10, %v4362_v29 }
 0x4cd   : > { %v2232_v39 = vpop.f32.mrf.mxu0 }
 0x4ce   : > { %v2233_v61 = vadd.f32 %v2232_v39, %v4367_v23  ;;  %v2182_v44 = vadd.f32 %v2181_v51, %v2133_v7  ;;  %v2183_v54 = vpop.f32.mrf.mxu3 }
 0x4d0   : > { %v2282_v25 = vadd.f32 %v2281_v16, %v2233_v61  ;;  %v2316_v56 = vmax.f32 %v2182_v44, 0.0 }
 0x4d2   : > { %v2319_v28 = vmax.f32 %v2282_v25, 0.0 }
 0x4d3   : > { %v2134_v15 = vpop.f32.mrf.mxu2 }
 0x4d4   : > { %v2135_v20 = vadd.f32 %v2134_v15, %v4362_v29  ;;  %v2343_v14 = vpack.c.bf16 %v2319_v28, %v2317_v11 }
 0x4d6   : > { %v2184_v1 = vadd.f32 %v2183_v54, %v2135_v20  ;;  %2556 = vmatmul.bf16.gmra.mxu3 %v2343_v14 }
 0x4d8   : > { %v2318_v50 = vmax.f32 %v2184_v1, 0.0 }
 0x4da   : > { %v2342_v5 = vpack.c.bf16 %v2318_v50, %v2316_v56 }
 0x4dc   : > { %2507 = vmatmul.bf16.gmra.mxu2 %v2342_v5 }
 0x4e3   : > { %v2284_v63 = vpop.f32.mrf.mxu1 }
 0x4e9   : > { %v2186_v55 = vpop.f32.mrf.mxu3  ;;  %v2235_v52 = vpop.f32.mrf.mxu0 }
 0x4ea   : > { %v2236_v45 = vadd.f32 %v2235_v52, %v4367_v23 }
 0x4eb   : > { %v2286_v13 = vpop.f32.mrf.mxu1 }
 0x4ec   : > { %v2285_v9 = vadd.f32 %v2284_v63, %v2236_v45 }
 0x4ee   : > { %v2321_v38 = vmax.f32 %v2285_v9, 0.0 }
 0x4ef   : > { %v2137_v32 = vpop.f32.mrf.mxu2 }
 0x4f0   : > { %v2138_v59 = vadd.f32 %v2137_v32, %v4362_v29 }
 0x4f1   : > { %v2188_v21 = vpop.f32.mrf.mxu3  ;;  %v2237_v41 = vpop.f32.mrf.mxu0 }
 0x4f2   : > { %v2238_v24 = vadd.f32 %v2237_v41, %v4367_v23  ;;  %v2187_v47 = vadd.f32 %v2186_v55, %v2138_v59 }
 0x4f3   : > { %v2289_v31 = vpop.f32.mrf.mxu1 }
 0x4f4   : > { %v2287_v53 = vadd.f32 %v2286_v13, %v2238_v24  ;;  %v2320_v30 = vmax.f32 %v2187_v47, 0.0 }
 0x4f6   : > { %v2323_v58 = vmax.f32 %v2287_v53, 0.0 }
 0x4f7   : > { %v2139_v0 = vpop.f32.mrf.mxu2 }
 0x4f8   : > { %v2140_v49 = vadd.f32 %v2139_v0, %v4362_v29  ;;  %v2345_v48 = vpack.c.bf16 %v2323_v58, %v2321_v38 }
 0x4f9   : > { %v2191_v42 = vpop.f32.mrf.mxu3  ;;  %v2240_v2 = vpop.f32.mrf.mxu0 }
 0x4fa   : > { %v2189_v46 = vadd.f32 %v2188_v21, %v2140_v49  ;;  %2561 = vmatmul.bf16.gmra.mxu3 %v2345_v48  ;;  %v2241_v18 = vadd.f32 %v2240_v2, %v4367_v23 }
 0x4fb   : > { %v2291_v43 = vpop.f32.mrf.mxu1 }
 0x4fc   : > { %v2322_v40 = vmax.f32 %v2189_v46, 0.0  ;;  %v2290_v4 = vadd.f32 %v2289_v31, %v2241_v18 }
 0x4fe   : > { %v2344_v6 = vpack.c.bf16 %v2322_v40, %v2320_v30  ;;  %v2325_v26 = vmax.f32 %v2290_v4, 0.0 }
 0x4ff   : > { %v2142_v33 = vpop.f32.mrf.mxu2 }
 0x500   : > { %2512 = vmatmul.bf16.gmra.mxu2 %v2344_v6  ;;  %v2143_v12 = vadd.f32 %v2142_v33, %v4362_v29 }
 0x501   : > { %v2193_v62 = vpop.f32.mrf.mxu3  ;;  %v2242_v8 = vpop.f32.mrf.mxu0 }
 0x502   : > { %v2243_v60 = vadd.f32 %v2242_v8, %v4367_v23  ;;  %v2192_v35 = vadd.f32 %v2191_v42, %v2143_v12 }
 0x503   : > { %v2294_v19 = vpop.f32.mrf.mxu1 }
 0x504   : > { %v2292_v36 = vadd.f32 %v2291_v43, %v2243_v60  ;;  %v2324_v10 = vmax.f32 %v2192_v35, 0.0 }
 0x506   : > { %v2327_v22 = vmax.f32 %v2292_v36, 0.0 }
 0x507   : > { %v2144_v27 = vpop.f32.mrf.mxu2 }
 0x508   : > { %v2145_v3 = vadd.f32 %v2144_v27, %v4362_v29  ;;  %v2347_v37 = vpack.c.bf16 %v2327_v22, %v2325_v26 }
 0x509   : > { %v2196_v34 = vpop.f32.mrf.mxu3  ;;  %v2245_v57 = vpop.f32.mrf.mxu0 }
 0x50a   : > { %v2194_v51 = vadd.f32 %v2193_v62, %v2145_v3  ;;  %2566 = vmatmul.bf16.gmra.mxu3 %v2347_v37  ;;  %v2246_v17 = vadd.f32 %v2245_v57, %v4367_v23 }
 0x50b   : > { %v2296_v61 = vpop.f32.mrf.mxu1 }
 0x50c   : > { %v2326_v39 = vmax.f32 %v2194_v51, 0.0  ;;  %v2295_v28 = vadd.f32 %v2294_v19, %v2246_v17 }
 0x50e   : > { %v2346_v16 = vpack.c.bf16 %v2326_v39, %v2324_v10  ;;  %v2329_v14 = vmax.f32 %v2295_v28, 0.0 }
 0x50f   : > { %v2147_v7 = vpop.f32.mrf.mxu2 }
 0x510   : > { %2517 = vmatmul.bf16.gmra.mxu2 %v2346_v16  ;;  %v2148_v44 = vadd.f32 %v2147_v7, %v4362_v29 }
 0x511   : > { %v2198_v25 = vpop.f32.mrf.mxu3  ;;  %v2247_v11 = vpop.f32.mrf.mxu0 }
 0x512   : > { %v2248_v15 = vadd.f32 %v2247_v11, %v4367_v23  ;;  %v2197_v56 = vadd.f32 %v2196_v34, %v2148_v44 }
 0x513   : > { %v2299_v50 = vpop.f32.mrf.mxu1 }
 0x514   : > { %v2297_v20 = vadd.f32 %v2296_v61, %v2248_v15  ;;  %v2328_v45 = vmax.f32 %v2197_v56, 0.0 }
 0x516   : > { %v2331_v54 = vmax.f32 %v2297_v20, 0.0 }
 0x517   : > { %v2149_v1 = vpop.f32.mrf.mxu2 }
 0x518   : > { %v2150_v5 = vadd.f32 %v2149_v1, %v4362_v29  ;;  %v2349_v63 = vpack.c.bf16 %v2331_v54, %v2329_v14 }
 0x519   : > { %v2201_v55 = vpop.f32.mrf.mxu3  ;;  %v2250_v52 = vpop.f32.mrf.mxu0 }
 0x51a   : > { %v2199_v13 = vadd.f32 %v2198_v25, %v2150_v5  ;;  %2571 = vmatmul.bf16.gmra.mxu3 %v2349_v63  ;;  %v2251_v21 = vadd.f32 %v2250_v52, %v4367_v23 }
 0x51b   : > { %v2301_v38 = vpop.f32.mrf.mxu1 }
 0x51c   : > { %v2330_v32 = vmax.f32 %v2199_v13, 0.0  ;;  %v2300_v59 = vadd.f32 %v2299_v50, %v2251_v21 }
 0x51e   : > { %v2348_v41 = vpack.c.bf16 %v2330_v32, %v2328_v45  ;;  %v2333_v47 = vmax.f32 %v2300_v59, 0.0 }
 0x51f   : > { %v2152_v9 = vpop.f32.mrf.mxu2 }
 0x520   : > { %2522 = vmatmul.bf16.gmra.mxu2 %v2348_v41  ;;  %v2153_v58 = vadd.f32 %v2152_v9, %v4362_v29 }
 0x521   : > { %v2203_v24 = vpop.f32.mrf.mxu3  ;;  %v2252_v31 = vpop.f32.mrf.mxu0 }
 0x522   : > { %v2253_v53 = vadd.f32 %v2252_v31, %v4367_v23  ;;  %v2202_v42 = vadd.f32 %v2201_v55, %v2153_v58  ;;  %v4518_v23 = vld [vmem:[%s4568_s6] ss:$0 sm:$0xff] }
 0x524   : > { %v2302_v0 = vadd.f32 %v2301_v38, %v2253_v53  ;;  %v2332_v40 = vmax.f32 %v2202_v42, 0.0 }
 0x526   : > { %v2335_v49 = vmax.f32 %v2302_v0, 0.0 }
 0x527   : > { %v2154_v48 = vpop.f32.mrf.mxu2 }
 0x528   : > { %v2155_v2 = vadd.f32 %v2154_v48, %v4362_v29  ;;  %v2351_v46 = vpack.c.bf16 %v2335_v49, %v2333_v47 }
 0x529   : > { %v2542_v43 = vpop.f32.mrf.mxu3 }
 0x52a   : > { %v2204_v30 = vadd.f32 %v2203_v24, %v2155_v2  ;;  %2576 = vmatmul.bf16.gmra.mxu3 %v2351_v46 }
 0x52c   : > { %v2334_v18 = vmax.f32 %v2204_v30, 0.0 }
 0x52e   : > { %v2350_v6 = vpack.c.bf16 %v2334_v18, %v2332_v40 }
 0x52f   : > { %v2493_v33 = vpop.f32.mrf.mxu2 }
 0x530   : > { %v2494_v62 = vadd.f32 %v4518_v23, %v2493_v33  ;;  %2527 = vmatmul.bf16.gmra.mxu2 %v2350_v6 }
 0x531   : > { %v2544_v8 = vpop.f32.mrf.mxu3 }
 0x532   : > { %v2543_v4 = vadd.f32 %v2542_v43, %v2494_v62 }
 0x534   : > { %v2582_v29 = vmax.f32 %v2543_v4, 0.0 }
 0x536   : > { %2598 = vst [vmem:[%s4526_s29] sm:$0xff] %v2582_v29 }
 0x537   : > { %v2495_v60 = vpop.f32.mrf.mxu2 }
 0x538   : > { %v2496_v12 = vadd.f32 %v4518_v23, %v2495_v60 }
 0x539   : > { %v2547_v36 = vpop.f32.mrf.mxu3 }
 0x53a   : > { %v2545_v19 = vadd.f32 %v2544_v8, %v2496_v12 }
 0x53c   : > { %v2583_v26 = vmax.f32 %v2545_v19, 0.0 }
 0x53e   : > { %2599 = vst [vmem:[%s4526_s29 + $0x8] sm:$0xff] %v2583_v26 }
 0x53f   : > { %v2498_v22 = vpop.f32.mrf.mxu2 }
 0x540   : > { %v2499_v27 = vadd.f32 %v4518_v23, %v2498_v22 }
 0x541   : > { %v2549_v35 = vpop.f32.mrf.mxu3 }
 0x542   : > { %v2548_v3 = vadd.f32 %v2547_v36, %v2499_v27 }
 0x544   : > { %v2584_v37 = vmax.f32 %v2548_v3, 0.0 }
 0x546   : > { %2600 = vst [vmem:[%s4526_s29 + $0x10] sm:$0xff] %v2584_v37 }
 0x547   : > { %v2500_v34 = vpop.f32.mrf.mxu2 }
 0x548   : > { %v2501_v57 = vadd.f32 %v4518_v23, %v2500_v34 }
 0x549   : > { %v2552_v10 = vpop.f32.mrf.mxu3 }
 0x54a   : > { %v2550_v51 = vadd.f32 %v2549_v35, %v2501_v57 }
 0x54c   : > { %v2585_v39 = vmax.f32 %v2550_v51, 0.0 }
 0x54e   : > { %2601 = vst [vmem:[%s4526_s29 + $0x18] sm:$0xff] %v2585_v39 }
 0x54f   : > { %v2503_v17 = vpop.f32.mrf.mxu2 }
 0x550   : > { %v2504_v61 = vadd.f32 %v4518_v23, %v2503_v17 }
 0x551   : > { %v2554_v25 = vpop.f32.mrf.mxu3 }
 0x552   : > { %v2553_v16 = vadd.f32 %v2552_v10, %v2504_v61 }
 0x554   : > { %v2586_v7 = vmax.f32 %v2553_v16, 0.0 }
 0x556   : > { %2602 = vst [vmem:[%s4526_s29 + $0x20] sm:$0xff] %v2586_v7 }
 0x557   : > { %v2505_v11 = vpop.f32.mrf.mxu2 }
 0x558   : > { %v2506_v28 = vadd.f32 %v4518_v23, %v2505_v11 }
 0x559   : > { %v2557_v20 = vpop.f32.mrf.mxu3 }
 0x55a   : > { %v2555_v15 = vadd.f32 %v2554_v25, %v2506_v28 }
 0x55c   : > { %v2587_v44 = vmax.f32 %v2555_v15, 0.0 }
 0x55e   : > { %2603 = vst [vmem:[%s4526_s29 + $0x28] sm:$0xff] %v2587_v44 }
 0x55f   : > { %v2508_v14 = vpop.f32.mrf.mxu2 }
 0x560   : > { %v2509_v54 = vadd.f32 %v4518_v23, %v2508_v14 }
 0x561   : > { %v2559_v63 = vpop.f32.mrf.mxu3 }
 0x562   : > { %v2558_v1 = vadd.f32 %v2557_v20, %v2509_v54 }
 0x564   : > { %v2588_v56 = vmax.f32 %v2558_v1, 0.0 }
 0x566   : > { %2604 = vst [vmem:[%s4526_s29 + $0x30] sm:$0xff] %v2588_v56 }
 0x567   : > { %v2510_v50 = vpop.f32.mrf.mxu2 }
 0x568   : > { %v2511_v5 = vadd.f32 %v4518_v23, %v2510_v50 }
 0x56a   : > { %v2560_v55 = vadd.f32 %v2559_v63, %v2511_v5 }
 0x56c   : > { %v2589_v52 = vmax.f32 %v2560_v55, 0.0 }
 0x56e   : > { %2605 = vst [vmem:[%s4526_s29 + $0x38] sm:$0xff] %v2589_v52 }
 0x57d   : > { %v2562_v13 = vpop.f32.mrf.mxu3 }
 0x583   : > { %v2513_v45 = vpop.f32.mrf.mxu2 }
 0x584   : > { %v2514_v32 = vadd.f32 %v4518_v23, %v2513_v45 }
 0x585   : > { %v2564_v21 = vpop.f32.mrf.mxu3 }
 0x586   : > { %v2563_v41 = vadd.f32 %v2562_v13, %v2514_v32 }
 0x588   : > { %v2590_v9 = vmax.f32 %v2563_v41, 0.0 }
 0x58a   : > { %2606 = vst [vmem:[%s4526_s29 + $0x40] sm:$0xff] %v2590_v9 }
 0x58b   : > { %v2515_v24 = vpop.f32.mrf.mxu2 }
 0x58c   : > { %v2516_v31 = vadd.f32 %v4518_v23, %v2515_v24 }
 0x58d   : > { %v2567_v59 = vpop.f32.mrf.mxu3 }
 0x58e   : > { %v2565_v53 = vadd.f32 %v2564_v21, %v2516_v31 }
 0x590   : > { %v2591_v38 = vmax.f32 %v2565_v53, 0.0 }
 0x592   : > { %2607 = vst [vmem:[%s4526_s29 + $0x48] sm:$0xff] %v2591_v38 }
 0x593   : > { %v2518_v58 = vpop.f32.mrf.mxu2 }
 0x594   : > { %v2519_v0 = vadd.f32 %v4518_v23, %v2518_v58 }
 0x595   : > { %v2569_v47 = vpop.f32.mrf.mxu3 }
 0x596   : > { %v2568_v49 = vadd.f32 %v2567_v59, %v2519_v0 }
 0x598   : > { %v2592_v48 = vmax.f32 %v2568_v49, 0.0 }
 0x59a   : > { %2608 = vst [vmem:[%s4526_s29 + $0x50] sm:$0xff] %v2592_v48 }
 0x59b   : > { %v2520_v42 = vpop.f32.mrf.mxu2 }
 0x59c   : > { %v2521_v2 = vadd.f32 %v4518_v23, %v2520_v42 }
 0x59d   : > { %v2572_v43 = vpop.f32.mrf.mxu3 }
 0x59e   : > { %v2570_v46 = vadd.f32 %v2569_v47, %v2521_v2 }
 0x5a0   : > { %v2593_v30 = vmax.f32 %v2570_v46, 0.0 }
 0x5a2   : > { %2609 = vst [vmem:[%s4526_s29 + $0x58] sm:$0xff] %v2593_v30 }
 0x5a3   : > { %v2523_v40 = vpop.f32.mrf.mxu2 }
 0x5a4   : > { %v2524_v18 = vadd.f32 %v4518_v23, %v2523_v40 }
 0x5a5   : > { %v2574_v62 = vpop.f32.mrf.mxu3 }
 0x5a6   : > { %v2573_v6 = vadd.f32 %v2572_v43, %v2524_v18 }
 0x5a8   : > { %v2594_v33 = vmax.f32 %v2573_v6, 0.0 }
 0x5aa   : > { %2610 = vst [vmem:[%s4526_s29 + $0x60] sm:$0xff] %v2594_v33 }
 0x5ab   : > { %v2525_v8 = vpop.f32.mrf.mxu2 }
 0x5ac   : > { %v2526_v4 = vadd.f32 %v4518_v23, %v2525_v8 }
 0x5ad   : > { %v2577_v12 = vpop.f32.mrf.mxu3 }
 0x5ae   : > { %v2575_v29 = vadd.f32 %v2574_v62, %v2526_v4 }
 0x5b0   : > { %v2595_v60 = vmax.f32 %v2575_v29, 0.0 }
 0x5b2   : > { %2611 = vst [vmem:[%s4526_s29 + $0x68] sm:$0xff] %v2595_v60 }
 0x5b3   : > { %v2528_v36 = vpop.f32.mrf.mxu2 }
 0x5b4   : > { %v2529_v19 = vadd.f32 %v4518_v23, %v2528_v36 }
 0x5b5   : > { %v2579_v3 = vpop.f32.mrf.mxu3 }
 0x5b6   : > { %v2578_v26 = vadd.f32 %v2577_v12, %v2529_v19 }
 0x5b8   : > { %v2596_v22 = vmax.f32 %v2578_v26, 0.0 }
 0x5ba   : > { %2612 = vst [vmem:[%s4526_s29 + $0x70] sm:$0xff] %v2596_v22 }
 0x5bb   : > { %v2530_v27 = vpop.f32.mrf.mxu2 }
 0x5bc   : > { %v2531_v35 = vadd.f32 %v4518_v23, %v2530_v27 }
 0x5be   : > { %v2580_v37 = vadd.f32 %v2579_v3, %v2531_v35 }
 0x5c0   : > { %v2597_v34 = vmax.f32 %v2580_v37, 0.0 }
 0x5c2   : > { %2613 = vst [vmem:[%s4526_s29 + $0x78] sm:$0xff] %v2597_v34 }
 0x5c3 PF: > { %s17_s24 = sadd.s32 1, %s3082_s24  }
 0x5c4   : > { %p14_p4 = scmp.ge.s32.totalorder %s17_s24, 6  }
 0x5c6   :  { %16 = sbr.rel (!%p14_p4) target bundleno = 1 (0x1), region = 78 }

// kernel: feature_extractor.1
= control target key start
LH: loop header
LB: loop body
LE: loop exit
PB: predicated region body
PF: predicated region fallthrough
CT: control target
= control target key end

     0   :  { %s3124_s24 = smov 0   ;;  %s4562_s0 = inlined_call_operand.vmem [shape: f32[512,128], index: 0, kind: input, shape index: {}]   ;;  %s4563_s1 = inlined_call_operand.vmem [shape: f32[3,128], index: 1, kind: input, shape index: {}]   ;;  %s4564_s2 = inlined_call_operand.vmem [shape: bf16[128,256], index: 2, kind: input, shape index: {}]   ;;  %s4565_s3 = inlined_call_operand.vmem [shape: f32[5,256], index: 3, kind: input, shape index: {}]   ;;  %s4566_s4 = inlined_call_operand.vmem [shape: bf16[256,256], index: 4, kind: input, shape index: {}]   ;;  %s4567_s5 = inlined_call_operand.vmem [shape: bf16[256,128], index: 5, kind: input, shape index: {}]   ;;  %s4568_s6 = inlined_call_operand.vmem [shape: f32[1,128], index: 6, kind: input, shape index: {}]   ;;  %s4569_s7 = inlined_call_operand.vmem [shape: f32[512,128], index: 7, kind: output, shape index: {}]  }
   0x1 LB: > { %s2670_s25 = sadd.s32 4294967295, %s3082_s24   ;;  %p2674_p0 = scmp.ge.s32.totalorder %s3082_s24, 1  ;;  %s3082_s24 = sphi %s3124_s24, %s17_s24  }
   0x2   : > { %p238_p1 = scmp.lt.s32.totalorder %s3082_s24, 5 }
   0x4   : > { %p239_p2 = pnand %p2674_p0, %p238_p1 }
   0x6   : > { %242 = sbr.rel (%p239_p2) target bundleno = 1475 (0x5c3), region = 48 }
   0xb   : > { %s2675_s26 = sshll.u32 %s2670_s25, 4  ;;  %v3157_v9 = vld [vmem:[%s4563_s1] sm:$0x7]  ;;  %v2737_v63 = vld [vmem:[%s4564_s2 + $0x70] sm:$0xf] }
   0xc   : > { %p271_p3 = scmp.lt.s32.totalorder %s2675_s26, 63  ;;  %v3160_v13 = vperm.slane %v3157_v9, 2 }
   0xe   : > { %s4659_s26 = smov (!%p271_p3, %s2675_s26), 63 }
   0xf   : > { %s2676_s27 = sshll.u32 %s4659_s26, 3 }
  0x10   : > { %s3140_s30 = scalar_lea.vmem %s4562_s0, %s2676_s27  ;;  %s4526_s29 = scalar_lea.vmem %s4569_s7, %s2676_s27 }
  0x11   : > { %v284_v0 = vld [vmem:[%s3140_s30 + $0x10] sm:$0xff]  ;;  %v282_v1 = vld [vmem:[%s3140_s30] sm:$0xff]  ;;  %v285_v3 = vld [vmem:[%s3140_s30 + $0x18] sm:$0xff] }
  0x12   : > { %305 = vadd.xlane.f32.xlu1 %v284_v0  ;;  %301 = vadd.xlane.f32.xlu0 %v282_v1  ;;  %v286_v2 = vld [vmem:[%s3140_s30 + $0x20] sm:$0xff]  ;;  %v283_v4 = vld [vmem:[%s3140_s30 + $0x8] sm:$0xff]  ;;  %v288_v6 = vld [vmem:[%s3140_s30 + $0x30] sm:$0xff] }
  0x13   : > { %309 = vadd.xlane.f32.xlu2 %v286_v2  ;;  %v287_v5 = vld [vmem:[%s3140_s30 + $0x28] sm:$0xff]  ;;  %v289_v7 = vld [vmem:[%s3140_s30 + $0x38] sm:$0xff]  ;;  %v3151_v8 = vld [vmem:[%s3140_s30 + $0x40] sm:$0xff] }
  0x14   : > { %v3179_v30 = vld [vmem:[%s3140_s30 + $0x48] sm:$0xff]  ;;  %v3189_v39 = vld [vmem:[%s3140_s30 + $0x50] sm:$0xff]  ;;  %v3200_v48 = vld [vmem:[%s3140_s30 + $0x58] sm:$0xff] }
  0x15   : > { %v3197_v47 = vld [vmem:[%s3140_s30 + $0x68] sm:$0xff]  ;;  %v3209_v53 = vld [vmem:[%s3140_s30 + $0x70] sm:$0xff]  ;;  %v3212_v54 = vld [vmem:[%s3140_s30 + $0x60] sm:$0xff] }
  0x16   : > { %v3222_v60 = vld [vmem:[%s3140_s30 + $0x78] sm:$0xff] }
  0x1a   : > { %307 = vadd.xlane.f32.xlu1 %v285_v3  ;;  %303 = vadd.xlane.f32.xlu0 %v283_v4 }
  0x1b   : > { %311 = vadd.xlane.f32.xlu2 %v287_v5 }
  0x22   : > { %313 = vadd.xlane.f32.xlu0 %v288_v6  ;;  %315 = vadd.xlane.f32.xlu1 %v289_v7 }
  0x2a   : > { %317 = vadd.xlane.f32.xlu1 %v3151_v8 }
  0x85   : > { %v306_v10 = vpop.xlane.xlu1 %305  ;;  %v302_v11 = vpop.xlane.xlu0 %301 }
  0x86   : > { %v333_v12 = vmul.f32 0.010416667, %v302_v11  ;;  %v310_v15 = vpop.xlane.xlu2 %309  ;;  %v335_v23 = vmul.f32 0.010416667, %v306_v10  ;;  %v2731_v10 = vld [vmem:[%s4564_s2 + $0x68] sm:$0xf0] }
  0x87   : > { %v337_v22 = vmul.f32 0.010416667, %v310_v15  ;;  %v2948_v15 = vld [vmem:[%s4564_s2 + $0x54] sm:$0xf0] }
  0x88   : > { %v3162_v14 = vsub.f32 %v282_v1, %v333_v12  ;;  %v3176_v29 = vsub.f32 %v284_v0, %v335_v23  ;;  %v2952_v0 = vld [vmem:[%s4564_s2 + $0x74] sm:$0xf0]  ;;  %v2951_v1 = vld [vmem:[%s4564_s2 + $0x74] sm:$0xf]  ;;  %v2721_v12 = vld [vmem:[%s4564_s2 + $0x50] sm:$0xf] }
  0x89   : > { %v3170_v26 = vsub.f32 %v286_v2, %v337_v22  ;;  %v2738_v2 = vor.u32 %v2952_v0, %v2737_v63  ;;  %v2945_v22 = vld [vmem:[%s4564_s2 + $0x44] sm:$0xf] }
  0x8a   : > { %v366_v16 = vmul.f32 %v3160_v13, %v3162_v14  ;;  %v368_v36 = vmul.f32 %v3160_v13, %v3176_v29  ;;  %v2937_v63 = vld [vmem:[%s4564_s2 + $0x4] sm:$0xf] }
  0x8b   : > { %v370_v35 = vmul.f32 %v3160_v13, %v3170_v26  ;;  %778 = vmatpush.bf16.msra.mxu0 %v2738_v2  ;;  %v2683_v2 = vld [vmem:[%s4564_s2 + $0x8] sm:$0xf0] }
  0x8c   : > { %v382_v17 = vmul.f32 %v366_v16, %v366_v16  ;;  %v384_v40 = vmul.f32 %v368_v36, %v368_v36  ;;  %v2947_v16 = vld [vmem:[%s4564_s2 + $0x54] sm:$0xf] }
  0x8d   : > { %v308_v18 = vpop.xlane.xlu1 %307  ;;  %v304_v19 = vpop.xlane.xlu0 %303  ;;  %v386_v38 = vmul.f32 %v370_v35, %v370_v35  ;;  %v2707_v35 = vld [vmem:[%s4564_s2 + $0x38] sm:$0xf0] }
  0x8e   : > { %v336_v20 = vmul.f32 0.010416667, %v308_v18  ;;  %v334_v21 = vmul.f32 0.010416667, %v304_v19  ;;  %398 = vadd.xlane.f32.xlu2 %v382_v17  ;;  %v312_v31 = vpop.xlane.xlu2 %311  ;;  %v2722_v17 = vor.u32 %v2948_v15, %v2721_v12  ;;  %v2723_v18 = vld [vmem:[%s4564_s2 + $0x58] sm:$0xf0] }
  0x8f   : > { %v338_v34 = vmul.f32 0.010416667, %v312_v31  ;;  %v2726_v19 = vor.u32 %v2947_v16, %v2723_v18  ;;  %v2705_v31 = vld [vmem:[%s4564_s2 + $0x30] sm:$0xf] }
  0x90   : > { %v3166_v24 = vsub.f32 %v285_v3, %v336_v20  ;;  %v3168_v25 = vsub.f32 %v283_v4, %v334_v21  ;;  %v2739_v3 = vld [vmem:[%s4564_s2 + $0x78] sm:$0xf0]  ;;  %v2713_v20 = vld [vmem:[%s4564_s2 + $0x40] sm:$0xf]  ;;  %v2946_v21 = vld [vmem:[%s4564_s2 + $0x44] sm:$0xf0] }
  0x91   : > { %v3186_v37 = vsub.f32 %v287_v5, %v338_v34  ;;  %v2742_v4 = vor.u32 %v2951_v1, %v2739_v3  ;;  %v2729_v5 = vld [vmem:[%s4564_s2 + $0x60] sm:$0xf]  ;;  %v2714_v23 = vor.u32 %v2946_v21, %v2713_v20  ;;  %v2686_v3 = vor.u32 %v2937_v63, %v2683_v2 }
  0x92   : > { %v369_v27 = vmul.f32 %v3160_v13, %v3166_v24  ;;  %v367_v28 = vmul.f32 %v3160_v13, %v3168_v25 }
  0x93   : > { %v371_v43 = vmul.f32 %v3160_v13, %v3186_v37  ;;  %827 = vmatpush.bf16.msra.mxu1 %v2742_v4 }
  0x94   : > { %v385_v32 = vmul.f32 %v369_v27, %v369_v27  ;;  %v383_v33 = vmul.f32 %v367_v28, %v367_v28  ;;  %v2715_v27 = vld [vmem:[%s4564_s2 + $0x48] sm:$0xf0] }
  0x95   : > { %v314_v41 = vpop.xlane.xlu0 %313  ;;  %v387_v45 = vmul.f32 %v371_v43, %v371_v43  ;;  %v316_v46 = vpop.xlane.xlu1 %315  ;;  %v2718_v28 = vor.u32 %v2945_v22, %v2715_v27  ;;  %v2699_v43 = vld [vmem:[%s4564_s2 + $0x28] sm:$0xf0] }
  0x96   : > { %404 = vadd.xlane.f32.xlu1 %v385_v32  ;;  %319 = vadd.xlane.f32.xlu2 %v3179_v30  ;;  %v339_v42 = vmul.f32 0.010416667, %v314_v41  ;;  %v340_v50 = vmul.f32 0.010416667, %v316_v46  ;;  %v2944_v32 = vld [vmem:[%s4564_s2 + $0x34] sm:$0xf0] }
  0x97   : > { %400 = vadd.xlane.f32.xlu0 %v383_v33  ;;  %v2943_v33 = vld [vmem:[%s4564_s2 + $0x34] sm:$0xf]  ;;  %v2706_v34 = vor.u32 %v2944_v32, %v2705_v31  ;;  %v2941_v41 = vld [vmem:[%s4564_s2 + $0x24] sm:$0xf]  ;;  %v2689_v46 = vld [vmem:[%s4564_s2 + $0x10] sm:$0xf] }
  0x98   : > { %v3194_v44 = vsub.f32 %v288_v6, %v339_v42  ;;  %v3206_v52 = vsub.f32 %v289_v7, %v340_v50  ;;  %v2950_v6 = vld [vmem:[%s4564_s2 + $0x64] sm:$0xf0]  ;;  %v2949_v7 = vld [vmem:[%s4564_s2 + $0x64] sm:$0xf]  ;;  %v2710_v36 = vor.u32 %v2943_v33, %v2707_v35  ;;  %v2939_v50 = vld [vmem:[%s4564_s2 + $0x14] sm:$0xf] }
  0x99   : > { %v2734_v11 = vor.u32 %v2949_v7, %v2731_v10 }
  0x9a   : > { %v372_v49 = vmul.f32 %v3160_v13, %v3194_v44  ;;  %v373_v57 = vmul.f32 %v3160_v13, %v3206_v52 }
  0x9b   : > { %828 = vmatpush.bf16.msra.mxu1 %v2734_v11 }
  0x9c   : > { %v388_v51 = vmul.f32 %v372_v49, %v372_v49  ;;  %v389_v59 = vmul.f32 %v373_v57, %v373_v57  ;;  %v2940_v49 = vld [vmem:[%s4564_s2 + $0x14] sm:$0xf0] }
  0x9d   : > { %v318_v55 = vpop.xlane.xlu1 %317 }
  0x9e   : > { %406 = vadd.xlane.f32.xlu1 %v386_v38  ;;  %321 = vadd.xlane.f32.xlu2 %v3189_v39  ;;  %v341_v56 = vmul.f32 0.010416667, %v318_v55  ;;  %v2697_v38 = vld [vmem:[%s4564_s2 + $0x20] sm:$0xf]  ;;  %v2691_v55 = vld [vmem:[%s4564_s2 + $0x18] sm:$0xf0] }
  0x9f   : > { %402 = vadd.xlane.f32.xlu0 %v384_v40  ;;  %829 = vmatpush.bf16.msra.mxu1 %v2726_v19  ;;  %v2942_v40 = vld [vmem:[%s4564_s2 + $0x24] sm:$0xf0]  ;;  %v2694_v57 = vor.u32 %v2939_v50, %v2691_v55 }
  0xa0   : > { %v3219_v58 = vsub.f32 %v3151_v8, %v341_v56  ;;  %v2730_v8 = vor.u32 %v2950_v6, %v2729_v5  ;;  %v2698_v42 = vor.u32 %v2942_v40, %v2697_v38 }
  0xa2   : > { %v374_v61 = vmul.f32 %v3160_v13, %v3219_v58  ;;  %779 = vmatpush.bf16.msra.mxu0 %v2730_v8 }
  0xa3   : > { %830 = vmatpush.bf16.msra.mxu1 %v2718_v28 }
  0xa4   : > { %v390_v62 = vmul.f32 %v374_v61, %v374_v61  ;;  %v2681_v61 = vld [vmem:[%s4564_s2] sm:$0xf] }
  0xa6   : > { %327 = vadd.xlane.f32.xlu1 %v3197_v47  ;;  %408 = vadd.xlane.f32.xlu2 %v387_v45  ;;  %v2702_v45 = vor.u32 %v2941_v41, %v2699_v43 }
  0xa7   : > { %323 = vadd.xlane.f32.xlu0 %v3200_v48  ;;  %780 = vmatpush.bf16.msra.mxu0 %v2722_v17 }
  0xa8   : > { %831 = vmatpush.bf16.msra.mxu1 %v2710_v36 }
  0xab   : > { %781 = vmatpush.bf16.msra.mxu0 %v2714_v23 }
  0xac   : > { %832 = vmatpush.bf16.msra.mxu1 %v2702_v45 }
  0xae   : > { %329 = vadd.xlane.f32.xlu1 %v3209_v53  ;;  %410 = vadd.xlane.f32.xlu2 %v388_v51  ;;  %v2690_v51 = vor.u32 %v2940_v49, %v2689_v46 }
  0xaf   : > { %325 = vadd.xlane.f32.xlu0 %v3212_v54  ;;  %782 = vmatpush.bf16.msra.mxu0 %v2706_v34 }
  0xb0   : > { %833 = vmatpush.bf16.msra.mxu1 %v2694_v57 }
  0xb3   : > { %783 = vmatpush.bf16.msra.mxu0 %v2698_v42 }
  0xb4   : > { %834 = vmatpush.bf16.msra.mxu1 %v2686_v3 }
  0xb6   : > { %331 = vadd.xlane.f32.xlu2 %v3222_v60 }
  0xb7   : > { %412 = vadd.xlane.f32.xlu0 %v389_v59  ;;  %784 = vmatpush.bf16.msra.mxu0 %v2690_v51 }
  0xbf   : > { %414 = vadd.xlane.f32.xlu0 %v390_v62  ;;  %v2938_v62 = vld [vmem:[%s4564_s2 + $0x4] sm:$0xf0] }
  0xc0   : > { %v2682_v1 = vor.u32 %v2938_v62, %v2681_v61 }
  0xc2   : > { %785 = vmatpush.bf16.msra.mxu0 %v2682_v1 }
 0x101   : > { %v399_v56 = vpop.xlane.xlu2 %398 }
 0x102   : > { %v430_v59 = vmul.f32 0.010416667, %v399_v56 }
 0x104   : > { %v446_v0 = vadd.f32 1e-05, %v430_v59 }
 0x106   : > { %3010 = vrsqrt.f32 %v446_v0  ;;  %vm468_vm1 = vweird.f32 %v446_v0 }
 0x109   : > { %v405_v4 = vpop.xlane.xlu1 %404  ;;  %v320_v5 = vpop.xlane.xlu2 %319 }
 0x10a   : > { %v433_v6 = vmul.f32 0.010416667, %v405_v4  ;;  %v342_v7 = vmul.f32 0.010416667, %v320_v5  ;;  %v401_v8 = vpop.xlane.xlu0 %400  ;;  %v3364_v4 = vperm.slane %v3157_v9, 0 }
 0x10b   : > { %v431_v10 = vmul.f32 0.010416667, %v401_v8 }
 0x10c   : > { %v3011_v11 = vpop.eup %3010  ;;  %v3323_v12 = vadd.f32 1e-05, %v433_v6  ;;  %v3326_v15 = vsub.f32 %v3179_v30, %v342_v7 }
 0x10d   : > { %v463_v16 = vmul.f32 %v3011_v11, %v446_v0  ;;  %v447_v17 = vadd.f32 1e-05, %v431_v10  ;;  %vm469_vm0 = vweird.f32 %v3011_v11 }
 0x10e   : > { %3012 = vrsqrt.f32 %v3323_v12  ;;  %v375_v18 = vmul.f32 %v3160_v13, %v3326_v15  ;;  %vm3345_vm2 = vmor %vm468_vm1, %vm469_vm0  ;;  %vm498_vm6 = vweird.f32 %v3323_v12 }
 0x10f   : > { %v464_v19 = vmul.f32 %v3011_v11, %v463_v16  ;;  %3014 = vrsqrt.f32 %v447_v17  ;;  %vm478_vm4 = vweird.f32 %v447_v17 }
 0x110   : > { %v391_v20 = vmul.f32 %v375_v18, %v375_v18 }
 0x111   : > { %v465_v21 = vmul.f32 0.5, %v464_v19  ;;  %v407_v22 = vpop.xlane.xlu1 %406  ;;  %v322_v23 = vpop.xlane.xlu2 %321 }
 0x112   : > { %v343_v27 = vmul.f32 0.010416667, %v322_v23  ;;  %v403_v28 = vpop.xlane.xlu0 %402  ;;  %416 = vadd.xlane.f32.xlu1 %v391_v20  ;;  %v434_v35 = vmul.f32 0.010416667, %v407_v22 }
 0x113   : > { %v466_v31 = vsub.f32 1.5, %v465_v21  ;;  %v432_v32 = vmul.f32 0.010416667, %v403_v28 }
 0x114   : > { %v3331_v30 = vpop.eup %3012  ;;  %v3334_v33 = vsub.f32 %v3189_v39, %v343_v27  ;;  %v3343_v45 = vadd.f32 1e-05, %v434_v35  ;;  %v3378_v27 = vperm.slane %v3157_v9, 1 }
 0x115   : > { %v3015_v34 = vpop.eup %3014  ;;  %v3336_v36 = vadd.f32 1e-05, %v432_v32  ;;  %v467_v40 = vmul.f32 %v3011_v11, %v466_v31  ;;  %v493_v41 = vmul.f32 %v3331_v30, %v3323_v12  ;;  %vm499_vm7 = vweird.f32 %v3331_v30 }
 0x116   : > { %v473_v38 = vmul.f32 %v3015_v34, %v447_v17  ;;  %v376_v42 = vmul.f32 %v3160_v13, %v3334_v33  ;;  %vm479_vm3 = vweird.f32 %v3015_v34  ;;  %vm3401_vm10 = vmor %vm498_vm6, %vm499_vm7  ;;  %vm508_vm14 = vweird.f32 %v3343_v45 }
 0x117   : > { %3016 = vrsqrt.f32 %v3336_v36  ;;  %v494_v59 = vmul.f32 %v3331_v30, %v493_v41  ;;  %v471_v62 = vsel %vm3345_vm2, %v3011_v11, %v467_v40  ;;  %vm480_vm5 = vmor %vm478_vm4, %vm479_vm3  ;;  %vm488_vm8 = vweird.f32 %v3336_v36 }
 0x118   : > { %v474_v43 = vmul.f32 %v3015_v34, %v473_v38  ;;  %v392_v49 = vmul.f32 %v376_v42, %v376_v42  ;;  %3018 = vrsqrt.f32 %v3343_v45 }
 0x119   : > { %v328_v39 = vpop.xlane.xlu1 %327  ;;  %v409_v46 = vpop.xlane.xlu2 %408  ;;  %v495_v7 = vmul.f32 0.5, %v494_v59 }
 0x11a   : > { %v475_v51 = vmul.f32 0.5, %v474_v43  ;;  %v346_v55 = vmul.f32 0.010416667, %v328_v39  ;;  %v435_v56 = vmul.f32 0.010416667, %v409_v46  ;;  %v324_v57 = vpop.xlane.xlu0 %323  ;;  %418 = vadd.xlane.f32.xlu2 %v392_v49 }
 0x11b   : > { %v344_v61 = vmul.f32 0.010416667, %v324_v57  ;;  %v496_v31 = vsub.f32 1.5, %v495_v7 }
 0x11c   : > { %v476_v63 = vsub.f32 1.5, %v475_v51  ;;  %v3353_v0 = vsub.f32 %v3197_v47, %v346_v55  ;;  %v3355_v1 = vadd.f32 1e-05, %v435_v56  ;;  %v622_v47 = vmul.f32 %v471_v62, %v3162_v14 }
 0x11d   : > { %v3357_v2 = vpop.eup %3016  ;;  %v3361_v3 = vsub.f32 %v3200_v48, %v344_v61 }
 0x11e   : > { %v477_v5 = vmul.f32 %v3015_v34, %v476_v63  ;;  %v483_v6 = vmul.f32 %v3357_v2, %v3336_v36  ;;  %3020 = vrsqrt.f32 %v3355_v1  ;;  %v379_v8 = vmul.f32 %v3160_v13, %v3353_v0  ;;  %v3380_v28 = vpop.eup %3018 }
 0x11f   : > { %v377_v48 = vmul.f32 %v3160_v13, %v3361_v3  ;;  %v639_v23 = vmul.f32 %v3364_v4, %v622_v47  ;;  %vm489_vm9 = vweird.f32 %v3357_v2  ;;  %v503_v36 = vmul.f32 %v3380_v28, %v3343_v45 }
 0x120   : > { %v484_v10 = vmul.f32 %v3357_v2, %v483_v6  ;;  %v481_v11 = vsel %vm480_vm5, %v3015_v34, %v477_v5  ;;  %v395_v18 = vmul.f32 %v379_v8, %v379_v8  ;;  %vm3411_vm11 = vmor %vm488_vm8, %vm489_vm9  ;;  %vm518_vm12 = vweird.f32 %v3355_v1 }
 0x121   : > { %v330_v16 = vpop.xlane.xlu1 %329  ;;  %v411_v17 = vpop.xlane.xlu2 %410  ;;  %v393_v19 = vmul.f32 %v377_v48, %v377_v48  ;;  %v623_v20 = vmul.f32 %v481_v11, %v3168_v25  ;;  %v656_v12 = vadd.f32 %v3378_v27, %v639_v23  ;;  %v504_v5 = vmul.f32 %v3380_v28, %v503_v36 }
 0x122   : > { %v485_v21 = vmul.f32 0.5, %v484_v10  ;;  %v347_v22 = vmul.f32 0.010416667, %v330_v16  ;;  %v326_v14 = vpop.xlane.xlu0 %325  ;;  %424 = vadd.xlane.f32.xlu2 %v395_v18  ;;  %v436_v42 = vmul.f32 0.010416667, %v411_v17  ;;  %vm509_vm15 = vweird.f32 %v3380_v28 }
 0x123   : > { %v345_v32 = vmul.f32 0.010416667, %v326_v14  ;;  %420 = vadd.xlane.f32.xlu0 %v393_v19  ;;  %v640_v34 = vmul.f32 %v3364_v4, %v623_v20  ;;  %v505_v16 = vmul.f32 0.5, %v504_v5  ;;  %vm510_vm1 = vmor %vm508_vm14, %vm509_vm15 }
 0x124   : > { %v3383_v35 = vpop.eup %3020  ;;  %v486_v25 = vsub.f32 1.5, %v485_v21  ;;  %v3388_v38 = vsub.f32 %v3209_v53, %v347_v22  ;;  %v497_v53 = vmul.f32 %v3331_v30, %v496_v31  ;;  %v3419_v61 = vadd.f32 1e-05, %v436_v42 }
 0x125   : > { %v513_v9 = vmul.f32 %v3383_v35, %v3355_v1  ;;  %v3395_v40 = vsub.f32 %v3212_v54, %v345_v32  ;;  %v657_v43 = vadd.f32 %v3378_v27, %v640_v34  ;;  %v506_v19 = vsub.f32 1.5, %v505_v16 }
 0x126   : > { %v487_v41 = vmul.f32 %v3357_v2, %v486_v25  ;;  %v380_v54 = vmul.f32 %v3160_v13, %v3388_v38  ;;  %v501_v47 = vsel %vm3401_vm10, %v3331_v30, %v497_v53  ;;  %3022 = vrsqrt.f32 %v3419_v61 }
 0x127   : > { %v378_v46 = vmul.f32 %v3160_v13, %v3395_v40  ;;  %v672_v50 = vpack.c.bf16 %v657_v43, %v656_v12  ;;  %v514_v51 = vmul.f32 %v3383_v35, %v513_v9  ;;  %v625_v11 = vmul.f32 %v501_v47, %v3166_v24 }
 0x128   : > { %v396_v56 = vmul.f32 %v380_v54, %v380_v54  ;;  %v491_v59 = vsel %vm3411_vm11, %v3357_v2, %v487_v41  ;;  %vm519_vm13 = vweird.f32 %v3383_v35  ;;  %v507_v14 = vmul.f32 %v3380_v28, %v506_v19 }
 0x129   : > { %v332_v55 = vpop.xlane.xlu2 %331  ;;  %v394_v57 = vmul.f32 %v378_v46, %v378_v46  ;;  %786 = vmatmul.bf16.vlgmr.msra.gmra.mxu0 %v672_v50  ;;  %835 = vmatmul.bf16.vlgmr.msra.gmra.mxu1 %v672_v50  ;;  %v624_v2 = vmul.f32 %v491_v59, %v3176_v29  ;;  %v515_v8 = vmul.f32 0.5, %v514_v51  ;;  %vm520_vm0 = vmor %vm518_vm12, %vm519_vm13  ;;  %vm528_vm4 = vweird.f32 %v3419_v61 }
 0x12a   : > { %v348_v62 = vmul.f32 0.010416667, %v332_v55  ;;  %v413_v63 = vpop.xlane.xlu0 %412  ;;  %v511_v34 = vsel %vm510_vm1, %v3380_v28, %v507_v14 }
 0x12b   : > { %v437_v6 = vmul.f32 0.010416667, %v413_v63  ;;  %426 = vadd.xlane.f32.xlu0 %v396_v56  ;;  %422 = vadd.xlane.f32.xlu1 %v394_v57  ;;  %v641_v18 = vmul.f32 %v3364_v4, %v624_v2  ;;  %v516_v30 = vsub.f32 1.5, %v515_v8  ;;  %v626_v41 = vmul.f32 %v511_v34, %v3170_v26 }
 0x12c   : > { %v3426_v7 = vsub.f32 %v3222_v60, %v348_v62  ;;  %v642_v60 = vmul.f32 %v3364_v4, %v625_v11  ;;  %v3023_v29 = vpop.eup %3022 }
 0x12d   : > { %v453_v48 = vadd.f32 1e-05, %v437_v6  ;;  %v658_v20 = vadd.f32 %v3378_v27, %v641_v18  ;;  %v517_v24 = vmul.f32 %v3383_v35, %v516_v30  ;;  %v523_v1 = vmul.f32 %v3023_v29, %v3419_v61 }
 0x12e   : > { %v381_v10 = vmul.f32 %v3160_v13, %v3426_v7  ;;  %v659_v22 = vadd.f32 %v3378_v27, %v642_v60  ;;  %v643_v53 = vmul.f32 %v3364_v4, %v626_v41  ;;  %vm529_vm5 = vweird.f32 %v3023_v29 }
 0x12f   : > { %3024 = vrsqrt.f32 %v453_v48  ;;  %v521_v32 = vsel %vm520_vm0, %v3383_v35, %v517_v24  ;;  %v524_v45 = vmul.f32 %v3023_v29, %v523_v1  ;;  %vm538_vm2 = vweird.f32 %v453_v48  ;;  %vm530_vm7 = vmor %vm528_vm4, %vm529_vm5 }
 0x130   : > { %v397_v17 = vmul.f32 %v381_v10, %v381_v10  ;;  %v673_v23 = vpack.c.bf16 %v659_v22, %v658_v20  ;;  %v627_v25 = vmul.f32 %v521_v32, %v3186_v37  ;;  %v660_v37 = vadd.f32 %v3378_v27, %v643_v53 }
 0x131   : > { %v525_v42 = vmul.f32 0.5, %v524_v45 }
 0x132   : > { %v644_v12 = vmul.f32 %v3364_v4, %v627_v25  ;;  %v415_v61 = vpop.xlane.xlu0 %414 }
 0x133   : > { %428 = vadd.xlane.f32.xlu1 %v397_v17  ;;  %v526_v39 = vsub.f32 1.5, %v525_v42  ;;  %v438_v62 = vmul.f32 0.010416667, %v415_v61 }
 0x134   : > { %v661_v35 = vadd.f32 %v3378_v27, %v644_v12 }
 0x135   : > { %v3025_v13 = vpop.eup %3024  ;;  %v527_v36 = vmul.f32 %v3023_v29, %v526_v39  ;;  %v454_v63 = vadd.f32 1e-05, %v438_v62 }
 0x136   : > { %v533_v21 = vmul.f32 %v3025_v13, %v453_v48  ;;  %vm539_vm3 = vweird.f32 %v3025_v13  ;;  %v674_v26 = vpack.c.bf16 %v661_v35, %v660_v37  ;;  %v3471_v37 = vld [vmem:[%s4565_s3] sm:$0x1f] }
 0x137   : > { %vm540_vm6 = vmor %vm538_vm2, %vm539_vm3  ;;  %v531_v46 = vsel %vm530_vm7, %v3023_v29, %v527_v36  ;;  %3026 = vrsqrt.f32 %v454_v63  ;;  %vm548_vm8 = vweird.f32 %v454_v63 }
 0x138   : > { %v534_v31 = vmul.f32 %v3025_v13, %v533_v21  ;;  %v628_v50 = vmul.f32 %v531_v46, %v3194_v44 }
 0x139   : > { %791 = vmatmul.bf16.gmra.mxu0 %v673_v23  ;;  %840 = vmatmul.bf16.gmra.mxu1 %v673_v23 }
 0x13a   : > { %v535_v9 = vmul.f32 0.5, %v534_v31  ;;  %v645_v55 = vmul.f32 %v3364_v4, %v628_v50 }
 0x13c   : > { %v536_v43 = vsub.f32 1.5, %v535_v9  ;;  %v662_v57 = vadd.f32 %v3378_v27, %v645_v55  ;;  %v3486_v55 = vperm.slane %v3471_v37, 3 }
 0x13d   : > { %v3027_v5 = vpop.eup %3026 }
 0x13e   : > { %v537_v28 = vmul.f32 %v3025_v13, %v536_v43  ;;  %v543_v6 = vmul.f32 %v3027_v5, %v454_v63  ;;  %vm549_vm9 = vweird.f32 %v3027_v5 }
 0x13f   : > { %vm550_vm10 = vmor %vm548_vm8, %vm549_vm9 }
 0x140   : > { %v541_v54 = vsel %vm540_vm6, %v3025_v13, %v537_v28 }
 0x141   : > { %v629_v49 = vmul.f32 %v541_v54, %v3206_v52  ;;  %v544_v52 = vmul.f32 %v3027_v5, %v543_v6 }
 0x143   : > { %v646_v51 = vmul.f32 %v3364_v4, %v629_v49  ;;  %v545_v8 = vmul.f32 0.5, %v544_v52 }
 0x145   : > { %v663_v56 = vadd.f32 %v3378_v27, %v646_v51  ;;  %v546_v48 = vsub.f32 1.5, %v545_v8 }
 0x147   : > { %v675_v59 = vpack.c.bf16 %v663_v56, %v662_v57  ;;  %v547_v17 = vmul.f32 %v3027_v5, %v546_v48 }
 0x149   : > { %796 = vmatmul.bf16.gmra.mxu0 %v674_v26  ;;  %845 = vmatmul.bf16.gmra.mxu1 %v674_v26  ;;  %v551_v29 = vsel %vm550_vm10, %v3027_v5, %v547_v17  ;;  %v3480_v26 = vld [vmem:[%s4565_s3 + $0x8] sm:$0x1f] }
 0x14a   : > { %v630_v14 = vmul.f32 %v551_v29, %v3219_v58  ;;  %v3489_v57 = vperm.slane %v3480_v26, 3 }
 0x14c   : > { %v647_v41 = vmul.f32 %v3364_v4, %v630_v14 }
 0x14e   : > { %v664_v35 = vadd.f32 %v3378_v27, %v647_v41 }
 0x159   : > { %801 = vmatmul.bf16.gmra.mxu0 %v675_v59  ;;  %850 = vmatmul.bf16.gmra.mxu1 %v675_v59 }
 0x185   : > { %v417_v47 = vpop.xlane.xlu1 %416 }
 0x186   : > { %v439_v44 = vmul.f32 0.010416667, %v417_v47 }
 0x188   : > { %v455_v2 = vadd.f32 1e-05, %v439_v44 }
 0x18a   : > { %3028 = vrsqrt.f32 %v455_v2  ;;  %vm558_vm12 = vweird.f32 %v455_v2 }
 0x18d   : > { %v419_v10 = vpop.xlane.xlu2 %418 }
 0x18e   : > { %v440_v11 = vmul.f32 0.010416667, %v419_v10 }
 0x190   : > { %v3029_v16 = vpop.eup %3028  ;;  %v456_v30 = vadd.f32 1e-05, %v440_v11 }
 0x191   : > { %v553_v18 = vmul.f32 %v3029_v16, %v455_v2  ;;  %vm559_vm11 = vweird.f32 %v3029_v16 }
 0x192   : > { %3030 = vrsqrt.f32 %v456_v30  ;;  %vm560_vm13 = vmor %vm558_vm12, %vm559_vm11  ;;  %vm568_vm14 = vweird.f32 %v456_v30 }
 0x193   : > { %v554_v60 = vmul.f32 %v3029_v16, %v553_v18 }
 0x195   : > { %v555_v19 = vmul.f32 0.5, %v554_v60  ;;  %v425_v20 = vpop.xlane.xlu2 %424 }
 0x196   : > { %v421_v13 = vpop.xlane.xlu0 %420  ;;  %v443_v21 = vmul.f32 0.010416667, %v425_v20 }
 0x197   : > { %v556_v24 = vsub.f32 1.5, %v555_v19  ;;  %v441_v22 = vmul.f32 0.010416667, %v421_v13 }
 0x198   : > { %v3031_v1 = vpop.eup %3030  ;;  %v3460_v31 = vadd.f32 1e-05, %v443_v21 }
 0x199   : > { %v557_v23 = vmul.f32 %v3029_v16, %v556_v24  ;;  %v457_v32 = vadd.f32 1e-05, %v441_v22  ;;  %v563_v45 = vmul.f32 %v3031_v1, %v456_v30  ;;  %vm569_vm15 = vweird.f32 %v3031_v1 }
 0x19a   : > { %3032 = vrsqrt.f32 %v3460_v31  ;;  %vm3493_vm0 = vmor %vm568_vm14, %vm569_vm15  ;;  %vm598_vm4 = vweird.f32 %v3460_v31 }
 0x19b   : > { %v561_v34 = vsel %vm560_vm13, %v3029_v16, %v557_v23  ;;  %v564_v25 = vmul.f32 %v3031_v1, %v563_v45  ;;  %3034 = vrsqrt.f32 %v457_v32  ;;  %vm578_vm2 = vweird.f32 %v457_v32 }
 0x19c   : > { %v631_v9 = vmul.f32 %v561_v34, %v3326_v15 }
 0x19d   : > { %v565_v42 = vmul.f32 0.5, %v564_v25 }
 0x19e   : > { %v423_v12 = vpop.xlane.xlu1 %422  ;;  %v648_v58 = vmul.f32 %v3364_v4, %v631_v9  ;;  %v427_v53 = vpop.xlane.xlu0 %426 }
 0x19f   : > { %v442_v43 = vmul.f32 0.010416667, %v423_v12  ;;  %v566_v39 = vsub.f32 1.5, %v565_v42  ;;  %v444_v46 = vmul.f32 0.010416667, %v427_v53 }
 0x1a0   : > { %v665_v28 = vadd.f32 %v3378_v27, %v648_v58  ;;  %v3473_v36 = vpop.eup %3032 }
 0x1a1   : > { %v3475_v15 = vadd.f32 1e-05, %v442_v43  ;;  %v3035_v54 = vpop.eup %3034  ;;  %v593_v50 = vmul.f32 %v3473_v36, %v3460_v31  ;;  %v567_v56 = vmul.f32 %v3031_v1, %v566_v39  ;;  %v3491_v61 = vadd.f32 1e-05, %v444_v46 }
 0x1a2   : > { %v676_v49 = vpack.c.bf16 %v665_v28, %v664_v35  ;;  %v573_v51 = vmul.f32 %v3035_v54, %v457_v32  ;;  %vm579_vm1 = vweird.f32 %v3035_v54  ;;  %vm599_vm5 = vweird.f32 %v3473_v36 }
 0x1a3   : > { %3036 = vrsqrt.f32 %v3475_v15  ;;  %v594_v5 = vmul.f32 %v3473_v36, %v593_v50  ;;  %v571_v48 = vsel %vm3493_vm0, %v3031_v1, %v567_v56  ;;  %vm580_vm3 = vmor %vm578_vm2, %vm579_vm1  ;;  %vm588_vm6 = vweird.f32 %v3475_v15 }
 0x1a4   : > { %806 = vmatmul.bf16.gmra.mxu0 %v676_v49  ;;  %855 = vmatmul.bf16.gmra.mxu1 %v676_v49  ;;  %v574_v59 = vmul.f32 %v3035_v54, %v573_v51  ;;  %3038 = vrsqrt.f32 %v3491_v61  ;;  %v632_v19 = vmul.f32 %v571_v48, %v3334_v33  ;;  %vm3534_vm8 = vmor %vm598_vm4, %vm599_vm5  ;;  %vm608_vm12 = vweird.f32 %v3491_v61 }
 0x1a5   : > { %v595_v30 = vmul.f32 0.5, %v594_v5 }
 0x1a6   : > { %v429_v62 = vpop.xlane.xlu1 %428  ;;  %v575_v6 = vmul.f32 0.5, %v574_v59  ;;  %v787_v52 = vpop.f32.mrf.mxu0  ;;  %v649_v1 = vmul.f32 %v3364_v4, %v632_v19 }
 0x1a7   : > { %v836_v47 = vpop.f32.mrf.mxu1  ;;  %v445_v44 = vmul.f32 0.010416667, %v429_v62  ;;  %v3499_v2 = vadd.f32 %v787_v52, %v3486_v55  ;;  %v596_v21 = vsub.f32 1.5, %v595_v30 }
 0x1a8   : > { %v3502_v8 = vadd.f32 %v836_v47, %v3489_v57  ;;  %v576_v11 = vsub.f32 1.5, %v575_v6  ;;  %v666_v42 = vadd.f32 %v3378_v27, %v649_v1 }
 0x1a9   : > { %v3037_v10 = vpop.eup %3036  ;;  %v3506_v16 = vadd.f32 1e-05, %v445_v44  ;;  %v597_v58 = vmul.f32 %v3473_v36, %v596_v21 }
 0x1aa   : > { %v583_v17 = vmul.f32 %v3037_v10, %v3475_v15  ;;  %v876_v18 = vadd.f32 %v3502_v8, %v3499_v2  ;;  %v577_v60 = vmul.f32 %v3035_v54, %v576_v11  ;;  %v3516_v23 = vpop.eup %3038  ;;  %vm589_vm7 = vweird.f32 %v3037_v10 }
 0x1ab   : > { %3040 = vrsqrt.f32 %v3506_v16  ;;  %v603_v31 = vmul.f32 %v3516_v23, %v3491_v61  ;;  %vm590_vm9 = vmor %vm588_vm6, %vm589_vm7  ;;  %v601_v50 = vsel %vm3534_vm8, %v3473_v36, %v597_v58  ;;  %vm618_vm10 = vweird.f32 %v3506_v16 }
 0x1ac   : > { %v584_v29 = vmul.f32 %v3037_v10, %v583_v17  ;;  %877 = vadd.xlane.f32.xlu2 %v876_v18  ;;  %v581_v20 = vsel %vm580_vm3, %v3035_v54, %v577_v60  ;;  %v635_v62 = vmul.f32 %v601_v50, %v3353_v0  ;;  %vm609_vm13 = vweird.f32 %v3516_v23 }
 0x1ad   : > { %v633_v24 = vmul.f32 %v581_v20, %v3361_v3  ;;  %v604_v54 = vmul.f32 %v3516_v23, %v603_v31  ;;  %vm610_vm15 = vmor %vm608_vm12, %vm609_vm13 }
 0x1ae   : > { %v585_v13 = vmul.f32 0.5, %v584_v29  ;;  %v789_v22 = vpop.f32.mrf.mxu0  ;;  %v652_v44 = vmul.f32 %v3364_v4, %v635_v62 }
 0x1af   : > { %v838_v14 = vpop.f32.mrf.mxu1  ;;  %v3519_v45 = vadd.f32 %v789_v22, %v3486_v55  ;;  %v650_v34 = vmul.f32 %v3364_v4, %v633_v24  ;;  %v605_v63 = vmul.f32 0.5, %v604_v54 }
 0x1b0   : > { %v586_v32 = vsub.f32 1.5, %v585_v13  ;;  %v3522_v33 = vadd.f32 %v838_v14, %v3489_v57 }
 0x1b1   : > { %v3041_v25 = vpop.eup %3040  ;;  %v667_v12 = vadd.f32 %v3378_v27, %v650_v34  ;;  %v606_v36 = vsub.f32 1.5, %v605_v63 }
 0x1b2   : > { %v587_v3 = vmul.f32 %v3037_v10, %v586_v32  ;;  %v613_v9 = vmul.f32 %v3041_v25, %v3506_v16  ;;  %v879_v41 = vadd.f32 %v3522_v33, %v3519_v45  ;;  %vm619_vm11 = vweird.f32 %v3041_v25 }
 0x1b3   : > { %v677_v53 = vpack.c.bf16 %v667_v12, %v666_v42  ;;  %vm620_vm14 = vmor %vm618_vm10, %vm619_vm11  ;;  %v669_v16 = vadd.f32 %v3378_v27, %v652_v44  ;;  %v607_v17 = vmul.f32 %v3516_v23, %v606_v36 }
 0x1b4   : > { %880 = vadd.xlane.f32.xlu0 %v879_v41  ;;  %v614_v39 = vmul.f32 %v3041_v25, %v613_v9  ;;  %v591_v35 = vsel %vm590_vm9, %v3037_v10, %v587_v3 }
 0x1b5   : > { %811 = vmatmul.bf16.gmra.mxu0 %v677_v53  ;;  %860 = vmatmul.bf16.gmra.mxu1 %v677_v53  ;;  %v634_v51 = vmul.f32 %v591_v35, %v3395_v40  ;;  %v611_v20 = vsel %vm610_vm15, %v3516_v23, %v607_v17 }
 0x1b6   : > { %v792_v28 = vpop.f32.mrf.mxu0  ;;  %v615_v56 = vmul.f32 0.5, %v614_v39  ;;  %v636_v21 = vmul.f32 %v611_v20, %v3388_v38 }
 0x1b7   : > { %v841_v15 = vpop.f32.mrf.mxu1  ;;  %v3542_v46 = vadd.f32 %v792_v28, %v3486_v55  ;;  %v651_v5 = vmul.f32 %v3364_v4, %v634_v51  ;;  %v3610_v28 = vperm.slane %v3471_v37, 2 }
 0x1b8   : > { %v3545_v49 = vadd.f32 %v841_v15, %v3489_v57  ;;  %v616_v6 = vsub.f32 1.5, %v615_v56  ;;  %v653_v32 = vmul.f32 %v3364_v4, %v636_v21  ;;  %v3613_v15 = vperm.slane %v3480_v26, 2 }
 0x1b9   : > { %v668_v0 = vadd.f32 %v3378_v27, %v651_v5 }
 0x1ba   : > { %v882_v59 = vadd.f32 %v3545_v49, %v3542_v46  ;;  %v617_v10 = vmul.f32 %v3041_v25, %v616_v6  ;;  %v670_v38 = vadd.f32 %v3378_v27, %v653_v32 }
 0x1bb   : > { %v678_v18 = vpack.c.bf16 %v669_v16, %v668_v0 }
 0x1bc   : > { %883 = vadd.xlane.f32.xlu1 %v882_v59  ;;  %v621_v30 = vsel %vm620_vm14, %v3041_v25, %v617_v10 }
 0x1bd   : > { %v637_v13 = vmul.f32 %v621_v30, %v3426_v7 }
 0x1be   : > { %v794_v52 = vpop.f32.mrf.mxu0 }
 0x1bf   : > { %v843_v47 = vpop.f32.mrf.mxu1  ;;  %v3558_v40 = vadd.f32 %v794_v52, %v3486_v55  ;;  %v654_v22 = vmul.f32 %v3364_v4, %v637_v13 }
 0x1c0   : > { %v3561_v48 = vadd.f32 %v843_v47, %v3489_v57 }
 0x1c1   : > { %v671_v7 = vadd.f32 %v3378_v27, %v654_v22 }
 0x1c2   : > { %v885_v11 = vadd.f32 %v3561_v48, %v3558_v40 }
 0x1c3   : > { %v679_v3 = vpack.c.bf16 %v671_v7, %v670_v38 }
 0x1c4   : > { %886 = vadd.xlane.f32.xlu2 %v885_v11 }
 0x1c5   : > { %816 = vmatmul.bf16.gmra.mxu0 %v678_v18  ;;  %865 = vmatmul.bf16.gmra.mxu1 %v678_v18 }
 0x1c6   : > { %v797_v60 = vpop.f32.mrf.mxu0 }
 0x1c7   : > { %v846_v19 = vpop.f32.mrf.mxu1  ;;  %v3571_v61 = vadd.f32 %v797_v60, %v3486_v55 }
 0x1c8   : > { %v3574_v29 = vadd.f32 %v846_v19, %v3489_v57 }
 0x1ca   : > { %v888_v24 = vadd.f32 %v3574_v29, %v3571_v61 }
 0x1cc   : > { %889 = vadd.xlane.f32.xlu0 %v888_v24 }
 0x1ce   : > { %v799_v14 = vpop.f32.mrf.mxu0 }
 0x1cf   : > { %v848_v1 = vpop.f32.mrf.mxu1  ;;  %v3584_v34 = vadd.f32 %v799_v14, %v3486_v55 }
 0x1d0   : > { %v3587_v25 = vadd.f32 %v848_v1, %v3489_v57 }
 0x1d2   : > { %v891_v23 = vadd.f32 %v3587_v25, %v3584_v34 }
 0x1d4   : > { %892 = vadd.xlane.f32.xlu1 %v891_v23 }
 0x1d5   : > { %821 = vmatmul.bf16.gmra.mxu0 %v679_v3  ;;  %870 = vmatmul.bf16.gmra.mxu1 %v679_v3 }
 0x1d6   : > { %v802_v9 = vpop.f32.mrf.mxu0 }
 0x1d7   : > { %v851_v41 = vpop.f32.mrf.mxu1  ;;  %v3594_v4 = vadd.f32 %v802_v9, %v3486_v55 }
 0x1d8   : > { %v3597_v42 = vadd.f32 %v851_v41, %v3489_v57 }
 0x1da   : > { %v894_v12 = vadd.f32 %v3597_v42, %v3594_v4 }
 0x1dc   : > { %895 = vadd.xlane.f32.xlu2 %v894_v12 }
 0x1de   : > { %v804_v58 = vpop.f32.mrf.mxu0 }
 0x1df   : > { %v853_v43 = vpop.f32.mrf.mxu1  ;;  %v3602_v27 = vadd.f32 %v804_v58, %v3486_v55 }
 0x1e0   : > { %v3605_v31 = vadd.f32 %v853_v43, %v3489_v57 }
 0x1e2   : > { %v897_v53 = vadd.f32 %v3605_v31, %v3602_v27 }
 0x1e4   : > { %898 = vadd.xlane.f32.xlu0 %v897_v53 }
 0x21f   : > { %v878_v39 = vpop.xlane.xlu2 %877 }
 0x220   : > { %v924_v35 = vmul.f32 0.0052083335, %v878_v39 }
 0x221   : > { %v807_v54 = vpop.f32.mrf.mxu0  ;;  %v856_v50 = vpop.f32.mrf.mxu1 }
 0x222   : > { %v3616_v51 = vsub.f32 %v3499_v2, %v924_v35  ;;  %v3619_v56 = vsub.f32 %v3502_v8, %v924_v35  ;;  %v3622_v59 = vadd.f32 %v807_v54, %v3486_v55  ;;  %v3625_v62 = vadd.f32 %v856_v50, %v3489_v57 }
 0x224   : > { %v900_v63 = vadd.f32 %v3625_v62, %v3622_v59  ;;  %v974_v5 = vmul.f32 %v3610_v28, %v3616_v51  ;;  %v975_v6 = vmul.f32 %v3613_v15, %v3619_v56 }
 0x226   : > { %901 = vadd.xlane.f32.xlu0 %v900_v63  ;;  %v1006_v2 = vmul.f32 %v974_v5, %v974_v5  ;;  %v1007_v52 = vmul.f32 %v975_v6, %v975_v6 }
 0x227   : > { %v881_v8 = vpop.xlane.xlu0 %880 }
 0x228   : > { %v925_v47 = vmul.f32 0.0052083335, %v881_v8  ;;  %v1038_v44 = vadd.f32 %v1007_v52, %v1006_v2 }
 0x229   : > { %v809_v36 = vpop.f32.mrf.mxu0  ;;  %v858_v0 = vpop.f32.mrf.mxu1 }
 0x22a   : > { %v3634_v10 = vsub.f32 %v3519_v45, %v925_v47  ;;  %v3637_v11 = vsub.f32 %v3522_v33, %v925_v47  ;;  %1039 = vadd.xlane.f32.xlu1 %v1038_v44  ;;  %v3640_v16 = vadd.f32 %v809_v36, %v3486_v55  ;;  %v3643_v17 = vadd.f32 %v858_v0, %v3489_v57  ;;  %v2967_v47 = vld [vmem:[%s4566_s4 + $0x74] sm:$0xf]  ;;  %v2803_v44 = vld [vmem:[%s4566_s4 + $0x78] sm:$0xf0] }
 0x22b   : > { %v2983_v36 = vld [vmem:[%s4566_s4 + $0xf4] sm:$0xf]  ;;  %v3702_v0 = vor.u32 %v2967_v47, %v2803_v44 }
 0x22c   : > { %v976_v18 = vmul.f32 %v3610_v28, %v3634_v10  ;;  %v977_v30 = vmul.f32 %v3613_v15, %v3637_v11  ;;  %v903_v33 = vadd.f32 %v3643_v17, %v3640_v16 }
 0x22d   : > { %4610 = vst [vmem:[#allocation6_spill] sm:$0xff] %v3702_v0  ;;  %1718 = vmatpush.bf16.msrb.mxu0 %v3702_v0 }
 0x22e   : > { %v1008_v60 = vmul.f32 %v976_v18, %v976_v18  ;;  %v1009_v19 = vmul.f32 %v977_v30, %v977_v30 }
 0x22f   : > { %v884_v45 = vpop.xlane.xlu1 %883 }
 0x230   : > { %v926_v20 = vmul.f32 0.0052083335, %v884_v45  ;;  %v1041_v13 = vadd.f32 %v1009_v19, %v1008_v60 }
 0x232   : > { %v3652_v24 = vsub.f32 %v3542_v46, %v926_v20  ;;  %v3655_v21 = vsub.f32 %v3545_v49, %v926_v20  ;;  %904 = vadd.xlane.f32.xlu1 %v903_v33  ;;  %1042 = vadd.xlane.f32.xlu2 %v1041_v13  ;;  %v812_v22 = vpop.f32.mrf.mxu0  ;;  %v861_v14 = vpop.f32.mrf.mxu1 }
 0x233   : > { %v3662_v7 = vadd.f32 %v812_v22, %v3486_v55  ;;  %v3665_v23 = vadd.f32 %v861_v14, %v3489_v57 }
 0x234   : > { %v978_v1 = vmul.f32 %v3610_v28, %v3652_v24  ;;  %v979_v32 = vmul.f32 %v3613_v15, %v3655_v21 }
 0x235   : > { %v906_v9 = vadd.f32 %v3665_v23, %v3662_v7 }
 0x236   : > { %v1010_v46 = vmul.f32 %v978_v1, %v978_v1  ;;  %v1011_v38 = vmul.f32 %v979_v32, %v979_v32 }
 0x237   : > { %v887_v49 = vpop.xlane.xlu2 %886 }
 0x238   : > { %v927_v3 = vmul.f32 0.0052083335, %v887_v49  ;;  %v1044_v41 = vadd.f32 %v1011_v38, %v1010_v46 }
 0x23a   : > { %v3670_v12 = vsub.f32 %v3558_v40, %v927_v3  ;;  %v3673_v58 = vsub.f32 %v3561_v48, %v927_v3  ;;  %907 = vadd.xlane.f32.xlu1 %v906_v9  ;;  %1045 = vadd.xlane.f32.xlu2 %v1044_v41  ;;  %v814_v43 = vpop.f32.mrf.mxu0  ;;  %v863_v53 = vpop.f32.mrf.mxu1 }
 0x23b   : > { %v3680_v54 = vadd.f32 %v814_v43, %v3486_v55  ;;  %v3683_v50 = vadd.f32 %v863_v53, %v3489_v57 }
 0x23c   : > { %4606 = vst [vmem:[#allocation2_spill] sm:$0xff] %v3670_v12  ;;  %v980_v39 = vmul.f32 %v3610_v28, %v3670_v12  ;;  %v981_v35 = vmul.f32 %v3613_v15, %v3673_v58 }
 0x23d   : > { %4607 = vst [vmem:[#allocation3_spill] sm:$0xff] %v3673_v58  ;;  %v909_v2 = vadd.f32 %v3683_v50, %v3680_v54 }
 0x23e   : > { %v1012_v40 = vmul.f32 %v980_v39, %v980_v39  ;;  %v1013_v63 = vmul.f32 %v981_v35, %v981_v35 }
 0x23f   : > { %v890_v48 = vpop.xlane.xlu0 %889 }
 0x240   : > { %v928_v5 = vmul.f32 0.0052083335, %v890_v48  ;;  %v1047_v6 = vadd.f32 %v1013_v63, %v1012_v40 }
 0x242   : > { %v3688_v52 = vsub.f32 %v3571_v61, %v928_v5  ;;  %v3691_v8 = vsub.f32 %v3574_v29, %v928_v5  ;;  %1048 = vadd.xlane.f32.xlu0 %v1047_v6  ;;  %910 = vadd.xlane.f32.xlu2 %v909_v2  ;;  %v2867_v61 = vld [vmem:[%s4566_s4 + $0xf8] sm:$0xf0]  ;;  %v817_v29 = vpop.f32.mrf.mxu0  ;;  %v866_v18 = vpop.f32.mrf.mxu1 }
 0x243   : > { %v3711_v19 = vor.u32 %v2983_v36, %v2867_v61  ;;  %v3714_v45 = vadd.f32 %v817_v29, %v3486_v55  ;;  %v3717_v20 = vadd.f32 %v866_v18, %v3489_v57 }
 0x244   : > { %4608 = vst [vmem:[#allocation4_spill] sm:$0xff] %v3688_v52  ;;  %v982_v30 = vmul.f32 %v3610_v28, %v3688_v52  ;;  %v983_v60 = vmul.f32 %v3613_v15, %v3691_v8 }
 0x245   : > { %4609 = vst [vmem:[#allocation5_spill] sm:$0xff] %v3691_v8  ;;  %1767 = vmatpush.bf16.msrb.mxu1 %v3711_v19  ;;  %v912_v1 = vadd.f32 %v3717_v20, %v3714_v45 }
 0x246   : > { %4611 = vst [vmem:[#allocation7_spill] sm:$0xff] %v3711_v19  ;;  %v1014_v33 = vmul.f32 %v982_v30, %v982_v30  ;;  %v1015_v13 = vmul.f32 %v983_v60, %v983_v60 }
 0x247   : > { %v893_v22 = vpop.xlane.xlu1 %892 }
 0x248   : > { %v929_v14 = vmul.f32 0.0052083335, %v893_v22  ;;  %v1050_v32 = vadd.f32 %v1015_v13, %v1014_v33 }
 0x24a   : > { %v3724_v46 = vsub.f32 %v3584_v34, %v929_v14  ;;  %v3727_v38 = vsub.f32 %v3587_v25, %v929_v14  ;;  %913 = vadd.xlane.f32.xlu2 %v912_v1  ;;  %1051 = vadd.xlane.f32.xlu0 %v1050_v32  ;;  %v819_v49 = vpop.f32.mrf.mxu0  ;;  %v868_v3 = vpop.f32.mrf.mxu1 }
 0x24b   : > { %v3734_v43 = vadd.f32 %v819_v49, %v3486_v55  ;;  %v3737_v53 = vadd.f32 %v868_v3, %v3489_v57 }
 0x24c   : > { %4612 = vst [vmem:[#allocation8_spill] sm:$0xff] %v3724_v46  ;;  %v984_v9 = vmul.f32 %v3610_v28, %v3724_v46  ;;  %v985_v41 = vmul.f32 %v3613_v15, %v3727_v38 }
 0x24d   : > { %4613 = vst [vmem:[#allocation9_spill] sm:$0xff] %v3727_v38  ;;  %v915_v63 = vadd.f32 %v3737_v53, %v3734_v43 }
 0x24e   : > { %v1016_v34 = vmul.f32 %v984_v9, %v984_v9  ;;  %v1017_v39 = vmul.f32 %v985_v41, %v985_v41 }
 0x24f   : > { %v896_v25 = vpop.xlane.xlu2 %895 }
 0x250   : > { %v930_v35 = vmul.f32 0.0052083335, %v896_v25  ;;  %v1053_v40 = vadd.f32 %v1017_v39, %v1016_v34  ;;  %v2965_v34 = vld [vmem:[%s4566_s4 + $0x64] sm:$0xf]  ;;  %v2968_v25 = vld [vmem:[%s4566_s4 + $0x74] sm:$0xf0] }
 0x252   : > { %v3742_v48 = vsub.f32 %v3594_v4, %v930_v35  ;;  %v3745_v5 = vsub.f32 %v3597_v42, %v930_v35  ;;  %1054 = vadd.xlane.f32.xlu1 %v1053_v40  ;;  %916 = vadd.xlane.f32.xlu0 %v915_v63  ;;  %v822_v6 = vpop.f32.mrf.mxu0  ;;  %v871_v2 = vpop.f32.mrf.mxu1  ;;  %v2865_v35 = vld [vmem:[%s4566_s4 + $0xf0] sm:$0xf]  ;;  %v2984_v63 = vld [vmem:[%s4566_s4 + $0xf4] sm:$0xf0] }
 0x253   : > { %v3752_v36 = vadd.f32 %v822_v6, %v3486_v55  ;;  %v3755_v61 = vadd.f32 %v871_v2, %v3489_v57  ;;  %v3800_v6 = vor.u32 %v2984_v63, %v2865_v35  ;;  %v2981_v2 = vld [vmem:[%s4566_s4 + $0xe4] sm:$0xf]  ;;  %v2777_v35 = vld [vmem:[%s4566_s4 + $0x40] sm:$0xf]  ;;  %v2962_v63 = vld [vmem:[%s4566_s4 + $0x44] sm:$0xf0] }
 0x254   : > { %4614 = vst [vmem:[#allocation10_spill] sm:$0xff] %v3742_v48  ;;  %v986_v47 = vmul.f32 %v3610_v28, %v3742_v48  ;;  %v987_v44 = vmul.f32 %v3613_v15, %v3745_v5 }
 0x255   : > { %4615 = vst [vmem:[#allocation11_spill] sm:$0xff] %v3745_v5  ;;  %v918_v60 = vadd.f32 %v3755_v61, %v3752_v36  ;;  %1669 = vmatpush.bf16.msra.mxu3 %v3800_v6  ;;  %v2827_v5 = vld [vmem:[%s4566_s4 + $0xa8] sm:$0xf0] }
 0x256   : > { %4616 = vst [vmem:[#allocation12_spill] sm:$0xff] %v3752_v36  ;;  %v1018_v4 = vmul.f32 %v986_v47, %v986_v47  ;;  %v1019_v29 = vmul.f32 %v987_v44, %v987_v44  ;;  %v2859_v47 = vld [vmem:[%s4566_s4 + $0xe8] sm:$0xf0]  ;;  %v2793_v44 = vld [vmem:[%s4566_s4 + $0x60] sm:$0xf] }
 0x257   : > { %4617 = vst [vmem:[#allocation13_spill] sm:$0xff] %v3755_v61  ;;  %v899_v42 = vpop.xlane.xlu0 %898 }
 0x258   : > { %v931_v18 = vmul.f32 0.0052083335, %v899_v42  ;;  %v1056_v30 = vadd.f32 %v1019_v29, %v1018_v4  ;;  %4622 = vst [vmem:[#allocation18_spill] sm:$0xff] %v3800_v6  ;;  %v3813_v4 = vor.u32 %v2981_v2, %v2859_v47  ;;  %v2966_v29 = vld [vmem:[%s4566_s4 + $0x64] sm:$0xf0]  ;;  %v3876_v47 = vor.u32 %v2962_v63, %v2777_v35 }
 0x259   : > { %v2857_v42 = vld [vmem:[%s4566_s4 + $0xe0] sm:$0xf]  ;;  %v2976_v35 = vld [vmem:[%s4566_s4 + $0xb4] sm:$0xf0]  ;;  %v2959_v63 = vld [vmem:[%s4566_s4 + $0x34] sm:$0xf] }
 0x25a   : > { %v3760_v33 = vsub.f32 %v3602_v27, %v931_v18  ;;  %v3763_v13 = vsub.f32 %v3605_v31, %v931_v18  ;;  %1057 = vadd.xlane.f32.xlu1 %v1056_v30  ;;  %919 = vadd.xlane.f32.xlu0 %v918_v60  ;;  %v824_v22 = vpop.f32.mrf.mxu0  ;;  %v873_v14 = vpop.f32.mrf.mxu1  ;;  %v2982_v18 = vld [vmem:[%s4566_s4 + $0xe4] sm:$0xf0]  ;;  %v3824_v30 = vor.u32 %v2966_v29, %v2793_v44  ;;  %v2841_v2 = vld [vmem:[%s4566_s4 + $0xc0] sm:$0xf]  ;;  %v2961_v29 = vld [vmem:[%s4566_s4 + $0x44] sm:$0xf] }
 0x25b   : > { %v3770_v49 = vadd.f32 %v824_v22, %v3486_v55  ;;  %v3773_v3 = vadd.f32 %v873_v14, %v3489_v57  ;;  %v2795_v55 = vld [vmem:[%s4566_s4 + $0x68] sm:$0xf0]  ;;  %v2801_v57 = vld [vmem:[%s4566_s4 + $0x70] sm:$0xf]  ;;  %v3826_v60 = vor.u32 %v2982_v18, %v2857_v42  ;;  %1768 = vmatpush.bf16.msrb.mxu1 %v3813_v4  ;;  %v2963_v22 = vld [vmem:[%s4566_s4 + $0x54] sm:$0xf] }
 0x25c   : > { %4618 = vst [vmem:[#allocation14_spill] sm:$0xff] %v3760_v33  ;;  %v988_v1 = vmul.f32 %v3610_v28, %v3760_v33  ;;  %v989_v32 = vmul.f32 %v3613_v15, %v3763_v13  ;;  %v3783_v39 = vor.u32 %v2965_v34, %v2795_v55  ;;  %v3795_v40 = vor.u32 %v2968_v25, %v2801_v57  ;;  %v2787_v14 = vld [vmem:[%s4566_s4 + $0x58] sm:$0xf0]  ;;  %v2849_v55 = vld [vmem:[%s4566_s4 + $0xd0] sm:$0xf] }
 0x25d   : > { %4619 = vst [vmem:[#allocation15_spill] sm:$0xff] %v3763_v13  ;;  %v921_v31 = vadd.f32 %v3773_v3, %v3770_v49  ;;  %1670 = vmatpush.bf16.msra.mxu3 %v3826_v60  ;;  %v2980_v57 = vld [vmem:[%s4566_s4 + $0xd4] sm:$0xf0]  ;;  %v2978_v44 = vld [vmem:[%s4566_s4 + $0xc4] sm:$0xf0] }
 0x25e   : > { %4620 = vst [vmem:[#allocation16_spill] sm:$0xff] %v3770_v49  ;;  %v1020_v27 = vmul.f32 %v988_v1, %v988_v1  ;;  %v1021_v9 = vmul.f32 %v989_v32, %v989_v32  ;;  %1719 = vmatpush.bf16.msrb.mxu0 %v3783_v39  ;;  %1620 = vmatpush.bf16.msra.mxu2 %v3795_v40  ;;  %v2979_v1 = vld [vmem:[%s4566_s4 + $0xd4] sm:$0xf]  ;;  %v2779_v42 = vld [vmem:[%s4566_s4 + $0x48] sm:$0xf0] }
 0x25f   : > { %4621 = vst [vmem:[#allocation17_spill] sm:$0xff] %v3773_v3  ;;  %v3840_v32 = vor.u32 %v2963_v22, %v2787_v14  ;;  %v3862_v25 = vor.u32 %v2980_v57, %v2849_v55  ;;  %v3887_v18 = vor.u32 %v2978_v44, %v2841_v2  ;;  %v3889_v22 = vor.u32 %v2961_v29, %v2779_v42  ;;  %v2977_v14 = vld [vmem:[%s4566_s4 + $0xc4] sm:$0xf]  ;;  %v2833_v55 = vld [vmem:[%s4566_s4 + $0xb0] sm:$0xf] }
 0x260   : > { %v1059_v41 = vadd.f32 %v1021_v9, %v1020_v27  ;;  %v2851_v27 = vld [vmem:[%s4566_s4 + $0xd8] sm:$0xf0]  ;;  %v2785_v9 = vld [vmem:[%s4566_s4 + $0x50] sm:$0xf]  ;;  %v3923_v44 = vor.u32 %v2976_v35, %v2833_v55  ;;  %v2975_v42 = vld [vmem:[%s4566_s4 + $0xb4] sm:$0xf] }
 0x261   : > { %1671 = vmatpush.bf16.msra.mxu3 %v3862_v25  ;;  %v2771_v2 = vld [vmem:[%s4566_s4 + $0x38] sm:$0xf0]  ;;  %v2761_v55 = vld [vmem:[%s4566_s4 + $0x20] sm:$0xf]  ;;  %v2958_v35 = vld [vmem:[%s4566_s4 + $0x24] sm:$0xf0] }
 0x262   : > { %922 = vadd.xlane.f32.xlu1 %v921_v31  ;;  %1060 = vadd.xlane.f32.xlu2 %v1059_v41  ;;  %v2964_v31 = vld [vmem:[%s4566_s4 + $0x54] sm:$0xf0]  ;;  %v3851_v41 = vor.u32 %v2979_v1, %v2851_v27  ;;  %v2843_v1 = vld [vmem:[%s4566_s4 + $0xc8] sm:$0xf0]  ;;  %v3925_v29 = vor.u32 %v2959_v63, %v2771_v2  ;;  %v3945_v63 = vor.u32 %v2958_v35, %v2761_v55  ;;  %v2825_v2 = vld [vmem:[%s4566_s4 + $0xa0] sm:$0xf] }
 0x263   : > { %1621 = vmatpush.bf16.msra.mxu2 %v3824_v30  ;;  %v3853_v34 = vor.u32 %v2964_v31, %v2785_v9  ;;  %1720 = vmatpush.bf16.msrb.mxu0 %v3840_v32  ;;  %v3897_v27 = vor.u32 %v2977_v14, %v2843_v1  ;;  %v2769_v9 = vld [vmem:[%s4566_s4 + $0x30] sm:$0xf]  ;;  %v2960_v31 = vld [vmem:[%s4566_s4 + $0x34] sm:$0xf0]  ;;  %v2835_v14 = vld [vmem:[%s4566_s4 + $0xb8] sm:$0xf0] }
 0x264   : > { %1769 = vmatpush.bf16.msrb.mxu1 %v3851_v41  ;;  %v3912_v57 = vor.u32 %v2960_v31, %v2769_v9  ;;  %4623 = vst [vmem:[#allocation19_spill] sm:$0xff] %v3925_v29  ;;  %v3933_v9 = vor.u32 %v2975_v42, %v2835_v14  ;;  %v2974_v42 = vld [vmem:[%s4566_s4 + $0xa4] sm:$0xf0]  ;;  %v2957_v14 = vld [vmem:[%s4566_s4 + $0x24] sm:$0xf] }
 0x265   : > { %1672 = vmatpush.bf16.msra.mxu3 %v3887_v18  ;;  %v3962_v55 = vor.u32 %v2974_v42, %v2825_v2  ;;  %v2763_v35 = vld [vmem:[%s4566_s4 + $0x28] sm:$0xf0]  ;;  %v2973_v33 = vld [vmem:[%s4566_s4 + $0xa4] sm:$0xf]  ;;  %v2753_v42 = vld [vmem:[%s4566_s4 + $0x10] sm:$0xf] }
 0x266   : > { %v3975_v38 = vor.u32 %v2973_v33, %v2827_v5  ;;  %v2817_v5 = vld [vmem:[%s4566_s4 + $0x90] sm:$0xf]  ;;  %v2972_v33 = vld [vmem:[%s4566_s4 + $0x94] sm:$0xf0]  ;;  %v2971_v3 = vld [vmem:[%s4566_s4 + $0x94] sm:$0xf] }
 0x267   : > { %1622 = vmatpush.bf16.msra.mxu2 %v3853_v34  ;;  %1721 = vmatpush.bf16.msrb.mxu0 %v3889_v22 }
 0x268   : > { %1770 = vmatpush.bf16.msrb.mxu1 %v3897_v27 }
 0x269   : > { %1673 = vmatpush.bf16.msra.mxu3 %v3923_v44 }
 0x26b   : > { %1623 = vmatpush.bf16.msra.mxu2 %v3876_v47  ;;  %1722 = vmatpush.bf16.msrb.mxu0 %v3925_v29 }
 0x26c   : > { %1771 = vmatpush.bf16.msrb.mxu1 %v3933_v9 }
 0x26d   : > { %1674 = vmatpush.bf16.msra.mxu3 %v3962_v55 }
 0x26f   : > { %1624 = vmatpush.bf16.msra.mxu2 %v3912_v57 }
 0x270   : > { %1772 = vmatpush.bf16.msrb.mxu1 %v3975_v38 }
 0x273   : > { %1625 = vmatpush.bf16.msra.mxu2 %v3945_v63 }
 0x299   : > { %v902_v1 = vpop.xlane.xlu0 %901 }
 0x29a   : > { %v932_v31 = vmul.f32 0.0052083335, %v902_v1 }
 0x29c   : > { %v3957_v1 = vsub.f32 %v3622_v59, %v932_v31  ;;  %v3960_v13 = vsub.f32 %v3625_v62, %v932_v31  ;;  %v3973_v59 = vor.u32 %v2957_v14, %v2763_v35  ;;  %v2956_v14 = vld [vmem:[%s4566_s4 + $0x14] sm:$0xf0]  ;;  %v2955_v35 = vld [vmem:[%s4566_s4 + $0x14] sm:$0xf] }
 0x29d   : > { %v1040_v48 = vpop.xlane.xlu1 %1039 }
 0x29e   : > { %4624 = vst [vmem:[#allocation20_spill] sm:$0xff] %v3957_v1  ;;  %v1086_v62 = vmul.f32 0.0052083335, %v1040_v48  ;;  %v990_v31 = vmul.f32 %v3610_v28, %v3957_v1  ;;  %v991_v2 = vmul.f32 %v3613_v15, %v3960_v13  ;;  %1723 = vmatpush.bf16.msrb.mxu0 %v3973_v59  ;;  %v3990_v48 = vor.u32 %v2956_v14, %v2753_v42  ;;  %v2755_v14 = vld [vmem:[%s4566_s4 + $0x18] sm:$0xf0] }
 0x29f   : > { %4625 = vst [vmem:[#allocation21_spill] sm:$0xff] %v3960_v13  ;;  %v4004_v42 = vor.u32 %v2972_v33, %v2817_v5  ;;  %v4012_v49 = vor.u32 %v2955_v35, %v2755_v14  ;;  %v2745_v5 = vld [vmem:[%s4566_s4] sm:$0xf]  ;;  %v2954_v33 = vld [vmem:[%s4566_s4 + $0x4] sm:$0xf0] }
 0x2a0   : > { %v4001_v13 = vadd.f32 1e-05, %v1086_v62  ;;  %v1022_v1 = vmul.f32 %v990_v31, %v990_v31  ;;  %v1023_v46 = vmul.f32 %v991_v2, %v991_v2  ;;  %v2819_v62 = vld [vmem:[%s4566_s4 + $0x98] sm:$0xf0]  ;;  %1626 = vmatpush.bf16.msra.mxu2 %v3990_v48  ;;  %v2809_v35 = vld [vmem:[%s4566_s4 + $0x80] sm:$0xf] }
 0x2a1   : > { %v4019_v2 = vor.u32 %v2971_v3, %v2819_v62  ;;  %1675 = vmatpush.bf16.msra.mxu3 %v4004_v42  ;;  %v2970_v3 = vld [vmem:[%s4566_s4 + $0x84] sm:$0xf0]  ;;  %v2747_v14 = vld [vmem:[%s4566_s4 + $0x8] sm:$0xf0] }
 0x2a2   : > { %3042 = vrsqrt.f32 %v4001_v13  ;;  %v1062_v31 = vadd.f32 %v1023_v46, %v1022_v1  ;;  %1724 = vmatpush.bf16.msrb.mxu0 %v4012_v49  ;;  %v4032_v46 = vor.u32 %v2954_v33, %v2745_v5  ;;  %v2953_v1 = vld [vmem:[%s4566_s4 + $0x4] sm:$0xf]  ;;  %v4044_v62 = vor.u32 %v2970_v3, %v2809_v35  ;;  %v2811_v33 = vld [vmem:[%s4566_s4 + $0x88] sm:$0xf0] }
 0x2a3   : > { %1773 = vmatpush.bf16.msrb.mxu1 %v4019_v2  ;;  %v4046_v8 = vor.u32 %v2953_v1, %v2747_v14  ;;  %v2969_v5 = vld [vmem:[%s4566_s4 + $0x84] sm:$0xf]  ;;  %vm1124_vm1 = vweird.f32 %v4001_v13 }
 0x2a4   : > { %1063 = vadd.xlane.f32.xlu2 %v1062_v31  ;;  %v4054_v36 = vor.u32 %v2969_v5, %v2811_v33  ;;  %1627 = vmatpush.bf16.msra.mxu2 %v4032_v46 }
 0x2a5   : > { %v905_v52 = vpop.xlane.xlu1 %904  ;;  %v1043_v61 = vpop.xlane.xlu2 %1042  ;;  %1676 = vmatpush.bf16.msra.mxu3 %v4044_v62 }
 0x2a6   : > { %v933_v58 = vmul.f32 0.0052083335, %v905_v52  ;;  %v1087_v31 = vmul.f32 0.0052083335, %v1043_v61  ;;  %1725 = vmatpush.bf16.msrb.mxu0 %v4046_v8 }
 0x2a7   : > { %1774 = vmatpush.bf16.msrb.mxu1 %v4054_v36 }
 0x2a8   : > { %v3043_v35 = vpop.eup %3042  ;;  %v4060_v3 = vsub.f32 %v3640_v16, %v933_v58  ;;  %v4063_v1 = vsub.f32 %v3643_v17, %v933_v58  ;;  %v4065_v14 = vadd.f32 1e-05, %v1087_v31  ;;  %1864 = vmatpush.bf16.msrb.mxu2 %v3795_v40 }
 0x2a9   : > { %v1119_v52 = vmul.f32 %v3043_v35, %v4001_v13  ;;  %1913 = vmatpush.bf16.msrb.mxu3 %v3800_v6  ;;  %vm1125_vm0 = vweird.f32 %v3043_v35 }
 0x2aa   : > { %4626 = vst [vmem:[#allocation22_spill] sm:$0xff] %v4060_v3  ;;  %1962 = vmatpush.bf16.msra.mxu0 %v3702_v0  ;;  %3044 = vrsqrt.f32 %v4065_v14  ;;  %v992_v16 = vmul.f32 %v3610_v28, %v4060_v3  ;;  %v993_v17 = vmul.f32 %v3613_v15, %v4063_v1  ;;  %vm1126_vm2 = vmor %vm1124_vm1, %vm1125_vm0  ;;  %vm1134_vm4 = vweird.f32 %v4065_v14 }
 0x2ab   : > { %4627 = vst [vmem:[#allocation23_spill] sm:$0xff] %v4063_v1  ;;  %2011 = vmatpush.bf16.msra.mxu1 %v3711_v19  ;;  %v1120_v58 = vmul.f32 %v3043_v35, %v1119_v52 }
 0x2ac   : > { %v1024_v61 = vmul.f32 %v992_v16, %v992_v16  ;;  %v1025_v5 = vmul.f32 %v993_v17, %v993_v17  ;;  %1865 = vmatpush.bf16.msrb.mxu2 %v3824_v30 }
 0x2ad   : > { %v1121_v33 = vmul.f32 0.5, %v1120_v58  ;;  %v908_v31 = vpop.xlane.xlu1 %907  ;;  %v1046_v12 = vpop.xlane.xlu2 %1045  ;;  %1914 = vmatpush.bf16.msrb.mxu3 %v3826_v60 }
 0x2ae   : > { %1963 = vmatpush.bf16.msra.mxu0 %v3783_v39  ;;  %v934_v0 = vmul.f32 0.0052083335, %v908_v31  ;;  %v1088_v6 = vmul.f32 0.0052083335, %v1046_v12  ;;  %v1065_v3 = vadd.f32 %v1025_v5, %v1024_v61  ;;  %v4103_v61 = vperm.slane %v3471_v37, 0 }
 0x2af   : > { %2012 = vmatpush.bf16.msra.mxu1 %v3813_v4  ;;  %v1122_v1 = vsub.f32 1.5, %v1121_v33 }
 0x2b0   : > { %v3045_v19 = vpop.eup %3044  ;;  %v4083_v52 = vsub.f32 %v3662_v7, %v934_v0  ;;  %v4086_v16 = vsub.f32 %v3665_v23, %v934_v0  ;;  %v4088_v17 = vadd.f32 1e-05, %v1088_v6  ;;  %1066 = vadd.xlane.f32.xlu0 %v1065_v3  ;;  %1866 = vmatpush.bf16.msrb.mxu2 %v3853_v34 }
 0x2b1   : > { %v1123_v58 = vmul.f32 %v3043_v35, %v1122_v1  ;;  %v1129_v12 = vmul.f32 %v3045_v19, %v4065_v14  ;;  %1915 = vmatpush.bf16.msrb.mxu3 %v3862_v25  ;;  %vm1135_vm3 = vweird.f32 %v3045_v19 }
 0x2b2   : > { %4628 = vst [vmem:[#allocation24_spill] sm:$0xff] %v4083_v52  ;;  %1964 = vmatpush.bf16.msra.mxu0 %v3840_v32  ;;  %3046 = vrsqrt.f32 %v4088_v17  ;;  %v994_v7 = vmul.f32 %v3610_v28, %v4083_v52  ;;  %v995_v23 = vmul.f32 %v3613_v15, %v4086_v16  ;;  %vm1136_vm5 = vmor %vm1134_vm4, %vm1135_vm3  ;;  %vm1144_vm6 = vweird.f32 %v4088_v17 }
 0x2b3   : > { %4629 = vst [vmem:[#allocation25_spill] sm:$0xff] %v4086_v16  ;;  %2013 = vmatpush.bf16.msra.mxu1 %v3851_v41  ;;  %v1127_v0 = vsel %vm1126_vm2, %v3043_v35, %v1123_v58  ;;  %v1130_v6 = vmul.f32 %v3045_v19, %v1129_v12  ;;  %v4108_v16 = vperm.slane %v3480_v26, 0 }
 0x2b4   : > { %v1026_v13 = vmul.f32 %v994_v7, %v994_v7  ;;  %v1027_v3 = vmul.f32 %v995_v23, %v995_v23  ;;  %v1278_v1 = vmul.f32 %v1127_v0, %v3616_v51  ;;  %1867 = vmatpush.bf16.msrb.mxu2 %v3876_v47  ;;  %v1279_v52 = vmul.f32 %v1127_v0, %v3619_v56 }
 0x2b5   : > { %v1131_v5 = vmul.f32 0.5, %v1130_v6  ;;  %v911_v33 = vpop.xlane.xlu2 %910  ;;  %v1049_v31 = vpop.xlane.xlu0 %1048  ;;  %1916 = vmatpush.bf16.msrb.mxu3 %v3887_v18  ;;  %v4114_v7 = vperm.slane %v3471_v37, 1  ;;  %v4117_v23 = vperm.slane %v3480_v26, 1 }
 0x2b6   : > { %1965 = vmatpush.bf16.msra.mxu0 %v3889_v22  ;;  %v935_v35 = vmul.f32 0.0052083335, %v911_v33  ;;  %v1089_v58 = vmul.f32 0.0052083335, %v1049_v31  ;;  %v1068_v51 = vadd.f32 %v1027_v3, %v1026_v13  ;;  %v1312_v13 = vmul.f32 %v4103_v61, %v1278_v1 }
 0x2b7   : > { %2014 = vmatpush.bf16.msra.mxu1 %v3897_v27  ;;  %v1132_v12 = vsub.f32 1.5, %v1131_v5  ;;  %v1313_v26 = vmul.f32 %v4108_v16, %v1279_v52 }
 0x2b8   : > { %v3047_v56 = vpop.eup %3046  ;;  %v4120_v0 = vsub.f32 %v3680_v54, %v935_v35  ;;  %v4123_v6 = vsub.f32 %v3683_v50, %v935_v35  ;;  %v4125_v33 = vadd.f32 1e-05, %v1089_v58  ;;  %1069 = vadd.xlane.f32.xlu1 %v1068_v51  ;;  %1868 = vmatpush.bf16.msrb.mxu2 %v3912_v57 }
 0x2b9   : > { %v1133_v3 = vmul.f32 %v3045_v19, %v1132_v12  ;;  %v1139_v37 = vmul.f32 %v3047_v56, %v4088_v17  ;;  %1917 = vmatpush.bf16.msrb.mxu3 %v3923_v44  ;;  %vm1145_vm7 = vweird.f32 %v3047_v56 }
 0x2ba   : > { %4630 = vst [vmem:[#allocation26_spill] sm:$0xff] %v4120_v0  ;;  %1966 = vmatpush.bf16.msra.mxu0 %v3925_v29  ;;  %3048 = vrsqrt.f32 %v4125_v33  ;;  %v996_v54 = vmul.f32 %v3610_v28, %v4120_v0  ;;  %v997_v50 = vmul.f32 %v3613_v15, %v4123_v6  ;;  %v1346_v0 = vadd.f32 %v4114_v7, %v1312_v13  ;;  %vm1146_vm8 = vmor %vm1144_vm6, %vm1145_vm7 }
 0x2bb   : > { %2015 = vmatpush.bf16.msra.mxu1 %v3933_v9  ;;  %v1137_v14 = vsel %vm1136_vm5, %v3045_v19, %v1133_v3  ;;  %v1140_v1 = vmul.f32 %v3047_v56, %v1139_v37  ;;  %v1347_v29 = vadd.f32 %v4117_v23, %v1313_v26  ;;  %vm1154_vm10 = vweird.f32 %v4125_v33 }
 0x2bc   : > { %v1028_v5 = vmul.f32 %v996_v54, %v996_v54  ;;  %v1029_v52 = vmul.f32 %v997_v50, %v997_v50  ;;  %v1280_v31 = vmul.f32 %v1137_v14, %v3634_v10  ;;  %v1281_v35 = vmul.f32 %v1137_v14, %v3637_v11  ;;  %1869 = vmatpush.bf16.msrb.mxu2 %v3945_v63 }
 0x2bd   : > { %v1141_v58 = vmul.f32 0.5, %v1140_v1  ;;  %v914_v51 = vpop.xlane.xlu2 %913  ;;  %v1052_v12 = vpop.xlane.xlu0 %1051  ;;  %1918 = vmatpush.bf16.msrb.mxu3 %v3962_v55 }
 0x2be   : > { %1967 = vmatpush.bf16.msra.mxu0 %v3973_v59  ;;  %v936_v19 = vmul.f32 0.0052083335, %v914_v51  ;;  %v1090_v3 = vmul.f32 0.0052083335, %v1052_v12  ;;  %v1071_v37 = vadd.f32 %v1029_v52, %v1028_v5  ;;  %v1314_v10 = vmul.f32 %v4103_v61, %v1280_v31 }
 0x2bf   : > { %2016 = vmatpush.bf16.msra.mxu1 %v3975_v38  ;;  %v1142_v11 = vsub.f32 1.5, %v1141_v58  ;;  %v1315_v54 = vmul.f32 %v4108_v16, %v1281_v35  ;;  %v1378_v31 = vmax.f32 %v1346_v0, 0.0 }
 0x2c0   : > { %v4152_v13 = vpop.eup %3048  ;;  %v4155_v26 = vsub.f32 %v3714_v45, %v936_v19  ;;  %v4158_v50 = vsub.f32 %v3717_v20, %v936_v19  ;;  %v4160_v14 = vadd.f32 1e-05, %v1090_v3  ;;  %1072 = vadd.xlane.f32.xlu2 %v1071_v37  ;;  %v1348_v1 = vadd.f32 %v4114_v7, %v1314_v10  ;;  %1870 = vmatpush.bf16.msrb.mxu2 %v3990_v48 }
 0x2c1   : > { %v1143_v5 = vmul.f32 %v3047_v56, %v1142_v11  ;;  %v1149_v52 = vmul.f32 %v4152_v13, %v4125_v33  ;;  %v1349_v35 = vadd.f32 %v4117_v23, %v1315_v54  ;;  %1919 = vmatpush.bf16.msrb.mxu3 %v4004_v42  ;;  %v1379_v20 = vmax.f32 %v1347_v29, 0.0  ;;  %v4634_v33 = vld [vmem:[#allocation7_spill] sm:$0xff] }
 0x2c2   : > { %4631 = vst [vmem:[#allocation27_spill] sm:$0xff] %v4155_v26  ;;  %1968 = vmatpush.bf16.msra.mxu0 %v4012_v49  ;;  %3050 = vrsqrt.f32 %v4160_v14  ;;  %v1380_v45 = vmax.f32 %v1348_v1, 0.0  ;;  %v998_v58 = vmul.f32 %v3610_v28, %v4155_v26  ;;  %v999_v19 = vmul.f32 %v3613_v15, %v4158_v50 }
 0x2c3   : > { %2017 = vmatpush.bf16.msra.mxu1 %v4019_v2  ;;  %v1147_v0 = vsel %vm1146_vm8, %v3047_v56, %v1143_v5  ;;  %v1150_v51 = vmul.f32 %v4152_v13, %v1149_v52  ;;  %v1381_v12 = vmax.f32 %v1349_v35, 0.0  ;;  %vm1155_vm9 = vweird.f32 %v4152_v13 }
 0x2c4   : > { %v1442_v3 = vpack.c.bf16 %v1380_v45, %v1378_v31  ;;  %v1030_v37 = vmul.f32 %v998_v58, %v998_v58  ;;  %v1282_v17 = vmul.f32 %v1147_v0, %v3652_v24  ;;  %1871 = vmatpush.bf16.msrb.mxu2 %v4032_v46  ;;  %v1031_v1 = vmul.f32 %v999_v19, %v999_v19  ;;  %vm1156_vm11 = vmor %vm1154_vm10, %vm1155_vm9 }
 0x2c5   : > { %v1151_v10 = vmul.f32 0.5, %v1150_v51  ;;  %v1055_v29 = vpop.xlane.xlu1 %1054  ;;  %v917_v11 = vpop.xlane.xlu0 %916  ;;  %v1443_v54 = vpack.c.bf16 %v1381_v12, %v1379_v20  ;;  %v1283_v26 = vmul.f32 %v1147_v0, %v3655_v21  ;;  %1920 = vmatpush.bf16.msrb.mxu3 %v4044_v62  ;;  %v4633_v12 = vld [vmem:[#allocation6_spill] sm:$0xff]  ;;  %vm1164_vm12 = vweird.f32 %v4160_v14 }
 0x2c6   : > { %1969 = vmatpush.bf16.msra.mxu0 %v4046_v8  ;;  %v1091_v56 = vmul.f32 0.0052083335, %v1055_v29  ;;  %v937_v5 = vmul.f32 0.0052083335, %v917_v11  ;;  %1628 = vmatmul.bf16.vlgmr.msra.gmra.mxu2 %v1442_v3  ;;  %v1074_v24 = vadd.f32 %v1031_v1, %v1030_v37  ;;  %v1316_v20 = vmul.f32 %v4103_v61, %v1282_v17  ;;  %v4635_v17 = vld [vmem:[#allocation2_spill] sm:$0xff]  ;;  %v4636_v29 = vld [vmem:[#allocation3_spill] sm:$0xff] }
 0x2c7   : > { %1726 = vmatmul.bf16.vlgmr.msrb.gmra.mxu0 %v1442_v3  ;;  %v1152_v52 = vsub.f32 1.5, %v1151_v10  ;;  %1677 = vmatmul.bf16.vlgmr.msra.gmra.mxu3 %v1443_v54  ;;  %v1317_v51 = vmul.f32 %v4108_v16, %v1283_v26 }
 0x2c8   : > { %1775 = vmatmul.bf16.vlgmr.msrb.gmra.mxu1 %v1443_v54  ;;  %v3051_v31 = vpop.eup %3050  ;;  %v4185_v35 = vadd.f32 1e-05, %v1091_v56  ;;  %v4188_v45 = vsub.f32 %v3734_v43, %v937_v5  ;;  %v4191_v21 = vsub.f32 %v3737_v53, %v937_v5  ;;  %2108 = vmatpush.bf16.msra.mxu2 %v3795_v40  ;;  %v4632_v43 = vld [vmem:[#allocation18_spill] sm:$0xff]  ;;  %v1350_v5 = vadd.f32 %v4114_v7, %v1316_v20 }
 0x2c9   : > { %2018 = vmatpush.bf16.msra.mxu1 %v4054_v36  ;;  %v1153_v58 = vmul.f32 %v4152_v13, %v1152_v52  ;;  %v1159_v0 = vmul.f32 %v3051_v31, %v4160_v14  ;;  %1075 = vadd.xlane.f32.xlu0 %v1074_v24  ;;  %v1351_v52 = vadd.f32 %v4117_v23, %v1317_v51  ;;  %vm1165_vm13 = vweird.f32 %v3051_v31  ;;  %v4637_v51 = vld [vmem:[#allocation12_spill] sm:$0xff] }
 0x2ca   : > { %2157 = vmatpush.bf16.msra.mxu3 %v4632_v43  ;;  %3052 = vrsqrt.f32 %v4185_v35  ;;  %v1000_v53 = vmul.f32 %v3610_v28, %v4188_v45  ;;  %v1001_v40 = vmul.f32 %v3613_v15, %v4191_v21  ;;  %2206 = vmatpush.bf16.msrb.mxu0 %v4633_v12  ;;  %vm1166_vm14 = vmor %vm1164_vm12, %vm1165_vm13  ;;  %vm1174_vm0 = vweird.f32 %v4185_v35 }
 0x2cb   : > { %v1157_v19 = vsel %vm1156_vm11, %v4152_v13, %v1153_v58  ;;  %v1160_v26 = vmul.f32 %v3051_v31, %v1159_v0 }
 0x2cc   : > { %v1032_v3 = vmul.f32 %v1000_v53, %v1000_v53  ;;  %v1033_v37 = vmul.f32 %v1001_v40, %v1001_v40  ;;  %v1284_v10 = vmul.f32 %v1157_v19, %v4635_v17  ;;  %v1285_v11 = vmul.f32 %v1157_v19, %v4636_v29  ;;  %2109 = vmatpush.bf16.msra.mxu2 %v3824_v30  ;;  %v4638_v40 = vld [vmem:[#allocation13_spill] sm:$0xff] }
 0x2cd   : > { %2255 = vmatpush.bf16.msrb.mxu1 %v4634_v33  ;;  %v1161_v54 = vmul.f32 0.5, %v1160_v26  ;;  %v1058_v1 = vpop.xlane.xlu1 %1057  ;;  %v920_v56 = vpop.xlane.xlu0 %919  ;;  %v1382_v19 = vmax.f32 %v1350_v5, 0.0 }
 0x2ce   : > { %2158 = vmatpush.bf16.msra.mxu3 %v3826_v60  ;;  %v1092_v24 = vmul.f32 0.0052083335, %v1058_v1  ;;  %v938_v13 = vmul.f32 0.0052083335, %v920_v56  ;;  %v1077_v58 = vadd.f32 %v1033_v37, %v1032_v3  ;;  %v1318_v0 = vmul.f32 %v4103_v61, %v1284_v10  ;;  %2207 = vmatpush.bf16.msrb.mxu0 %v3783_v39 }
 0x2cf   : > { %v1162_v43 = vsub.f32 1.5, %v1161_v54  ;;  %v1319_v30 = vmul.f32 %v4108_v16, %v1285_v11  ;;  %v1383_v37 = vmax.f32 %v1351_v52, 0.0 }
 0x2d0   : > { %v3053_v20 = vpop.eup %3052  ;;  %v4222_v53 = vadd.f32 1e-05, %v1092_v24  ;;  %v4225_v60 = vsub.f32 %v4637_v51, %v938_v13  ;;  %v4228_v12 = vsub.f32 %v4638_v40, %v938_v13  ;;  %1078 = vadd.xlane.f32.xlu1 %v1077_v58  ;;  %v1352_v39 = vadd.f32 %v4114_v7, %v1318_v0  ;;  %2110 = vmatpush.bf16.msra.mxu2 %v3853_v34  ;;  %v4639_v24 = vld [vmem:[#allocation4_spill] sm:$0xff]  ;;  %v4642_v40 = vld [vmem:[#allocation17_spill] sm:$0xff] }
 0x2d1   : > { %2256 = vmatpush.bf16.msrb.mxu1 %v3813_v4  ;;  %v1163_v4 = vmul.f32 %v3051_v31, %v1162_v43  ;;  %v1169_v33 = vmul.f32 %v3053_v20, %v4185_v35  ;;  %v1353_v26 = vadd.f32 %v4117_v23, %v1319_v30  ;;  %vm1175_vm15 = vweird.f32 %v3053_v20  ;;  %v4641_v30 = vld [vmem:[#allocation16_spill] sm:$0xff] }
 0x2d2   : > { %2159 = vmatpush.bf16.msra.mxu3 %v3862_v25  ;;  %3054 = vrsqrt.f32 %v4222_v53  ;;  %v1384_v3 = vmax.f32 %v1352_v39, 0.0  ;;  %v1002_v17 = vmul.f32 %v3610_v28, %v4225_v60  ;;  %2208 = vmatpush.bf16.msrb.mxu0 %v3840_v32  ;;  %v1003_v25 = vmul.f32 %v3613_v15, %v4228_v12  ;;  %vm1176_vm1 = vmor %vm1174_vm0, %vm1175_vm15 }
 0x2d3   : > { %v1167_v34 = vsel %vm1166_vm14, %v3051_v31, %v1163_v4  ;;  %v1170_v10 = vmul.f32 %v3053_v20, %v1169_v33  ;;  %v1385_v29 = vmax.f32 %v1353_v26, 0.0  ;;  %v4640_v31 = vld [vmem:[#allocation5_spill] sm:$0xff]  ;;  %vm1184_vm3 = vweird.f32 %v4222_v53 }
 0x2d4   : > { %v1444_v11 = vpack.c.bf16 %v1384_v3, %v1382_v19  ;;  %v1034_v14 = vmul.f32 %v1002_v17, %v1002_v17  ;;  %2111 = vmatpush.bf16.msra.mxu2 %v3876_v47  ;;  %v1035_v52 = vmul.f32 %v1003_v25, %v1003_v25  ;;  %v1286_v13 = vmul.f32 %v1167_v34, %v4639_v24  ;;  %v4645_v25 = vld [vmem:[#allocation19_spill] sm:$0xff] }
 0x2d5   : > { %2257 = vmatpush.bf16.msrb.mxu1 %v3851_v41  ;;  %v1171_v54 = vmul.f32 0.5, %v1170_v10  ;;  %v923_v1 = vpop.xlane.xlu1 %922  ;;  %v1061_v56 = vpop.xlane.xlu2 %1060  ;;  %v1445_v5 = vpack.c.bf16 %v1385_v29, %v1383_v37  ;;  %v1287_v58 = vmul.f32 %v1167_v34, %v4640_v31  ;;  %v4643_v34 = vld [vmem:[#allocation8_spill] sm:$0xff]  ;;  %v4644_v10 = vld [vmem:[#allocation9_spill] sm:$0xff] }
 0x2d6   : > { %2160 = vmatpush.bf16.msra.mxu3 %v3887_v18  ;;  %v939_v32 = vmul.f32 0.0052083335, %v923_v1  ;;  %v1093_v41 = vmul.f32 0.0052083335, %v1061_v56  ;;  %1633 = vmatmul.bf16.gmra.mxu2 %v1444_v11  ;;  %v1080_v47 = vadd.f32 %v1035_v52, %v1034_v14  ;;  %v1320_v19 = vmul.f32 %v4103_v61, %v1286_v13 }
 0x2d7   : > { %1731 = vmatmul.bf16.gmra.mxu0 %v1444_v11  ;;  %v1172_v0 = vsub.f32 1.5, %v1171_v54  ;;  %1682 = vmatmul.bf16.gmra.mxu3 %v1445_v5 }
 0x2d8   : > { %1780 = vmatmul.bf16.gmra.mxu1 %v1445_v5  ;;  %v3055_v43 = vpop.eup %3054  ;;  %v4249_v51 = vsub.f32 %v4641_v30, %v939_v32  ;;  %v4252_v39 = vsub.f32 %v4642_v40, %v939_v32  ;;  %v4254_v4 = vadd.f32 1e-05, %v1093_v41  ;;  %2209 = vmatpush.bf16.msrb.mxu0 %v3889_v22  ;;  %v4649_v40 = vld [vmem:[#allocation15_spill] sm:$0xff] }
 0x2d9   : > { %2258 = vmatpush.bf16.msrb.mxu1 %v3897_v27  ;;  %v1173_v18 = vmul.f32 %v3053_v20, %v1172_v0  ;;  %v1179_v33 = vmul.f32 %v3055_v43, %v4222_v53  ;;  %1081 = vadd.xlane.f32.xlu2 %v1080_v47  ;;  %v1321_v27 = vmul.f32 %v4108_v16, %v1287_v58  ;;  %vm1185_vm2 = vweird.f32 %v3055_v43  ;;  %v4647_v58 = vld [vmem:[#allocation11_spill] sm:$0xff] }
 0x2da   : > { %2112 = vmatpush.bf16.msra.mxu2 %v3912_v57  ;;  %3056 = vrsqrt.f32 %v4254_v4  ;;  %v1004_v26 = vmul.f32 %v3610_v28, %v4249_v51  ;;  %v1005_v22 = vmul.f32 %v3613_v15, %v4252_v39  ;;  %2161 = vmatpush.bf16.msra.mxu3 %v3923_v44  ;;  %v1354_v28 = vadd.f32 %v4114_v7, %v1320_v19  ;;  %vm1186_vm4 = vmor %vm1184_vm3, %vm1185_vm2 }
 0x2db   : > { %v1177_v35 = vsel %vm1176_vm1, %v3053_v20, %v1173_v18  ;;  %v1180_v3 = vmul.f32 %v3055_v43, %v1179_v33  ;;  %v1355_v14 = vadd.f32 %v4117_v23, %v1321_v27  ;;  %vm1194_vm6 = vweird.f32 %v4254_v4 }
 0x2dc   : > { %v1036_v37 = vmul.f32 %v1004_v26, %v1004_v26  ;;  %v1037_v17 = vmul.f32 %v1005_v22, %v1005_v22  ;;  %v1288_v57 = vmul.f32 %v1177_v35, %v4643_v34  ;;  %v1289_v29 = vmul.f32 %v1177_v35, %v4644_v10  ;;  %2210 = vmatpush.bf16.msrb.mxu0 %v4645_v25 }
 0x2dd   : > { %v1181_v11 = vmul.f32 0.5, %v1180_v3  ;;  %2259 = vmatpush.bf16.msrb.mxu1 %v3933_v9  ;;  %v1387_v24 = vmax.f32 %v1355_v14, 0.0 }
 0x2de   : > { %2113 = vmatpush.bf16.msra.mxu2 %v3945_v63  ;;  %v1083_v15 = vadd.f32 %v1037_v17, %v1036_v37  ;;  %v1322_v44 = vmul.f32 %v4103_v61, %v1288_v57  ;;  %v1323_v20 = vmul.f32 %v4108_v16, %v1289_v29  ;;  %2162 = vmatpush.bf16.msra.mxu3 %v3962_v55  ;;  %v1386_v55 = vmax.f32 %v1354_v28, 0.0 }
 0x2df   : > { %v1182_v54 = vsub.f32 1.5, %v1181_v11 }
 0x2e0   : > { %v3057_v1 = vpop.eup %3056  ;;  %1084 = vadd.xlane.f32.xlu0 %v1083_v15  ;;  %v1356_v56 = vadd.f32 %v4114_v7, %v1322_v44  ;;  %v1357_v5 = vadd.f32 %v4117_v23, %v1323_v20  ;;  %2211 = vmatpush.bf16.msrb.mxu0 %v3973_v59 }
 0x2e1   : > { %v1183_v9 = vmul.f32 %v3055_v43, %v1182_v54  ;;  %v1189_v63 = vmul.f32 %v3057_v1, %v4254_v4  ;;  %2260 = vmatpush.bf16.msrb.mxu1 %v3975_v38  ;;  %v4646_v38 = vld [vmem:[#allocation10_spill] sm:$0xff]  ;;  %vm1195_vm5 = vweird.f32 %v3057_v1 }
 0x2e2   : > { %2114 = vmatpush.bf16.msra.mxu2 %v3990_v48  ;;  %v1388_v52 = vmax.f32 %v1356_v56, 0.0  ;;  %v1389_v13 = vmax.f32 %v1357_v5, 0.0  ;;  %2163 = vmatpush.bf16.msra.mxu3 %v4004_v42  ;;  %vm1196_vm7 = vmor %vm1194_vm6, %vm1195_vm5 }
 0x2e3   : > { %v1187_v32 = vsel %vm1186_vm4, %v3055_v43, %v1183_v9  ;;  %v1190_v41 = vmul.f32 %v3057_v1, %v1189_v63  ;;  %v4648_v43 = vld [vmem:[#allocation14_spill] sm:$0xff] }
 0x2e4   : > { %v1446_v31 = vpack.c.bf16 %v1388_v52, %v1386_v55  ;;  %v1447_v59 = vpack.c.bf16 %v1389_v13, %v1387_v24  ;;  %2212 = vmatpush.bf16.msrb.mxu0 %v4012_v49  ;;  %v1290_v48 = vmul.f32 %v1187_v32, %v4646_v38  ;;  %v1291_v0 = vmul.f32 %v1187_v32, %v4647_v58  ;;  %v4650_v32 = vld [vmem:[#allocation20_spill] sm:$0xff] }
 0x2e5   : > { %v1191_v53 = vmul.f32 0.5, %v1190_v41  ;;  %2261 = vmatpush.bf16.msrb.mxu1 %v4019_v2 }
 0x2e6   : > { %2115 = vmatpush.bf16.msra.mxu2 %v4032_v46  ;;  %2164 = vmatpush.bf16.msra.mxu3 %v4044_v62  ;;  %v1324_v42 = vmul.f32 %v4103_v61, %v1290_v48  ;;  %v1325_v2 = vmul.f32 %v4108_v16, %v1291_v0 }
 0x2e7   : > { %1638 = vmatmul.bf16.gmra.mxu2 %v1446_v31  ;;  %1736 = vmatmul.bf16.gmra.mxu0 %v1446_v31  ;;  %v1192_v47 = vsub.f32 1.5, %v1191_v53  ;;  %v4651_v31 = vld [vmem:[#allocation21_spill] sm:$0xff] }
 0x2e8   : > { %1687 = vmatmul.bf16.gmra.mxu3 %v1447_v59  ;;  %1785 = vmatmul.bf16.gmra.mxu1 %v1447_v59  ;;  %v1358_v62 = vadd.f32 %v4114_v7, %v1324_v42  ;;  %v1359_v4 = vadd.f32 %v4117_v23, %v1325_v2 }
 0x2e9   : > { %2213 = vmatpush.bf16.msrb.mxu0 %v4046_v8  ;;  %v1193_v49 = vmul.f32 %v3057_v1, %v1192_v47  ;;  %2262 = vmatpush.bf16.msrb.mxu1 %v4054_v36 }
 0x2ea   : > { %v1390_v26 = vmax.f32 %v1358_v62, 0.0  ;;  %v1391_v27 = vmax.f32 %v1359_v4, 0.0 }
 0x2eb   : > { %v1197_v46 = vsel %vm1196_vm7, %v3057_v1, %v1193_v49 }
 0x2ec   : > { %v1292_v30 = vmul.f32 %v1197_v46, %v4648_v43  ;;  %v1293_v18 = vmul.f32 %v1197_v46, %v4649_v40  ;;  %v4652_v46 = vld [vmem:[#allocation22_spill] sm:$0xff] }
 0x2ee   : > { %v1326_v33 = vmul.f32 %v4103_v61, %v1292_v30  ;;  %v1327_v8 = vmul.f32 %v4108_v16, %v1293_v18  ;;  %v4653_v30 = vld [vmem:[#allocation23_spill] sm:$0xff] }
 0x2f0   : > { %v1360_v36 = vadd.f32 %v4114_v7, %v1326_v33  ;;  %v1361_v19 = vadd.f32 %v4117_v23, %v1327_v8 }
 0x2f2   : > { %v1392_v22 = vmax.f32 %v1360_v36, 0.0  ;;  %v1393_v35 = vmax.f32 %v1361_v19, 0.0 }
 0x2f4   : > { %v1448_v3 = vpack.c.bf16 %v1392_v22, %v1390_v26  ;;  %v1449_v37 = vpack.c.bf16 %v1393_v35, %v1391_v27 }
 0x2f7   : > { %1643 = vmatmul.bf16.gmra.mxu2 %v1448_v3  ;;  %1741 = vmatmul.bf16.gmra.mxu0 %v1448_v3 }
 0x2f8   : > { %1692 = vmatmul.bf16.gmra.mxu3 %v1449_v37  ;;  %1790 = vmatmul.bf16.gmra.mxu1 %v1449_v37 }
 0x317   : > { %v1064_v17 = vpop.xlane.xlu2 %1063 }
 0x318   : > { %v1094_v34 = vmul.f32 0.0052083335, %v1064_v17 }
 0x31a   : > { %v1110_v57 = vadd.f32 1e-05, %v1094_v34 }
 0x31c   : > { %3058 = vrsqrt.f32 %v1110_v57  ;;  %vm1204_vm9 = vweird.f32 %v1110_v57 }
 0x322   : > { %v3059_v10 = vpop.eup %3058 }
 0x323   : > { %v1199_v29 = vmul.f32 %v3059_v10, %v1110_v57  ;;  %v1067_v25 = vpop.xlane.xlu0 %1066  ;;  %vm1205_vm8 = vweird.f32 %v3059_v10 }
 0x324   : > { %v1095_v11 = vmul.f32 0.0052083335, %v1067_v25  ;;  %vm1206_vm10 = vmor %vm1204_vm9, %vm1205_vm8 }
 0x325   : > { %v1200_v28 = vmul.f32 %v3059_v10, %v1199_v29 }
 0x326   : > { %v1111_v15 = vadd.f32 1e-05, %v1095_v11 }
 0x327   : > { %v1201_v44 = vmul.f32 0.5, %v1200_v28 }
 0x328   : > { %3060 = vrsqrt.f32 %v1111_v15  ;;  %vm1214_vm12 = vweird.f32 %v1111_v15 }
 0x329   : > { %v1202_v20 = vsub.f32 1.5, %v1201_v44 }
 0x32b   : > { %v1070_v14 = vpop.xlane.xlu1 %1069  ;;  %v1203_v1 = vmul.f32 %v3059_v10, %v1202_v20 }
 0x32c   : > { %v1096_v54 = vmul.f32 0.0052083335, %v1070_v14 }
 0x32d   : > { %v1207_v63 = vsel %vm1206_vm10, %v3059_v10, %v1203_v1 }
 0x32e   : > { %v3061_v56 = vpop.eup %3060  ;;  %v1112_v5 = vadd.f32 1e-05, %v1096_v54  ;;  %v1294_v41 = vmul.f32 %v1207_v63, %v4650_v32  ;;  %v1295_v59 = vmul.f32 %v1207_v63, %v4651_v31  ;;  %v4654_v54 = vld [vmem:[#allocation24_spill] sm:$0xff] }
 0x32f   : > { %v1209_v9 = vmul.f32 %v3061_v56, %v1111_v15  ;;  %vm1215_vm11 = vweird.f32 %v3061_v56 }
 0x330   : > { %3062 = vrsqrt.f32 %v1112_v5  ;;  %vm1216_vm13 = vmor %vm1214_vm12, %vm1215_vm11  ;;  %v1328_v47 = vmul.f32 %v4103_v61, %v1294_v41  ;;  %v1329_v49 = vmul.f32 %v4108_v16, %v1295_v59  ;;  %vm1224_vm15 = vweird.f32 %v1112_v5  ;;  %v4656_v59 = vld [vmem:[#allocation26_spill] sm:$0xff] }
 0x331   : > { %v1210_v55 = vmul.f32 %v3061_v56, %v1209_v9 }
 0x332   : > { %v1362_v8 = vadd.f32 %v4114_v7, %v1328_v47  ;;  %v1363_v36 = vadd.f32 %v4117_v23, %v1329_v49 }
 0x333   : > { %v1211_v52 = vmul.f32 0.5, %v1210_v55  ;;  %v1073_v24 = vpop.xlane.xlu2 %1072 }
 0x334   : > { %v1097_v13 = vmul.f32 0.0052083335, %v1073_v24  ;;  %v1394_v34 = vmax.f32 %v1362_v8, 0.0  ;;  %v1395_v10 = vmax.f32 %v1363_v36, 0.0 }
 0x335   : > { %v1212_v53 = vsub.f32 1.5, %v1211_v52 }
 0x336   : > { %v3063_v38 = vpop.eup %3062  ;;  %v1113_v48 = vadd.f32 1e-05, %v1097_v13 }
 0x337   : > { %v1213_v58 = vmul.f32 %v3061_v56, %v1212_v53  ;;  %v1219_v0 = vmul.f32 %v3063_v38, %v1112_v5  ;;  %vm1225_vm14 = vweird.f32 %v3063_v38  ;;  %v4655_v5 = vld [vmem:[#allocation25_spill] sm:$0xff] }
 0x338   : > { %3064 = vrsqrt.f32 %v1113_v48  ;;  %vm1226_vm0 = vmor %vm1224_vm15, %vm1225_vm14  ;;  %vm1234_vm2 = vweird.f32 %v1113_v48 }
 0x339   : > { %v1217_v42 = vsel %vm1216_vm13, %v3061_v56, %v1213_v58  ;;  %v1220_v2 = vmul.f32 %v3063_v38, %v1219_v0 }
 0x33a   : > { %v1296_v43 = vmul.f32 %v1217_v42, %v4652_v46  ;;  %v1297_v40 = vmul.f32 %v1217_v42, %v4653_v30 }
 0x33b   : > { %v1221_v18 = vmul.f32 0.5, %v1220_v2 }
 0x33c   : > { %v1076_v33 = vpop.xlane.xlu0 %1075  ;;  %v1330_v62 = vmul.f32 %v4103_v61, %v1296_v43  ;;  %v1331_v4 = vmul.f32 %v4108_v16, %v1297_v40 }
 0x33d   : > { %v1222_v19 = vsub.f32 1.5, %v1221_v18  ;;  %v1098_v26 = vmul.f32 0.0052083335, %v1076_v33 }
 0x33e   : > { %v3065_v22 = vpop.eup %3064  ;;  %v1364_v27 = vadd.f32 %v4114_v7, %v1330_v62  ;;  %v1365_v35 = vadd.f32 %v4117_v23, %v1331_v4 }
 0x33f   : > { %v1223_v3 = vmul.f32 %v3063_v38, %v1222_v19  ;;  %v1229_v37 = vmul.f32 %v3065_v22, %v1113_v48  ;;  %v1114_v17 = vadd.f32 1e-05, %v1098_v26  ;;  %vm1235_vm1 = vweird.f32 %v3065_v22 }
 0x340   : > { %v1396_v57 = vmax.f32 %v1364_v27, 0.0  ;;  %v1397_v29 = vmax.f32 %v1365_v35, 0.0  ;;  %vm1236_vm3 = vmor %vm1234_vm2, %vm1235_vm1 }
 0x341   : > { %v1227_v25 = vsel %vm1226_vm0, %v3063_v38, %v1223_v3  ;;  %v1230_v11 = vmul.f32 %v3065_v22, %v1229_v37  ;;  %3066 = vrsqrt.f32 %v1114_v17  ;;  %vm1244_vm5 = vweird.f32 %v1114_v17 }
 0x342   : > { %v1450_v28 = vpack.c.bf16 %v1396_v57, %v1394_v34  ;;  %v1451_v15 = vpack.c.bf16 %v1397_v29, %v1395_v10  ;;  %v1298_v1 = vmul.f32 %v1227_v25, %v4654_v54  ;;  %v1299_v9 = vmul.f32 %v1227_v25, %v4655_v5  ;;  %v4657_v34 = vld [vmem:[#allocation27_spill] sm:$0xff] }
 0x343   : > { %v1231_v44 = vmul.f32 0.5, %v1230_v11  ;;  %v1079_v20 = vpop.xlane.xlu1 %1078 }
 0x344   : > { %v1099_v14 = vmul.f32 0.0052083335, %v1079_v20  ;;  %1648 = vmatmul.bf16.gmra.mxu2 %v1450_v28  ;;  %1697 = vmatmul.bf16.gmra.mxu3 %v1451_v15  ;;  %v1332_v13 = vmul.f32 %v4103_v61, %v1298_v1  ;;  %v1333_v41 = vmul.f32 %v4108_v16, %v1299_v9 }
 0x345   : > { %v1232_v56 = vsub.f32 1.5, %v1231_v44  ;;  %1746 = vmatmul.bf16.gmra.mxu0 %v1450_v28  ;;  %1795 = vmatmul.bf16.gmra.mxu1 %v1451_v15 }
 0x346   : > { %v1115_v63 = vadd.f32 1e-05, %v1099_v14  ;;  %v1366_v49 = vadd.f32 %v4114_v7, %v1332_v13  ;;  %v1367_v2 = vadd.f32 %v4117_v23, %v1333_v41 }
 0x347   : > { %v3067_v55 = vpop.eup %3066  ;;  %v1233_v52 = vmul.f32 %v3065_v22, %v1232_v56 }
 0x348   : > { %v1239_v24 = vmul.f32 %v3067_v55, %v1114_v17  ;;  %3068 = vrsqrt.f32 %v1115_v63  ;;  %vm1245_vm4 = vweird.f32 %v3067_v55  ;;  %v1398_v62 = vmax.f32 %v1366_v49, 0.0 }
 0x349   : > { %v1237_v32 = vsel %vm1236_vm3, %v3065_v22, %v1233_v52  ;;  %vm1246_vm6 = vmor %vm1244_vm5, %vm1245_vm4  ;;  %v1399_v36 = vmax.f32 %v1367_v2, 0.0  ;;  %vm1254_vm8 = vweird.f32 %v1115_v63  ;;  %v4339_v9 = vpop.f32.mrf.mxu2  ;;  %v1776_v2 = vpop.f32.mrf.mxu1 }
 0x34a   : > { %v1240_v31 = vmul.f32 %v3067_v55, %v1239_v24  ;;  %v1300_v53 = vmul.f32 %v1237_v32, %v4656_v59  ;;  %v1301_v38 = vmul.f32 %v1237_v32, %v4123_v6  ;;  %v4343_v24 = vpop.f32.mrf.mxu0  ;;  %v1678_v49 = vpop.f32.mrf.mxu3 }
 0x34c   : > { %v1241_v58 = vmul.f32 0.5, %v1240_v31  ;;  %v1082_v0 = vpop.xlane.xlu2 %1081  ;;  %v1334_v47 = vmul.f32 %v4103_v61, %v1300_v53  ;;  %v1335_v42 = vmul.f32 %v4108_v16, %v1301_v38 }
 0x34d   : > { %v1100_v48 = vmul.f32 0.0052083335, %v1082_v0 }
 0x34e   : > { %v3069_v46 = vpop.eup %3068  ;;  %v1242_v43 = vsub.f32 1.5, %v1241_v58  ;;  %v1368_v30 = vadd.f32 %v4114_v7, %v1334_v47  ;;  %v1369_v6 = vadd.f32 %v4117_v23, %v1335_v42 }
 0x34f   : > { %v1249_v40 = vmul.f32 %v3069_v46, %v1115_v63  ;;  %v1116_v18 = vadd.f32 1e-05, %v1100_v48  ;;  %vm1255_vm7 = vweird.f32 %v3069_v46 }
 0x350   : > { %v1243_v33 = vmul.f32 %v3067_v55, %v1242_v43  ;;  %v1400_v8 = vmax.f32 %v1368_v30, 0.0  ;;  %v1401_v19 = vmax.f32 %v1369_v6, 0.0  ;;  %vm1256_vm9 = vmor %vm1254_vm8, %vm1255_vm7 }
 0x351   : > { %v1250_v4 = vmul.f32 %v3069_v46, %v1249_v40  ;;  %3070 = vrsqrt.f32 %v1116_v18  ;;  %vm1264_vm11 = vweird.f32 %v1116_v18  ;;  %v1631_v40 = vpop.f32.mrf.mxu2 }
 0x352   : > { %v1247_v26 = vsel %vm1246_vm6, %v3067_v55, %v1243_v33  ;;  %v1452_v22 = vpack.c.bf16 %v1400_v8, %v1398_v62  ;;  %v1453_v3 = vpack.c.bf16 %v1401_v19, %v1399_v36  ;;  %v1729_v6 = vpop.f32.mrf.mxu0 }
 0x353   : > { %v1251_v27 = vmul.f32 0.5, %v1250_v4  ;;  %v1085_v35 = vpop.xlane.xlu0 %1084  ;;  %v1302_v57 = vmul.f32 %v1247_v26, %v4657_v34  ;;  %v1303_v17 = vmul.f32 %v1247_v26, %v4158_v50 }
 0x354   : > { %v1101_v37 = vmul.f32 0.0052083335, %v1085_v35  ;;  %1653 = vmatmul.bf16.gmra.mxu2 %v1452_v22  ;;  %1702 = vmatmul.bf16.gmra.mxu3 %v1453_v3 }
 0x355   : > { %v1252_v10 = vsub.f32 1.5, %v1251_v27  ;;  %1751 = vmatmul.bf16.gmra.mxu0 %v1452_v22  ;;  %1800 = vmatmul.bf16.gmra.mxu1 %v1453_v3  ;;  %v1336_v15 = vmul.f32 %v4103_v61, %v1302_v57  ;;  %v1337_v20 = vmul.f32 %v4108_v16, %v1303_v17  ;;  %v1680_v22 = vpop.f32.mrf.mxu3  ;;  %v1778_v27 = vpop.f32.mrf.mxu1 }
 0x356   : > { %v1117_v29 = vadd.f32 1e-05, %v1101_v37 }
 0x357   : > { %v3071_v25 = vpop.eup %3070  ;;  %v1253_v11 = vmul.f32 %v3069_v46, %v1252_v10  ;;  %v1370_v5 = vadd.f32 %v4114_v7, %v1336_v15  ;;  %v1371_v55 = vadd.f32 %v4117_v23, %v1337_v20 }
 0x358   : > { %v1259_v28 = vmul.f32 %v3071_v25, %v1116_v18  ;;  %3072 = vrsqrt.f32 %v1117_v29  ;;  %vm1265_vm10 = vweird.f32 %v3071_v25  ;;  %vm1274_vm14 = vweird.f32 %v1117_v29 }
 0x359   : > { %v1257_v44 = vsel %vm1256_vm9, %v3069_v46, %v1253_v11  ;;  %v1402_v31 = vmax.f32 %v1370_v5, 0.0  ;;  %vm1266_vm12 = vmor %vm1264_vm11, %vm1265_vm10  ;;  %v1403_v38 = vmax.f32 %v1371_v55, 0.0  ;;  %v1634_v10 = vpop.f32.mrf.mxu2 }
 0x35a   : > { %v1260_v14 = vmul.f32 %v3071_v25, %v1259_v28  ;;  %v1304_v54 = vmul.f32 %v1257_v44, %v4188_v45  ;;  %v1305_v1 = vmul.f32 %v1257_v44, %v4191_v21 }
 0x35c   : > { %v1261_v56 = vmul.f32 0.5, %v1260_v14  ;;  %v1338_v50 = vmul.f32 %v4103_v61, %v1304_v54  ;;  %v1339_v63 = vmul.f32 %v4108_v16, %v1305_v1 }
 0x35d   : > { %v1683_v28 = vpop.f32.mrf.mxu3  ;;  %v1781_v44 = vpop.f32.mrf.mxu1 }
 0x35e   : > { %v3073_v52 = vpop.eup %3072  ;;  %v1262_v13 = vsub.f32 1.5, %v1261_v56  ;;  %v1372_v45 = vadd.f32 %v4114_v7, %v1338_v50  ;;  %v1373_v21 = vadd.f32 %v4117_v23, %v1339_v63 }
 0x35f   : > { %v1269_v32 = vmul.f32 %v3073_v52, %v1117_v29  ;;  %vm1275_vm13 = vweird.f32 %v3073_v52 }
 0x360   : > { %v1263_v41 = vmul.f32 %v3071_v25, %v1262_v13  ;;  %v1404_v59 = vmax.f32 %v1372_v45, 0.0  ;;  %v1405_v58 = vmax.f32 %v1373_v21, 0.0  ;;  %vm1276_vm15 = vmor %vm1274_vm14, %vm1275_vm13 }
 0x361   : > { %v1270_v53 = vmul.f32 %v3073_v52, %v1269_v32  ;;  %v1636_v1 = vpop.f32.mrf.mxu2 }
 0x362   : > { %v1267_v0 = vsel %vm1266_vm12, %v3071_v25, %v1263_v41  ;;  %v1454_v47 = vpack.c.bf16 %v1404_v59, %v1402_v31  ;;  %v1455_v42 = vpack.c.bf16 %v1405_v58, %v1403_v38 }
 0x363   : > { %v1271_v48 = vmul.f32 0.5, %v1270_v53  ;;  %v1306_v46 = vmul.f32 %v1267_v0, %v4225_v60  ;;  %v1307_v43 = vmul.f32 %v1267_v0, %v4228_v12 }
 0x364   : > { %1658 = vmatmul.bf16.gmra.mxu2 %v1454_v47  ;;  %1707 = vmatmul.bf16.gmra.mxu3 %v1455_v42 }
 0x365   : > { %v1272_v30 = vsub.f32 1.5, %v1271_v48  ;;  %1756 = vmatmul.bf16.gmra.mxu0 %v1454_v47  ;;  %1805 = vmatmul.bf16.gmra.mxu1 %v1455_v42  ;;  %v1340_v33 = vmul.f32 %v4103_v61, %v1306_v46  ;;  %v1341_v62 = vmul.f32 %v4108_v16, %v1307_v43  ;;  %v1685_v45 = vpop.f32.mrf.mxu3  ;;  %v1783_v32 = vpop.f32.mrf.mxu1 }
 0x367   : > { %v1273_v18 = vmul.f32 %v3073_v52, %v1272_v30  ;;  %v1374_v36 = vadd.f32 %v4114_v7, %v1340_v33  ;;  %v1375_v26 = vadd.f32 %v4117_v23, %v1341_v62 }
 0x369   : > { %v1277_v8 = vsel %vm1276_vm15, %v3073_v52, %v1273_v18  ;;  %v1406_v37 = vmax.f32 %v1374_v36, 0.0  ;;  %v1407_v57 = vmax.f32 %v1375_v26, 0.0 }
 0x36a   : > { %v1308_v4 = vmul.f32 %v1277_v8, %v4249_v51  ;;  %v1309_v60 = vmul.f32 %v1277_v8, %v4252_v39  ;;  %v1732_v39 = vpop.f32.mrf.mxu0 }
 0x36c   : > { %v1342_v12 = vmul.f32 %v4103_v61, %v1308_v4  ;;  %v1343_v19 = vmul.f32 %v4108_v16, %v1309_v60  ;;  %v3074_v16 = vld [vmem:[%s4565_s3] sm:$0x1f] }
 0x36d   : > { %v4362_v29 = vperm.slane %v3074_v16, 4  ;;  %v1688_v47 = vpop.f32.mrf.mxu3  ;;  %v1786_v48 = vpop.f32.mrf.mxu1 }
 0x36e   : > { %v1376_v35 = vadd.f32 %v4114_v7, %v1342_v12  ;;  %v1377_v3 = vadd.f32 %v4117_v23, %v1343_v19  ;;  %v3075_v7 = vld [vmem:[%s4565_s3 + $0x8] sm:$0x1f] }
 0x36f   : > { %v4367_v23 = vperm.slane %v3075_v7, 4  ;;  %v1632_v25 = vadd.f32 %v1631_v40, %v4362_v29  ;;  %v1630_v15 = vadd.f32 %v4339_v9, %v4362_v29  ;;  %v1639_v9 = vpop.f32.mrf.mxu2  ;;  %v1635_v53 = vadd.f32 %v1634_v10, %v4362_v29 }
 0x370   : > { %v1408_v34 = vmax.f32 %v1376_v35, 0.0  ;;  %v1409_v51 = vmax.f32 %v1377_v3, 0.0  ;;  %v1640_v12 = vadd.f32 %v1639_v9, %v4362_v29 }
 0x371   : > { %v1730_v11 = vadd.f32 %v1729_v6, %v4367_v23  ;;  %v1728_v20 = vadd.f32 %v4343_v24, %v4367_v23  ;;  %v1681_v14 = vadd.f32 %v1680_v22, %v1632_v25  ;;  %v1679_v56 = vadd.f32 %v1678_v49, %v1630_v15 }
 0x372   : > { %v1456_v17 = vpack.c.bf16 %v1408_v34, %v1406_v37  ;;  %v1457_v61 = vpack.c.bf16 %v1409_v51, %v1407_v57  ;;  %v1734_v50 = vpop.f32.mrf.mxu0  ;;  %v1637_v24 = vadd.f32 %v1636_v1, %v4362_v29  ;;  %v1733_v38 = vadd.f32 %v1732_v39, %v4367_v23 }
 0x373   : > { %v1779_v54 = vadd.f32 %v1778_v27, %v1730_v11  ;;  %v1777_v5 = vadd.f32 %v1776_v2, %v1728_v20  ;;  %v1818_v63 = vmax.f32 %v1681_v14, 0.0  ;;  %v1816_v52 = vmax.f32 %v1679_v56, 0.0 }
 0x374   : > { %1663 = vmatmul.bf16.gmra.mxu2 %v1456_v17  ;;  %1712 = vmatmul.bf16.gmra.mxu3 %v1457_v61  ;;  %v1735_v59 = vadd.f32 %v1734_v50, %v4367_v23  ;;  %v1686_v58 = vadd.f32 %v1685_v45, %v1637_v24  ;;  %v1684_v49 = vadd.f32 %v1683_v28, %v1635_v53 }
 0x375   : > { %1761 = vmatmul.bf16.gmra.mxu0 %v1456_v17  ;;  %1810 = vmatmul.bf16.gmra.mxu1 %v1457_v61  ;;  %v1819_v55 = vmax.f32 %v1779_v54, 0.0  ;;  %v1817_v13 = vmax.f32 %v1777_v5, 0.0  ;;  %v1848_v21 = vpack.c.bf16 %v1818_v63, %v1816_v52  ;;  %v1782_v42 = vadd.f32 %v1781_v44, %v1733_v38  ;;  %v1690_v62 = vpop.f32.mrf.mxu3  ;;  %v1788_v8 = vpop.f32.mrf.mxu1 }
 0x376   : > { %v1784_v0 = vadd.f32 %v1783_v32, %v1735_v59  ;;  %v1822_v2 = vmax.f32 %v1686_v58, 0.0  ;;  %v1820_v30 = vmax.f32 %v1684_v49, 0.0  ;;  %v1689_v35 = vadd.f32 %v1688_v47, %v1640_v12 }
 0x377   : > { %v1849_v41 = vpack.c.bf16 %v1819_v55, %v1817_v13  ;;  %v1641_v43 = vpop.f32.mrf.mxu2  ;;  %v1821_v18 = vmax.f32 %v1782_v42, 0.0 }
 0x378   : > { %v1823_v46 = vmax.f32 %v1784_v0, 0.0  ;;  %v1850_v6 = vpack.c.bf16 %v1822_v2, %v1820_v30  ;;  %v1642_v4 = vadd.f32 %v1641_v43, %v4362_v29  ;;  %v1824_v51 = vmax.f32 %v1689_v35, 0.0 }
 0x37a   : > { %v1737_v31 = vpop.f32.mrf.mxu0  ;;  %v1851_v33 = vpack.c.bf16 %v1823_v46, %v1821_v18  ;;  %v1691_v26 = vadd.f32 %v1690_v62, %v1642_v4 }
 0x37b   : > { %v1738_v36 = vadd.f32 %v1737_v31, %v4367_v23 }
 0x37c   : > { %v1826_v37 = vmax.f32 %v1691_v26, 0.0 }
 0x37d   : > { %v1787_v3 = vadd.f32 %v1786_v48, %v1738_v36  ;;  %v1693_v57 = vpop.f32.mrf.mxu3  ;;  %v1791_v10 = vpop.f32.mrf.mxu1 }
 0x37e   : > { %v1852_v17 = vpack.c.bf16 %v1826_v37, %v1824_v51 }
 0x37f   : > { %v1644_v19 = vpop.f32.mrf.mxu2  ;;  %v1825_v39 = vmax.f32 %v1787_v3, 0.0 }
 0x380   : > { %v1645_v28 = vadd.f32 %v1644_v19, %v4362_v29 }
 0x382   : > { %v1739_v40 = vpop.f32.mrf.mxu0  ;;  %v1694_v1 = vadd.f32 %v1693_v57, %v1645_v28 }
 0x383   : > { %v1740_v60 = vadd.f32 %v1739_v40, %v4367_v23 }
 0x384   : > { %1872 = vmatmul.bf16.vlgmr.msrb.gmra.mxu2 %v1848_v21  ;;  %1921 = vmatmul.bf16.vlgmr.msrb.gmra.mxu3 %v1849_v41  ;;  %v1828_v63 = vmax.f32 %v1694_v1, 0.0 }
 0x385   : > { %1970 = vmatmul.bf16.vlgmr.msra.gmra.mxu0 %v1848_v21  ;;  %2019 = vmatmul.bf16.vlgmr.msra.gmra.mxu1 %v1849_v41  ;;  %v1789_v27 = vadd.f32 %v1788_v8, %v1740_v60  ;;  %v1695_v44 = vpop.f32.mrf.mxu3  ;;  %v1793_v20 = vpop.f32.mrf.mxu1 }
 0x387   : > { %v1827_v34 = vmax.f32 %v1789_v27, 0.0  ;;  %v1646_v61 = vpop.f32.mrf.mxu2 }
 0x388   : > { %v1647_v25 = vadd.f32 %v1646_v61, %v4362_v29 }
 0x389   : > { %v1853_v16 = vpack.c.bf16 %v1827_v34, %v1825_v39 }
 0x38a   : > { %v1742_v22 = vpop.f32.mrf.mxu0  ;;  %v1696_v14 = vadd.f32 %v1695_v44, %v1647_v25 }
 0x38b   : > { %v1743_v15 = vadd.f32 %v1742_v22, %v4367_v23 }
 0x38c   : > { %v1830_v50 = vmax.f32 %v1696_v14, 0.0 }
 0x38d   : > { %v1792_v56 = vadd.f32 %v1791_v10, %v1743_v15 }
 0x38e   : > { %v1854_v52 = vpack.c.bf16 %v1830_v50, %v1828_v63 }
 0x38f   : > { %v1829_v55 = vmax.f32 %v1792_v56, 0.0 }
 0x392   : > { %v1744_v7 = vpop.f32.mrf.mxu0 }
 0x393   : > { %v1745_v11 = vadd.f32 %v1744_v7, %v4367_v23 }
 0x394   : > { %1877 = vmatmul.bf16.gmra.mxu2 %v1850_v6  ;;  %1926 = vmatmul.bf16.gmra.mxu3 %v1851_v33 }
 0x395   : > { %1975 = vmatmul.bf16.gmra.mxu0 %v1850_v6  ;;  %2024 = vmatmul.bf16.gmra.mxu1 %v1851_v33  ;;  %v1794_v54 = vadd.f32 %v1793_v20, %v1745_v11 }
 0x397   : > { %v1831_v5 = vmax.f32 %v1794_v54, 0.0 }
 0x399   : > { %v1855_v13 = vpack.c.bf16 %v1831_v5, %v1829_v55 }
 0x3a4   : > { %1882 = vmatmul.bf16.gmra.mxu2 %v1852_v17  ;;  %1931 = vmatmul.bf16.gmra.mxu3 %v1853_v16 }
 0x3a5   : > { %1980 = vmatmul.bf16.gmra.mxu0 %v1852_v17  ;;  %2029 = vmatmul.bf16.gmra.mxu1 %v1853_v16 }
 0x3b4   : > { %1887 = vmatmul.bf16.gmra.mxu2 %v1854_v52  ;;  %1936 = vmatmul.bf16.gmra.mxu3 %v1855_v13 }
 0x3b5   : > { %1985 = vmatmul.bf16.gmra.mxu0 %v1854_v52  ;;  %2034 = vmatmul.bf16.gmra.mxu1 %v1855_v13 }
 0x3c2   : > { %v1747_v45 = vpop.f32.mrf.mxu0  ;;  %v1796_v32 = vpop.f32.mrf.mxu1 }
 0x3c3   : > { %v1748_v21 = vadd.f32 %v1747_v45, %v4367_v23 }
 0x3c5   : > { %v1797_v59 = vadd.f32 %v1796_v32, %v1748_v21 }
 0x3c7   : > { %v1649_v41 = vpop.f32.mrf.mxu2  ;;  %v1698_v9 = vpop.f32.mrf.mxu3  ;;  %v1833_v0 = vmax.f32 %v1797_v59, 0.0 }
 0x3c8   : > { %v1650_v38 = vadd.f32 %v1649_v41, %v4362_v29 }
 0x3ca   : > { %v1749_v24 = vpop.f32.mrf.mxu0  ;;  %v1798_v31 = vpop.f32.mrf.mxu1  ;;  %v1699_v42 = vadd.f32 %v1698_v9, %v1650_v38 }
 0x3cb   : > { %v1750_v53 = vadd.f32 %v1749_v24, %v4367_v23 }
 0x3cc   : > { %v1832_v18 = vmax.f32 %v1699_v42, 0.0 }
 0x3cd   : > { %v1799_v58 = vadd.f32 %v1798_v31, %v1750_v53 }
 0x3cf   : > { %v1835_v47 = vmax.f32 %v1799_v58, 0.0  ;;  %v1651_v49 = vpop.f32.mrf.mxu2  ;;  %v1700_v48 = vpop.f32.mrf.mxu3 }
 0x3d0   : > { %v1652_v2 = vadd.f32 %v1651_v49, %v4362_v29 }
 0x3d1   : > { %v1857_v46 = vpack.c.bf16 %v1835_v47, %v1833_v0 }
 0x3d2   : > { %v1701_v43 = vadd.f32 %v1700_v48, %v1652_v2  ;;  %v1752_v30 = vpop.f32.mrf.mxu0  ;;  %v1801_v40 = vpop.f32.mrf.mxu1 }
 0x3d3   : > { %1941 = vmatmul.bf16.gmra.mxu3 %v1857_v46  ;;  %2039 = vmatmul.bf16.gmra.mxu1 %v1857_v46  ;;  %v1753_v62 = vadd.f32 %v1752_v30, %v4367_v23 }
 0x3d4   : > { %v1834_v6 = vmax.f32 %v1701_v43, 0.0 }
 0x3d5   : > { %v1802_v12 = vadd.f32 %v1801_v40, %v1753_v62 }
 0x3d6   : > { %v1856_v33 = vpack.c.bf16 %v1834_v6, %v1832_v18 }
 0x3d7   : > { %v1654_v8 = vpop.f32.mrf.mxu2  ;;  %v1703_v4 = vpop.f32.mrf.mxu3  ;;  %v1837_v27 = vmax.f32 %v1802_v12, 0.0 }
 0x3d8   : > { %1892 = vmatmul.bf16.gmra.mxu2 %v1856_v33  ;;  %1990 = vmatmul.bf16.gmra.mxu0 %v1856_v33  ;;  %v1655_v26 = vadd.f32 %v1654_v8, %v4362_v29 }
 0x3da   : > { %v1754_v60 = vpop.f32.mrf.mxu0  ;;  %v1803_v19 = vpop.f32.mrf.mxu1  ;;  %v1704_v37 = vadd.f32 %v1703_v4, %v1655_v26 }
 0x3db   : > { %v1755_v36 = vadd.f32 %v1754_v60, %v4367_v23 }
 0x3dc   : > { %v1836_v61 = vmax.f32 %v1704_v37, 0.0 }
 0x3dd   : > { %v1804_v22 = vadd.f32 %v1803_v19, %v1755_v36 }
 0x3df   : > { %v1839_v35 = vmax.f32 %v1804_v22, 0.0  ;;  %v1656_v3 = vpop.f32.mrf.mxu2  ;;  %v1705_v57 = vpop.f32.mrf.mxu3 }
 0x3e0   : > { %v1657_v34 = vadd.f32 %v1656_v3, %v4362_v29 }
 0x3e1   : > { %v1859_v51 = vpack.c.bf16 %v1839_v35, %v1837_v27 }
 0x3e2   : > { %v1706_v10 = vadd.f32 %v1705_v57, %v1657_v34  ;;  %v1757_v39 = vpop.f32.mrf.mxu0  ;;  %v1806_v17 = vpop.f32.mrf.mxu1 }
 0x3e3   : > { %1946 = vmatmul.bf16.gmra.mxu3 %v1859_v51  ;;  %2044 = vmatmul.bf16.gmra.mxu1 %v1859_v51  ;;  %v1758_v25 = vadd.f32 %v1757_v39, %v4367_v23 }
 0x3e4   : > { %v1838_v16 = vmax.f32 %v1706_v10, 0.0 }
 0x3e5   : > { %v1807_v44 = vadd.f32 %v1806_v17, %v1758_v25 }
 0x3e6   : > { %v1858_v7 = vpack.c.bf16 %v1838_v16, %v1836_v61 }
 0x3e7   : > { %v1659_v11 = vpop.f32.mrf.mxu2  ;;  %v1708_v28 = vpop.f32.mrf.mxu3  ;;  %v1841_v56 = vmax.f32 %v1807_v44, 0.0 }
 0x3e8   : > { %1897 = vmatmul.bf16.gmra.mxu2 %v1858_v7  ;;  %1995 = vmatmul.bf16.gmra.mxu0 %v1858_v7  ;;  %v1660_v54 = vadd.f32 %v1659_v11, %v4362_v29 }
 0x3ea   : > { %v1759_v15 = vpop.f32.mrf.mxu0  ;;  %v1808_v14 = vpop.f32.mrf.mxu1  ;;  %v1709_v63 = vadd.f32 %v1708_v28, %v1660_v54 }
 0x3eb   : > { %v1760_v20 = vadd.f32 %v1759_v15, %v4367_v23 }
 0x3ec   : > { %v1840_v41 = vmax.f32 %v1709_v63, 0.0 }
 0x3ed   : > { %v1809_v1 = vadd.f32 %v1808_v14, %v1760_v20 }
 0x3ef   : > { %v1843_v50 = vmax.f32 %v1809_v1, 0.0  ;;  %v1661_v5 = vpop.f32.mrf.mxu2  ;;  %v1710_v52 = vpop.f32.mrf.mxu3 }
 0x3f0   : > { %v1662_v55 = vadd.f32 %v1661_v5, %v4362_v29 }
 0x3f1   : > { %v1861_v13 = vpack.c.bf16 %v1843_v50, %v1841_v56 }
 0x3f2   : > { %v1711_v45 = vadd.f32 %v1710_v52, %v1662_v55  ;;  %v1762_v32 = vpop.f32.mrf.mxu0  ;;  %v1811_v21 = vpop.f32.mrf.mxu1 }
 0x3f3   : > { %1951 = vmatmul.bf16.gmra.mxu3 %v1861_v13  ;;  %2049 = vmatmul.bf16.gmra.mxu1 %v1861_v13  ;;  %v1763_v31 = vadd.f32 %v1762_v32, %v4367_v23 }
 0x3f4   : > { %v1842_v9 = vmax.f32 %v1711_v45, 0.0 }
 0x3f5   : > { %v1812_v58 = vadd.f32 %v1811_v21, %v1763_v31 }
 0x3f6   : > { %v1860_v24 = vpack.c.bf16 %v1842_v9, %v1840_v41 }
 0x3f7   : > { %v1664_v59 = vpop.f32.mrf.mxu2  ;;  %v1713_v53 = vpop.f32.mrf.mxu3  ;;  %v1845_v42 = vmax.f32 %v1812_v58, 0.0  ;;  %v3000_v58 = vld [vmem:[%s4567_s5 + $0x78] sm:$0xff] }
 0x3f8   : > { %1902 = vmatmul.bf16.gmra.mxu2 %v1860_v24  ;;  %2000 = vmatmul.bf16.gmra.mxu0 %v1860_v24  ;;  %v1665_v49 = vadd.f32 %v1664_v59, %v4362_v29 }
 0x3f9   : > { %2533 = vmatpush.bf16.msrb.mxu3 %v3000_v58 }
 0x3fa   : > { %v1764_v38 = vpop.f32.mrf.mxu0  ;;  %v1813_v47 = vpop.f32.mrf.mxu1  ;;  %v1714_v43 = vadd.f32 %v1713_v53, %v1665_v49 }
 0x3fb   : > { %v1765_v0 = vadd.f32 %v1764_v38, %v4367_v23  ;;  %v2992_v38 = vld [vmem:[%s4567_s5 + $0x38] sm:$0xff] }
 0x3fc   : > { %v1844_v8 = vmax.f32 %v1714_v43, 0.0  ;;  %2484 = vmatpush.bf16.msrb.mxu2 %v2992_v38 }
 0x3fd   : > { %v1814_v48 = vadd.f32 %v1813_v47, %v1765_v0 }
 0x3ff   : > { %v1847_v2 = vmax.f32 %v1814_v48, 0.0  ;;  %v1666_v46 = vpop.f32.mrf.mxu2  ;;  %v1715_v40 = vpop.f32.mrf.mxu3 }
 0x400   : > { %v1667_v30 = vadd.f32 %v1666_v46, %v4362_v29 }
 0x401   : > { %v1863_v18 = vpack.c.bf16 %v1847_v2, %v1845_v42 }
 0x402   : > { %v1716_v6 = vadd.f32 %v1715_v40, %v1667_v30  ;;  %v1971_v33 = vpop.f32.mrf.mxu0  ;;  %v2020_v62 = vpop.f32.mrf.mxu1 }
 0x403   : > { %1956 = vmatmul.bf16.gmra.mxu3 %v1863_v18  ;;  %2054 = vmatmul.bf16.gmra.mxu1 %v1863_v18  ;;  %v1972_v12 = vadd.f32 %v1971_v33, %v4367_v23 }
 0x404   : > { %v1846_v4 = vmax.f32 %v1716_v6, 0.0 }
 0x405   : > { %v2021_v22 = vadd.f32 %v2020_v62, %v1972_v12  ;;  %v2999_v12 = vld [vmem:[%s4567_s5 + $0x70] sm:$0xff] }
 0x406   : > { %v1862_v60 = vpack.c.bf16 %v1846_v4, %v1844_v8  ;;  %2534 = vmatpush.bf16.msrb.mxu3 %v2999_v12 }
 0x407   : > { %v1873_v36 = vpop.f32.mrf.mxu2  ;;  %v1922_v19 = vpop.f32.mrf.mxu3  ;;  %v2061_v34 = vmax.f32 %v2021_v22, 0.0 }
 0x408   : > { %1907 = vmatmul.bf16.gmra.mxu2 %v1862_v60  ;;  %2005 = vmatmul.bf16.gmra.mxu0 %v1862_v60  ;;  %v1874_v3 = vadd.f32 %v1873_v36, %v4362_v29  ;;  %v2991_v60 = vld [vmem:[%s4567_s5 + $0x30] sm:$0xff] }
 0x409   : > { %2485 = vmatpush.bf16.msrb.mxu2 %v2991_v60 }
 0x40a   : > { %v1973_v26 = vpop.f32.mrf.mxu0  ;;  %v2022_v35 = vpop.f32.mrf.mxu1  ;;  %v1923_v10 = vadd.f32 %v1922_v19, %v1874_v3 }
 0x40b   : > { %v1974_v27 = vadd.f32 %v1973_v26, %v4367_v23 }
 0x40c   : > { %v2060_v11 = vmax.f32 %v1923_v10, 0.0 }
 0x40d   : > { %v2023_v37 = vadd.f32 %v2022_v35, %v1974_v27 }
 0x40f   : > { %v2063_v57 = vmax.f32 %v2023_v37, 0.0  ;;  %v1875_v51 = vpop.f32.mrf.mxu2  ;;  %v1924_v17 = vpop.f32.mrf.mxu3 }
 0x410   : > { %v1876_v39 = vadd.f32 %v1875_v51, %v4362_v29 }
 0x411   : > { %v2093_v61 = vpack.c.bf16 %v2063_v57, %v2061_v34 }
 0x412   : > { %v1925_v16 = vadd.f32 %v1924_v17, %v1876_v39  ;;  %v1976_v7 = vpop.f32.mrf.mxu0  ;;  %v2025_v25 = vpop.f32.mrf.mxu1 }
 0x413   : > { %2165 = vmatmul.bf16.vlgmr.msra.gmra.mxu3 %v2093_v61  ;;  %2263 = vmatmul.bf16.vlgmr.msrb.gmra.mxu1 %v2093_v61  ;;  %v1977_v44 = vadd.f32 %v1976_v7, %v4367_v23 }
 0x414   : > { %v2062_v28 = vmax.f32 %v1925_v16, 0.0 }
 0x415   : > { %v2026_v1 = vadd.f32 %v2025_v25, %v1977_v44 }
 0x416   : > { %v2092_v15 = vpack.c.bf16 %v2062_v28, %v2060_v11 }
 0x417   : > { %v1878_v20 = vpop.f32.mrf.mxu2  ;;  %v1927_v14 = vpop.f32.mrf.mxu3  ;;  %v2065_v55 = vmax.f32 %v2026_v1, 0.0  ;;  %v2998_v1 = vld [vmem:[%s4567_s5 + $0x68] sm:$0xff] }
 0x418   : > { %2116 = vmatmul.bf16.vlgmr.msra.gmra.mxu2 %v2092_v15  ;;  %2214 = vmatmul.bf16.vlgmr.msrb.gmra.mxu0 %v2092_v15  ;;  %v1879_v5 = vadd.f32 %v1878_v20, %v4362_v29 }
 0x419   : > { %2535 = vmatpush.bf16.msrb.mxu3 %v2998_v1 }
 0x41a   : > { %v1978_v54 = vpop.f32.mrf.mxu0  ;;  %v2027_v50 = vpop.f32.mrf.mxu1  ;;  %v1928_v45 = vadd.f32 %v1927_v14, %v1879_v5 }
 0x41b   : > { %v1979_v56 = vadd.f32 %v1978_v54, %v4367_v23  ;;  %v2990_v54 = vld [vmem:[%s4567_s5 + $0x28] sm:$0xff] }
 0x41c   : > { %v2064_v59 = vmax.f32 %v1928_v45, 0.0  ;;  %2486 = vmatpush.bf16.msrb.mxu2 %v2990_v54 }
 0x41d   : > { %v2028_v63 = vadd.f32 %v2027_v50, %v1979_v56 }
 0x41f   : > { %v2067_v52 = vmax.f32 %v2028_v63, 0.0  ;;  %v1880_v13 = vpop.f32.mrf.mxu2  ;;  %v1929_v21 = vpop.f32.mrf.mxu3 }
 0x420   : > { %v1881_v32 = vadd.f32 %v1880_v13, %v4362_v29 }
 0x421   : > { %v2095_v41 = vpack.c.bf16 %v2067_v52, %v2065_v55  ;;  %v2989_v55 = vld [vmem:[%s4567_s5 + $0x20] sm:$0xff] }
 0x422   : > { %v1930_v9 = vadd.f32 %v1929_v21, %v1881_v32  ;;  %v1981_v24 = vpop.f32.mrf.mxu0  ;;  %v2030_v31 = vpop.f32.mrf.mxu1  ;;  %v2997_v52 = vld [vmem:[%s4567_s5 + $0x60] sm:$0xff]  ;;  %2487 = vmatpush.bf16.msrb.mxu2 %v2989_v55  ;;  %v2994_v55 = vld [vmem:[%s4567_s5 + $0x48] sm:$0xff] }
 0x423   : > { %2170 = vmatmul.bf16.gmra.mxu3 %v2095_v41  ;;  %2268 = vmatmul.bf16.gmra.mxu1 %v2095_v41  ;;  %v1982_v47 = vadd.f32 %v1981_v24, %v4367_v23 }
 0x424   : > { %v2066_v53 = vmax.f32 %v1930_v9, 0.0  ;;  %2536 = vmatpush.bf16.msrb.mxu3 %v2997_v52 }
 0x425   : > { %v2031_v2 = vadd.f32 %v2030_v31, %v1982_v47 }
 0x426   : > { %v2094_v0 = vpack.c.bf16 %v2066_v53, %v2064_v59 }
 0x427   : > { %v1883_v49 = vpop.f32.mrf.mxu2  ;;  %v1932_v48 = vpop.f32.mrf.mxu3  ;;  %v2069_v18 = vmax.f32 %v2031_v2, 0.0 }
 0x428   : > { %2121 = vmatmul.bf16.gmra.mxu2 %v2094_v0  ;;  %2219 = vmatmul.bf16.gmra.mxu0 %v2094_v0  ;;  %v1884_v30 = vadd.f32 %v1883_v49, %v4362_v29  ;;  %v2988_v49 = vld [vmem:[%s4567_s5 + $0x18] sm:$0xff] }
 0x429   : > { %2488 = vmatpush.bf16.msrb.mxu2 %v2988_v49 }
 0x42a   : > { %v1983_v42 = vpop.f32.mrf.mxu0  ;;  %v2032_v43 = vpop.f32.mrf.mxu1  ;;  %v1933_v62 = vadd.f32 %v1932_v48, %v1884_v30  ;;  %v2996_v48 = vld [vmem:[%s4567_s5 + $0x58] sm:$0xff] }
 0x42b   : > { %v1984_v46 = vadd.f32 %v1983_v42, %v4367_v23  ;;  %2537 = vmatpush.bf16.msrb.mxu3 %v2996_v48  ;;  %v2985_v48 = vld [vmem:[%s4567_s5] sm:$0xff] }
 0x42c   : > { %v2068_v27 = vmax.f32 %v1933_v62, 0.0 }
 0x42d   : > { %v2033_v40 = vadd.f32 %v2032_v43, %v1984_v46 }
 0x42f   : > { %v2071_v6 = vmax.f32 %v2033_v40, 0.0  ;;  %v1885_v33 = vpop.f32.mrf.mxu2  ;;  %v1934_v4 = vpop.f32.mrf.mxu3 }
 0x430   : > { %v1886_v8 = vadd.f32 %v1885_v33, %v4362_v29 }
 0x431   : > { %v2097_v36 = vpack.c.bf16 %v2071_v6, %v2069_v18 }
 0x432   : > { %v1935_v19 = vadd.f32 %v1934_v4, %v1886_v8  ;;  %v1986_v26 = vpop.f32.mrf.mxu0  ;;  %v2035_v22 = vpop.f32.mrf.mxu1 }
 0x433   : > { %2175 = vmatmul.bf16.gmra.mxu3 %v2097_v36  ;;  %2273 = vmatmul.bf16.gmra.mxu1 %v2097_v36  ;;  %v1987_v37 = vadd.f32 %v1986_v26, %v4367_v23 }
 0x434   : > { %v2070_v35 = vmax.f32 %v1935_v19, 0.0 }
 0x435   : > { %v2036_v10 = vadd.f32 %v2035_v22, %v1987_v37 }
 0x436   : > { %v2096_v3 = vpack.c.bf16 %v2070_v35, %v2068_v27 }
 0x437   : > { %v1888_v34 = vpop.f32.mrf.mxu2  ;;  %v1937_v57 = vpop.f32.mrf.mxu3  ;;  %v2073_v7 = vmax.f32 %v2036_v10, 0.0 }
 0x438   : > { %2126 = vmatmul.bf16.gmra.mxu2 %v2096_v3  ;;  %2224 = vmatmul.bf16.gmra.mxu0 %v2096_v3  ;;  %v1889_v17 = vadd.f32 %v1888_v34, %v4362_v29  ;;  %v2987_v34 = vld [vmem:[%s4567_s5 + $0x10] sm:$0xff] }
 0x439   : > { %2489 = vmatpush.bf16.msrb.mxu2 %v2987_v34 }
 0x43a   : > { %v1988_v51 = vpop.f32.mrf.mxu0  ;;  %v2037_v61 = vpop.f32.mrf.mxu1  ;;  %v1938_v28 = vadd.f32 %v1937_v57, %v1889_v17  ;;  %v2995_v57 = vld [vmem:[%s4567_s5 + $0x50] sm:$0xff] }
 0x43b   : > { %v1989_v39 = vadd.f32 %v1988_v51, %v4367_v23  ;;  %2538 = vmatpush.bf16.msrb.mxu3 %v2995_v57 }
 0x43c   : > { %v2072_v56 = vmax.f32 %v1938_v28, 0.0 }
 0x43d   : > { %v2038_v16 = vadd.f32 %v2037_v61, %v1989_v39 }
 0x43f   : > { %v2075_v25 = vmax.f32 %v2038_v16, 0.0  ;;  %v1890_v11 = vpop.f32.mrf.mxu2  ;;  %v1939_v44 = vpop.f32.mrf.mxu3  ;;  %2539 = vmatpush.bf16.msrb.mxu3 %v2994_v55 }
 0x440   : > { %v1891_v15 = vadd.f32 %v1890_v11, %v4362_v29 }
 0x441   : > { %v2099_v20 = vpack.c.bf16 %v2075_v25, %v2073_v7 }
 0x442   : > { %v1940_v14 = vadd.f32 %v1939_v44, %v1891_v15 }
 0x443   : > { %2180 = vmatmul.bf16.gmra.mxu3 %v2099_v20  ;;  %2278 = vmatmul.bf16.gmra.mxu1 %v2099_v20 }
 0x444   : > { %v2074_v50 = vmax.f32 %v1940_v14, 0.0 }
 0x446   : > { %v2098_v5 = vpack.c.bf16 %v2074_v50, %v2072_v56 }
 0x448   : > { %2131 = vmatmul.bf16.gmra.mxu2 %v2098_v5  ;;  %2229 = vmatmul.bf16.gmra.mxu0 %v2098_v5 }
 0x450   : > { %v2040_v63 = vpop.f32.mrf.mxu1 }
 0x455   : > { %v1991_v13 = vpop.f32.mrf.mxu0 }
 0x456   : > { %v1942_v45 = vpop.f32.mrf.mxu3  ;;  %v1992_v21 = vadd.f32 %v1991_v13, %v4367_v23 }
 0x458   : > { %v2042_v32 = vpop.f32.mrf.mxu1  ;;  %v2041_v24 = vadd.f32 %v2040_v63, %v1992_v21 }
 0x45a   : > { %v2077_v0 = vmax.f32 %v2041_v24, 0.0  ;;  %v2993_v24 = vld [vmem:[%s4567_s5 + $0x40] sm:$0xff] }
 0x45b   : > { %v1893_v41 = vpop.f32.mrf.mxu2  ;;  %2540 = vmatpush.bf16.msrb.mxu3 %v2993_v24 }
 0x45c   : > { %v1894_v53 = vadd.f32 %v1893_v41, %v4362_v29 }
 0x45d   : > { %v1993_v9 = vpop.f32.mrf.mxu0 }
 0x45e   : > { %v1944_v31 = vpop.f32.mrf.mxu3  ;;  %v1994_v59 = vadd.f32 %v1993_v9, %v4367_v23  ;;  %v1943_v2 = vadd.f32 %v1942_v45, %v1894_v53  ;;  %v2986_v9 = vld [vmem:[%s4567_s5 + $0x8] sm:$0xff] }
 0x45f   : > { %2490 = vmatpush.bf16.msrb.mxu2 %v2986_v9 }
 0x460   : > { %v2043_v38 = vadd.f32 %v2042_v32, %v1994_v59  ;;  %v2045_v58 = vpop.f32.mrf.mxu1  ;;  %v2076_v6 = vmax.f32 %v1943_v2, 0.0 }
 0x462   : > { %v2079_v47 = vmax.f32 %v2043_v38, 0.0 }
 0x463   : > { %v1895_v42 = vpop.f32.mrf.mxu2  ;;  %2491 = vmatpush.bf16.msrb.mxu2 %v2985_v48 }
 0x464   : > { %v1896_v46 = vadd.f32 %v1895_v42, %v4362_v29  ;;  %v2101_v43 = vpack.c.bf16 %v2079_v47, %v2077_v0 }
 0x465   : > { %v1996_v30 = vpop.f32.mrf.mxu0 }
 0x466   : > { %v1945_v40 = vadd.f32 %v1944_v31, %v1896_v46  ;;  %v1947_v18 = vpop.f32.mrf.mxu3  ;;  %2185 = vmatmul.bf16.gmra.mxu3 %v2101_v43  ;;  %2283 = vmatmul.bf16.gmra.mxu1 %v2101_v43  ;;  %v1997_v8 = vadd.f32 %v1996_v30, %v4367_v23 }
 0x468   : > { %v2078_v33 = vmax.f32 %v1945_v40, 0.0  ;;  %v2047_v62 = vpop.f32.mrf.mxu1  ;;  %v2046_v36 = vadd.f32 %v2045_v58, %v1997_v8 }
 0x46a   : > { %v2100_v4 = vpack.c.bf16 %v2078_v33, %v2076_v6  ;;  %v2081_v3 = vmax.f32 %v2046_v36, 0.0 }
 0x46b   : > { %v1898_v60 = vpop.f32.mrf.mxu2 }
 0x46c   : > { %2136 = vmatmul.bf16.gmra.mxu2 %v2100_v4  ;;  %2234 = vmatmul.bf16.gmra.mxu0 %v2100_v4  ;;  %v1899_v22 = vadd.f32 %v1898_v60, %v4362_v29 }
 0x46d   : > { %v1998_v12 = vpop.f32.mrf.mxu0 }
 0x46e   : > { %v1949_v19 = vpop.f32.mrf.mxu3  ;;  %v1999_v26 = vadd.f32 %v1998_v12, %v4367_v23  ;;  %v1948_v10 = vadd.f32 %v1947_v18, %v1899_v22 }
 0x470   : > { %v2048_v27 = vadd.f32 %v2047_v62, %v1999_v26  ;;  %v2050_v35 = vpop.f32.mrf.mxu1  ;;  %v2080_v25 = vmax.f32 %v1948_v10, 0.0 }
 0x472   : > { %v2083_v37 = vmax.f32 %v2048_v27, 0.0 }
 0x473   : > { %v1900_v51 = vpop.f32.mrf.mxu2 }
 0x474   : > { %v1901_v39 = vadd.f32 %v1900_v51, %v4362_v29  ;;  %v2103_v17 = vpack.c.bf16 %v2083_v37, %v2081_v3 }
 0x475   : > { %v2001_v61 = vpop.f32.mrf.mxu0 }
 0x476   : > { %v1950_v16 = vadd.f32 %v1949_v19, %v1901_v39  ;;  %v1952_v7 = vpop.f32.mrf.mxu3  ;;  %2190 = vmatmul.bf16.gmra.mxu3 %v2103_v17  ;;  %2288 = vmatmul.bf16.gmra.mxu1 %v2103_v17  ;;  %v2002_v15 = vadd.f32 %v2001_v61, %v4367_v23 }
 0x478   : > { %v2082_v11 = vmax.f32 %v1950_v16, 0.0  ;;  %v2052_v28 = vpop.f32.mrf.mxu1  ;;  %v2051_v54 = vadd.f32 %v2050_v35, %v2002_v15 }
 0x47a   : > { %v2102_v44 = vpack.c.bf16 %v2082_v11, %v2080_v25  ;;  %v2085_v52 = vmax.f32 %v2051_v54, 0.0 }
 0x47b   : > { %v1903_v20 = vpop.f32.mrf.mxu2 }
 0x47c   : > { %2141 = vmatmul.bf16.gmra.mxu2 %v2102_v44  ;;  %2239 = vmatmul.bf16.gmra.mxu0 %v2102_v44  ;;  %v1904_v50 = vadd.f32 %v1903_v20, %v4362_v29 }
 0x47d   : > { %v2003_v14 = vpop.f32.mrf.mxu0 }
 0x47e   : > { %v1954_v1 = vpop.f32.mrf.mxu3  ;;  %v2004_v56 = vadd.f32 %v2003_v14, %v4367_v23  ;;  %v1953_v32 = vadd.f32 %v1952_v7, %v1904_v50 }
 0x480   : > { %v2053_v5 = vadd.f32 %v2052_v28, %v2004_v56  ;;  %v2055_v63 = vpop.f32.mrf.mxu1  ;;  %v2084_v38 = vmax.f32 %v1953_v32, 0.0 }
 0x482   : > { %v2087_v13 = vmax.f32 %v2053_v5, 0.0 }
 0x483   : > { %v1905_v45 = vpop.f32.mrf.mxu2 }
 0x484   : > { %v1906_v21 = vadd.f32 %v1905_v45, %v4362_v29  ;;  %v2105_v41 = vpack.c.bf16 %v2087_v13, %v2085_v52 }
 0x485   : > { %v2006_v31 = vpop.f32.mrf.mxu0 }
 0x486   : > { %v1955_v59 = vadd.f32 %v1954_v1, %v1906_v21  ;;  %v1957_v53 = vpop.f32.mrf.mxu3  ;;  %2195 = vmatmul.bf16.gmra.mxu3 %v2105_v41  ;;  %2293 = vmatmul.bf16.gmra.mxu1 %v2105_v41  ;;  %v2007_v47 = vadd.f32 %v2006_v31, %v4367_v23 }
 0x488   : > { %v2086_v58 = vmax.f32 %v1955_v59, 0.0  ;;  %v2057_v0 = vpop.f32.mrf.mxu1  ;;  %v2056_v46 = vadd.f32 %v2055_v63, %v2007_v47 }
 0x48a   : > { %v2104_v49 = vpack.c.bf16 %v2086_v58, %v2084_v38  ;;  %v2089_v33 = vmax.f32 %v2056_v46, 0.0 }
 0x48b   : > { %v1908_v42 = vpop.f32.mrf.mxu2 }
 0x48c   : > { %2146 = vmatmul.bf16.gmra.mxu2 %v2104_v49  ;;  %2244 = vmatmul.bf16.gmra.mxu0 %v2104_v49  ;;  %v1909_v40 = vadd.f32 %v1908_v42, %v4362_v29 }
 0x48d   : > { %v2008_v2 = vpop.f32.mrf.mxu0 }
 0x48e   : > { %v1959_v43 = vpop.f32.mrf.mxu3  ;;  %v2009_v30 = vadd.f32 %v2008_v2, %v4367_v23  ;;  %v1958_v4 = vadd.f32 %v1957_v53, %v1909_v40 }
 0x490   : > { %v2058_v18 = vadd.f32 %v2057_v0, %v2009_v30  ;;  %v2264_v6 = vpop.f32.mrf.mxu1  ;;  %v2088_v22 = vmax.f32 %v1958_v4, 0.0 }
 0x492   : > { %v2091_v62 = vmax.f32 %v2058_v18, 0.0 }
 0x493   : > { %v1910_v8 = vpop.f32.mrf.mxu2 }
 0x494   : > { %v1911_v60 = vadd.f32 %v1910_v8, %v4362_v29  ;;  %v2107_v12 = vpack.c.bf16 %v2091_v62, %v2089_v33 }
 0x495   : > { %v2215_v36 = vpop.f32.mrf.mxu0 }
 0x496   : > { %v1960_v19 = vadd.f32 %v1959_v43, %v1911_v60  ;;  %v2166_v26 = vpop.f32.mrf.mxu3  ;;  %2200 = vmatmul.bf16.gmra.mxu3 %v2107_v12  ;;  %2298 = vmatmul.bf16.gmra.mxu1 %v2107_v12  ;;  %v2216_v3 = vadd.f32 %v2215_v36, %v4367_v23 }
 0x498   : > { %v2090_v27 = vmax.f32 %v1960_v19, 0.0  ;;  %v2266_v35 = vpop.f32.mrf.mxu1  ;;  %v2265_v51 = vadd.f32 %v2264_v6, %v2216_v3 }
 0x49a   : > { %v2106_v37 = vpack.c.bf16 %v2090_v27, %v2088_v22  ;;  %v2305_v7 = vmax.f32 %v2265_v51, 0.0 }
 0x49b   : > { %v2117_v34 = vpop.f32.mrf.mxu2 }
 0x49c   : > { %2151 = vmatmul.bf16.gmra.mxu2 %v2106_v37  ;;  %2249 = vmatmul.bf16.gmra.mxu0 %v2106_v37  ;;  %v2118_v17 = vadd.f32 %v2117_v34, %v4362_v29 }
 0x49d   : > { %v2217_v57 = vpop.f32.mrf.mxu0 }
 0x49e   : > { %v2168_v10 = vpop.f32.mrf.mxu3  ;;  %v2218_v39 = vadd.f32 %v2217_v57, %v4367_v23  ;;  %v2167_v28 = vadd.f32 %v2166_v26, %v2118_v17 }
 0x4a0   : > { %v2267_v61 = vadd.f32 %v2266_v35, %v2218_v39  ;;  %v2269_v16 = vpop.f32.mrf.mxu1  ;;  %v2304_v1 = vmax.f32 %v2167_v28, 0.0 }
 0x4a2   : > { %v2307_v25 = vmax.f32 %v2267_v61, 0.0 }
 0x4a3   : > { %v2119_v11 = vpop.f32.mrf.mxu2 }
 0x4a4   : > { %v2337_v15 = vpack.c.bf16 %v2307_v25, %v2305_v7  ;;  %v2120_v44 = vadd.f32 %v2119_v11, %v4362_v29 }
 0x4a5   : > { %v2220_v20 = vpop.f32.mrf.mxu0 }
 0x4a6   : > { %v2169_v14 = vadd.f32 %v2168_v10, %v2120_v44  ;;  %v2171_v54 = vpop.f32.mrf.mxu3  ;;  %2541 = vmatmul.bf16.vlgmr.msrb.gmra.mxu3 %v2337_v15  ;;  %v2221_v63 = vadd.f32 %v2220_v20, %v4367_v23 }
 0x4a8   : > { %v2306_v56 = vmax.f32 %v2169_v14, 0.0  ;;  %v2271_v50 = vpop.f32.mrf.mxu1  ;;  %v2270_v13 = vadd.f32 %v2269_v16, %v2221_v63 }
 0x4aa   : > { %v2336_v5 = vpack.c.bf16 %v2306_v56, %v2304_v1  ;;  %v2309_v24 = vmax.f32 %v2270_v13, 0.0 }
 0x4ab   : > { %v2122_v55 = vpop.f32.mrf.mxu2 }
 0x4ac   : > { %2492 = vmatmul.bf16.vlgmr.msrb.gmra.mxu2 %v2336_v5  ;;  %v2123_v21 = vadd.f32 %v2122_v55, %v4362_v29 }
 0x4ad   : > { %v2222_v52 = vpop.f32.mrf.mxu0 }
 0x4ae   : > { %v2173_v45 = vpop.f32.mrf.mxu3  ;;  %v2223_v32 = vadd.f32 %v2222_v52, %v4367_v23  ;;  %v2172_v53 = vadd.f32 %v2171_v54, %v2123_v21 }
 0x4b0   : > { %v2272_v41 = vadd.f32 %v2271_v50, %v2223_v32  ;;  %v2274_v9 = vpop.f32.mrf.mxu1  ;;  %v2308_v48 = vmax.f32 %v2172_v53, 0.0 }
 0x4b2   : > { %v2311_v31 = vmax.f32 %v2272_v41, 0.0 }
 0x4b3   : > { %v2124_v59 = vpop.f32.mrf.mxu2 }
 0x4b4   : > { %v2125_v38 = vadd.f32 %v2124_v59, %v4362_v29  ;;  %v2339_v58 = vpack.c.bf16 %v2311_v31, %v2309_v24 }
 0x4b5   : > { %v2225_v0 = vpop.f32.mrf.mxu0 }
 0x4b6   : > { %v2174_v47 = vadd.f32 %v2173_v45, %v2125_v38  ;;  %2546 = vmatmul.bf16.gmra.mxu3 %v2339_v58  ;;  %v2176_v49 = vpop.f32.mrf.mxu3  ;;  %v2226_v2 = vadd.f32 %v2225_v0, %v4367_v23 }
 0x4b8   : > { %v2310_v42 = vmax.f32 %v2174_v47, 0.0  ;;  %v2276_v43 = vpop.f32.mrf.mxu1  ;;  %v2275_v18 = vadd.f32 %v2274_v9, %v2226_v2 }
 0x4ba   : > { %v2338_v46 = vpack.c.bf16 %v2310_v42, %v2308_v48  ;;  %v2313_v4 = vmax.f32 %v2275_v18, 0.0 }
 0x4bb   : > { %v2127_v30 = vpop.f32.mrf.mxu2 }
 0x4bc   : > { %2497 = vmatmul.bf16.gmra.mxu2 %v2338_v46  ;;  %v2128_v33 = vadd.f32 %v2127_v30, %v4362_v29 }
 0x4bd   : > { %v2227_v40 = vpop.f32.mrf.mxu0 }
 0x4be   : > { %v2228_v6 = vadd.f32 %v2227_v40, %v4367_v23  ;;  %v2178_v8 = vpop.f32.mrf.mxu3  ;;  %v2177_v36 = vadd.f32 %v2176_v49, %v2128_v33 }
 0x4c0   : > { %v2277_v62 = vadd.f32 %v2276_v43, %v2228_v6  ;;  %v2279_v22 = vpop.f32.mrf.mxu1  ;;  %v2312_v3 = vmax.f32 %v2177_v36, 0.0 }
 0x4c2   : > { %v2315_v60 = vmax.f32 %v2277_v62, 0.0 }
 0x4c3   : > { %v2129_v12 = vpop.f32.mrf.mxu2 }
 0x4c4   : > { %v2130_v19 = vadd.f32 %v2129_v12, %v4362_v29  ;;  %v2341_v26 = vpack.c.bf16 %v2315_v60, %v2313_v4 }
 0x4c5   : > { %v2230_v27 = vpop.f32.mrf.mxu0 }
 0x4c6   : > { %v2179_v35 = vadd.f32 %v2178_v8, %v2130_v19  ;;  %2551 = vmatmul.bf16.gmra.mxu3 %v2341_v26  ;;  %v2231_v34 = vadd.f32 %v2230_v27, %v4367_v23  ;;  %v2181_v51 = vpop.f32.mrf.mxu3 }
 0x4c8   : > { %v2314_v37 = vmax.f32 %v2179_v35, 0.0  ;;  %v2280_v17 = vadd.f32 %v2279_v22, %v2231_v34  ;;  %v2281_v16 = vpop.f32.mrf.mxu1 }
 0x4ca   : > { %v2340_v57 = vpack.c.bf16 %v2314_v37, %v2312_v3  ;;  %v2317_v11 = vmax.f32 %v2280_v17, 0.0 }
 0x4cb   : > { %v2132_v10 = vpop.f32.mrf.mxu2 }
 0x4cc   : > { %2502 = vmatmul.bf16.gmra.mxu2 %v2340_v57  ;;  %v2133_v7 = vadd.f32 %v2132_v10, %v4362_v29 }
 0x4cd   : > { %v2232_v39 = vpop.f32.mrf.mxu0 }
 0x4ce   : > { %v2233_v61 = vadd.f32 %v2232_v39, %v4367_v23  ;;  %v2182_v44 = vadd.f32 %v2181_v51, %v2133_v7  ;;  %v2183_v54 = vpop.f32.mrf.mxu3 }
 0x4d0   : > { %v2282_v25 = vadd.f32 %v2281_v16, %v2233_v61  ;;  %v2316_v56 = vmax.f32 %v2182_v44, 0.0 }
 0x4d2   : > { %v2319_v28 = vmax.f32 %v2282_v25, 0.0 }
 0x4d3   : > { %v2134_v15 = vpop.f32.mrf.mxu2 }
 0x4d4   : > { %v2135_v20 = vadd.f32 %v2134_v15, %v4362_v29  ;;  %v2343_v14 = vpack.c.bf16 %v2319_v28, %v2317_v11 }
 0x4d6   : > { %v2184_v1 = vadd.f32 %v2183_v54, %v2135_v20  ;;  %2556 = vmatmul.bf16.gmra.mxu3 %v2343_v14 }
 0x4d8   : > { %v2318_v50 = vmax.f32 %v2184_v1, 0.0 }
 0x4da   : > { %v2342_v5 = vpack.c.bf16 %v2318_v50, %v2316_v56 }
 0x4dc   : > { %2507 = vmatmul.bf16.gmra.mxu2 %v2342_v5 }
 0x4e3   : > { %v2284_v63 = vpop.f32.mrf.mxu1 }
 0x4e9   : > { %v2186_v55 = vpop.f32.mrf.mxu3  ;;  %v2235_v52 = vpop.f32.mrf.mxu0 }
 0x4ea   : > { %v2236_v45 = vadd.f32 %v2235_v52, %v4367_v23 }
 0x4eb   : > { %v2286_v13 = vpop.f32.mrf.mxu1 }
 0x4ec   : > { %v2285_v9 = vadd.f32 %v2284_v63, %v2236_v45 }
 0x4ee   : > { %v2321_v38 = vmax.f32 %v2285_v9, 0.0 }
 0x4ef   : > { %v2137_v32 = vpop.f32.mrf.mxu2 }
 0x4f0   : > { %v2138_v59 = vadd.f32 %v2137_v32, %v4362_v29 }
 0x4f1   : > { %v2188_v21 = vpop.f32.mrf.mxu3  ;;  %v2237_v41 = vpop.f32.mrf.mxu0 }
 0x4f2   : > { %v2238_v24 = vadd.f32 %v2237_v41, %v4367_v23  ;;  %v2187_v47 = vadd.f32 %v2186_v55, %v2138_v59 }
 0x4f3   : > { %v2289_v31 = vpop.f32.mrf.mxu1 }
 0x4f4   : > { %v2287_v53 = vadd.f32 %v2286_v13, %v2238_v24  ;;  %v2320_v30 = vmax.f32 %v2187_v47, 0.0 }
 0x4f6   : > { %v2323_v58 = vmax.f32 %v2287_v53, 0.0 }
 0x4f7   : > { %v2139_v0 = vpop.f32.mrf.mxu2 }
 0x4f8   : > { %v2140_v49 = vadd.f32 %v2139_v0, %v4362_v29  ;;  %v2345_v48 = vpack.c.bf16 %v2323_v58, %v2321_v38 }
 0x4f9   : > { %v2191_v42 = vpop.f32.mrf.mxu3  ;;  %v2240_v2 = vpop.f32.mrf.mxu0 }
 0x4fa   : > { %v2189_v46 = vadd.f32 %v2188_v21, %v2140_v49  ;;  %2561 = vmatmul.bf16.gmra.mxu3 %v2345_v48  ;;  %v2241_v18 = vadd.f32 %v2240_v2, %v4367_v23 }
 0x4fb   : > { %v2291_v43 = vpop.f32.mrf.mxu1 }
 0x4fc   : > { %v2322_v40 = vmax.f32 %v2189_v46, 0.0  ;;  %v2290_v4 = vadd.f32 %v2289_v31, %v2241_v18 }
 0x4fe   : > { %v2344_v6 = vpack.c.bf16 %v2322_v40, %v2320_v30  ;;  %v2325_v26 = vmax.f32 %v2290_v4, 0.0 }
 0x4ff   : > { %v2142_v33 = vpop.f32.mrf.mxu2 }
 0x500   : > { %2512 = vmatmul.bf16.gmra.mxu2 %v2344_v6  ;;  %v2143_v12 = vadd.f32 %v2142_v33, %v4362_v29 }
 0x501   : > { %v2193_v62 = vpop.f32.mrf.mxu3  ;;  %v2242_v8 = vpop.f32.mrf.mxu0 }
 0x502   : > { %v2243_v60 = vadd.f32 %v2242_v8, %v4367_v23  ;;  %v2192_v35 = vadd.f32 %v2191_v42, %v2143_v12 }
 0x503   : > { %v2294_v19 = vpop.f32.mrf.mxu1 }
 0x504   : > { %v2292_v36 = vadd.f32 %v2291_v43, %v2243_v60  ;;  %v2324_v10 = vmax.f32 %v2192_v35, 0.0 }
 0x506   : > { %v2327_v22 = vmax.f32 %v2292_v36, 0.0 }
 0x507   : > { %v2144_v27 = vpop.f32.mrf.mxu2 }
 0x508   : > { %v2145_v3 = vadd.f32 %v2144_v27, %v4362_v29  ;;  %v2347_v37 = vpack.c.bf16 %v2327_v22, %v2325_v26 }
 0x509   : > { %v2196_v34 = vpop.f32.mrf.mxu3  ;;  %v2245_v57 = vpop.f32.mrf.mxu0 }
 0x50a   : > { %v2194_v51 = vadd.f32 %v2193_v62, %v2145_v3  ;;  %2566 = vmatmul.bf16.gmra.mxu3 %v2347_v37  ;;  %v2246_v17 = vadd.f32 %v2245_v57, %v4367_v23 }
 0x50b   : > { %v2296_v61 = vpop.f32.mrf.mxu1 }
 0x50c   : > { %v2326_v39 = vmax.f32 %v2194_v51, 0.0  ;;  %v2295_v28 = vadd.f32 %v2294_v19, %v2246_v17 }
 0x50e   : > { %v2346_v16 = vpack.c.bf16 %v2326_v39, %v2324_v10  ;;  %v2329_v14 = vmax.f32 %v2295_v28, 0.0 }
 0x50f   : > { %v2147_v7 = vpop.f32.mrf.mxu2 }
 0x510   : > { %2517 = vmatmul.bf16.gmra.mxu2 %v2346_v16  ;;  %v2148_v44 = vadd.f32 %v2147_v7, %v4362_v29 }
 0x511   : > { %v2198_v25 = vpop.f32.mrf.mxu3  ;;  %v2247_v11 = vpop.f32.mrf.mxu0 }
 0x512   : > { %v2248_v15 = vadd.f32 %v2247_v11, %v4367_v23  ;;  %v2197_v56 = vadd.f32 %v2196_v34, %v2148_v44 }
 0x513   : > { %v2299_v50 = vpop.f32.mrf.mxu1 }
 0x514   : > { %v2297_v20 = vadd.f32 %v2296_v61, %v2248_v15  ;;  %v2328_v45 = vmax.f32 %v2197_v56, 0.0 }
 0x516   : > { %v2331_v54 = vmax.f32 %v2297_v20, 0.0 }
 0x517   : > { %v2149_v1 = vpop.f32.mrf.mxu2 }
 0x518   : > { %v2150_v5 = vadd.f32 %v2149_v1, %v4362_v29  ;;  %v2349_v63 = vpack.c.bf16 %v2331_v54, %v2329_v14 }
 0x519   : > { %v2201_v55 = vpop.f32.mrf.mxu3  ;;  %v2250_v52 = vpop.f32.mrf.mxu0 }
 0x51a   : > { %v2199_v13 = vadd.f32 %v2198_v25, %v2150_v5  ;;  %2571 = vmatmul.bf16.gmra.mxu3 %v2349_v63  ;;  %v2251_v21 = vadd.f32 %v2250_v52, %v4367_v23 }
 0x51b   : > { %v2301_v38 = vpop.f32.mrf.mxu1 }
 0x51c   : > { %v2330_v32 = vmax.f32 %v2199_v13, 0.0  ;;  %v2300_v59 = vadd.f32 %v2299_v50, %v2251_v21 }
 0x51e   : > { %v2348_v41 = vpack.c.bf16 %v2330_v32, %v2328_v45  ;;  %v2333_v47 = vmax.f32 %v2300_v59, 0.0 }
 0x51f   : > { %v2152_v9 = vpop.f32.mrf.mxu2 }
 0x520   : > { %2522 = vmatmul.bf16.gmra.mxu2 %v2348_v41  ;;  %v2153_v58 = vadd.f32 %v2152_v9, %v4362_v29 }
 0x521   : > { %v2203_v24 = vpop.f32.mrf.mxu3  ;;  %v2252_v31 = vpop.f32.mrf.mxu0 }
 0x522   : > { %v2253_v53 = vadd.f32 %v2252_v31, %v4367_v23  ;;  %v2202_v42 = vadd.f32 %v2201_v55, %v2153_v58  ;;  %v4518_v23 = vld [vmem:[%s4568_s6] ss:$0 sm:$0xff] }
 0x524   : > { %v2302_v0 = vadd.f32 %v2301_v38, %v2253_v53  ;;  %v2332_v40 = vmax.f32 %v2202_v42, 0.0 }
 0x526   : > { %v2335_v49 = vmax.f32 %v2302_v0, 0.0 }
 0x527   : > { %v2154_v48 = vpop.f32.mrf.mxu2 }
 0x528   : > { %v2155_v2 = vadd.f32 %v2154_v48, %v4362_v29  ;;  %v2351_v46 = vpack.c.bf16 %v2335_v49, %v2333_v47 }
 0x529   : > { %v2542_v43 = vpop.f32.mrf.mxu3 }
 0x52a   : > { %v2204_v30 = vadd.f32 %v2203_v24, %v2155_v2  ;;  %2576 = vmatmul.bf16.gmra.mxu3 %v2351_v46 }
 0x52c   : > { %v2334_v18 = vmax.f32 %v2204_v30, 0.0 }
 0x52e   : > { %v2350_v6 = vpack.c.bf16 %v2334_v18, %v2332_v40 }
 0x52f   : > { %v2493_v33 = vpop.f32.mrf.mxu2 }
 0x530   : > { %v2494_v62 = vadd.f32 %v4518_v23, %v2493_v33  ;;  %2527 = vmatmul.bf16.gmra.mxu2 %v2350_v6 }
 0x531   : > { %v2544_v8 = vpop.f32.mrf.mxu3 }
 0x532   : > { %v2543_v4 = vadd.f32 %v2542_v43, %v2494_v62 }
 0x534   : > { %v2582_v29 = vmax.f32 %v2543_v4, 0.0 }
 0x536   : > { %2598 = vst [vmem:[%s4526_s29] sm:$0xff] %v2582_v29 }
 0x537   : > { %v2495_v60 = vpop.f32.mrf.mxu2 }
 0x538   : > { %v2496_v12 = vadd.f32 %v4518_v23, %v2495_v60 }
 0x539   : > { %v2547_v36 = vpop.f32.mrf.mxu3 }
 0x53a   : > { %v2545_v19 = vadd.f32 %v2544_v8, %v2496_v12 }
 0x53c   : > { %v2583_v26 = vmax.f32 %v2545_v19, 0.0 }
 0x53e   : > { %2599 = vst [vmem:[%s4526_s29 + $0x8] sm:$0xff] %v2583_v26 }
 0x53f   : > { %v2498_v22 = vpop.f32.mrf.mxu2 }
 0x540   : > { %v2499_v27 = vadd.f32 %v4518_v23, %v2498_v22 }
 0x541   : > { %v2549_v35 = vpop.f32.mrf.mxu3 }
 0x542   : > { %v2548_v3 = vadd.f32 %v2547_v36, %v2499_v27 }
 0x544   : > { %v2584_v37 = vmax.f32 %v2548_v3, 0.0 }
 0x546   : > { %2600 = vst [vmem:[%s4526_s29 + $0x10] sm:$0xff] %v2584_v37 }
 0x547   : > { %v2500_v34 = vpop.f32.mrf.mxu2 }
 0x548   : > { %v2501_v57 = vadd.f32 %v4518_v23, %v2500_v34 }
 0x549   : > { %v2552_v10 = vpop.f32.mrf.mxu3 }
 0x54a   : > { %v2550_v51 = vadd.f32 %v2549_v35, %v2501_v57 }
 0x54c   : > { %v2585_v39 = vmax.f32 %v2550_v51, 0.0 }
 0x54e   : > { %2601 = vst [vmem:[%s4526_s29 + $0x18] sm:$0xff] %v2585_v39 }
 0x54f   : > { %v2503_v17 = vpop.f32.mrf.mxu2 }
 0x550   : > { %v2504_v61 = vadd.f32 %v4518_v23, %v2503_v17 }
 0x551   : > { %v2554_v25 = vpop.f32.mrf.mxu3 }
 0x552   : > { %v2553_v16 = vadd.f32 %v2552_v10, %v2504_v61 }
 0x554   : > { %v2586_v7 = vmax.f32 %v2553_v16, 0.0 }
 0x556   : > { %2602 = vst [vmem:[%s4526_s29 + $0x20] sm:$0xff] %v2586_v7 }
 0x557   : > { %v2505_v11 = vpop.f32.mrf.mxu2 }
 0x558   : > { %v2506_v28 = vadd.f32 %v4518_v23, %v2505_v11 }
 0x559   : > { %v2557_v20 = vpop.f32.mrf.mxu3 }
 0x55a   : > { %v2555_v15 = vadd.f32 %v2554_v25, %v2506_v28 }
 0x55c   : > { %v2587_v44 = vmax.f32 %v2555_v15, 0.0 }
 0x55e   : > { %2603 = vst [vmem:[%s4526_s29 + $0x28] sm:$0xff] %v2587_v44 }
 0x55f   : > { %v2508_v14 = vpop.f32.mrf.mxu2 }
 0x560   : > { %v2509_v54 = vadd.f32 %v4518_v23, %v2508_v14 }
 0x561   : > { %v2559_v63 = vpop.f32.mrf.mxu3 }
 0x562   : > { %v2558_v1 = vadd.f32 %v2557_v20, %v2509_v54 }
 0x564   : > { %v2588_v56 = vmax.f32 %v2558_v1, 0.0 }
 0x566   : > { %2604 = vst [vmem:[%s4526_s29 + $0x30] sm:$0xff] %v2588_v56 }
 0x567   : > { %v2510_v50 = vpop.f32.mrf.mxu2 }
 0x568   : > { %v2511_v5 = vadd.f32 %v4518_v23, %v2510_v50 }
 0x56a   : > { %v2560_v55 = vadd.f32 %v2559_v63, %v2511_v5 }
 0x56c   : > { %v2589_v52 = vmax.f32 %v2560_v55, 0.0 }
 0x56e   : > { %2605 = vst [vmem:[%s4526_s29 + $0x38] sm:$0xff] %v2589_v52 }
 0x57d   : > { %v2562_v13 = vpop.f32.mrf.mxu3 }
 0x583   : > { %v2513_v45 = vpop.f32.mrf.mxu2 }
 0x584   : > { %v2514_v32 = vadd.f32 %v4518_v23, %v2513_v45 }
 0x585   : > { %v2564_v21 = vpop.f32.mrf.mxu3 }
 0x586   : > { %v2563_v41 = vadd.f32 %v2562_v13, %v2514_v32 }
 0x588   : > { %v2590_v9 = vmax.f32 %v2563_v41, 0.0 }
 0x58a   : > { %2606 = vst [vmem:[%s4526_s29 + $0x40] sm:$0xff] %v2590_v9 }
 0x58b   : > { %v2515_v24 = vpop.f32.mrf.mxu2 }
 0x58c   : > { %v2516_v31 = vadd.f32 %v4518_v23, %v2515_v24 }
 0x58d   : > { %v2567_v59 = vpop.f32.mrf.mxu3 }
 0x58e   : > { %v2565_v53 = vadd.f32 %v2564_v21, %v2516_v31 }
 0x590   : > { %v2591_v38 = vmax.f32 %v2565_v53, 0.0 }
 0x592   : > { %2607 = vst [vmem:[%s4526_s29 + $0x48] sm:$0xff] %v2591_v38 }
 0x593   : > { %v2518_v58 = vpop.f32.mrf.mxu2 }
 0x594   : > { %v2519_v0 = vadd.f32 %v4518_v23, %v2518_v58 }
 0x595   : > { %v2569_v47 = vpop.f32.mrf.mxu3 }
 0x596   : > { %v2568_v49 = vadd.f32 %v2567_v59, %v2519_v0 }
 0x598   : > { %v2592_v48 = vmax.f32 %v2568_v49, 0.0 }
 0x59a   : > { %2608 = vst [vmem:[%s4526_s29 + $0x50] sm:$0xff] %v2592_v48 }
 0x59b   : > { %v2520_v42 = vpop.f32.mrf.mxu2 }
 0x59c   : > { %v2521_v2 = vadd.f32 %v4518_v23, %v2520_v42 }
 0x59d   : > { %v2572_v43 = vpop.f32.mrf.mxu3 }
 0x59e   : > { %v2570_v46 = vadd.f32 %v2569_v47, %v2521_v2 }
 0x5a0   : > { %v2593_v30 = vmax.f32 %v2570_v46, 0.0 }
 0x5a2   : > { %2609 = vst [vmem:[%s4526_s29 + $0x58] sm:$0xff] %v2593_v30 }
 0x5a3   : > { %v2523_v40 = vpop.f32.mrf.mxu2 }
 0x5a4   : > { %v2524_v18 = vadd.f32 %v4518_v23, %v2523_v40 }
 0x5a5   : > { %v2574_v62 = vpop.f32.mrf.mxu3 }
 0x5a6   : > { %v2573_v6 = vadd.f32 %v2572_v43, %v2524_v18 }
 0x5a8   : > { %v2594_v33 = vmax.f32 %v2573_v6, 0.0 }
 0x5aa   : > { %2610 = vst [vmem:[%s4526_s29 + $0x60] sm:$0xff] %v2594_v33 }
 0x5ab   : > { %v2525_v8 = vpop.f32.mrf.mxu2 }
 0x5ac   : > { %v2526_v4 = vadd.f32 %v4518_v23, %v2525_v8 }
 0x5ad   : > { %v2577_v12 = vpop.f32.mrf.mxu3 }
 0x5ae   : > { %v2575_v29 = vadd.f32 %v2574_v62, %v2526_v4 }
 0x5b0   : > { %v2595_v60 = vmax.f32 %v2575_v29, 0.0 }
 0x5b2   : > { %2611 = vst [vmem:[%s4526_s29 + $0x68] sm:$0xff] %v2595_v60 }
 0x5b3   : > { %v2528_v36 = vpop.f32.mrf.mxu2 }
 0x5b4   : > { %v2529_v19 = vadd.f32 %v4518_v23, %v2528_v36 }
 0x5b5   : > { %v2579_v3 = vpop.f32.mrf.mxu3 }
 0x5b6   : > { %v2578_v26 = vadd.f32 %v2577_v12, %v2529_v19 }
 0x5b8   : > { %v2596_v22 = vmax.f32 %v2578_v26, 0.0 }
 0x5ba   : > { %2612 = vst [vmem:[%s4526_s29 + $0x70] sm:$0xff] %v2596_v22 }
 0x5bb   : > { %v2530_v27 = vpop.f32.mrf.mxu2 }
 0x5bc   : > { %v2531_v35 = vadd.f32 %v4518_v23, %v2530_v27 }
 0x5be   : > { %v2580_v37 = vadd.f32 %v2579_v3, %v2531_v35 }
 0x5c0   : > { %v2597_v34 = vmax.f32 %v2580_v37, 0.0 }
 0x5c2   : > { %2613 = vst [vmem:[%s4526_s29 + $0x78] sm:$0xff] %v2597_v34 }
 0x5c3 PF: > { %s17_s24 = sadd.s32 1, %s3082_s24  }
 0x5c4   : > { %p14_p4 = scmp.ge.s32.totalorder %s17_s24, 6  }
 0x5c6   :  { %16 = sbr.rel (!%p14_p4) target bundleno = 1 (0x1), region = 78 }

</bundles_post_ra>
